<compile_context>
chip_gen: v7x
topology: tpu7x:2x2x1
jax: 0.10.0
libtpu: 0.0.40
codegen_flags: <defaults>
</compile_context>

<pallas_src>
import jax
import jax.numpy as jnp
from jax.experimental import pallas as pl
from jax.experimental.pallas import tpu as pltpu

LANE = 128
_VMEM_LIMIT = 32 * 1024 * 1024  # safe scoped-VMEM cap on v5e/v6e/v7x


def _round_up(x, m):
    return (x + m - 1) // m * m


def _pick_tile_m(M, max_tile=512):
    """M-tile: multiple of 8, dividing M when possible (no pad/slice round-trip),
    preferring an even grid count (v7x shards the grid across 2 TensorCores)."""
    if M % 8 == 0:
        cands = [d for d in range(8, min(M, max_tile) + 1, 8) if M % d == 0]
        if M <= max_tile:
            cands.append(M)
        even = [d for d in cands if (M // d) % 2 == 0]
        return (max(even) if even else max(cands)), False
    return min(_round_up(M, 8), max_tile), True


def _pick_leading_tile(L, max_tile=64):
    cands = [d for d in range(1, min(L, max_tile) + 1) if L % d == 0]
    even = [d for d in cands if (L // d) % 2 == 0]
    return max(even) if even else max(cands)


# ----------------------------------------------------------------------------
# Matmul kernels (bias + ReLU epilogue; optional fused 2x2 max-pool)
# ----------------------------------------------------------------------------
def _matmul_bias_relu_kernel(a_ref, w_ref, b_ref, o_ref):
    acc = jnp.dot(a_ref[...], w_ref[...], preferred_element_type=jnp.float32)
    o_ref[...] = jnp.maximum(acc + b_ref[...], 0.0).astype(o_ref.dtype)


def _matmul_pool4_bias_relu_kernel(a_ref, w_ref, b_ref, o_ref):
    # The accumulator lanes pack the four 2x2-pool window pixels
    # [v0u0|v0u1|v1u0|v1u1]; max over the aligned 128-lane groups (pure VPU,
    # no sublane gymnastics), then bias + ReLU (max commutes with both).
    acc = jnp.dot(a_ref[...], w_ref[...], preferred_element_type=jnp.float32)
    c = o_ref.shape[-1]
    m = jnp.maximum(jnp.maximum(acc[:, 0 * c:1 * c], acc[:, 1 * c:2 * c]),
                    jnp.maximum(acc[:, 2 * c:3 * c], acc[:, 3 * c:4 * c]))
    o_ref[...] = jnp.maximum(m + b_ref[...], 0.0).astype(o_ref.dtype)


def matmul_bias_relu(a, w, b, *, pool4=False, out_dtype=jnp.bfloat16,
                     max_tile=512):
    """relu((M,K)@(K,N) + bias).  If pool4, N == 4*C and the four C-lane output
    groups are max-reduced (fused 2x2 max-pool) before the epilogue."""
    M, K = a.shape
    K2, N = w.shape
    C = N // 4 if pool4 else N
    assert K == K2 and b.shape == (1, C) and C % LANE == 0 and K % LANE == 0

    tm, need_pad = _pick_tile_m(M, max_tile)
    grid_m = pl.cdiv(M, tm)
    Mp = grid_m * tm
    if need_pad:
        # Pad rows produce relu(bias) garbage; they are sliced off below and
        # must never be consumed by a later fusion.
        a = jnp.pad(a, ((0, Mp - M), (0, 0)))

    kernel = _matmul_pool4_bias_relu_kernel if pool4 else _matmul_bias_relu_kernel
    cost = pl.CostEstimate(
        flops=2 * Mp * K * N,
        transcendentals=0,
        bytes_accessed=(Mp * K * a.dtype.itemsize + K * N * w.dtype.itemsize
                        + C * 4 + Mp * C * jnp.dtype(out_dtype).itemsize))

    out = pl.pallas_call(
        kernel,
        out_shape=jax.ShapeDtypeStruct((Mp, C), out_dtype),
        grid=(grid_m,),
        in_specs=[
            pl.BlockSpec((tm, K), lambda i: (i, 0)),            # A: pipelined over M
            pl.BlockSpec((K, N), lambda i: (0, 0),              # W: resident, 1 buffer
                         pipeline_mode=pl.Buffered(1)),
            pl.BlockSpec((1, C), lambda i: (0, 0),              # bias: resident
                         pipeline_mode=pl.Buffered(1)),
        ],
        out_specs=pl.BlockSpec((tm, C), lambda i: (i, 0)),
        compiler_params=pltpu.CompilerParams(
            dimension_semantics=("parallel",),
            vmem_limit_bytes=_VMEM_LIMIT,
        ),
        cost_estimate=cost,
    )(a, w, b)
    return out[:M] if Mp != M else out


# ----------------------------------------------------------------------------
# 2x2 / stride-2 max pool (used only after conv2) — transpose-free, lane-dense
# ----------------------------------------------------------------------------
def _maxpool_kernel(x_ref, o_ref):
    # x_ref: (lt, 2, OW, 2*C) — axis 1 is the vertical window offset, the lane
    # axis packs [even-column | odd-column] channel blocks.
    m = jnp.maximum(x_ref[:, 0, :, :], x_ref[:, 1, :, :])
    c = o_ref.shape[-1]
    o_ref[...] = jnp.maximum(m[..., :c], m[..., c:]).astype(o_ref.dtype)


def maxpool2x2(y_rows, B, H, W, C):
    """y_rows: (B*H*W, C) rows in (b, h, w) order; H, W even; C % 128 == 0.
    Returns (B*H//2, W//2, C)."""
    OH, OW = H // 2, W // 2
    L = B * OH
    x = y_rows.reshape(L, 2, OW, 2 * C)          # contiguous view, no copy
    lt = _pick_leading_tile(L)
    nbytes = y_rows.size * y_rows.dtype.itemsize
    return pl.pallas_call(
        _maxpool_kernel,
        out_shape=jax.ShapeDtypeStruct((L, OW, C), y_rows.dtype),
        grid=(L // lt,),
        in_specs=[pl.BlockSpec((lt, 2, OW, 2 * C), lambda i: (i, 0, 0, 0))],
        out_specs=pl.BlockSpec((lt, OW, C), lambda i: (i, 0, 0)),
        compiler_params=pltpu.CompilerParams(
            dimension_semantics=("parallel",),
            vmem_limit_bytes=_VMEM_LIMIT,
        ),
        cost_estimate=pl.CostEstimate(flops=3 * L * OW * C, transcendentals=0,
                                      bytes_accessed=nbytes + nbytes // 4),
    )(x)


# ----------------------------------------------------------------------------
# im2col glue (plain JAX) — valid conv, stride 1, tap-major / channel-minor
# ----------------------------------------------------------------------------
def _im2col(x, k):
    B, H, W, C = x.shape
    OH, OW = H - k + 1, W - k + 1
    patches = [x[:, i:i + OH, j:j + OW, :] for i in range(k) for j in range(k)]
    cols = jnp.stack(patches, axis=3)                       # (B, OH, OW, k*k, C)
    return cols.reshape(B * OH * OW, k * k * C), OH, OW


def _im2col_pool4(x, k, kpad):
    """im2col for conv(kxk, valid, stride 1) followed by 2x2/2 max-pool: one row
    per *pooled* pixel holding the four window patches [v0u0|v0u1|v1u0|v1u1],
    each zero-padded to kpad columns (lane-aligned)."""
    B, H, W, Cin = x.shape
    OH, OW = H - k + 1, W - k + 1
    PH, PW = OH // 2, OW // 2
    Kp = k * k * Cin
    patches = [x[:, i:i + OH, j:j + OW, :] for i in range(k) for j in range(k)]
    cols = jnp.stack(patches, axis=3).reshape(B, OH, OW, Kp)
    if kpad > Kp:
        cols = jnp.pad(cols, ((0, 0), (0, 0), (0, 0), (0, kpad - Kp)))
    cols = cols.reshape(B, PH, 2, PW, 2, kpad)
    cols = jnp.transpose(cols, (0, 1, 3, 2, 4, 5))          # (B, PH, PW, v, u, K)
    return cols.reshape(B * PH * PW, 4 * kpad), PH, PW


# ----------------------------------------------------------------------------
# Parameters: PyTorch-style init, pre-folded into kernel-ready bf16 layouts
# ----------------------------------------------------------------------------
def _fold_params(conv1_w, conv1_b, conv2_w, conv2_b, fc1_w, fc1_b):
    wdt = jnp.bfloat16

    # conv1: (75, 20) -> pad (128, 128) -> 4-way block-diagonal (512, 512) so the
    # fused kernel's four 128-lane output groups are the four pool-window pixels.
    oc1, ic1, kh1, kw1 = conv1_w.shape
    w1 = jnp.transpose(conv1_w, (2, 3, 1, 0)).reshape(kh1 * kw1 * ic1, oc1)
    w1 = jnp.pad(w1, ((0, LANE - kh1 * kw1 * ic1), (0, LANE - oc1)))
    z = jnp.zeros_like(w1)
    w1p = jnp.block([[w1, z, z, z], [z, w1, z, z], [z, z, w1, z], [z, z, z, w1]])

    # conv2: consumes the full 128-padded conv1 channels (pad rows are zero),
    # tap-major / channel-minor -> (25*128, 128).
    oc2, ic2, kh2, kw2 = conv2_w.shape
    w2 = jnp.transpose(conv2_w, (2, 3, 1, 0))               # (5, 5, 20, 50)
    w2 = jnp.pad(w2, ((0, 0), (0, 0), (0, LANE - ic2), (0, LANE - oc2)))
    w2 = w2.reshape(kh2 * kw2 * LANE, LANE)

    # fc1: PyTorch flattens NCHW (c, h, w); permute rows to our NHWC-padded
    # (h, w, c_pad) flatten order so no activation transpose is needed.
    fcw = fc1_w.reshape(500, 50, 5, 5)
    fcw = jnp.transpose(fcw, (2, 3, 1, 0))                  # (5, 5, 50, 500)
    fcw = jnp.pad(fcw, ((0, 0), (0, 0), (0, LANE - 50), (0, 512 - 500)))
    fcw = fcw.reshape(5 * 5 * LANE, 512)

    def pad_bias(b, n):
        return jnp.pad(b, (0, n - b.shape[0])).reshape(1, n).astype(jnp.float32)

    return {
        "conv1_w": w1p.astype(wdt), "conv1_b": pad_bias(conv1_b, LANE),
        "conv2_w": w2.astype(wdt), "conv2_b": pad_bias(conv2_b, LANE),
        "fc1_w": fcw.astype(wdt), "fc1_b": pad_bias(fc1_b, 512),
    }


def init_params(key):
    ks = jax.random.split(key, 6)

    def uni(k, shape, fan_in):
        bound = 1.0 / jnp.sqrt(jnp.float32(fan_in))
        return jax.random.uniform(k, shape, jnp.float32, -bound, bound)

    return _fold_params(
        uni(ks[0], (20, 3, 5, 5), 3 * 5 * 5),
        uni(ks[1], (20,), 3 * 5 * 5),
        uni(ks[2], (50, 20, 5, 5), 20 * 5 * 5),
        uni(ks[3], (50,), 20 * 5 * 5),
        uni(ks[4], (500, 50 * 5 * 5), 50 * 5 * 5),
        uni(ks[5], (500,), 50 * 5 * 5),
    )


# ----------------------------------------------------------------------------
# Forward pass (matches PyTorch LeNet.forward)
# ----------------------------------------------------------------------------
def lenet_forward(x_nchw, params):
    # Grayscale branch: replicate to 3 channels, nearest-resize to 32x32.
    if x_nchw.shape[1] == 1:
        x_nchw = jnp.concatenate([x_nchw, x_nchw, x_nchw], axis=1)
        x_nchw = jax.image.resize(
            x_nchw, (x_nchw.shape[0], 3, 32, 32), method="nearest")

    B = x_nchw.shape[0]
    x = jnp.transpose(x_nchw, (0, 2, 3, 1)).astype(jnp.bfloat16)   # (B,32,32,3)

    # conv1 + ReLU + 2x2 max-pool, fused into a single matmul kernel.
    cols1, PH1, PW1 = _im2col_pool4(x, 5, LANE)                    # (B*196, 512)
    p1 = matmul_bias_relu(cols1, params["conv1_w"], params["conv1_b"],
                          pool4=True, out_dtype=jnp.bfloat16)
    p1 = p1.reshape(B, PH1, PW1, LANE)                             # (B,14,14,128)

    # conv2 + ReLU over the full 128-padded channels (lane-aligned K, no :20
    # relayout).  TODO(synk): fusing conv2's pool like conv1 would 4x the
    # (3200,128) weight to ~13 MB, which loses at small batch — left unfused.
    cols2, OH2, OW2 = _im2col(p1, 5)                               # (B*100, 3200)
    y2 = matmul_bias_relu(cols2, params["conv2_w"], params["conv2_b"],
                          out_dtype=jnp.bfloat16)
    p2 = maxpool2x2(y2, B, OH2, OW2, LANE)                         # (B*5, 5, 128)

    # fc1 + ReLU: weights pre-permuted to the NHWC-padded flatten order, so a
    # free reshape replaces PyTorch's NCHW view(-1, 1250).
    feats = p2.reshape(B, 5 * 5 * LANE)                            # (B, 3200)
    out = matmul_bias_relu(feats, params["fc1_w"], params["fc1_b"],
                           out_dtype=jnp.float32)                  # (B, 512)
    return out[:, :500]                                            # slice at the very end


if __name__ == "__main__":
    key = jax.random.PRNGKey(0)
    pkey, xkey = jax.random.split(key)
    params = init_params(pkey)

    # fc1 = 50*5*5 implies 3x32x32 spatial input.
    x = jax.random.normal(xkey, (2, 3, 32, 32), jnp.float32)

    fwd = jax.jit(lenet_forward)
    out = fwd(x, params)
    jax.block_until_ready(out)
    assert out.shape == (2, 500), out.shape
    assert out.dtype == jnp.float32
    assert bool(jnp.all(out >= 0.0))  # ReLU output
    print("KERNEL_OK")
</pallas_src>

<mosaic_0001>
module attributes {stable_mosaic.version = 11 : i64} {
  func.func @_matmul_pool4_bias_relu_kernel(%arg0: i32, %arg1: memref<392x512xbf16, #tpu.memory_space<vmem>>, %arg2: memref<512x512xbf16, #tpu.memory_space<vmem>>, %arg3: memref<1x128xf32, #tpu.memory_space<vmem>>, %arg4: memref<392x128xbf16, #tpu.memory_space<vmem>>) attributes {dimension_semantics = [#tpu.dimension_semantics<parallel>], iteration_bounds = array<i64: 1>, scalar_prefetch = 0 : i64, scratch_operands = 0 : i64, tpu.core_type = #tpu.core_type<tc>, window_params = [{transform_indices = @transform_0, window_bounds = array<i64: 392, 512>}, {pipeline_mode = #tpu.pipeline_mode<synchronous>, transform_indices = @transform_1, window_bounds = array<i64: 512, 512>}, {pipeline_mode = #tpu.pipeline_mode<synchronous>, transform_indices = @transform_2, window_bounds = array<i64: 1, 128>}, {transform_indices = @transform_3, window_bounds = array<i64: 392, 128>}]} {
    %c0 = arith.constant 0 : index
    %c0_0 = arith.constant 0 : index
    %0 = vector.load %arg1[%c0, %c0_0] : memref<392x512xbf16, #tpu.memory_space<vmem>>, vector<392x512xbf16>
    %c0_1 = arith.constant 0 : index
    %c0_2 = arith.constant 0 : index
    %1 = vector.load %arg2[%c0_1, %c0_2] : memref<512x512xbf16, #tpu.memory_space<vmem>>, vector<512x512xbf16>
    %cst = arith.constant dense<0.000000e+00> : vector<392x512xf32>
    %2 = tpu.matmul %0, %1, %cst {dimension_numbers = #tpu.dot_dimension_numbers<[1], [0], [0], [1], [0, 0, 1, 1], [], []>} : vector<392x512xbf16>, vector<512x512xbf16>, vector<392x512xf32> -> vector<392x512xf32>
    %3 = vector.extract_strided_slice %2 {offsets = [0, 0], sizes = [392, 128], strides = [1, 1]} : vector<392x512xf32> to vector<392x128xf32>
    %4 = vector.extract_strided_slice %2 {offsets = [0, 128], sizes = [392, 128], strides = [1, 1]} : vector<392x512xf32> to vector<392x128xf32>
    %5 = arith.maximumf %3, %4 : vector<392x128xf32>
    %6 = vector.extract_strided_slice %2 {offsets = [0, 256], sizes = [392, 128], strides = [1, 1]} : vector<392x512xf32> to vector<392x128xf32>
    %7 = vector.extract_strided_slice %2 {offsets = [0, 384], sizes = [392, 128], strides = [1, 1]} : vector<392x512xf32> to vector<392x128xf32>
    %8 = arith.maximumf %6, %7 : vector<392x128xf32>
    %9 = arith.maximumf %5, %8 : vector<392x128xf32>
    %c0_3 = arith.constant 0 : index
    %c0_4 = arith.constant 0 : index
    %10 = vector.load %arg3[%c0_3, %c0_4] : memref<1x128xf32, #tpu.memory_space<vmem>>, vector<1x128xf32>
    %11 = vector.broadcast %10 : vector<1x128xf32> to vector<392x128xf32>
    %12 = arith.addf %9, %11 : vector<392x128xf32>
    %cst_5 = arith.constant 0.000000e+00 : f32
    %13 = vector.broadcast %cst_5 : f32 to vector<392x128xf32>
    %14 = arith.maximumf %12, %13 : vector<392x128xf32>
    %15 = arith.truncf %14 : vector<392x128xf32> to vector<392x128xbf16>
    %c0_6 = arith.constant 0 : index
    %c0_7 = arith.constant 0 : index
    %16 = vector.load %arg4[%c0_6, %c0_7] : memref<392x128xbf16, #tpu.memory_space<vmem>>, vector<392x128xbf16>
    tpu.vector_store %arg4[%c0_6, %c0_7], %15 {strides = array<i32>} : memref<392x128xbf16, #tpu.memory_space<vmem>>, vector<392x128xbf16>,
    return
  }
  func.func @transform_0(%arg0: i32) -> (i32, i32) {
    %c0_i32 = arith.constant 0 : i32
    %c0_i32_0 = arith.constant 0 : i32
    return %arg0, %c0_i32 : i32, i32
  }
  func.func @transform_1(%arg0: i32) -> (i32, i32) {
    %c0_i32 = arith.constant 0 : i32
    %c0_i32_0 = arith.constant 0 : i32
    %c0_i32_1 = arith.constant 0 : i32
    return %c0_i32, %c0_i32_0 : i32, i32
  }
  func.func @transform_2(%arg0: i32) -> (i32, i32) {
    %c0_i32 = arith.constant 0 : i32
    %c0_i32_0 = arith.constant 0 : i32
    %c0_i32_1 = arith.constant 0 : i32
    return %c0_i32, %c0_i32_0 : i32, i32
  }
  func.func @transform_3(%arg0: i32) -> (i32, i32) {
    %c0_i32 = arith.constant 0 : i32
    %c0_i32_0 = arith.constant 0 : i32
    return %arg0, %c0_i32 : i32, i32
  }
}

module attributes {stable_mosaic.version = 11 : i64} {
  func.func @_matmul_bias_relu_kernel(%arg0: i32, %arg1: memref<200x3200xbf16, #tpu.memory_space<vmem>>, %arg2: memref<3200x128xbf16, #tpu.memory_space<vmem>>, %arg3: memref<1x128xf32, #tpu.memory_space<vmem>>, %arg4: memref<200x128xbf16, #tpu.memory_space<vmem>>) attributes {dimension_semantics = [#tpu.dimension_semantics<parallel>], iteration_bounds = array<i64: 1>, scalar_prefetch = 0 : i64, scratch_operands = 0 : i64, tpu.core_type = #tpu.core_type<tc>, window_params = [{transform_indices = @transform_0, window_bounds = array<i64: 200, 3200>}, {pipeline_mode = #tpu.pipeline_mode<synchronous>, transform_indices = @transform_1, window_bounds = array<i64: 3200, 128>}, {pipeline_mode = #tpu.pipeline_mode<synchronous>, transform_indices = @transform_2, window_bounds = array<i64: 1, 128>}, {transform_indices = @transform_3, window_bounds = array<i64: 200, 128>}]} {
    %c0 = arith.constant 0 : index
    %c0_0 = arith.constant 0 : index
    %0 = vector.load %arg1[%c0, %c0_0] : memref<200x3200xbf16, #tpu.memory_space<vmem>>, vector<200x3200xbf16>
    %c0_1 = arith.constant 0 : index
    %c0_2 = arith.constant 0 : index
    %1 = vector.load %arg2[%c0_1, %c0_2] : memref<3200x128xbf16, #tpu.memory_space<vmem>>, vector<3200x128xbf16>
    %cst = arith.constant dense<0.000000e+00> : vector<200x128xf32>
    %2 = tpu.matmul %0, %1, %cst {dimension_numbers = #tpu.dot_dimension_numbers<[1], [0], [0], [1], [0, 0, 1, 1], [], []>} : vector<200x3200xbf16>, vector<3200x128xbf16>, vector<200x128xf32> -> vector<200x128xf32>
    %c0_3 = arith.constant 0 : index
    %c0_4 = arith.constant 0 : index
    %3 = vector.load %arg3[%c0_3, %c0_4] : memref<1x128xf32, #tpu.memory_space<vmem>>, vector<1x128xf32>
    %4 = vector.broadcast %3 : vector<1x128xf32> to vector<200x128xf32>
    %5 = arith.addf %2, %4 : vector<200x128xf32>
    %cst_5 = arith.constant 0.000000e+00 : f32
    %6 = vector.broadcast %cst_5 : f32 to vector<200x128xf32>
    %7 = arith.maximumf %5, %6 : vector<200x128xf32>
    %8 = arith.truncf %7 : vector<200x128xf32> to vector<200x128xbf16>
    %c0_6 = arith.constant 0 : index
    %c0_7 = arith.constant 0 : index
    %9 = vector.load %arg4[%c0_6, %c0_7] : memref<200x128xbf16, #tpu.memory_space<vmem>>, vector<200x128xbf16>
    tpu.vector_store %arg4[%c0_6, %c0_7], %8 {strides = array<i32>} : memref<200x128xbf16, #tpu.memory_space<vmem>>, vector<200x128xbf16>,
    return
  }
  func.func @transform_0(%arg0: i32) -> (i32, i32) {
    %c0_i32 = arith.constant 0 : i32
    %c0_i32_0 = arith.constant 0 : i32
    return %arg0, %c0_i32 : i32, i32
  }
  func.func @transform_1(%arg0: i32) -> (i32, i32) {
    %c0_i32 = arith.constant 0 : i32
    %c0_i32_0 = arith.constant 0 : i32
    %c0_i32_1 = arith.constant 0 : i32
    return %c0_i32, %c0_i32_0 : i32, i32
  }
  func.func @transform_2(%arg0: i32) -> (i32, i32) {
    %c0_i32 = arith.constant 0 : i32
    %c0_i32_0 = arith.constant 0 : i32
    %c0_i32_1 = arith.constant 0 : i32
    return %c0_i32, %c0_i32_0 : i32, i32
  }
  func.func @transform_3(%arg0: i32) -> (i32, i32) {
    %c0_i32 = arith.constant 0 : i32
    %c0_i32_0 = arith.constant 0 : i32
    return %arg0, %c0_i32 : i32, i32
  }
}

module attributes {stable_mosaic.version = 11 : i64} {
  func.func @_maxpool_kernel(%arg0: i32, %arg1: memref<5x2x5x256xbf16, #tpu.memory_space<vmem>>, %arg2: memref<5x5x128xbf16, #tpu.memory_space<vmem>>) attributes {dimension_semantics = [#tpu.dimension_semantics<parallel>], iteration_bounds = array<i64: 2>, scalar_prefetch = 0 : i64, scratch_operands = 0 : i64, tpu.core_type = #tpu.core_type<tc>, window_params = [{transform_indices = @transform_0, window_bounds = array<i64: 5, 2, 5, 256>}, {transform_indices = @transform_1, window_bounds = array<i64: 5, 5, 128>}]} {
    %c0 = arith.constant 0 : index
    %c0_0 = arith.constant 0 : index
    %c0_1 = arith.constant 0 : index
    %c0_2 = arith.constant 0 : index
    %0 = vector.load %arg1[%c0, %c0_0, %c0_1, %c0_2] : memref<5x2x5x256xbf16, #tpu.memory_space<vmem>>, vector<5x1x5x256xbf16>
    %1 = vector.shape_cast %0 : vector<5x1x5x256xbf16> to vector<5x5x256xbf16>
    %c0_3 = arith.constant 0 : index
    %c1 = arith.constant 1 : index
    %c0_4 = arith.constant 0 : index
    %c0_5 = arith.constant 0 : index
    %2 = vector.load %arg1[%c0_3, %c1, %c0_4, %c0_5] : memref<5x2x5x256xbf16, #tpu.memory_space<vmem>>, vector<5x1x5x256xbf16>
    %3 = vector.shape_cast %2 : vector<5x1x5x256xbf16> to vector<5x5x256xbf16>
    %4 = arith.maximumf %1, %3 : vector<5x5x256xbf16>
    %5 = vector.extract_strided_slice %4 {offsets = [0, 0, 0], sizes = [5, 5, 128], strides = [1, 1, 1]} : vector<5x5x256xbf16> to vector<5x5x128xbf16>
    %6 = vector.extract_strided_slice %4 {offsets = [0, 0, 128], sizes = [5, 5, 128], strides = [1, 1, 1]} : vector<5x5x256xbf16> to vector<5x5x128xbf16>
    %7 = arith.maximumf %5, %6 : vector<5x5x128xbf16>
    %c0_6 = arith.constant 0 : index
    %c0_7 = arith.constant 0 : index
    %c0_8 = arith.constant 0 : index
    %8 = vector.load %arg2[%c0_6, %c0_7, %c0_8] : memref<5x5x128xbf16, #tpu.memory_space<vmem>>, vector<5x5x128xbf16>
    tpu.vector_store %arg2[%c0_6, %c0_7, %c0_8], %7 {strides = array<i32>} : memref<5x5x128xbf16, #tpu.memory_space<vmem>>, vector<5x5x128xbf16>,
    return
  }
  func.func @transform_0(%arg0: i32) -> (i32, i32, i32, i32) {
    %c0_i32 = arith.constant 0 : i32
    %c0_i32_0 = arith.constant 0 : i32
    %c0_i32_1 = arith.constant 0 : i32
    %c0_i32_2 = arith.constant 0 : i32
    return %arg0, %c0_i32, %c0_i32_0, %c0_i32_1 : i32, i32, i32, i32
  }
  func.func @transform_1(%arg0: i32) -> (i32, i32, i32) {
    %c0_i32 = arith.constant 0 : i32
    %c0_i32_0 = arith.constant 0 : i32
    %c0_i32_1 = arith.constant 0 : i32
    return %arg0, %c0_i32, %c0_i32_0 : i32, i32, i32
  }
}

module attributes {stable_mosaic.version = 11 : i64} {
  func.func @_matmul_bias_relu_kernel(%arg0: i32, %arg1: memref<8x3200xbf16, #tpu.memory_space<vmem>>, %arg2: memref<3200x512xbf16, #tpu.memory_space<vmem>>, %arg3: memref<1x512xf32, #tpu.memory_space<vmem>>, %arg4: memref<8x512xf32, #tpu.memory_space<vmem>>) attributes {dimension_semantics = [#tpu.dimension_semantics<parallel>], iteration_bounds = array<i64: 1>, scalar_prefetch = 0 : i64, scratch_operands = 0 : i64, tpu.core_type = #tpu.core_type<tc>, window_params = [{transform_indices = @transform_0, window_bounds = array<i64: 8, 3200>}, {pipeline_mode = #tpu.pipeline_mode<synchronous>, transform_indices = @transform_1, window_bounds = array<i64: 3200, 512>}, {pipeline_mode = #tpu.pipeline_mode<synchronous>, transform_indices = @transform_2, window_bounds = array<i64: 1, 512>}, {transform_indices = @transform_3, window_bounds = array<i64: 8, 512>}]} {
    %c0 = arith.constant 0 : index
    %c0_0 = arith.constant 0 : index
    %0 = vector.load %arg1[%c0, %c0_0] : memref<8x3200xbf16, #tpu.memory_space<vmem>>, vector<8x3200xbf16>
    %c0_1 = arith.constant 0 : index
    %c0_2 = arith.constant 0 : index
    %1 = vector.load %arg2[%c0_1, %c0_2] : memref<3200x512xbf16, #tpu.memory_space<vmem>>, vector<3200x512xbf16>
    %cst = arith.constant dense<0.000000e+00> : vector<8x512xf32>
    %2 = tpu.matmul %0, %1, %cst {dimension_numbers = #tpu.dot_dimension_numbers<[1], [0], [0], [1], [0, 0, 1, 1], [], []>} : vector<8x3200xbf16>, vector<3200x512xbf16>, vector<8x512xf32> -> vector<8x512xf32>
    %c0_3 = arith.constant 0 : index
    %c0_4 = arith.constant 0 : index
    %3 = vector.load %arg3[%c0_3, %c0_4] : memref<1x512xf32, #tpu.memory_space<vmem>>, vector<1x512xf32>
    %4 = vector.broadcast %3 : vector<1x512xf32> to vector<8x512xf32>
    %5 = arith.addf %2, %4 : vector<8x512xf32>
    %cst_5 = arith.constant 0.000000e+00 : f32
    %6 = vector.broadcast %cst_5 : f32 to vector<8x512xf32>
    %7 = arith.maximumf %5, %6 : vector<8x512xf32>
    %c0_6 = arith.constant 0 : index
    %c0_7 = arith.constant 0 : index
    %8 = vector.load %arg4[%c0_6, %c0_7] : memref<8x512xf32, #tpu.memory_space<vmem>>, vector<8x512xf32>
    tpu.vector_store %arg4[%c0_6, %c0_7], %7 {strides = array<i32>} : memref<8x512xf32, #tpu.memory_space<vmem>>, vector<8x512xf32>,
    return
  }
  func.func @transform_0(%arg0: i32) -> (i32, i32) {
    %c0_i32 = arith.constant 0 : i32
    %c0_i32_0 = arith.constant 0 : i32
    return %arg0, %c0_i32 : i32, i32
  }
  func.func @transform_1(%arg0: i32) -> (i32, i32) {
    %c0_i32 = arith.constant 0 : i32
    %c0_i32_0 = arith.constant 0 : i32
    %c0_i32_1 = arith.constant 0 : i32
    return %c0_i32, %c0_i32_0 : i32, i32
  }
  func.func @transform_2(%arg0: i32) -> (i32, i32) {
    %c0_i32 = arith.constant 0 : i32
    %c0_i32_0 = arith.constant 0 : i32
    %c0_i32_1 = arith.constant 0 : i32
    return %c0_i32, %c0_i32_0 : i32, i32
  }
  func.func @transform_3(%arg0: i32) -> (i32, i32) {
    %c0_i32 = arith.constant 0 : i32
    %c0_i32_0 = arith.constant 0 : i32
    return %arg0, %c0_i32 : i32, i32
  }
}

</mosaic_0001>

<bundles_post_ra>
// kernel: lenet_forward.4
= control target key start
LH: loop header
LB: loop body
LE: loop exit
PB: predicated region body
PF: predicated region fallthrough
CT: control target
= control target key end

     0   :  { %s4837_s1 = inlined_call_operand.vmem [shape: bf16[512,512], index: 1, kind: input, shape index: {}]   ;;  %s4838_s0 = inlined_call_operand.vmem [shape: bf16[392,512], index: 0, kind: input, shape index: {}]   ;;  %s4839_s2 = inlined_call_operand.vmem [shape: f32[1,128], index: 2, kind: input, shape index: {}]   ;;  %s4840_s3 = inlined_call_operand.vmem [shape: bf16[392,128], index: 3, kind: output, shape index: {}]  }
   0x1   :  { %v3670_v0 = vld [vmem:[%s4837_s1 + $0x4] ss:$16 sps:$4 sm:$0xff]   ;;  %v3672_v1 = vld [vmem:[%s4837_s1 + $0xc] ss:$16 sps:$4 sm:$0xff]   ;;  %v3674_v2 = vld [vmem:[%s4837_s1] ss:$16 sps:$4 sm:$0xff]  }
   0x2   :  { %1374 = vmatprep.subr.bf16.mxu0 %v3670_v0  ;;  %v3675_v3 = vld [vmem:[%s4837_s1 + $0x8] ss:$16 sps:$4 sm:$0xff]   ;;  %1936 = vmatprep.subr.bf16.mxu1 %v3672_v1  ;;  %v3676_v4 = vld [vmem:[%s4837_s1 + $0x24] ss:$16 sps:$4 sm:$0xff]   ;;  %v3678_v5 = vld [vmem:[%s4837_s1 + $0x2c] ss:$16 sps:$4 sm:$0xff]  }
   0x3   :  { %1375 = vmatpush1.bf16.msra.mxu0 %v3674_v2  ;;  %1937 = vmatpush1.bf16.msra.mxu1 %v3675_v3  ;;  %v3680_v6 = vld [vmem:[%s4837_s1 + $0x20] ss:$16 sps:$4 sm:$0xff]   ;;  %v3681_v7 = vld [vmem:[%s4837_s1 + $0x28] ss:$16 sps:$4 sm:$0xff]   ;;  %v3682_v8 = vld [vmem:[%s4837_s1 + $0x44] ss:$16 sps:$4 sm:$0xff]  }
   0x4   :  { %1376 = vmatprep.subr.bf16.mxu0 %v3676_v4  ;;  %1938 = vmatprep.subr.bf16.mxu1 %v3678_v5  ;;  %v3684_v9 = vld [vmem:[%s4837_s1 + $0x4c] ss:$16 sps:$4 sm:$0xff]   ;;  %v3686_v10 = vld [vmem:[%s4837_s1 + $0x40] ss:$16 sps:$4 sm:$0xff]   ;;  %v3687_v11 = vld [vmem:[%s4837_s1 + $0x48] ss:$16 sps:$4 sm:$0xff]  }
   0x5   :  { %v3688_v12 = vld [vmem:[%s4837_s1 + $0x64] ss:$16 sps:$4 sm:$0xff]   ;;  %v3690_v13 = vld [vmem:[%s4837_s1 + $0x6c] ss:$16 sps:$4 sm:$0xff]   ;;  %v3692_v14 = vld [vmem:[%s4837_s1 + $0x60] ss:$16 sps:$4 sm:$0xff]  }
   0x6   :  { %v3693_v15 = vld [vmem:[%s4837_s1 + $0x68] ss:$16 sps:$4 sm:$0xff]   ;;  %v3694_v16 = vld [vmem:[%s4837_s1 + $0x84] ss:$16 sps:$4 sm:$0xff]   ;;  %v3696_v17 = vld [vmem:[%s4837_s1 + $0x8c] ss:$16 sps:$4 sm:$0xff]  }
   0x7   :  { %1377 = vmatpush1.bf16.msra.mxu0 %v3680_v6  ;;  %1939 = vmatpush1.bf16.msra.mxu1 %v3681_v7  ;;  %v3698_v18 = vld [vmem:[%s4837_s1 + $0x80] ss:$16 sps:$4 sm:$0xff]   ;;  %v3699_v19 = vld [vmem:[%s4837_s1 + $0x88] ss:$16 sps:$4 sm:$0xff]   ;;  %v3700_v20 = vld [vmem:[%s4837_s1 + $0xa4] ss:$16 sps:$4 sm:$0xff]  }
   0x8   :  { %1378 = vmatprep.subr.bf16.mxu0 %v3682_v8  ;;  %1940 = vmatprep.subr.bf16.mxu1 %v3684_v9  ;;  %v3702_v21 = vld [vmem:[%s4837_s1 + $0xac] ss:$16 sps:$4 sm:$0xff]   ;;  %v3704_v22 = vld [vmem:[%s4837_s1 + $0xa0] ss:$16 sps:$4 sm:$0xff]   ;;  %v3705_v23 = vld [vmem:[%s4837_s1 + $0xa8] ss:$16 sps:$4 sm:$0xff]  }
   0x9   :  { %v3706_v24 = vld [vmem:[%s4837_s1 + $0xc4] ss:$16 sps:$4 sm:$0xff]   ;;  %v3708_v25 = vld [vmem:[%s4837_s1 + $0xcc] ss:$16 sps:$4 sm:$0xff]   ;;  %v3710_v26 = vld [vmem:[%s4837_s1 + $0xc0] ss:$16 sps:$4 sm:$0xff]  }
   0xa   :  { %v3711_v27 = vld [vmem:[%s4837_s1 + $0xc8] ss:$16 sps:$4 sm:$0xff]   ;;  %v3712_v28 = vld [vmem:[%s4837_s1 + $0xe4] ss:$16 sps:$4 sm:$0xff]   ;;  %v3714_v29 = vld [vmem:[%s4837_s1 + $0xec] ss:$16 sps:$4 sm:$0xff]  }
   0xb   :  { %1379 = vmatpush1.bf16.msra.mxu0 %v3686_v10  ;;  %1941 = vmatpush1.bf16.msra.mxu1 %v3687_v11  ;;  %v3716_v30 = vld [vmem:[%s4837_s1 + $0xe0] ss:$16 sps:$4 sm:$0xff]   ;;  %v3717_v31 = vld [vmem:[%s4837_s1 + $0xe8] ss:$16 sps:$4 sm:$0xff]   ;;  %v3718_v32 = vld [vmem:[%s4837_s1 + $0x104] ss:$16 sps:$4 sm:$0xff]  }
   0xc   :  { %1380 = vmatprep.subr.bf16.mxu0 %v3688_v12  ;;  %1942 = vmatprep.subr.bf16.mxu1 %v3690_v13  ;;  %v3720_v33 = vld [vmem:[%s4837_s1 + $0x10c] ss:$16 sps:$4 sm:$0xff]   ;;  %v3722_v34 = vld [vmem:[%s4837_s1 + $0x100] ss:$16 sps:$4 sm:$0xff]   ;;  %v3723_v35 = vld [vmem:[%s4837_s1 + $0x108] ss:$16 sps:$4 sm:$0xff]  }
   0xd   :  { %v3724_v36 = vld [vmem:[%s4837_s1 + $0x124] ss:$16 sps:$4 sm:$0xff]   ;;  %v3726_v37 = vld [vmem:[%s4837_s1 + $0x12c] ss:$16 sps:$4 sm:$0xff]   ;;  %v3728_v38 = vld [vmem:[%s4837_s1 + $0x120] ss:$16 sps:$4 sm:$0xff]  }
   0xe   :  { %v3729_v39 = vld [vmem:[%s4837_s1 + $0x128] ss:$16 sps:$4 sm:$0xff]   ;;  %v3730_v40 = vld [vmem:[%s4837_s1 + $0x144] ss:$16 sps:$4 sm:$0xff]   ;;  %v3732_v41 = vld [vmem:[%s4837_s1 + $0x14c] ss:$16 sps:$4 sm:$0xff]  }
   0xf   :  { %1381 = vmatpush1.bf16.msra.mxu0 %v3692_v14  ;;  %1943 = vmatpush1.bf16.msra.mxu1 %v3693_v15  ;;  %v3734_v42 = vld [vmem:[%s4837_s1 + $0x140] ss:$16 sps:$4 sm:$0xff]   ;;  %v3735_v43 = vld [vmem:[%s4837_s1 + $0x148] ss:$16 sps:$4 sm:$0xff]   ;;  %v3736_v44 = vld [vmem:[%s4837_s1 + $0x164] ss:$16 sps:$4 sm:$0xff]  }
  0x10   :  { %1382 = vmatprep.subr.bf16.mxu0 %v3694_v16  ;;  %1944 = vmatprep.subr.bf16.mxu1 %v3696_v17  ;;  %v3738_v45 = vld [vmem:[%s4837_s1 + $0x16c] ss:$16 sps:$4 sm:$0xff]   ;;  %v3740_v46 = vld [vmem:[%s4837_s1 + $0x160] ss:$16 sps:$4 sm:$0xff]   ;;  %v3741_v47 = vld [vmem:[%s4837_s1 + $0x168] ss:$16 sps:$4 sm:$0xff]  }
  0x11   :  { %v3768_v48 = vld [vmem:[%s4838_s0 + $0x4] ss:$16 sps:$4 sm:$0xff]   ;;  %v3744_v50 = vld [vmem:[%s4837_s1 + $0x18c] ss:$16 sps:$4 sm:$0xff]   ;;  %v3746_v51 = vld [vmem:[%s4837_s1 + $0x180] ss:$16 sps:$4 sm:$0xff]  }
  0x12   :  { %v3742_v49 = vld [vmem:[%s4837_s1 + $0x184] ss:$16 sps:$4 sm:$0xff]   ;;  %1406 = vmatprep.mubr.bf16.mxu0 %v3768_v48  ;;  %1968 = vmatprep.mubr.bf16.mxu1 %v3768_v48  ;;  %v3747_v52 = vld [vmem:[%s4837_s1 + $0x188] ss:$16 sps:$4 sm:$0xff]   ;;  %v3750_v54 = vld [vmem:[%s4837_s1 + $0x1ac] ss:$16 sps:$4 sm:$0xff]  }
  0x13   :  { %1383 = vmatpush1.bf16.msra.mxu0 %v3698_v18  ;;  %1945 = vmatpush1.bf16.msra.mxu1 %v3699_v19  ;;  %v3748_v53 = vld [vmem:[%s4837_s1 + $0x1a4] ss:$16 sps:$4 sm:$0xff]   ;;  %v3752_v55 = vld [vmem:[%s4837_s1 + $0x1a0] ss:$16 sps:$4 sm:$0xff]   ;;  %v3753_v56 = vld [vmem:[%s4837_s1 + $0x1a8] ss:$16 sps:$4 sm:$0xff]  }
  0x14   :  { %1384 = vmatprep.subr.bf16.mxu0 %v3700_v20  ;;  %1946 = vmatprep.subr.bf16.mxu1 %v3702_v21  ;;  %v3754_v57 = vld [vmem:[%s4837_s1 + $0x1c4] ss:$16 sps:$4 sm:$0xff]   ;;  %v3756_v58 = vld [vmem:[%s4837_s1 + $0x1cc] ss:$16 sps:$4 sm:$0xff]   ;;  %v3758_v59 = vld [vmem:[%s4837_s1 + $0x1c0] ss:$16 sps:$4 sm:$0xff]  }
  0x15   :  { %v3759_v60 = vld [vmem:[%s4837_s1 + $0x1c8] ss:$16 sps:$4 sm:$0xff]   ;;  %v3760_v61 = vld [vmem:[%s4837_s1 + $0x1e4] ss:$16 sps:$4 sm:$0xff]   ;;  %v3762_v62 = vld [vmem:[%s4837_s1 + $0x1ec] ss:$16 sps:$4 sm:$0xff]  }
  0x16   :  { %v3764_v63 = vld [vmem:[%s4837_s1 + $0x1e0] ss:$16 sps:$4 sm:$0xff]   ;;  %v3765_v0 = vld [vmem:[%s4837_s1 + $0x1e8] ss:$16 sps:$4 sm:$0xff]   ;;  %v3771_v1 = vld [vmem:[%s4837_s1 + $0x204] ss:$16 sps:$4 sm:$0xff]  }
  0x17   :  { %1385 = vmatpush1.bf16.msra.mxu0 %v3704_v22  ;;  %1947 = vmatpush1.bf16.msra.mxu1 %v3705_v23  ;;  %v3774_v2 = vld [vmem:[%s4837_s1 + $0x20c] ss:$16 sps:$4 sm:$0xff]   ;;  %v3766_v3 = vld [vmem:[%s4838_s0] ss:$16 sps:$4 sm:$0xff]   ;;  %v3772_v5 = vld [vmem:[%s4837_s1 + $0x208] ss:$16 sps:$4 sm:$0xff]  }
  0x18   :  { %1386 = vmatprep.subr.bf16.mxu0 %v3706_v24  ;;  %1948 = vmatprep.subr.bf16.mxu1 %v3708_v25  ;;  %v3769_v4 = vld [vmem:[%s4837_s1 + $0x200] ss:$16 sps:$4 sm:$0xff]   ;;  %v3775_v6 = vld [vmem:[%s4838_s0 + $0x24] ss:$16 sps:$4 sm:$0xff]   ;;  %v3783_v8 = vld [vmem:[%s4837_s1 + $0x22c] ss:$16 sps:$4 sm:$0xff]  }
  0x19   :  { %v3780_v7 = vld [vmem:[%s4837_s1 + $0x224] ss:$16 sps:$4 sm:$0xff]   ;;  %v3778_v9 = vld [vmem:[%s4837_s1 + $0x220] ss:$16 sps:$4 sm:$0xff]   ;;  %v3781_v10 = vld [vmem:[%s4837_s1 + $0x228] ss:$16 sps:$4 sm:$0xff]  }
  0x1a   :  { %v3792_v11 = vld [vmem:[%s4837_s1 + $0x244] ss:$16 sps:$4 sm:$0xff]   ;;  %v3795_v12 = vld [vmem:[%s4837_s1 + $0x24c] ss:$16 sps:$4 sm:$0xff]   ;;  %v3777_v13 = vld [vmem:[%s4838_s0 + $0x20] ss:$16 sps:$4 sm:$0xff]  }
  0x1b   :  { %1387 = vmatpush1.bf16.msra.mxu0 %v3710_v26  ;;  %1949 = vmatpush1.bf16.msra.mxu1 %v3711_v27  ;;  %v3784_v14 = vld [vmem:[%s4838_s0 + $0x44] ss:$16 sps:$4 sm:$0xff]   ;;  %v3790_v15 = vld [vmem:[%s4837_s1 + $0x240] ss:$16 sps:$4 sm:$0xff]   ;;  %v3793_v16 = vld [vmem:[%s4837_s1 + $0x248] ss:$16 sps:$4 sm:$0xff]  }
  0x1c   :  { %1388 = vmatprep.subr.bf16.mxu0 %v3712_v28  ;;  %1950 = vmatprep.subr.bf16.mxu1 %v3714_v29  ;;  %v3801_v17 = vld [vmem:[%s4837_s1 + $0x264] ss:$16 sps:$4 sm:$0xff]   ;;  %v3804_v18 = vld [vmem:[%s4837_s1 + $0x26c] ss:$16 sps:$4 sm:$0xff]   ;;  %v3799_v19 = vld [vmem:[%s4837_s1 + $0x260] ss:$16 sps:$4 sm:$0xff]  }
  0x1d   :  { %v3802_v20 = vld [vmem:[%s4837_s1 + $0x268] ss:$16 sps:$4 sm:$0xff]   ;;  %v3813_v21 = vld [vmem:[%s4837_s1 + $0x284] ss:$16 sps:$4 sm:$0xff]   ;;  %v3816_v22 = vld [vmem:[%s4837_s1 + $0x28c] ss:$16 sps:$4 sm:$0xff]  }
  0x1e   :  { %v3786_v23 = vld [vmem:[%s4838_s0 + $0x40] ss:$16 sps:$4 sm:$0xff]   ;;  %v3787_v24 = vld [vmem:[%s4838_s0 + $0x64] ss:$16 sps:$4 sm:$0xff]   ;;  %v3814_v26 = vld [vmem:[%s4837_s1 + $0x288] ss:$16 sps:$4 sm:$0xff]  }
  0x1f   :  { %1389 = vmatpush1.bf16.msra.mxu0 %v3716_v30  ;;  %1951 = vmatpush1.bf16.msra.mxu1 %v3717_v31  ;;  %v3811_v25 = vld [vmem:[%s4837_s1 + $0x280] ss:$16 sps:$4 sm:$0xff]   ;;  %v3824_v27 = vld [vmem:[%s4837_s1 + $0x2a4] ss:$16 sps:$4 sm:$0xff]   ;;  %v3827_v28 = vld [vmem:[%s4837_s1 + $0x2ac] ss:$16 sps:$4 sm:$0xff]  }
  0x20   :  { %1390 = vmatprep.subr.bf16.mxu0 %v3718_v32  ;;  %1952 = vmatprep.subr.bf16.mxu1 %v3720_v33  ;;  %v3822_v29 = vld [vmem:[%s4837_s1 + $0x2a0] ss:$16 sps:$4 sm:$0xff]   ;;  %v3825_v30 = vld [vmem:[%s4837_s1 + $0x2a8] ss:$16 sps:$4 sm:$0xff]   ;;  %v3834_v31 = vld [vmem:[%s4837_s1 + $0x2c4] ss:$16 sps:$4 sm:$0xff]  }
  0x21   :  { %v3837_v32 = vld [vmem:[%s4837_s1 + $0x2cc] ss:$16 sps:$4 sm:$0xff]   ;;  %v3789_v33 = vld [vmem:[%s4838_s0 + $0x60] ss:$16 sps:$4 sm:$0xff]  }
  0x22   :  { %v3870_v48 = vld [vmem:[%s4837_s1 + $0x32c] ss:$16 sps:$4 sm:$0xff]  }
  0x23   :  { %1391 = vmatpush1.bf16.msra.mxu0 %v3722_v34  ;;  %1953 = vmatpush1.bf16.msra.mxu1 %v3723_v35  ;;  %v3796_v34 = vld [vmem:[%s4838_s0 + $0x84] ss:$16 sps:$4 sm:$0xff]   ;;  %v3832_v35 = vld [vmem:[%s4837_s1 + $0x2c0] ss:$16 sps:$4 sm:$0xff]  }
  0x24   :  { %1392 = vmatprep.subr.bf16.mxu0 %v3724_v36  ;;  %1954 = vmatprep.subr.bf16.mxu1 %v3726_v37  ;;  %v3835_v36 = vld [vmem:[%s4837_s1 + $0x2c8] ss:$16 sps:$4 sm:$0xff]   ;;  %v3846_v37 = vld [vmem:[%s4837_s1 + $0x2e4] ss:$16 sps:$4 sm:$0xff]  }
  0x27   :  { %1393 = vmatpush1.bf16.msra.mxu0 %v3728_v38  ;;  %1955 = vmatpush1.bf16.msra.mxu1 %v3729_v39  ;;  %v3849_v38 = vld [vmem:[%s4837_s1 + $0x2ec] ss:$16 sps:$4 sm:$0xff]   ;;  %v3844_v39 = vld [vmem:[%s4837_s1 + $0x2e0] ss:$16 sps:$4 sm:$0xff]  }
  0x28   :  { %1394 = vmatprep.subr.bf16.mxu0 %v3730_v40  ;;  %1956 = vmatprep.subr.bf16.mxu1 %v3732_v41  ;;  %v3847_v40 = vld [vmem:[%s4837_s1 + $0x2e8] ss:$16 sps:$4 sm:$0xff]   ;;  %v3855_v41 = vld [vmem:[%s4837_s1 + $0x304] ss:$16 sps:$4 sm:$0xff]  }
  0x2b   :  { %1395 = vmatpush1.bf16.msra.mxu0 %v3734_v42  ;;  %1957 = vmatpush1.bf16.msra.mxu1 %v3735_v43  ;;  %v3858_v42 = vld [vmem:[%s4837_s1 + $0x30c] ss:$16 sps:$4 sm:$0xff]   ;;  %v3798_v43 = vld [vmem:[%s4838_s0 + $0x80] ss:$16 sps:$4 sm:$0xff]  }
  0x2c   :  { %1396 = vmatprep.subr.bf16.mxu0 %v3736_v44  ;;  %1958 = vmatprep.subr.bf16.mxu1 %v3738_v45  ;;  %v3805_v44 = vld [vmem:[%s4838_s0 + $0xa4] ss:$16 sps:$4 sm:$0xff]   ;;  %v3853_v45 = vld [vmem:[%s4837_s1 + $0x300] ss:$16 sps:$4 sm:$0xff]  }
  0x2f   :  { %1397 = vmatpush1.bf16.msra.mxu0 %v3740_v46  ;;  %1959 = vmatpush1.bf16.msra.mxu1 %v3741_v47  ;;  %v3856_v46 = vld [vmem:[%s4837_s1 + $0x308] ss:$16 sps:$4 sm:$0xff]   ;;  %v3867_v47 = vld [vmem:[%s4837_s1 + $0x324] ss:$16 sps:$4 sm:$0xff]  }
  0x30   :  { %1398 = vmatprep.subr.bf16.mxu0 %v3742_v49  ;;  %1960 = vmatprep.subr.bf16.mxu1 %v3744_v50  ;;  %v3865_v49 = vld [vmem:[%s4837_s1 + $0x320] ss:$16 sps:$4 sm:$0xff]   ;;  %v3868_v50 = vld [vmem:[%s4837_s1 + $0x328] ss:$16 sps:$4 sm:$0xff]  }
  0x33   :  { %1399 = vmatpush1.bf16.msra.mxu0 %v3746_v51  ;;  %1961 = vmatpush1.bf16.msra.mxu1 %v3747_v52  ;;  %v3876_v51 = vld [vmem:[%s4837_s1 + $0x344] ss:$16 sps:$4 sm:$0xff]   ;;  %v3879_v52 = vld [vmem:[%s4837_s1 + $0x34c] ss:$16 sps:$4 sm:$0xff]  }
  0x34   :  { %1400 = vmatprep.subr.bf16.mxu0 %v3748_v53  ;;  %1962 = vmatprep.subr.bf16.mxu1 %v3750_v54  ;;  %v3807_v53 = vld [vmem:[%s4838_s0 + $0xa0] ss:$16 sps:$4 sm:$0xff]   ;;  %v3808_v54 = vld [vmem:[%s4838_s0 + $0xc4] ss:$16 sps:$4 sm:$0xff]  }
  0x37   :  { %1401 = vmatpush1.bf16.msra.mxu0 %v3752_v55  ;;  %1963 = vmatpush1.bf16.msra.mxu1 %v3753_v56  ;;  %v3874_v55 = vld [vmem:[%s4837_s1 + $0x340] ss:$16 sps:$4 sm:$0xff]   ;;  %v3877_v56 = vld [vmem:[%s4837_s1 + $0x348] ss:$16 sps:$4 sm:$0xff]  }
  0x38   :  { %1402 = vmatprep.subr.bf16.mxu0 %v3754_v57  ;;  %1964 = vmatprep.subr.bf16.mxu1 %v3756_v58  ;;  %v3888_v57 = vld [vmem:[%s4837_s1 + $0x364] ss:$16 sps:$4 sm:$0xff]   ;;  %v3891_v58 = vld [vmem:[%s4837_s1 + $0x36c] ss:$16 sps:$4 sm:$0xff]  }
  0x3b   :  { %1403 = vmatpush1.bf16.msra.mxu0 %v3758_v59  ;;  %1965 = vmatpush1.bf16.msra.mxu1 %v3759_v60  ;;  %v3886_v59 = vld [vmem:[%s4837_s1 + $0x360] ss:$16 sps:$4 sm:$0xff]   ;;  %v3889_v60 = vld [vmem:[%s4837_s1 + $0x368] ss:$16 sps:$4 sm:$0xff]  }
  0x3c   :  { %1404 = vmatprep.subr.bf16.mxu0 %v3760_v61  ;;  %1966 = vmatprep.subr.bf16.mxu1 %v3762_v62  ;;  %v3810_v61 = vld [vmem:[%s4838_s0 + $0xc0] ss:$16 sps:$4 sm:$0xff]   ;;  %v3897_v62 = vld [vmem:[%s4837_s1 + $0x384] ss:$16 sps:$4 sm:$0xff]  }
  0x3f   :  { %1405 = vmatpush1.bf16.msra.mxu0 %v3764_v63  ;;  %1967 = vmatpush1.bf16.msra.mxu1 %v3765_v0  ;;  %v3900_v63 = vld [vmem:[%s4837_s1 + $0x38c] ss:$16 sps:$4 sm:$0xff]   ;;  %v3817_v0 = vld [vmem:[%s4838_s0 + $0xe4] ss:$16 sps:$4 sm:$0xff]  }
  0x40   :  { %1655 = vmatprep.subr.bf16.mxu0 %v3771_v1  ;;  %2217 = vmatprep.subr.bf16.mxu1 %v3774_v2  ;;  %v3895_v1 = vld [vmem:[%s4837_s1 + $0x380] ss:$16 sps:$4 sm:$0xff]   ;;  %v3898_v2 = vld [vmem:[%s4837_s1 + $0x388] ss:$16 sps:$4 sm:$0xff]  }
  0x42   :  { %1407 = vmatmul.mubr.bf16.vlgmr.msra.gmra.mrb[0].mxu0 %v3766_v3  ;;  %1969 = vmatmul.mubr.bf16.vlgmr.msra.gmra.mrb[0].mxu1 %v3766_v3  ;;  %v3909_v3 = vld [vmem:[%s4837_s1 + $0x3a4] ss:$16 sps:$4 sm:$0xff]  }
  0x43   :  { %1656 = vmatpush1.bf16.msra.mxu0 %v3769_v4  ;;  %2218 = vmatpush1.bf16.msra.mxu1 %v3772_v5  ;;  %v3912_v4 = vld [vmem:[%s4837_s1 + $0x3ac] ss:$16 sps:$4 sm:$0xff]   ;;  %v3907_v5 = vld [vmem:[%s4837_s1 + $0x3a0] ss:$16 sps:$4 sm:$0xff]  }
  0x44   :  { %1416 = vmatprep.mubr.bf16.mxu0 %v3775_v6  ;;  %1978 = vmatprep.mubr.bf16.mxu1 %v3775_v6  ;;  %v3910_v6 = vld [vmem:[%s4837_s1 + $0x3a8] ss:$16 sps:$4 sm:$0xff]  }
  0x45   :  { %1657 = vmatprep.subr.bf16.mxu0 %v3780_v7  ;;  %2219 = vmatprep.subr.bf16.mxu1 %v3783_v8  ;;  %v3920_v7 = vld [vmem:[%s4837_s1 + $0x3c4] ss:$16 sps:$4 sm:$0xff]   ;;  %v3923_v8 = vld [vmem:[%s4837_s1 + $0x3cc] ss:$16 sps:$4 sm:$0xff]  }
  0x47   :  { %1658 = vmatpush1.bf16.msra.mxu0 %v3778_v9  ;;  %2220 = vmatpush1.bf16.msra.mxu1 %v3781_v10  ;;  %v3819_v9 = vld [vmem:[%s4838_s0 + $0xe0] ss:$16 sps:$4 sm:$0xff]   ;;  %v3820_v10 = vld [vmem:[%s4838_s0 + $0x104] ss:$16 sps:$4 sm:$0xff]  }
  0x48   :  { %1659 = vmatprep.subr.bf16.mxu0 %v3792_v11  ;;  %2221 = vmatprep.subr.bf16.mxu1 %v3795_v12  ;;  %v3918_v11 = vld [vmem:[%s4837_s1 + $0x3c0] ss:$16 sps:$4 sm:$0xff]   ;;  %v3921_v12 = vld [vmem:[%s4837_s1 + $0x3c8] ss:$16 sps:$4 sm:$0xff]  }
  0x4a   :  { %1417 = vmatmul.mubr.bf16.gmra.mrb[4].mxu0 %v3777_v13  ;;  %1979 = vmatmul.mubr.bf16.gmra.mrb[4].mxu1 %v3777_v13  ;;  %v3928_v13 = vld [vmem:[%s4837_s1 + $0x3e0] ss:$16 sps:$4 sm:$0xff]  }
  0x4b   :  { %1426 = vmatprep.mubr.bf16.mxu0 %v3784_v14  ;;  %1988 = vmatprep.mubr.bf16.mxu1 %v3784_v14  ;;  %v3930_v14 = vld [vmem:[%s4837_s1 + $0x3e4] ss:$16 sps:$4 sm:$0xff]  }
  0x4c   :  { %1660 = vmatpush1.bf16.msra.mxu0 %v3790_v15  ;;  %2222 = vmatpush1.bf16.msra.mxu1 %v3793_v16  ;;  %v3931_v15 = vld [vmem:[%s4837_s1 + $0x3e8] ss:$16 sps:$4 sm:$0xff]   ;;  %v3933_v16 = vld [vmem:[%s4837_s1 + $0x3ec] ss:$16 sps:$4 sm:$0xff]  }
  0x4d   :  { %1661 = vmatprep.subr.bf16.mxu0 %v3801_v17  ;;  %2223 = vmatprep.subr.bf16.mxu1 %v3804_v18  ;;  %v3828_v17 = vld [vmem:[%s4838_s0 + $0x100] ss:$16 sps:$4 sm:$0xff]   ;;  %v3829_v18 = vld [vmem:[%s4838_s0 + $0x124] ss:$16 sps:$4 sm:$0xff]  }
  0x50   :  { %1662 = vmatpush1.bf16.msra.mxu0 %v3799_v19  ;;  %2224 = vmatpush1.bf16.msra.mxu1 %v3802_v20  ;;  %v3831_v19 = vld [vmem:[%s4838_s0 + $0x120] ss:$16 sps:$4 sm:$0xff]   ;;  %v3838_v20 = vld [vmem:[%s4838_s0 + $0x144] ss:$16 sps:$4 sm:$0xff]  }
  0x51   :  { %1663 = vmatprep.subr.bf16.mxu0 %v3813_v21  ;;  %2225 = vmatprep.subr.bf16.mxu1 %v3816_v22  ;;  %v3840_v21 = vld [vmem:[%s4838_s0 + $0x140] ss:$16 sps:$4 sm:$0xff]   ;;  %v3841_v22 = vld [vmem:[%s4838_s0 + $0x164] ss:$16 sps:$4 sm:$0xff]  }
  0x52   :  { %1427 = vmatmul.mubr.bf16.gmra.mrb[8].mxu0 %v3786_v23  ;;  %1989 = vmatmul.mubr.bf16.gmra.mrb[8].mxu1 %v3786_v23  ;;  %v3843_v23 = vld [vmem:[%s4838_s0 + $0x160] ss:$16 sps:$4 sm:$0xff]  }
  0x53   :  { %1436 = vmatprep.mubr.bf16.mxu0 %v3787_v24  ;;  %1998 = vmatprep.mubr.bf16.mxu1 %v3787_v24  ;;  %v3850_v24 = vld [vmem:[%s4838_s0 + $0x184] ss:$16 sps:$4 sm:$0xff]  }
  0x54   :  { %1664 = vmatpush1.bf16.msra.mxu0 %v3811_v25  ;;  %2226 = vmatpush1.bf16.msra.mxu1 %v3814_v26  ;;  %v3852_v25 = vld [vmem:[%s4838_s0 + $0x180] ss:$16 sps:$4 sm:$0xff]   ;;  %v3859_v26 = vld [vmem:[%s4838_s0 + $0x1a4] ss:$16 sps:$4 sm:$0xff]  }
  0x55   :  { %1665 = vmatprep.subr.bf16.mxu0 %v3824_v27  ;;  %2227 = vmatprep.subr.bf16.mxu1 %v3827_v28  ;;  %v3861_v27 = vld [vmem:[%s4838_s0 + $0x1a0] ss:$16 sps:$4 sm:$0xff]   ;;  %v3862_v28 = vld [vmem:[%s4838_s0 + $0x1c4] ss:$16 sps:$4 sm:$0xff]  }
  0x58   :  { %1666 = vmatpush1.bf16.msra.mxu0 %v3822_v29  ;;  %2228 = vmatpush1.bf16.msra.mxu1 %v3825_v30  ;;  %v3864_v29 = vld [vmem:[%s4838_s0 + $0x1c0] ss:$16 sps:$4 sm:$0xff]   ;;  %v3871_v30 = vld [vmem:[%s4838_s0 + $0x1e4] ss:$16 sps:$4 sm:$0xff]  }
  0x59   :  { %1667 = vmatprep.subr.bf16.mxu0 %v3834_v31  ;;  %2229 = vmatprep.subr.bf16.mxu1 %v3837_v32  ;;  %v3873_v31 = vld [vmem:[%s4838_s0 + $0x1e0] ss:$16 sps:$4 sm:$0xff]   ;;  %v3880_v32 = vld [vmem:[%s4838_s0 + $0x204] ss:$16 sps:$4 sm:$0xff]  }
  0x5a   :  { %1437 = vmatmul.mubr.bf16.gmra.mrb[12].mxu0 %v3789_v33  ;;  %1999 = vmatmul.mubr.bf16.gmra.mrb[12].mxu1 %v3789_v33  ;;  %v3882_v33 = vld [vmem:[%s4838_s0 + $0x200] ss:$16 sps:$4 sm:$0xff]  }
  0x5b   :  { %1446 = vmatprep.mubr.bf16.mxu0 %v3796_v34  ;;  %2008 = vmatprep.mubr.bf16.mxu1 %v3796_v34  ;;  %v3883_v34 = vld [vmem:[%s4838_s0 + $0x224] ss:$16 sps:$4 sm:$0xff]  }
  0x5c   :  { %1668 = vmatpush1.bf16.msra.mxu0 %v3832_v35  ;;  %2230 = vmatpush1.bf16.msra.mxu1 %v3835_v36  ;;  %v3885_v35 = vld [vmem:[%s4838_s0 + $0x220] ss:$16 sps:$4 sm:$0xff]   ;;  %v3892_v36 = vld [vmem:[%s4838_s0 + $0x244] ss:$16 sps:$4 sm:$0xff]  }
  0x5d   :  { %1669 = vmatprep.subr.bf16.mxu0 %v3846_v37  ;;  %2231 = vmatprep.subr.bf16.mxu1 %v3849_v38  ;;  %v3894_v37 = vld [vmem:[%s4838_s0 + $0x240] ss:$16 sps:$4 sm:$0xff]   ;;  %v3901_v38 = vld [vmem:[%s4838_s0 + $0x264] ss:$16 sps:$4 sm:$0xff]  }
  0x60   :  { %1670 = vmatpush1.bf16.msra.mxu0 %v3844_v39  ;;  %2232 = vmatpush1.bf16.msra.mxu1 %v3847_v40  ;;  %v3903_v39 = vld [vmem:[%s4838_s0 + $0x260] ss:$16 sps:$4 sm:$0xff]   ;;  %v3904_v40 = vld [vmem:[%s4838_s0 + $0x284] ss:$16 sps:$4 sm:$0xff]  }
  0x61   :  { %1671 = vmatprep.subr.bf16.mxu0 %v3855_v41  ;;  %2233 = vmatprep.subr.bf16.mxu1 %v3858_v42  ;;  %v3906_v41 = vld [vmem:[%s4838_s0 + $0x280] ss:$16 sps:$4 sm:$0xff]   ;;  %v3913_v42 = vld [vmem:[%s4838_s0 + $0x2a4] ss:$16 sps:$4 sm:$0xff]  }
  0x62   :  { %1447 = vmatmul.mubr.bf16.gmra.mrb[16].mxu0 %v3798_v43  ;;  %2009 = vmatmul.mubr.bf16.gmra.mrb[16].mxu1 %v3798_v43  ;;  %v3915_v43 = vld [vmem:[%s4838_s0 + $0x2a0] ss:$16 sps:$4 sm:$0xff]  }
  0x63   :  { %1456 = vmatprep.mubr.bf16.mxu0 %v3805_v44  ;;  %2018 = vmatprep.mubr.bf16.mxu1 %v3805_v44  ;;  %v3916_v44 = vld [vmem:[%s4838_s0 + $0x2c4] ss:$16 sps:$4 sm:$0xff]  }
  0x64   :  { %1672 = vmatpush1.bf16.msra.mxu0 %v3853_v45  ;;  %2234 = vmatpush1.bf16.msra.mxu1 %v3856_v46  ;;  %v3924_v45 = vld [vmem:[%s4838_s0 + $0x2c0] ss:$16 sps:$4 sm:$0xff]   ;;  %v3925_v46 = vld [vmem:[%s4838_s0 + $0x2e4] ss:$16 sps:$4 sm:$0xff]  }
  0x65   :  { %1673 = vmatprep.subr.bf16.mxu0 %v3867_v47  ;;  %2235 = vmatprep.subr.bf16.mxu1 %v3870_v48  ;;  %v110_v47 = vld [vmem:[%s4838_s0 + $0x300] sm:$0xff] }
  0x66   :  { %v3927_v48 = vld [vmem:[%s4838_s0 + $0x2e0] ss:$16 sps:$4 sm:$0xff]  }
  0x68   :  { %1674 = vmatpush1.bf16.msra.mxu0 %v3865_v49  ;;  %2236 = vmatpush1.bf16.msra.mxu1 %v3868_v50  ;;  %v3097_v49 = vcombine.high %v110_v47, %v110_v47  ;;  %v3096_v50 = vcombine.low %v110_v47, %v110_v47 }
  0x69   :  { %1675 = vmatprep.subr.bf16.mxu0 %v3876_v51  ;;  %2237 = vmatprep.subr.bf16.mxu1 %v3879_v52  ;;  %v3938_v51 = vld [vmem:[%s4838_s0 + $0xc] ss:$16 sps:$4 sm:$0xff]   ;;  %v3936_v52 = vld [vmem:[%s4838_s0 + $0x8] ss:$16 sps:$4 sm:$0xff]  }
  0x6a   :  { %1457 = vmatmul.mubr.bf16.gmra.mrb[20].mxu0 %v3807_v53  ;;  %2019 = vmatmul.mubr.bf16.gmra.mrb[20].mxu1 %v3807_v53  ;;  %v3939_v53 = vld [vmem:[%s4838_s0 + $0x2c] ss:$16 sps:$4 sm:$0xff]  }
  0x6b   :  { %1466 = vmatprep.mubr.bf16.mxu0 %v3808_v54  ;;  %2028 = vmatprep.mubr.bf16.mxu1 %v3808_v54  ;;  %v3941_v54 = vld [vmem:[%s4838_s0 + $0x28] ss:$16 sps:$4 sm:$0xff]  }
  0x6c   :  { %1676 = vmatpush1.bf16.msra.mxu0 %v3874_v55  ;;  %2238 = vmatpush1.bf16.msra.mxu1 %v3877_v56  ;;  %v3942_v55 = vld [vmem:[%s4838_s0 + $0x4c] ss:$16 sps:$4 sm:$0xff]   ;;  %v3944_v56 = vld [vmem:[%s4838_s0 + $0x48] ss:$16 sps:$4 sm:$0xff]  }
  0x6d   :  { %1677 = vmatprep.subr.bf16.mxu0 %v3888_v57  ;;  %2239 = vmatprep.subr.bf16.mxu1 %v3891_v58  ;;  %v3945_v57 = vld [vmem:[%s4838_s0 + $0x6c] ss:$16 sps:$4 sm:$0xff]   ;;  %v3947_v58 = vld [vmem:[%s4838_s0 + $0x68] ss:$16 sps:$4 sm:$0xff]  }
  0x70   :  { %1678 = vmatpush1.bf16.msra.mxu0 %v3886_v59  ;;  %2240 = vmatpush1.bf16.msra.mxu1 %v3889_v60  ;;  %v3948_v59 = vld [vmem:[%s4838_s0 + $0x8c] ss:$16 sps:$4 sm:$0xff]   ;;  %v3950_v60 = vld [vmem:[%s4838_s0 + $0x88] ss:$16 sps:$4 sm:$0xff]  }
  0x71   :  { %1679 = vmatprep.subr.bf16.mxu0 %v3897_v62  ;;  %2241 = vmatprep.subr.bf16.mxu1 %v3900_v63  ;;  %v3953_v62 = vld [vmem:[%s4838_s0 + $0xa8] ss:$16 sps:$4 sm:$0xff]   ;;  %v3954_v63 = vld [vmem:[%s4838_s0 + $0xcc] ss:$16 sps:$4 sm:$0xff]  }
  0x72   :  { %1467 = vmatmul.mubr.bf16.gmra.mrb[24].mxu0 %v3810_v61  ;;  %2029 = vmatmul.mubr.bf16.gmra.mrb[24].mxu1 %v3810_v61  ;;  %v3951_v61 = vld [vmem:[%s4838_s0 + $0xac] ss:$16 sps:$4 sm:$0xff]  }
  0x73   :  { %1476 = vmatprep.mubr.bf16.mxu0 %v3817_v0  ;;  %2038 = vmatprep.mubr.bf16.mxu1 %v3817_v0  ;;  %v3956_v0 = vld [vmem:[%s4838_s0 + $0xc8] ss:$16 sps:$4 sm:$0xff]  }
  0x74   :  { %1680 = vmatpush1.bf16.msra.mxu0 %v3895_v1  ;;  %2242 = vmatpush1.bf16.msra.mxu1 %v3898_v2  ;;  %v3957_v1 = vld [vmem:[%s4838_s0 + $0xec] ss:$16 sps:$4 sm:$0xff]   ;;  %v3959_v2 = vld [vmem:[%s4838_s0 + $0xe8] ss:$16 sps:$4 sm:$0xff]  }
  0x75   :  { %1681 = vmatprep.subr.bf16.mxu0 %v3909_v3  ;;  %2243 = vmatprep.subr.bf16.mxu1 %v3912_v4  ;;  %v3960_v3 = vld [vmem:[%s4838_s0 + $0x10c] ss:$16 sps:$4 sm:$0xff]   ;;  %v3962_v4 = vld [vmem:[%s4838_s0 + $0x108] ss:$16 sps:$4 sm:$0xff]  }
  0x78   :  { %1682 = vmatpush1.bf16.msra.mxu0 %v3907_v5  ;;  %2244 = vmatpush1.bf16.msra.mxu1 %v3910_v6  ;;  %v3963_v5 = vld [vmem:[%s4838_s0 + $0x12c] ss:$16 sps:$4 sm:$0xff]   ;;  %v3965_v6 = vld [vmem:[%s4838_s0 + $0x128] ss:$16 sps:$4 sm:$0xff]  }
  0x79   :  { %1683 = vmatprep.subr.bf16.mxu0 %v3920_v7  ;;  %2245 = vmatprep.subr.bf16.mxu1 %v3923_v8  ;;  %v3966_v7 = vld [vmem:[%s4838_s0 + $0x14c] ss:$16 sps:$4 sm:$0xff]   ;;  %v3968_v8 = vld [vmem:[%s4838_s0 + $0x148] ss:$16 sps:$4 sm:$0xff]  }
  0x7a   :  { %1477 = vmatmul.mubr.bf16.gmra.mrb[28].mxu0 %v3819_v9  ;;  %2039 = vmatmul.mubr.bf16.gmra.mrb[28].mxu1 %v3819_v9  ;;  %v3969_v9 = vld [vmem:[%s4838_s0 + $0x16c] ss:$16 sps:$4 sm:$0xff]  }
  0x7b   :  { %1486 = vmatprep.mubr.bf16.mxu0 %v3820_v10  ;;  %2048 = vmatprep.mubr.bf16.mxu1 %v3820_v10  ;;  %v3971_v10 = vld [vmem:[%s4838_s0 + $0x168] ss:$16 sps:$4 sm:$0xff]  }
  0x7c   :  { %1684 = vmatpush1.bf16.msra.mxu0 %v3918_v11  ;;  %2246 = vmatpush1.bf16.msra.mxu1 %v3921_v12  ;;  %v3972_v11 = vld [vmem:[%s4838_s0 + $0x18c] ss:$16 sps:$4 sm:$0xff]   ;;  %v3974_v12 = vld [vmem:[%s4838_s0 + $0x188] ss:$16 sps:$4 sm:$0xff]  }
  0x7d   :  { %1685 = vmatprep.subr.bf16.mxu0 %v3930_v14  ;;  %2247 = vmatprep.subr.bf16.mxu1 %v3933_v16  ;;  %v3977_v14 = vld [vmem:[%s4838_s0 + $0x1a8] ss:$16 sps:$4 sm:$0xff]  }
  0x7e   :  { %v3980_v16 = vld [vmem:[%s4838_s0 + $0x1c8] ss:$16 sps:$4 sm:$0xff]  }
  0x80   :  { %1686 = vmatpush1.bf16.msra.mxu0 %v3928_v13  ;;  %2248 = vmatpush1.bf16.msra.mxu1 %v3931_v15  ;;  %v3975_v13 = vld [vmem:[%s4838_s0 + $0x1ac] ss:$16 sps:$4 sm:$0xff]  }
  0x81   :  { %v3978_v15 = vld [vmem:[%s4838_s0 + $0x1cc] ss:$16 sps:$4 sm:$0xff]  }
  0x82   :  { %1487 = vmatmul.mubr.bf16.gmra.mrb[32].mxu0 %v3828_v17  ;;  %2049 = vmatmul.mubr.bf16.gmra.mrb[32].mxu1 %v3828_v17  ;;  %v3981_v17 = vld [vmem:[%s4838_s0 + $0x1ec] ss:$16 sps:$4 sm:$0xff]  }
  0x83   :  { %1496 = vmatprep.mubr.bf16.mxu0 %v3829_v18  ;;  %2058 = vmatprep.mubr.bf16.mxu1 %v3829_v18  ;;  %v3983_v18 = vld [vmem:[%s4838_s0 + $0x1e8] ss:$16 sps:$4 sm:$0xff]  }
  0x8a   :  { %1497 = vmatmul.mubr.bf16.gmra.mrb[36].mxu0 %v3831_v19  ;;  %2059 = vmatmul.mubr.bf16.gmra.mrb[36].mxu1 %v3831_v19  ;;  %v3984_v19 = vld [vmem:[%s4838_s0 + $0x20c] ss:$16 sps:$4 sm:$0xff]  }
  0x8b   :  { %1506 = vmatprep.mubr.bf16.mxu0 %v3838_v20  ;;  %2068 = vmatprep.mubr.bf16.mxu1 %v3838_v20  ;;  %v3986_v20 = vld [vmem:[%s4838_s0 + $0x208] ss:$16 sps:$4 sm:$0xff]  }
  0x92   :  { %1507 = vmatmul.mubr.bf16.gmra.mrb[40].mxu0 %v3840_v21  ;;  %2069 = vmatmul.mubr.bf16.gmra.mrb[40].mxu1 %v3840_v21  ;;  %v3987_v21 = vld [vmem:[%s4838_s0 + $0x22c] ss:$16 sps:$4 sm:$0xff]  }
  0x93   :  { %1516 = vmatprep.mubr.bf16.mxu0 %v3841_v22  ;;  %2078 = vmatprep.mubr.bf16.mxu1 %v3841_v22  ;;  %v3989_v22 = vld [vmem:[%s4838_s0 + $0x228] ss:$16 sps:$4 sm:$0xff]  }
  0x9a   :  { %1517 = vmatmul.mubr.bf16.gmra.mrb[44].mxu0 %v3843_v23  ;;  %2079 = vmatmul.mubr.bf16.gmra.mrb[44].mxu1 %v3843_v23  ;;  %v3990_v23 = vld [vmem:[%s4838_s0 + $0x24c] ss:$16 sps:$4 sm:$0xff]  }
  0x9b   :  { %1526 = vmatprep.mubr.bf16.mxu0 %v3850_v24  ;;  %2088 = vmatprep.mubr.bf16.mxu1 %v3850_v24  ;;  %v3992_v24 = vld [vmem:[%s4838_s0 + $0x248] ss:$16 sps:$4 sm:$0xff]  }
  0xa2   :  { %1527 = vmatmul.mubr.bf16.gmra.mrb[48].mxu0 %v3852_v25  ;;  %2089 = vmatmul.mubr.bf16.gmra.mrb[48].mxu1 %v3852_v25  ;;  %v3993_v25 = vld [vmem:[%s4838_s0 + $0x26c] ss:$16 sps:$4 sm:$0xff]  }
  0xa3   :  { %1536 = vmatprep.mubr.bf16.mxu0 %v3859_v26  ;;  %2098 = vmatprep.mubr.bf16.mxu1 %v3859_v26  ;;  %v3995_v26 = vld [vmem:[%s4838_s0 + $0x268] ss:$16 sps:$4 sm:$0xff]  }
  0xaa   :  { %1537 = vmatmul.mubr.bf16.gmra.mrb[52].mxu0 %v3861_v27  ;;  %2099 = vmatmul.mubr.bf16.gmra.mrb[52].mxu1 %v3861_v27  ;;  %v3996_v27 = vld [vmem:[%s4838_s0 + $0x28c] ss:$16 sps:$4 sm:$0xff]  }
  0xab   :  { %1546 = vmatprep.mubr.bf16.mxu0 %v3862_v28  ;;  %2108 = vmatprep.mubr.bf16.mxu1 %v3862_v28  ;;  %v3998_v28 = vld [vmem:[%s4838_s0 + $0x288] ss:$16 sps:$4 sm:$0xff]  }
  0xb2   :  { %1547 = vmatmul.mubr.bf16.gmra.mrb[56].mxu0 %v3864_v29  ;;  %2109 = vmatmul.mubr.bf16.gmra.mrb[56].mxu1 %v3864_v29  ;;  %v3999_v29 = vld [vmem:[%s4838_s0 + $0x2ac] ss:$16 sps:$4 sm:$0xff]  }
  0xb3   :  { %1556 = vmatprep.mubr.bf16.mxu0 %v3871_v30  ;;  %2118 = vmatprep.mubr.bf16.mxu1 %v3871_v30  ;;  %v4001_v30 = vld [vmem:[%s4838_s0 + $0x2a8] ss:$16 sps:$4 sm:$0xff]  }
  0xba   :  { %1557 = vmatmul.mubr.bf16.gmra.mrb[60].mxu0 %v3873_v31  ;;  %2119 = vmatmul.mubr.bf16.gmra.mrb[60].mxu1 %v3873_v31  ;;  %v4002_v31 = vld [vmem:[%s4838_s0 + $0x2cc] ss:$16 sps:$4 sm:$0xff]  }
  0xbb   :  { %1566 = vmatprep.mubr.bf16.mxu0 %v3880_v32  ;;  %2128 = vmatprep.mubr.bf16.mxu1 %v3880_v32  ;;  %v4004_v32 = vld [vmem:[%s4838_s0 + $0x2c8] ss:$16 sps:$4 sm:$0xff]  }
  0xc2   :  { %1567 = vmatmul.mubr.bf16.gmra.mrb[64].mxu0 %v3882_v33  ;;  %2129 = vmatmul.mubr.bf16.gmra.mrb[64].mxu1 %v3882_v33  ;;  %v4005_v33 = vld [vmem:[%s4838_s0 + $0x2ec] ss:$16 sps:$4 sm:$0xff]  }
  0xc3   :  { %1576 = vmatprep.mubr.bf16.mxu0 %v3883_v34  ;;  %2138 = vmatprep.mubr.bf16.mxu1 %v3883_v34  ;;  %v111_v34 = vld [vmem:[%s4838_s0 + $0x308] sm:$0xff] }
  0xca   :  { %1577 = vmatmul.mubr.bf16.gmra.mrb[68].mxu0 %v3885_v35  ;;  %2139 = vmatmul.mubr.bf16.gmra.mrb[68].mxu1 %v3885_v35  ;;  %v4007_v35 = vld [vmem:[%s4838_s0 + $0x2e8] ss:$16 sps:$4 sm:$0xff]  }
  0xcb   :  { %1586 = vmatprep.mubr.bf16.mxu0 %v3892_v36  ;;  %2148 = vmatprep.mubr.bf16.mxu1 %v3892_v36  ;;  %v3099_v36 = vcombine.high %v111_v34, %v111_v34 }
  0xd2   :  { %1587 = vmatmul.mubr.bf16.gmra.mrb[72].mxu0 %v3894_v37  ;;  %2149 = vmatmul.mubr.bf16.gmra.mrb[72].mxu1 %v3894_v37  ;;  %v3098_v37 = vcombine.low %v111_v34, %v111_v34 }
  0xd3   :  { %1596 = vmatprep.mubr.bf16.mxu0 %v3901_v38  ;;  %2158 = vmatprep.mubr.bf16.mxu1 %v3901_v38 }
  0xda   :  { %1597 = vmatmul.mubr.bf16.gmra.mrb[76].mxu0 %v3903_v39  ;;  %2159 = vmatmul.mubr.bf16.gmra.mrb[76].mxu1 %v3903_v39 }
  0xdb   :  { %1606 = vmatprep.mubr.bf16.mxu0 %v3904_v40  ;;  %2168 = vmatprep.mubr.bf16.mxu1 %v3904_v40 }
  0xe2   :  { %1607 = vmatmul.mubr.bf16.gmra.mrb[80].mxu0 %v3906_v41  ;;  %2169 = vmatmul.mubr.bf16.gmra.mrb[80].mxu1 %v3906_v41 }
  0xe3   :  { %1616 = vmatprep.mubr.bf16.mxu0 %v3913_v42  ;;  %2178 = vmatprep.mubr.bf16.mxu1 %v3913_v42 }
  0xea   :  { %1617 = vmatmul.mubr.bf16.gmra.mrb[84].mxu0 %v3915_v43  ;;  %2179 = vmatmul.mubr.bf16.gmra.mrb[84].mxu1 %v3915_v43 }
  0xeb   :  { %1626 = vmatprep.mubr.bf16.mxu0 %v3916_v44  ;;  %2188 = vmatprep.mubr.bf16.mxu1 %v3916_v44 }
  0xf2   :  { %1627 = vmatmul.mubr.bf16.gmra.mrb[88].mxu0 %v3924_v45  ;;  %2189 = vmatmul.mubr.bf16.gmra.mrb[88].mxu1 %v3924_v45 }
  0xf3   :  { %1636 = vmatprep.mubr.bf16.mxu0 %v3925_v46  ;;  %2198 = vmatprep.mubr.bf16.mxu1 %v3925_v46  ;;  %v4711_v46 = vld [vmem:[%s4839_s2] ss:$0 sm:$0xff] }
  0xfa   :  { %1637 = vmatmul.mubr.bf16.gmra.mrb[92].mxu0 %v3927_v48  ;;  %2199 = vmatmul.mubr.bf16.gmra.mrb[92].mxu1 %v3927_v48 }
  0xfb   :  { %1646 = vmatprep.mubr.bf16.mxu0 %v3097_v49  ;;  %2208 = vmatprep.mubr.bf16.mxu1 %v3097_v49 }
 0x102   :  { %1647 = vmatmul.mubr.bf16.gmra.mrb[96].mxu0 %v3096_v50  ;;  %2209 = vmatmul.mubr.bf16.gmra.mrb[96].mxu1 %v3096_v50 }
 0x103   :  { %1687 = vmatprep.mubr.bf16.mxu0 %v3938_v51  ;;  %2249 = vmatprep.mubr.bf16.mxu1 %v3938_v51 }
 0x10a   :  { %1688 = vmatmul.mubr.bf16.vlgmr.msra.gmra.mrb[0].mxu0 %v3936_v52  ;;  %2250 = vmatmul.mubr.bf16.vlgmr.msra.gmra.mrb[0].mxu1 %v3936_v52 }
 0x10b   :  { %1697 = vmatprep.mubr.bf16.mxu0 %v3939_v53  ;;  %2259 = vmatprep.mubr.bf16.mxu1 %v3939_v53 }
 0x112   :  { %1698 = vmatmul.mubr.bf16.gmra.mrb[4].mxu0 %v3941_v54  ;;  %2260 = vmatmul.mubr.bf16.gmra.mrb[4].mxu1 %v3941_v54 }
 0x113   :  { %1707 = vmatprep.mubr.bf16.mxu0 %v3942_v55  ;;  %2269 = vmatprep.mubr.bf16.mxu1 %v3942_v55 }
 0x11a   :  { %1708 = vmatmul.mubr.bf16.gmra.mrb[8].mxu0 %v3944_v56  ;;  %2270 = vmatmul.mubr.bf16.gmra.mrb[8].mxu1 %v3944_v56 }
 0x11b   :  { %1717 = vmatprep.mubr.bf16.mxu0 %v3945_v57  ;;  %2279 = vmatprep.mubr.bf16.mxu1 %v3945_v57 }
 0x122   :  { %1718 = vmatmul.mubr.bf16.gmra.mrb[12].mxu0 %v3947_v58  ;;  %2280 = vmatmul.mubr.bf16.gmra.mrb[12].mxu1 %v3947_v58 }
 0x123   :  { %1727 = vmatprep.mubr.bf16.mxu0 %v3948_v59  ;;  %2289 = vmatprep.mubr.bf16.mxu1 %v3948_v59 }
 0x12a   :  { %1728 = vmatmul.mubr.bf16.gmra.mrb[16].mxu0 %v3950_v60  ;;  %2290 = vmatmul.mubr.bf16.gmra.mrb[16].mxu1 %v3950_v60 }
 0x12b   :  { %1737 = vmatprep.mubr.bf16.mxu0 %v3951_v61  ;;  %2299 = vmatprep.mubr.bf16.mxu1 %v3951_v61 }
 0x132   :  { %1738 = vmatmul.mubr.bf16.gmra.mrb[20].mxu0 %v3953_v62  ;;  %2300 = vmatmul.mubr.bf16.gmra.mrb[20].mxu1 %v3953_v62 }
 0x133   :  { %1747 = vmatprep.mubr.bf16.mxu0 %v3954_v63  ;;  %2309 = vmatprep.mubr.bf16.mxu1 %v3954_v63 }
 0x13a   :  { %1748 = vmatmul.mubr.bf16.gmra.mrb[24].mxu0 %v3956_v0  ;;  %2310 = vmatmul.mubr.bf16.gmra.mrb[24].mxu1 %v3956_v0 }
 0x13b   :  { %1757 = vmatprep.mubr.bf16.mxu0 %v3957_v1  ;;  %2319 = vmatprep.mubr.bf16.mxu1 %v3957_v1 }
 0x142   :  { %1758 = vmatmul.mubr.bf16.gmra.mrb[28].mxu0 %v3959_v2  ;;  %2320 = vmatmul.mubr.bf16.gmra.mrb[28].mxu1 %v3959_v2 }
 0x143   :  { %1767 = vmatprep.mubr.bf16.mxu0 %v3960_v3  ;;  %2329 = vmatprep.mubr.bf16.mxu1 %v3960_v3 }
 0x14a   :  { %1768 = vmatmul.mubr.bf16.gmra.mrb[32].mxu0 %v3962_v4  ;;  %2330 = vmatmul.mubr.bf16.gmra.mrb[32].mxu1 %v3962_v4 }
 0x14b   :  { %1777 = vmatprep.mubr.bf16.mxu0 %v3963_v5  ;;  %2339 = vmatprep.mubr.bf16.mxu1 %v3963_v5 }
 0x152   :  { %1778 = vmatmul.mubr.bf16.gmra.mrb[36].mxu0 %v3965_v6  ;;  %2340 = vmatmul.mubr.bf16.gmra.mrb[36].mxu1 %v3965_v6 }
 0x153   :  { %1787 = vmatprep.mubr.bf16.mxu0 %v3966_v7  ;;  %2349 = vmatprep.mubr.bf16.mxu1 %v3966_v7 }
 0x15a   :  { %1788 = vmatmul.mubr.bf16.gmra.mrb[40].mxu0 %v3968_v8  ;;  %2350 = vmatmul.mubr.bf16.gmra.mrb[40].mxu1 %v3968_v8 }
 0x15b   :  { %1797 = vmatprep.mubr.bf16.mxu0 %v3969_v9  ;;  %2359 = vmatprep.mubr.bf16.mxu1 %v3969_v9 }
 0x162   :  { %1798 = vmatmul.mubr.bf16.gmra.mrb[44].mxu0 %v3971_v10  ;;  %2360 = vmatmul.mubr.bf16.gmra.mrb[44].mxu1 %v3971_v10 }
 0x163   :  { %1807 = vmatprep.mubr.bf16.mxu0 %v3972_v11  ;;  %2369 = vmatprep.mubr.bf16.mxu1 %v3972_v11 }
 0x16a   :  { %1808 = vmatmul.mubr.bf16.gmra.mrb[48].mxu0 %v3974_v12  ;;  %2370 = vmatmul.mubr.bf16.gmra.mrb[48].mxu1 %v3974_v12 }
 0x16b   :  { %1817 = vmatprep.mubr.bf16.mxu0 %v3975_v13  ;;  %2379 = vmatprep.mubr.bf16.mxu1 %v3975_v13 }
 0x172   :  { %1818 = vmatmul.mubr.bf16.gmra.mrb[52].mxu0 %v3977_v14  ;;  %2380 = vmatmul.mubr.bf16.gmra.mrb[52].mxu1 %v3977_v14 }
 0x173   :  { %1827 = vmatprep.mubr.bf16.mxu0 %v3978_v15  ;;  %2389 = vmatprep.mubr.bf16.mxu1 %v3978_v15 }
 0x17a   :  { %1828 = vmatmul.mubr.bf16.gmra.mrb[56].mxu0 %v3980_v16  ;;  %2390 = vmatmul.mubr.bf16.gmra.mrb[56].mxu1 %v3980_v16 }
 0x17b   :  { %1837 = vmatprep.mubr.bf16.mxu0 %v3981_v17  ;;  %2399 = vmatprep.mubr.bf16.mxu1 %v3981_v17 }
 0x182   :  { %1838 = vmatmul.mubr.bf16.gmra.mrb[60].mxu0 %v3983_v18  ;;  %2400 = vmatmul.mubr.bf16.gmra.mrb[60].mxu1 %v3983_v18 }
 0x183   :  { %1847 = vmatprep.mubr.bf16.mxu0 %v3984_v19  ;;  %2409 = vmatprep.mubr.bf16.mxu1 %v3984_v19 }
 0x18a   :  { %1848 = vmatmul.mubr.bf16.gmra.mrb[64].mxu0 %v3986_v20  ;;  %2410 = vmatmul.mubr.bf16.gmra.mrb[64].mxu1 %v3986_v20 }
 0x18b   :  { %1857 = vmatprep.mubr.bf16.mxu0 %v3987_v21  ;;  %2419 = vmatprep.mubr.bf16.mxu1 %v3987_v21 }
 0x192   :  { %1858 = vmatmul.mubr.bf16.gmra.mrb[68].mxu0 %v3989_v22  ;;  %2420 = vmatmul.mubr.bf16.gmra.mrb[68].mxu1 %v3989_v22 }
 0x193   :  { %1867 = vmatprep.mubr.bf16.mxu0 %v3990_v23  ;;  %2429 = vmatprep.mubr.bf16.mxu1 %v3990_v23 }
 0x19a   :  { %1868 = vmatmul.mubr.bf16.gmra.mrb[72].mxu0 %v3992_v24  ;;  %2430 = vmatmul.mubr.bf16.gmra.mrb[72].mxu1 %v3992_v24 }
 0x19b   :  { %1877 = vmatprep.mubr.bf16.mxu0 %v3993_v25  ;;  %2439 = vmatprep.mubr.bf16.mxu1 %v3993_v25 }
 0x1a2   :  { %1878 = vmatmul.mubr.bf16.gmra.mrb[76].mxu0 %v3995_v26  ;;  %2440 = vmatmul.mubr.bf16.gmra.mrb[76].mxu1 %v3995_v26 }
 0x1a3   :  { %1887 = vmatprep.mubr.bf16.mxu0 %v3996_v27  ;;  %2449 = vmatprep.mubr.bf16.mxu1 %v3996_v27 }
 0x1aa   :  { %1888 = vmatmul.mubr.bf16.gmra.mrb[80].mxu0 %v3998_v28  ;;  %2450 = vmatmul.mubr.bf16.gmra.mrb[80].mxu1 %v3998_v28 }
 0x1ab   :  { %1897 = vmatprep.mubr.bf16.mxu0 %v3999_v29  ;;  %2459 = vmatprep.mubr.bf16.mxu1 %v3999_v29 }
 0x1b2   :  { %1898 = vmatmul.mubr.bf16.gmra.mrb[84].mxu0 %v4001_v30  ;;  %2460 = vmatmul.mubr.bf16.gmra.mrb[84].mxu1 %v4001_v30 }
 0x1b3   :  { %1907 = vmatprep.mubr.bf16.mxu0 %v4002_v31  ;;  %2469 = vmatprep.mubr.bf16.mxu1 %v4002_v31 }
 0x1ba   :  { %1908 = vmatmul.mubr.bf16.gmra.mrb[88].mxu0 %v4004_v32  ;;  %2470 = vmatmul.mubr.bf16.gmra.mrb[88].mxu1 %v4004_v32 }
 0x1bb   :  { %1917 = vmatprep.mubr.bf16.mxu0 %v4005_v33  ;;  %2479 = vmatprep.mubr.bf16.mxu1 %v4005_v33 }
 0x1c2   :  { %1918 = vmatmul.mubr.bf16.gmra.mrb[92].mxu0 %v4007_v35  ;;  %2480 = vmatmul.mubr.bf16.gmra.mrb[92].mxu1 %v4007_v35 }
 0x1c3   :  { %1927 = vmatprep.mubr.bf16.mxu0 %v3099_v36  ;;  %2489 = vmatprep.mubr.bf16.mxu1 %v3099_v36 }
 0x1ca   :  { %1928 = vmatmul.mubr.bf16.gmra.mrb[96].mxu0 %v3098_v37  ;;  %2490 = vmatmul.mubr.bf16.gmra.mrb[96].mxu1 %v3098_v37 }
 0x1dd   :  { %v1689_v38 = vpop.f32.mrb[0].mxu0  ;;  %v2251_v39 = vpop.f32.mrb[0].mxu1 }
 0x1de   :  { %v1691_v40 = vpop.f32.mrb[1].mxu0  ;;  %v2253_v41 = vpop.f32.mrb[1].mxu1 }
 0x1df   :  { %v2498_v42 = vmax.f32 %v1689_v38, %v1691_v40  ;;  %v2547_v43 = vmax.f32 %v2251_v39, %v2253_v41  ;;  %v1693_v44 = vpop.f32.mrb[2].mxu0  ;;  %v2255_v45 = vpop.f32.mrb[2].mxu1 }
 0x1e0   :  { %v1695_v47 = vpop.f32.mrb[3].mxu0  ;;  %v2257_v48 = vpop.f32.mrb[3].mxu1 }
 0x1e1   :  { %v2596_v49 = vmax.f32 %v2498_v42, %v2547_v43  ;;  %v2499_v50 = vmax.f32 %v1693_v44, %v1695_v47  ;;  %v2548_v51 = vmax.f32 %v2255_v45, %v2257_v48 }
 0x1e3   :  { %v2652_v52 = vadd.f32 %v4711_v46, %v2596_v49  ;;  %v2597_v53 = vmax.f32 %v2499_v50, %v2548_v51 }
 0x1e5   :  { %v2653_v54 = vadd.f32 %v4711_v46, %v2597_v53  ;;  %v1699_v55 = vpop.f32.mrb[4].mxu0  ;;  %v2261_v56 = vpop.f32.mrb[4].mxu1  ;;  %v2701_v59 = vmax.f32 %v2652_v52, 0.0 }
 0x1e6   :  { %v1701_v57 = vpop.f32.mrb[5].mxu0  ;;  %v2263_v58 = vpop.f32.mrb[5].mxu1 }
 0x1e7   :  { %v2702_v60 = vmax.f32 %v2653_v54, 0.0  ;;  %v2500_v61 = vmax.f32 %v1699_v55, %v1701_v57  ;;  %v2549_v62 = vmax.f32 %v2261_v56, %v2263_v58  ;;  %v1703_v63 = vpop.f32.mrb[6].mxu0  ;;  %v2265_v0 = vpop.f32.mrb[6].mxu1 }
 0x1e8   :  { %v1705_v1 = vpop.f32.mrb[7].mxu0  ;;  %v2267_v2 = vpop.f32.mrb[7].mxu1 }
 0x1e9   :  { %v3330_v3 = vpack.c.bf16 %v2702_v60, %v2701_v59  ;;  %v2598_v4 = vmax.f32 %v2500_v61, %v2549_v62  ;;  %v2501_v5 = vmax.f32 %v1703_v63, %v1705_v1  ;;  %v2550_v6 = vmax.f32 %v2265_v0, %v2267_v2 }
 0x1eb   :  { %3331 = vst [vmem:[%s4840_s3] sm:$0xff] %v3330_v3   ;;  %v2654_v7 = vadd.f32 %v4711_v46, %v2598_v4  ;;  %v2599_v8 = vmax.f32 %v2501_v5, %v2550_v6 }
 0x1ed   :  { %v2655_v9 = vadd.f32 %v4711_v46, %v2599_v8  ;;  %v1709_v10 = vpop.f32.mrb[8].mxu0  ;;  %v2271_v11 = vpop.f32.mrb[8].mxu1  ;;  %v2703_v14 = vmax.f32 %v2654_v7, 0.0 }
 0x1ee   :  { %v1711_v12 = vpop.f32.mrb[9].mxu0  ;;  %v2273_v13 = vpop.f32.mrb[9].mxu1 }
 0x1ef   :  { %v2704_v15 = vmax.f32 %v2655_v9, 0.0  ;;  %v2502_v16 = vmax.f32 %v1709_v10, %v1711_v12  ;;  %v2551_v17 = vmax.f32 %v2271_v11, %v2273_v13  ;;  %v1713_v18 = vpop.f32.mrb[10].mxu0  ;;  %v2275_v19 = vpop.f32.mrb[10].mxu1 }
 0x1f0   :  { %v1715_v20 = vpop.f32.mrb[11].mxu0  ;;  %v2277_v21 = vpop.f32.mrb[11].mxu1 }
 0x1f1   :  { %v3335_v22 = vpack.c.bf16 %v2704_v15, %v2703_v14  ;;  %v2600_v23 = vmax.f32 %v2502_v16, %v2551_v17  ;;  %v2503_v24 = vmax.f32 %v1713_v18, %v1715_v20  ;;  %v2552_v25 = vmax.f32 %v2275_v19, %v2277_v21 }
 0x1f3   :  { %3447 = vst [vmem:[%s4840_s3 + $0x8] sm:$0xff] %v3335_v22   ;;  %v2656_v26 = vadd.f32 %v4711_v46, %v2600_v23  ;;  %v2601_v27 = vmax.f32 %v2503_v24, %v2552_v25 }
 0x1f5   :  { %v2657_v28 = vadd.f32 %v4711_v46, %v2601_v27  ;;  %v1719_v29 = vpop.f32.mrb[12].mxu0  ;;  %v2281_v30 = vpop.f32.mrb[12].mxu1  ;;  %v2705_v33 = vmax.f32 %v2656_v26, 0.0 }
 0x1f6   :  { %v1721_v31 = vpop.f32.mrb[13].mxu0  ;;  %v2283_v32 = vpop.f32.mrb[13].mxu1 }
 0x1f7   :  { %v2706_v34 = vmax.f32 %v2657_v28, 0.0  ;;  %v2504_v35 = vmax.f32 %v1719_v29, %v1721_v31  ;;  %v2553_v36 = vmax.f32 %v2281_v30, %v2283_v32  ;;  %v1723_v37 = vpop.f32.mrb[14].mxu0  ;;  %v2285_v38 = vpop.f32.mrb[14].mxu1 }
 0x1f8   :  { %v1725_v39 = vpop.f32.mrb[15].mxu0  ;;  %v2287_v40 = vpop.f32.mrb[15].mxu1 }
 0x1f9   :  { %v3340_v41 = vpack.c.bf16 %v2706_v34, %v2705_v33  ;;  %v2602_v42 = vmax.f32 %v2504_v35, %v2553_v36  ;;  %v2505_v43 = vmax.f32 %v1723_v37, %v1725_v39  ;;  %v2554_v44 = vmax.f32 %v2285_v38, %v2287_v40 }
 0x1fb   :  { %3448 = vst [vmem:[%s4840_s3 + $0x10] sm:$0xff] %v3340_v41   ;;  %v2658_v45 = vadd.f32 %v4711_v46, %v2602_v42  ;;  %v2603_v47 = vmax.f32 %v2505_v43, %v2554_v44 }
 0x1fd   :  { %v2659_v48 = vadd.f32 %v4711_v46, %v2603_v47  ;;  %v1729_v49 = vpop.f32.mrb[16].mxu0  ;;  %v2291_v50 = vpop.f32.mrb[16].mxu1  ;;  %v2707_v53 = vmax.f32 %v2658_v45, 0.0 }
 0x1fe   :  { %v1731_v51 = vpop.f32.mrb[17].mxu0  ;;  %v2293_v52 = vpop.f32.mrb[17].mxu1 }
 0x1ff   :  { %v2708_v54 = vmax.f32 %v2659_v48, 0.0  ;;  %v2506_v55 = vmax.f32 %v1729_v49, %v1731_v51  ;;  %v2555_v56 = vmax.f32 %v2291_v50, %v2293_v52  ;;  %v1733_v57 = vpop.f32.mrb[18].mxu0  ;;  %v2295_v58 = vpop.f32.mrb[18].mxu1 }
 0x200   :  { %v1735_v59 = vpop.f32.mrb[19].mxu0  ;;  %v2297_v60 = vpop.f32.mrb[19].mxu1 }
 0x201   :  { %v3345_v61 = vpack.c.bf16 %v2708_v54, %v2707_v53  ;;  %v2604_v62 = vmax.f32 %v2506_v55, %v2555_v56  ;;  %v2507_v63 = vmax.f32 %v1733_v57, %v1735_v59  ;;  %v2556_v0 = vmax.f32 %v2295_v58, %v2297_v60 }
 0x203   :  { %3449 = vst [vmem:[%s4840_s3 + $0x18] sm:$0xff] %v3345_v61   ;;  %v2660_v1 = vadd.f32 %v4711_v46, %v2604_v62  ;;  %v2605_v2 = vmax.f32 %v2507_v63, %v2556_v0 }
 0x205   :  { %v2661_v3 = vadd.f32 %v4711_v46, %v2605_v2  ;;  %v1739_v4 = vpop.f32.mrb[20].mxu0  ;;  %v2301_v5 = vpop.f32.mrb[20].mxu1  ;;  %v2709_v8 = vmax.f32 %v2660_v1, 0.0 }
 0x206   :  { %v1741_v6 = vpop.f32.mrb[21].mxu0  ;;  %v2303_v7 = vpop.f32.mrb[21].mxu1 }
 0x207   :  { %v2710_v9 = vmax.f32 %v2661_v3, 0.0  ;;  %v2508_v10 = vmax.f32 %v1739_v4, %v1741_v6  ;;  %v2557_v11 = vmax.f32 %v2301_v5, %v2303_v7  ;;  %v1743_v12 = vpop.f32.mrb[22].mxu0  ;;  %v2305_v13 = vpop.f32.mrb[22].mxu1 }
 0x208   :  { %v1745_v14 = vpop.f32.mrb[23].mxu0  ;;  %v2307_v15 = vpop.f32.mrb[23].mxu1 }
 0x209   :  { %v3350_v16 = vpack.c.bf16 %v2710_v9, %v2709_v8  ;;  %v2606_v17 = vmax.f32 %v2508_v10, %v2557_v11  ;;  %v2509_v18 = vmax.f32 %v1743_v12, %v1745_v14  ;;  %v2558_v19 = vmax.f32 %v2305_v13, %v2307_v15 }
 0x20b   :  { %3450 = vst [vmem:[%s4840_s3 + $0x20] sm:$0xff] %v3350_v16   ;;  %v2662_v20 = vadd.f32 %v4711_v46, %v2606_v17  ;;  %v2607_v21 = vmax.f32 %v2509_v18, %v2558_v19 }
 0x20d   :  { %v2663_v22 = vadd.f32 %v4711_v46, %v2607_v21  ;;  %v1749_v23 = vpop.f32.mrb[24].mxu0  ;;  %v2311_v24 = vpop.f32.mrb[24].mxu1  ;;  %v2711_v27 = vmax.f32 %v2662_v20, 0.0 }
 0x20e   :  { %v1751_v25 = vpop.f32.mrb[25].mxu0  ;;  %v2313_v26 = vpop.f32.mrb[25].mxu1 }
 0x20f   :  { %v2712_v28 = vmax.f32 %v2663_v22, 0.0  ;;  %v2510_v29 = vmax.f32 %v1749_v23, %v1751_v25  ;;  %v2559_v30 = vmax.f32 %v2311_v24, %v2313_v26  ;;  %v1753_v31 = vpop.f32.mrb[26].mxu0  ;;  %v2315_v32 = vpop.f32.mrb[26].mxu1 }
 0x210   :  { %v1755_v33 = vpop.f32.mrb[27].mxu0  ;;  %v2317_v34 = vpop.f32.mrb[27].mxu1 }
 0x211   :  { %v3355_v35 = vpack.c.bf16 %v2712_v28, %v2711_v27  ;;  %v2608_v36 = vmax.f32 %v2510_v29, %v2559_v30  ;;  %v2511_v37 = vmax.f32 %v1753_v31, %v1755_v33  ;;  %v2560_v38 = vmax.f32 %v2315_v32, %v2317_v34 }
 0x213   :  { %3451 = vst [vmem:[%s4840_s3 + $0x28] sm:$0xff] %v3355_v35   ;;  %v2664_v39 = vadd.f32 %v4711_v46, %v2608_v36  ;;  %v2609_v40 = vmax.f32 %v2511_v37, %v2560_v38 }
 0x215   :  { %v2665_v41 = vadd.f32 %v4711_v46, %v2609_v40  ;;  %v1759_v42 = vpop.f32.mrb[28].mxu0  ;;  %v2321_v43 = vpop.f32.mrb[28].mxu1  ;;  %v2713_v47 = vmax.f32 %v2664_v39, 0.0 }
 0x216   :  { %v1761_v44 = vpop.f32.mrb[29].mxu0  ;;  %v2323_v45 = vpop.f32.mrb[29].mxu1 }
 0x217   :  { %v2714_v48 = vmax.f32 %v2665_v41, 0.0  ;;  %v2512_v49 = vmax.f32 %v1759_v42, %v1761_v44  ;;  %v2561_v50 = vmax.f32 %v2321_v43, %v2323_v45  ;;  %v1763_v51 = vpop.f32.mrb[30].mxu0  ;;  %v2325_v52 = vpop.f32.mrb[30].mxu1 }
 0x218   :  { %v1765_v53 = vpop.f32.mrb[31].mxu0  ;;  %v2327_v54 = vpop.f32.mrb[31].mxu1 }
 0x219   :  { %v3360_v55 = vpack.c.bf16 %v2714_v48, %v2713_v47  ;;  %v2610_v56 = vmax.f32 %v2512_v49, %v2561_v50  ;;  %v2513_v57 = vmax.f32 %v1763_v51, %v1765_v53  ;;  %v2562_v58 = vmax.f32 %v2325_v52, %v2327_v54 }
 0x21b   :  { %3452 = vst [vmem:[%s4840_s3 + $0x30] sm:$0xff] %v3360_v55   ;;  %v2666_v59 = vadd.f32 %v4711_v46, %v2610_v56  ;;  %v2611_v60 = vmax.f32 %v2513_v57, %v2562_v58 }
 0x21d   :  { %v2667_v61 = vadd.f32 %v4711_v46, %v2611_v60  ;;  %v1769_v62 = vpop.f32.mrb[32].mxu0  ;;  %v2331_v63 = vpop.f32.mrb[32].mxu1  ;;  %v2715_v2 = vmax.f32 %v2666_v59, 0.0 }
 0x21e   :  { %v1771_v0 = vpop.f32.mrb[33].mxu0  ;;  %v2333_v1 = vpop.f32.mrb[33].mxu1 }
 0x21f   :  { %v2716_v3 = vmax.f32 %v2667_v61, 0.0  ;;  %v2514_v4 = vmax.f32 %v1769_v62, %v1771_v0  ;;  %v2563_v5 = vmax.f32 %v2331_v63, %v2333_v1  ;;  %v1773_v6 = vpop.f32.mrb[34].mxu0  ;;  %v2335_v7 = vpop.f32.mrb[34].mxu1 }
 0x220   :  { %v1775_v8 = vpop.f32.mrb[35].mxu0  ;;  %v2337_v9 = vpop.f32.mrb[35].mxu1 }
 0x221   :  { %v3365_v10 = vpack.c.bf16 %v2716_v3, %v2715_v2  ;;  %v2612_v11 = vmax.f32 %v2514_v4, %v2563_v5  ;;  %v2515_v12 = vmax.f32 %v1773_v6, %v1775_v8  ;;  %v2564_v13 = vmax.f32 %v2335_v7, %v2337_v9 }
 0x223   :  { %3453 = vst [vmem:[%s4840_s3 + $0x38] sm:$0xff] %v3365_v10   ;;  %v2668_v14 = vadd.f32 %v4711_v46, %v2612_v11  ;;  %v2613_v15 = vmax.f32 %v2515_v12, %v2564_v13 }
 0x225   :  { %v2669_v16 = vadd.f32 %v4711_v46, %v2613_v15  ;;  %v1779_v17 = vpop.f32.mrb[36].mxu0  ;;  %v2341_v18 = vpop.f32.mrb[36].mxu1  ;;  %v2717_v21 = vmax.f32 %v2668_v14, 0.0 }
 0x226   :  { %v1781_v19 = vpop.f32.mrb[37].mxu0  ;;  %v2343_v20 = vpop.f32.mrb[37].mxu1 }
 0x227   :  { %v2718_v22 = vmax.f32 %v2669_v16, 0.0  ;;  %v2516_v23 = vmax.f32 %v1779_v17, %v1781_v19  ;;  %v2565_v24 = vmax.f32 %v2341_v18, %v2343_v20  ;;  %v1783_v25 = vpop.f32.mrb[38].mxu0  ;;  %v2345_v26 = vpop.f32.mrb[38].mxu1 }
 0x228   :  { %v1785_v27 = vpop.f32.mrb[39].mxu0  ;;  %v2347_v28 = vpop.f32.mrb[39].mxu1 }
 0x229   :  { %v3370_v29 = vpack.c.bf16 %v2718_v22, %v2717_v21  ;;  %v2614_v30 = vmax.f32 %v2516_v23, %v2565_v24  ;;  %v2517_v31 = vmax.f32 %v1783_v25, %v1785_v27  ;;  %v2566_v32 = vmax.f32 %v2345_v26, %v2347_v28 }
 0x22b   :  { %3454 = vst [vmem:[%s4840_s3 + $0x40] sm:$0xff] %v3370_v29   ;;  %v2670_v33 = vadd.f32 %v4711_v46, %v2614_v30  ;;  %v2615_v34 = vmax.f32 %v2517_v31, %v2566_v32 }
 0x22d   :  { %v2671_v35 = vadd.f32 %v4711_v46, %v2615_v34  ;;  %v1789_v36 = vpop.f32.mrb[40].mxu0  ;;  %v2351_v37 = vpop.f32.mrb[40].mxu1  ;;  %v2719_v40 = vmax.f32 %v2670_v33, 0.0 }
 0x22e   :  { %v1791_v38 = vpop.f32.mrb[41].mxu0  ;;  %v2353_v39 = vpop.f32.mrb[41].mxu1 }
 0x22f   :  { %v2720_v41 = vmax.f32 %v2671_v35, 0.0  ;;  %v2518_v42 = vmax.f32 %v1789_v36, %v1791_v38  ;;  %v2567_v43 = vmax.f32 %v2351_v37, %v2353_v39  ;;  %v1793_v44 = vpop.f32.mrb[42].mxu0  ;;  %v2355_v45 = vpop.f32.mrb[42].mxu1 }
 0x230   :  { %v1795_v47 = vpop.f32.mrb[43].mxu0  ;;  %v2357_v48 = vpop.f32.mrb[43].mxu1 }
 0x231   :  { %v3375_v49 = vpack.c.bf16 %v2720_v41, %v2719_v40  ;;  %v2616_v50 = vmax.f32 %v2518_v42, %v2567_v43  ;;  %v2519_v51 = vmax.f32 %v1793_v44, %v1795_v47  ;;  %v2568_v52 = vmax.f32 %v2355_v45, %v2357_v48 }
 0x233   :  { %3455 = vst [vmem:[%s4840_s3 + $0x48] sm:$0xff] %v3375_v49   ;;  %v2672_v53 = vadd.f32 %v4711_v46, %v2616_v50  ;;  %v2617_v54 = vmax.f32 %v2519_v51, %v2568_v52 }
 0x235   :  { %v2673_v55 = vadd.f32 %v4711_v46, %v2617_v54  ;;  %v1799_v56 = vpop.f32.mrb[44].mxu0  ;;  %v2361_v57 = vpop.f32.mrb[44].mxu1  ;;  %v2721_v60 = vmax.f32 %v2672_v53, 0.0 }
 0x236   :  { %v1801_v58 = vpop.f32.mrb[45].mxu0  ;;  %v2363_v59 = vpop.f32.mrb[45].mxu1 }
 0x237   :  { %v2722_v61 = vmax.f32 %v2673_v55, 0.0  ;;  %v2520_v62 = vmax.f32 %v1799_v56, %v1801_v58  ;;  %v2569_v63 = vmax.f32 %v2361_v57, %v2363_v59  ;;  %v1803_v0 = vpop.f32.mrb[46].mxu0  ;;  %v2365_v1 = vpop.f32.mrb[46].mxu1 }
 0x238   :  { %v1805_v2 = vpop.f32.mrb[47].mxu0  ;;  %v2367_v3 = vpop.f32.mrb[47].mxu1 }
 0x239   :  { %v3380_v4 = vpack.c.bf16 %v2722_v61, %v2721_v60  ;;  %v2618_v5 = vmax.f32 %v2520_v62, %v2569_v63  ;;  %v2521_v6 = vmax.f32 %v1803_v0, %v1805_v2  ;;  %v2570_v7 = vmax.f32 %v2365_v1, %v2367_v3 }
 0x23b   :  { %3456 = vst [vmem:[%s4840_s3 + $0x50] sm:$0xff] %v3380_v4   ;;  %v2674_v8 = vadd.f32 %v4711_v46, %v2618_v5  ;;  %v2619_v9 = vmax.f32 %v2521_v6, %v2570_v7 }
 0x23d   :  { %v2675_v10 = vadd.f32 %v4711_v46, %v2619_v9  ;;  %v1809_v11 = vpop.f32.mrb[48].mxu0  ;;  %v2371_v12 = vpop.f32.mrb[48].mxu1  ;;  %v2723_v15 = vmax.f32 %v2674_v8, 0.0 }
 0x23e   :  { %v1811_v13 = vpop.f32.mrb[49].mxu0  ;;  %v2373_v14 = vpop.f32.mrb[49].mxu1 }
 0x23f   :  { %v2724_v16 = vmax.f32 %v2675_v10, 0.0  ;;  %v2522_v17 = vmax.f32 %v1809_v11, %v1811_v13  ;;  %v2571_v18 = vmax.f32 %v2371_v12, %v2373_v14  ;;  %v1813_v19 = vpop.f32.mrb[50].mxu0  ;;  %v2375_v20 = vpop.f32.mrb[50].mxu1 }
 0x240   :  { %v1815_v21 = vpop.f32.mrb[51].mxu0  ;;  %v2377_v22 = vpop.f32.mrb[51].mxu1 }
 0x241   :  { %v3385_v23 = vpack.c.bf16 %v2724_v16, %v2723_v15  ;;  %v2620_v24 = vmax.f32 %v2522_v17, %v2571_v18  ;;  %v2523_v25 = vmax.f32 %v1813_v19, %v1815_v21  ;;  %v2572_v26 = vmax.f32 %v2375_v20, %v2377_v22 }
 0x243   :  { %3457 = vst [vmem:[%s4840_s3 + $0x58] sm:$0xff] %v3385_v23   ;;  %v2676_v27 = vadd.f32 %v4711_v46, %v2620_v24  ;;  %v2621_v28 = vmax.f32 %v2523_v25, %v2572_v26 }
 0x245   :  { %v2677_v29 = vadd.f32 %v4711_v46, %v2621_v28  ;;  %v1819_v30 = vpop.f32.mrb[52].mxu0  ;;  %v2381_v31 = vpop.f32.mrb[52].mxu1  ;;  %v2725_v34 = vmax.f32 %v2676_v27, 0.0 }
 0x246   :  { %v1821_v32 = vpop.f32.mrb[53].mxu0  ;;  %v2383_v33 = vpop.f32.mrb[53].mxu1 }
 0x247   :  { %v2726_v35 = vmax.f32 %v2677_v29, 0.0  ;;  %v2524_v36 = vmax.f32 %v1819_v30, %v1821_v32  ;;  %v2573_v37 = vmax.f32 %v2381_v31, %v2383_v33  ;;  %v1823_v38 = vpop.f32.mrb[54].mxu0  ;;  %v2385_v39 = vpop.f32.mrb[54].mxu1 }
 0x248   :  { %v1825_v40 = vpop.f32.mrb[55].mxu0  ;;  %v2387_v41 = vpop.f32.mrb[55].mxu1 }
 0x249   :  { %v3390_v42 = vpack.c.bf16 %v2726_v35, %v2725_v34  ;;  %v2622_v43 = vmax.f32 %v2524_v36, %v2573_v37  ;;  %v2525_v44 = vmax.f32 %v1823_v38, %v1825_v40  ;;  %v2574_v45 = vmax.f32 %v2385_v39, %v2387_v41 }
 0x24b   :  { %3458 = vst [vmem:[%s4840_s3 + $0x60] sm:$0xff] %v3390_v42   ;;  %v2678_v47 = vadd.f32 %v4711_v46, %v2622_v43  ;;  %v2623_v48 = vmax.f32 %v2525_v44, %v2574_v45 }
 0x24d   :  { %v2679_v49 = vadd.f32 %v4711_v46, %v2623_v48  ;;  %v1829_v50 = vpop.f32.mrb[56].mxu0  ;;  %v2391_v51 = vpop.f32.mrb[56].mxu1  ;;  %v2727_v54 = vmax.f32 %v2678_v47, 0.0 }
 0x24e   :  { %v1831_v52 = vpop.f32.mrb[57].mxu0  ;;  %v2393_v53 = vpop.f32.mrb[57].mxu1 }
 0x24f   :  { %v2728_v55 = vmax.f32 %v2679_v49, 0.0  ;;  %v2526_v56 = vmax.f32 %v1829_v50, %v1831_v52  ;;  %v2575_v57 = vmax.f32 %v2391_v51, %v2393_v53  ;;  %v1833_v58 = vpop.f32.mrb[58].mxu0  ;;  %v2395_v59 = vpop.f32.mrb[58].mxu1 }
 0x250   :  { %v1835_v60 = vpop.f32.mrb[59].mxu0  ;;  %v2397_v61 = vpop.f32.mrb[59].mxu1 }
 0x251   :  { %v3395_v62 = vpack.c.bf16 %v2728_v55, %v2727_v54  ;;  %v2624_v63 = vmax.f32 %v2526_v56, %v2575_v57  ;;  %v2527_v0 = vmax.f32 %v1833_v58, %v1835_v60  ;;  %v2576_v1 = vmax.f32 %v2395_v59, %v2397_v61 }
 0x253   :  { %3459 = vst [vmem:[%s4840_s3 + $0x68] sm:$0xff] %v3395_v62   ;;  %v2680_v2 = vadd.f32 %v4711_v46, %v2624_v63  ;;  %v2625_v3 = vmax.f32 %v2527_v0, %v2576_v1 }
 0x255   :  { %v2681_v4 = vadd.f32 %v4711_v46, %v2625_v3  ;;  %v1839_v5 = vpop.f32.mrb[60].mxu0  ;;  %v2401_v6 = vpop.f32.mrb[60].mxu1  ;;  %v2729_v9 = vmax.f32 %v2680_v2, 0.0 }
 0x256   :  { %v1841_v7 = vpop.f32.mrb[61].mxu0  ;;  %v2403_v8 = vpop.f32.mrb[61].mxu1 }
 0x257   :  { %v2730_v10 = vmax.f32 %v2681_v4, 0.0  ;;  %v2528_v11 = vmax.f32 %v1839_v5, %v1841_v7  ;;  %v2577_v12 = vmax.f32 %v2401_v6, %v2403_v8  ;;  %v1843_v13 = vpop.f32.mrb[62].mxu0  ;;  %v2405_v14 = vpop.f32.mrb[62].mxu1 }
 0x258   :  { %v1845_v15 = vpop.f32.mrb[63].mxu0  ;;  %v2407_v16 = vpop.f32.mrb[63].mxu1 }
 0x259   :  { %v3400_v17 = vpack.c.bf16 %v2730_v10, %v2729_v9  ;;  %v2626_v18 = vmax.f32 %v2528_v11, %v2577_v12  ;;  %v2529_v19 = vmax.f32 %v1843_v13, %v1845_v15  ;;  %v2578_v20 = vmax.f32 %v2405_v14, %v2407_v16 }
 0x25b   :  { %3460 = vst [vmem:[%s4840_s3 + $0x70] sm:$0xff] %v3400_v17   ;;  %v2682_v21 = vadd.f32 %v4711_v46, %v2626_v18  ;;  %v2627_v22 = vmax.f32 %v2529_v19, %v2578_v20 }
 0x25d   :  { %v2683_v23 = vadd.f32 %v4711_v46, %v2627_v22  ;;  %v1849_v24 = vpop.f32.mrb[64].mxu0  ;;  %v2411_v25 = vpop.f32.mrb[64].mxu1  ;;  %v2731_v28 = vmax.f32 %v2682_v21, 0.0 }
 0x25e   :  { %v1851_v26 = vpop.f32.mrb[65].mxu0  ;;  %v2413_v27 = vpop.f32.mrb[65].mxu1 }
 0x25f   :  { %v2732_v29 = vmax.f32 %v2683_v23, 0.0  ;;  %v2530_v30 = vmax.f32 %v1849_v24, %v1851_v26  ;;  %v2579_v31 = vmax.f32 %v2411_v25, %v2413_v27  ;;  %v1853_v32 = vpop.f32.mrb[66].mxu0  ;;  %v2415_v33 = vpop.f32.mrb[66].mxu1 }
 0x260   :  { %v1855_v34 = vpop.f32.mrb[67].mxu0  ;;  %v2417_v35 = vpop.f32.mrb[67].mxu1 }
 0x261   :  { %v3405_v36 = vpack.c.bf16 %v2732_v29, %v2731_v28  ;;  %v2628_v37 = vmax.f32 %v2530_v30, %v2579_v31  ;;  %v2531_v38 = vmax.f32 %v1853_v32, %v1855_v34  ;;  %v2580_v39 = vmax.f32 %v2415_v33, %v2417_v35 }
 0x263   :  { %3461 = vst [vmem:[%s4840_s3 + $0x78] sm:$0xff] %v3405_v36   ;;  %v2684_v40 = vadd.f32 %v4711_v46, %v2628_v37  ;;  %v2629_v41 = vmax.f32 %v2531_v38, %v2580_v39 }
 0x265   :  { %v2685_v42 = vadd.f32 %v4711_v46, %v2629_v41  ;;  %v1859_v43 = vpop.f32.mrb[68].mxu0  ;;  %v2421_v44 = vpop.f32.mrb[68].mxu1  ;;  %v2733_v48 = vmax.f32 %v2684_v40, 0.0 }
 0x266   :  { %v1861_v45 = vpop.f32.mrb[69].mxu0  ;;  %v2423_v47 = vpop.f32.mrb[69].mxu1 }
 0x267   :  { %v2734_v49 = vmax.f32 %v2685_v42, 0.0  ;;  %v2532_v50 = vmax.f32 %v1859_v43, %v1861_v45  ;;  %v2581_v51 = vmax.f32 %v2421_v44, %v2423_v47  ;;  %v1863_v52 = vpop.f32.mrb[70].mxu0  ;;  %v2425_v53 = vpop.f32.mrb[70].mxu1 }
 0x268   :  { %v1865_v54 = vpop.f32.mrb[71].mxu0  ;;  %v2427_v55 = vpop.f32.mrb[71].mxu1 }
 0x269   :  { %v3410_v56 = vpack.c.bf16 %v2734_v49, %v2733_v48  ;;  %v2630_v57 = vmax.f32 %v2532_v50, %v2581_v51  ;;  %v2533_v58 = vmax.f32 %v1863_v52, %v1865_v54  ;;  %v2582_v59 = vmax.f32 %v2425_v53, %v2427_v55 }
 0x26b   :  { %3462 = vst [vmem:[%s4840_s3 + $0x80] sm:$0xff] %v3410_v56   ;;  %v2686_v60 = vadd.f32 %v4711_v46, %v2630_v57  ;;  %v2631_v61 = vmax.f32 %v2533_v58, %v2582_v59 }
 0x26d   :  { %v2687_v62 = vadd.f32 %v4711_v46, %v2631_v61  ;;  %v1869_v63 = vpop.f32.mrb[72].mxu0  ;;  %v2431_v0 = vpop.f32.mrb[72].mxu1  ;;  %v2735_v3 = vmax.f32 %v2686_v60, 0.0 }
 0x26e   :  { %v1871_v1 = vpop.f32.mrb[73].mxu0  ;;  %v2433_v2 = vpop.f32.mrb[73].mxu1 }
 0x26f   :  { %v2736_v4 = vmax.f32 %v2687_v62, 0.0  ;;  %v2534_v5 = vmax.f32 %v1869_v63, %v1871_v1  ;;  %v2583_v6 = vmax.f32 %v2431_v0, %v2433_v2  ;;  %v1873_v7 = vpop.f32.mrb[74].mxu0  ;;  %v2435_v8 = vpop.f32.mrb[74].mxu1 }
 0x270   :  { %v1875_v9 = vpop.f32.mrb[75].mxu0  ;;  %v2437_v10 = vpop.f32.mrb[75].mxu1 }
 0x271   :  { %v3415_v11 = vpack.c.bf16 %v2736_v4, %v2735_v3  ;;  %v2632_v12 = vmax.f32 %v2534_v5, %v2583_v6  ;;  %v2535_v13 = vmax.f32 %v1873_v7, %v1875_v9  ;;  %v2584_v14 = vmax.f32 %v2435_v8, %v2437_v10 }
 0x273   :  { %3463 = vst [vmem:[%s4840_s3 + $0x88] sm:$0xff] %v3415_v11   ;;  %v2688_v15 = vadd.f32 %v4711_v46, %v2632_v12  ;;  %v2633_v16 = vmax.f32 %v2535_v13, %v2584_v14 }
 0x275   :  { %v2689_v17 = vadd.f32 %v4711_v46, %v2633_v16  ;;  %v1879_v18 = vpop.f32.mrb[76].mxu0  ;;  %v2441_v19 = vpop.f32.mrb[76].mxu1  ;;  %v2737_v22 = vmax.f32 %v2688_v15, 0.0 }
 0x276   :  { %v1881_v20 = vpop.f32.mrb[77].mxu0  ;;  %v2443_v21 = vpop.f32.mrb[77].mxu1 }
 0x277   :  { %v2738_v23 = vmax.f32 %v2689_v17, 0.0  ;;  %v2536_v24 = vmax.f32 %v1879_v18, %v1881_v20  ;;  %v2585_v25 = vmax.f32 %v2441_v19, %v2443_v21  ;;  %v1883_v26 = vpop.f32.mrb[78].mxu0  ;;  %v2445_v27 = vpop.f32.mrb[78].mxu1 }
 0x278   :  { %v1885_v28 = vpop.f32.mrb[79].mxu0  ;;  %v2447_v29 = vpop.f32.mrb[79].mxu1 }
 0x279   :  { %v3420_v30 = vpack.c.bf16 %v2738_v23, %v2737_v22  ;;  %v2634_v31 = vmax.f32 %v2536_v24, %v2585_v25  ;;  %v2537_v32 = vmax.f32 %v1883_v26, %v1885_v28  ;;  %v2586_v33 = vmax.f32 %v2445_v27, %v2447_v29 }
 0x27b   :  { %3464 = vst [vmem:[%s4840_s3 + $0x90] sm:$0xff] %v3420_v30   ;;  %v2690_v34 = vadd.f32 %v4711_v46, %v2634_v31  ;;  %v2635_v35 = vmax.f32 %v2537_v32, %v2586_v33 }
 0x27d   :  { %v2691_v36 = vadd.f32 %v4711_v46, %v2635_v35  ;;  %v1889_v37 = vpop.f32.mrb[80].mxu0  ;;  %v2451_v38 = vpop.f32.mrb[80].mxu1  ;;  %v2739_v41 = vmax.f32 %v2690_v34, 0.0 }
 0x27e   :  { %v1891_v39 = vpop.f32.mrb[81].mxu0  ;;  %v2453_v40 = vpop.f32.mrb[81].mxu1 }
 0x27f   :  { %v2740_v42 = vmax.f32 %v2691_v36, 0.0  ;;  %v2538_v43 = vmax.f32 %v1889_v37, %v1891_v39  ;;  %v2587_v44 = vmax.f32 %v2451_v38, %v2453_v40  ;;  %v1893_v45 = vpop.f32.mrb[82].mxu0  ;;  %v2455_v47 = vpop.f32.mrb[82].mxu1 }
 0x280   :  { %v1895_v48 = vpop.f32.mrb[83].mxu0  ;;  %v2457_v49 = vpop.f32.mrb[83].mxu1 }
 0x281   :  { %v3425_v50 = vpack.c.bf16 %v2740_v42, %v2739_v41  ;;  %v2636_v51 = vmax.f32 %v2538_v43, %v2587_v44  ;;  %v2539_v52 = vmax.f32 %v1893_v45, %v1895_v48  ;;  %v2588_v53 = vmax.f32 %v2455_v47, %v2457_v49 }
 0x283   :  { %3465 = vst [vmem:[%s4840_s3 + $0x98] sm:$0xff] %v3425_v50   ;;  %v2692_v54 = vadd.f32 %v4711_v46, %v2636_v51  ;;  %v2637_v55 = vmax.f32 %v2539_v52, %v2588_v53 }
 0x285   :  { %v2693_v56 = vadd.f32 %v4711_v46, %v2637_v55  ;;  %v1899_v57 = vpop.f32.mrb[84].mxu0  ;;  %v2461_v58 = vpop.f32.mrb[84].mxu1  ;;  %v2741_v61 = vmax.f32 %v2692_v54, 0.0 }
 0x286   :  { %v1901_v59 = vpop.f32.mrb[85].mxu0  ;;  %v2463_v60 = vpop.f32.mrb[85].mxu1 }
 0x287   :  { %v2742_v62 = vmax.f32 %v2693_v56, 0.0  ;;  %v2540_v63 = vmax.f32 %v1899_v57, %v1901_v59  ;;  %v2589_v0 = vmax.f32 %v2461_v58, %v2463_v60  ;;  %v1903_v1 = vpop.f32.mrb[86].mxu0  ;;  %v2465_v2 = vpop.f32.mrb[86].mxu1 }
 0x288   :  { %v1905_v3 = vpop.f32.mrb[87].mxu0  ;;  %v2467_v4 = vpop.f32.mrb[87].mxu1 }
 0x289   :  { %v3430_v5 = vpack.c.bf16 %v2742_v62, %v2741_v61  ;;  %v2638_v6 = vmax.f32 %v2540_v63, %v2589_v0  ;;  %v2541_v7 = vmax.f32 %v1903_v1, %v1905_v3  ;;  %v2590_v8 = vmax.f32 %v2465_v2, %v2467_v4 }
 0x28b   :  { %3466 = vst [vmem:[%s4840_s3 + $0xa0] sm:$0xff] %v3430_v5   ;;  %v2694_v9 = vadd.f32 %v4711_v46, %v2638_v6  ;;  %v2639_v10 = vmax.f32 %v2541_v7, %v2590_v8 }
 0x28d   :  { %v2695_v11 = vadd.f32 %v4711_v46, %v2639_v10  ;;  %v1909_v12 = vpop.f32.mrb[88].mxu0  ;;  %v2471_v13 = vpop.f32.mrb[88].mxu1  ;;  %v2743_v16 = vmax.f32 %v2694_v9, 0.0 }
 0x28e   :  { %v1911_v14 = vpop.f32.mrb[89].mxu0  ;;  %v2473_v15 = vpop.f32.mrb[89].mxu1 }
 0x28f   :  { %v2744_v17 = vmax.f32 %v2695_v11, 0.0  ;;  %v2542_v18 = vmax.f32 %v1909_v12, %v1911_v14  ;;  %v2591_v19 = vmax.f32 %v2471_v13, %v2473_v15  ;;  %v1913_v20 = vpop.f32.mrb[90].mxu0  ;;  %v2475_v21 = vpop.f32.mrb[90].mxu1 }
 0x290   :  { %v1915_v22 = vpop.f32.mrb[91].mxu0  ;;  %v2477_v23 = vpop.f32.mrb[91].mxu1 }
 0x291   :  { %v3435_v24 = vpack.c.bf16 %v2744_v17, %v2743_v16  ;;  %v2640_v25 = vmax.f32 %v2542_v18, %v2591_v19  ;;  %v2543_v26 = vmax.f32 %v1913_v20, %v1915_v22  ;;  %v2592_v27 = vmax.f32 %v2475_v21, %v2477_v23 }
 0x293   :  { %3467 = vst [vmem:[%s4840_s3 + $0xa8] sm:$0xff] %v3435_v24   ;;  %v2696_v28 = vadd.f32 %v4711_v46, %v2640_v25  ;;  %v2641_v29 = vmax.f32 %v2543_v26, %v2592_v27 }
 0x295   :  { %v2697_v30 = vadd.f32 %v4711_v46, %v2641_v29  ;;  %v1919_v31 = vpop.f32.mrb[92].mxu0  ;;  %v2481_v32 = vpop.f32.mrb[92].mxu1  ;;  %v2745_v35 = vmax.f32 %v2696_v28, 0.0 }
 0x296   :  { %v1921_v33 = vpop.f32.mrb[93].mxu0  ;;  %v2483_v34 = vpop.f32.mrb[93].mxu1 }
 0x297   :  { %v2746_v36 = vmax.f32 %v2697_v30, 0.0  ;;  %v2544_v37 = vmax.f32 %v1919_v31, %v1921_v33  ;;  %v2593_v38 = vmax.f32 %v2481_v32, %v2483_v34  ;;  %v1923_v39 = vpop.f32.mrb[94].mxu0  ;;  %v2485_v40 = vpop.f32.mrb[94].mxu1 }
 0x298   :  { %v1925_v41 = vpop.f32.mrb[95].mxu0  ;;  %v2487_v42 = vpop.f32.mrb[95].mxu1 }
 0x299   :  { %v3440_v43 = vpack.c.bf16 %v2746_v36, %v2745_v35  ;;  %v2642_v44 = vmax.f32 %v2544_v37, %v2593_v38  ;;  %v2545_v45 = vmax.f32 %v1923_v39, %v1925_v41  ;;  %v2594_v47 = vmax.f32 %v2485_v40, %v2487_v42 }
 0x29b   :  { %3468 = vst [vmem:[%s4840_s3 + $0xb0] sm:$0xff] %v3440_v43   ;;  %v2698_v48 = vadd.f32 %v4711_v46, %v2642_v44  ;;  %v2643_v49 = vmax.f32 %v2545_v45, %v2594_v47 }
 0x29d   :  { %v2699_v50 = vadd.f32 %v4711_v46, %v2643_v49  ;;  %v1929_v51 = vpop.f32.mrb[96].mxu0  ;;  %v2491_v52 = vpop.f32.mrb[96].mxu1  ;;  %v2747_v55 = vmax.f32 %v2698_v48, 0.0 }
 0x29e   :  { %v1931_v53 = vpop.f32.mrb[97].mxu0  ;;  %v2493_v54 = vpop.f32.mrb[97].mxu1 }
 0x29f   :  { %v2748_v56 = vmax.f32 %v2699_v50, 0.0  ;;  %v2546_v57 = vmax.f32 %v1929_v51, %v1931_v53  ;;  %v2595_v58 = vmax.f32 %v2491_v52, %v2493_v54  ;;  %v1933_v59 = vpop.f32.mrb[98].mxu0  ;;  %v2495_v60 = vpop.f32.mrb[98].mxu1 }
 0x2a0   :  { %v1934_v61 = vpop.f32.mrb[99].mxu0  ;;  %v2496_v62 = vpop.f32.mrb[99].mxu1 }
 0x2a1   :  { %v3445_v63 = vpack.c.bf16 %v2748_v56, %v2747_v55  ;;  %v2644_v0 = vmax.f32 %v2546_v57, %v2595_v58 }
 0x2a3   :  { %3469 = vst [vmem:[%s4840_s3 + $0xb8] sm:$0xff] %v3445_v63   ;;  %v2700_v1 = vadd.f32 %v4711_v46, %v2644_v0 }
 0x2a5   :  { %v2749_v2 = vmax.f32 %v2700_v1, 0.0 }
 0x2a7   :  { %v3326_v3 = vpack.c.bf16 %v2749_v2, %v2749_v2 }
 0x2a9   :  { %2995 = vst [vmem:[%s4840_s3 + $0xc0] sm:$0xf] %v3326_v3 }

// kernel: lenet_forward.5
= control target key start
LH: loop header
LB: loop body
LE: loop exit
PB: predicated region body
PF: predicated region fallthrough
CT: control target
= control target key end

     0   :  { %vm8023_vm0 = vmmov 0   ;;  %s10137_s1 = inlined_call_operand.vmem [shape: bf16[3200,128], index: 1, kind: input, shape index: {}]   ;;  %s10138_s0 = inlined_call_operand.vmem [shape: bf16[200,3200], index: 0, kind: input, shape index: {}]   ;;  %s10139_s2 = inlined_call_operand.vmem [shape: f32[1,128], index: 2, kind: input, shape index: {}]   ;;  %s10140_s3 = inlined_call_operand.vmem [shape: bf16[200,128], index: 3, kind: output, shape index: {}]  }
   0x1   :  { %v7352_v0 = vld [vmem:[%s10137_s1 + $0x40] sm:$0xff]   ;;  %v7354_v2 = vld [vmem:[%s10137_s1 + $0x48] sm:$0xff]   ;;  %v7356_v4 = vld [vmem:[%s10137_s1 + $0x50] sm:$0xff]  }
   0x2   :  { %v7353_v1 = vld [vmem:[%s10137_s1] sm:$0xff]   ;;  %6117 = vmatprep.subr.bf16.mxu0 %v7352_v0  ;;  %7334 = vmatprep.subr.bf16.mxu1 %v7352_v0  ;;  %v7355_v3 = vld [vmem:[%s10137_s1 + $0x8] sm:$0xff]   ;;  %v7357_v5 = vld [vmem:[%s10137_s1 + $0x10] sm:$0xff]  }
   0x3   :  { %6118 = vmatpush3.bf16.msra.mxu0 %v7353_v1  ;;  %7342 = vmatpush3.bf16.msra.mxu1 %v7353_v1  ;;  %v7358_v6 = vld [vmem:[%s10137_s1 + $0x58] sm:$0xff]   ;;  %v7360_v8 = vld [vmem:[%s10137_s1 + $0x60] sm:$0xff]   ;;  %v7362_v10 = vld [vmem:[%s10137_s1 + $0x68] sm:$0xff]  }
   0x4   :  { %6119 = vmatprep.subr.bf16.mxu0 %v7354_v2  ;;  %7335 = vmatprep.subr.bf16.mxu1 %v7354_v2  ;;  %v7359_v7 = vld [vmem:[%s10137_s1 + $0x18] sm:$0xff]   ;;  %v7361_v9 = vld [vmem:[%s10137_s1 + $0x20] sm:$0xff]   ;;  %v7363_v13 = vld [vmem:[%s10137_s1 + $0x28] sm:$0xff]  }
   0x5   :  { %v7370_v11 = vld [vmem:[%s10138_s0 + $0x4] ss:$100 sps:$4 sm:$0xff]   ;;  %v7373_v12 = vld [vmem:[%s10138_s0 + $0x57c] ss:$100 sps:$4 sm:$0xff]   ;;  %v7364_v14 = vld [vmem:[%s10137_s1 + $0x70] sm:$0xff]  }
   0x6   :  { %3579 = vmatprep.mubr.bf16.mxu0 %v7370_v11  ;;  %3635 = vmatprep.mubr.bf16.mxu1 %v7373_v12  ;;  %v7365_v15 = vld [vmem:[%s10137_s1 + $0x30] sm:$0xff]   ;;  %v7366_v16 = vld [vmem:[%s10137_s1 + $0x78] sm:$0xff]   ;;  %v7374_v18 = vld [vmem:[%s10137_s1 + $0x140] sm:$0xff]  }
   0x7   :  { %6120 = vmatpush3.bf16.msra.mxu0 %v7355_v3  ;;  %7343 = vmatpush3.bf16.msra.mxu1 %v7355_v3  ;;  %v7367_v17 = vld [vmem:[%s10137_s1 + $0x38] sm:$0xff]   ;;  %v7368_v19 = vld [vmem:[%s10138_s0] ss:$100 sps:$4 sm:$0xff]   ;;  %v7378_v24 = vld [vmem:[%s10138_s0 + $0xcc] ss:$100 sps:$4 sm:$0xff]  }
   0x8   :  { %6121 = vmatprep.subr.bf16.mxu0 %v7356_v4  ;;  %7336 = vmatprep.subr.bf16.mxu1 %v7356_v4  ;;  %v7371_v20 = vld [vmem:[%s10138_s0 + $0x578] ss:$100 sps:$4 sm:$0xff]   ;;  %v7376_v21 = vld [vmem:[%s10137_s1 + $0xc0] sm:$0xff]   ;;  %v7382_v26 = vld [vmem:[%s10137_s1 + $0x148] sm:$0xff]  }
   0x9   :  { %v7375_v22 = vld [vmem:[%s10137_s1 + $0x100] sm:$0xff]   ;;  %v7386_v27 = vld [vmem:[%s10137_s1 + $0xc8] sm:$0xff]   ;;  %v7388_v30 = vld [vmem:[%s10137_s1 + $0x150] sm:$0xff]  }
   0xa   :  { %v7377_v23 = vld [vmem:[%s10137_s1 + $0x80] sm:$0xff]   ;;  %v7385_v28 = vld [vmem:[%s10137_s1 + $0x108] sm:$0xff]   ;;  %v7393_v33 = vld [vmem:[%s10137_s1 + $0xd0] sm:$0xff]  }
   0xb   :  { %6122 = vmatpush3.bf16.msra.mxu0 %v7357_v5  ;;  %7344 = vmatpush3.bf16.msra.mxu1 %v7357_v5  ;;  %v7380_v25 = vld [vmem:[%s10138_s0 + $0x644] ss:$100 sps:$4 sm:$0xff]   ;;  %v7389_v34 = vld [vmem:[%s10138_s0 + $0x194] ss:$100 sps:$4 sm:$0xff]   ;;  %v7391_v35 = vld [vmem:[%s10138_s0 + $0x70c] ss:$100 sps:$4 sm:$0xff]  }
   0xc   :  { %6123 = vmatprep.subr.bf16.mxu0 %v7358_v6  ;;  %7337 = vmatprep.subr.bf16.mxu1 %v7358_v6  ;;  %v7387_v29 = vld [vmem:[%s10137_s1 + $0x88] sm:$0xff]   ;;  %v7384_v32 = vld [vmem:[%s10138_s0 + $0x640] ss:$100 sps:$4 sm:$0xff]   ;;  %v7394_v36 = vld [vmem:[%s10137_s1 + $0x110] sm:$0xff]  }
   0xd   :  { %v7383_v31 = vld [vmem:[%s10138_s0 + $0xc8] ss:$100 sps:$4 sm:$0xff]   ;;  %v7397_v37 = vld [vmem:[%s10137_s1 + $0x90] sm:$0xff]   ;;  %v7398_v38 = vld [vmem:[%s10137_s1 + $0xd8] sm:$0xff]  }
   0xe   :  { %v7399_v39 = vld [vmem:[%s10137_s1 + $0x158] sm:$0xff]   ;;  %v7395_v42 = vld [vmem:[%s10138_s0 + $0x190] ss:$100 sps:$4 sm:$0xff]   ;;  %v7396_v43 = vld [vmem:[%s10138_s0 + $0x708] ss:$100 sps:$4 sm:$0xff]  }
   0xf   :  { %6124 = vmatpush3.bf16.msra.mxu0 %v7359_v7  ;;  %7345 = vmatpush3.bf16.msra.mxu1 %v7359_v7  ;;  %v7400_v40 = vld [vmem:[%s10137_s1 + $0x98] sm:$0xff]   ;;  %v7408_v44 = vld [vmem:[%s10137_s1 + $0xe0] sm:$0xff]   ;;  %v7418_v50 = vld [vmem:[%s10137_s1 + $0xe8] sm:$0xff]  }
  0x10   :  { %6125 = vmatprep.subr.bf16.mxu0 %v7360_v8  ;;  %7338 = vmatprep.subr.bf16.mxu1 %v7360_v8  ;;  %v7401_v41 = vld [vmem:[%s10137_s1 + $0x118] sm:$0xff]   ;;  %v7410_v45 = vld [vmem:[%s10137_s1 + $0x160] sm:$0xff]   ;;  %v7419_v51 = vld [vmem:[%s10137_s1 + $0xa8] sm:$0xff]  }
  0x11   :  { %v7402_v46 = vld [vmem:[%s10138_s0 + $0x25c] ss:$100 sps:$4 sm:$0xff]   ;;  %v7404_v47 = vld [vmem:[%s10138_s0 + $0x7d4] ss:$100 sps:$4 sm:$0xff]   ;;  %v7420_v53 = vld [vmem:[%s10137_s1 + $0x168] sm:$0xff]  }
  0x12   :  { %v7409_v48 = vld [vmem:[%s10137_s1 + $0xa0] sm:$0xff]   ;;  %v7406_v52 = vld [vmem:[%s10138_s0 + $0x258] ss:$100 sps:$4 sm:$0xff]   ;;  %v7421_v54 = vld [vmem:[%s10137_s1 + $0x128] sm:$0xff]  }
  0x13   :  { %6126 = vmatpush3.bf16.msra.mxu0 %v7361_v9  ;;  %7346 = vmatpush3.bf16.msra.mxu1 %v7361_v9  ;;  %v7411_v49 = vld [vmem:[%s10137_s1 + $0x120] sm:$0xff]   ;;  %v7407_v55 = vld [vmem:[%s10138_s0 + $0x7d0] ss:$100 sps:$4 sm:$0xff]   ;;  %v7431_v63 = vld [vmem:[%s10137_s1 + $0xf8] sm:$0xff]  }
  0x14   :  { %6127 = vmatprep.subr.bf16.mxu0 %v7362_v10  ;;  %7339 = vmatprep.subr.bf16.mxu1 %v7362_v10  ;;  %v7412_v56 = vld [vmem:[%s10138_s0 + $0x324] ss:$100 sps:$4 sm:$0xff]   ;;  %v7414_v57 = vld [vmem:[%s10138_s0 + $0x89c] ss:$100 sps:$4 sm:$0xff]   ;;  %v7425_v58 = vld [vmem:[%s10137_s1 + $0xf0] sm:$0xff]  }
  0x15   :  { %v7428_v59 = vld [vmem:[%s10137_s1 + $0xb0] sm:$0xff]   ;;  %v327_v61 = vld [vmem:[%s10138_s0 + $0x960] sm:$0xff]  ;;  %v7432_v0 = vld [vmem:[%s10137_s1 + $0xb8] sm:$0xff]  }
  0x16   :  { %v7429_v60 = vld [vmem:[%s10137_s1 + $0x170] sm:$0xff]   ;;  %v7416_v1 = vld [vmem:[%s10138_s0 + $0x320] ss:$100 sps:$4 sm:$0xff]   ;;  %v7417_v2 = vld [vmem:[%s10138_s0 + $0x898] ss:$100 sps:$4 sm:$0xff]   ;;  %v5772_v4 = vcombine.high %v327_v61, %v327_v61  ;;  %v5771_v10 = vcombine.low %v327_v61, %v327_v61 }
  0x17   :  { %6128 = vmatpush3.bf16.msra.mxu0 %v7363_v13  ;;  %7347 = vmatpush3.bf16.msra.mxu1 %v7363_v13  ;;  %v7430_v62 = vld [vmem:[%s10137_s1 + $0x130] sm:$0xff]   ;;  %v7439_v5 = vld [vmem:[%s10137_s1 + $0x178] sm:$0xff]   ;;  %v7441_v7 = vld [vmem:[%s10137_s1 + $0x1c0] sm:$0xff]  }
  0x18   :  { %6129 = vmatprep.subr.bf16.mxu0 %v7364_v14  ;;  %7340 = vmatprep.subr.bf16.mxu1 %v7364_v14  ;;  %v7422_v3 = vld [vmem:[%s10138_s0 + $0x3ec] ss:$100 sps:$4 sm:$0xff]   ;;  %v7440_v6 = vld [vmem:[%s10137_s1 + $0x138] sm:$0xff]   ;;  %v7449_v12 = vld [vmem:[%s10137_s1 + $0x240] sm:$0xff]  }
  0x19   :  { %v7426_v8 = vld [vmem:[%s10138_s0 + $0x3e8] ss:$100 sps:$4 sm:$0xff]   ;;  %v7433_v9 = vld [vmem:[%s10138_s0 + $0x4b4] ss:$100 sps:$4 sm:$0xff]  }
  0x1a   :  { %v7437_v11 = vld [vmem:[%s10138_s0 + $0xc] ss:$100 sps:$4 sm:$0xff]  }
  0x1b   :  { %6130 = vmatpush3.bf16.msra.mxu0 %v7365_v15  ;;  %7348 = vmatpush3.bf16.msra.mxu1 %v7365_v15  ;;  %v7435_v13 = vld [vmem:[%s10138_s0 + $0x8] ss:$100 sps:$4 sm:$0xff]   ;;  %v7438_v14 = vld [vmem:[%s10138_s0 + $0x4b0] ss:$100 sps:$4 sm:$0xff]   ;;  %v7442_v15 = vld [vmem:[%s10137_s1 + $0x180] sm:$0xff]  }
  0x1c   :  { %6131 = vmatprep.subr.bf16.mxu0 %v7366_v16  ;;  %7341 = vmatprep.subr.bf16.mxu1 %v7366_v16  ;;  %v7443_v16 = vld [vmem:[%s10138_s0 + $0xd4] ss:$100 sps:$4 sm:$0xff]  }
  0x1d   :  { %v7527_v61 = vld [vmem:[%s10137_s1 + $0x270] sm:$0xff]  }
  0x1f   :  { %6132 = vmatpush3.bf16.msra.mxu0 %v7367_v17  ;;  %7349 = vmatpush3.bf16.msra.mxu1 %v7367_v17  ;;  %v7447_v17 = vld [vmem:[%s10138_s0 + $0x14] ss:$100 sps:$4 sm:$0xff]  }
  0x20   :  { %6305 = vmatprep.subr.bf16.mxu0 %v7374_v18  ;;  %6211 = vmatprep.subr.bf16.mxu1 %v7376_v21  ;;  %v7457_v18 = vld [vmem:[%s10137_s1 + $0x1c8] sm:$0xff]   ;;  %v7467_v21 = vld [vmem:[%s10137_s1 + $0x1d0] sm:$0xff]  }
  0x22   :  { %3580 = vmatmul.mubr.bf16.vlgmr.msra.gmra.mrb[0].mxu0 %v7368_v19  ;;  %3636 = vmatmul.mubr.bf16.vlgmr.msra.gmra.mrb[0].mxu1 %v7371_v20  ;;  %v7458_v19 = vld [vmem:[%s10137_s1 + $0x188] sm:$0xff]   ;;  %v7445_v20 = vld [vmem:[%s10138_s0 + $0x10] ss:$100 sps:$4 sm:$0xff]  }
  0x23   :  { %6306 = vmatpush3.bf16.msra.mxu0 %v7375_v22  ;;  %6212 = vmatpush3.bf16.msra.mxu1 %v7377_v23  ;;  %v7448_v22 = vld [vmem:[%s10138_s0 + $0xd0] ss:$100 sps:$4 sm:$0xff]   ;;  %v7450_v23 = vld [vmem:[%s10137_s1 + $0x200] sm:$0xff]  }
  0x24   :  { %3587 = vmatprep.mubr.bf16.mxu0 %v7378_v24  ;;  %3643 = vmatprep.mubr.bf16.mxu1 %v7380_v25  ;;  %v7451_v24 = vld [vmem:[%s10138_s0 + $0x19c] ss:$100 sps:$4 sm:$0xff]  }
  0x25   :  { %6307 = vmatprep.subr.bf16.mxu0 %v7382_v26  ;;  %6213 = vmatprep.subr.bf16.mxu1 %v7386_v27  ;;  %v7453_v25 = vld [vmem:[%s10138_s0 + $0xdc] ss:$100 sps:$4 sm:$0xff]   ;;  %v7459_v26 = vld [vmem:[%s10137_s1 + $0x248] sm:$0xff]   ;;  %v7468_v27 = vld [vmem:[%s10137_s1 + $0x190] sm:$0xff]  }
  0x27   :  { %6308 = vmatpush3.bf16.msra.mxu0 %v7385_v28  ;;  %6214 = vmatpush3.bf16.msra.mxu1 %v7387_v29  ;;  %v7460_v28 = vld [vmem:[%s10137_s1 + $0x208] sm:$0xff]   ;;  %v7483_v29 = vld [vmem:[%s10137_s1 + $0x1d8] sm:$0xff]  }
  0x28   :  { %6309 = vmatprep.subr.bf16.mxu0 %v7388_v30  ;;  %6215 = vmatprep.subr.bf16.mxu1 %v7393_v33  ;;  %v7455_v30 = vld [vmem:[%s10138_s0 + $0x198] ss:$100 sps:$4 sm:$0xff]  }
  0x29   :  { %v7484_v33 = vld [vmem:[%s10137_s1 + $0x198] sm:$0xff]  }
  0x2a   :  { %3588 = vmatmul.mubr.bf16.gmra.mrb[4].mxu0 %v7383_v31  ;;  %3644 = vmatmul.mubr.bf16.gmra.mrb[4].mxu1 %v7384_v32  ;;  %v7456_v31 = vld [vmem:[%s10138_s0 + $0xd8] ss:$100 sps:$4 sm:$0xff]   ;;  %v7475_v32 = vld [vmem:[%s10137_s1 + $0x250] sm:$0xff]  }
  0x2b   :  { %3595 = vmatprep.mubr.bf16.mxu0 %v7389_v34  ;;  %3651 = vmatprep.mubr.bf16.mxu1 %v7391_v35  ;;  %v7461_v34 = vld [vmem:[%s10138_s0 + $0x264] ss:$100 sps:$4 sm:$0xff]  }
  0x2c   :  { %6310 = vmatpush3.bf16.msra.mxu0 %v7394_v36  ;;  %6216 = vmatpush3.bf16.msra.mxu1 %v7397_v37  ;;  %v7463_v35 = vld [vmem:[%s10138_s0 + $0x1a4] ss:$100 sps:$4 sm:$0xff]   ;;  %v7476_v36 = vld [vmem:[%s10137_s1 + $0x210] sm:$0xff]   ;;  %v7489_v37 = vld [vmem:[%s10137_s1 + $0x258] sm:$0xff]  }
  0x2d   :  { %6217 = vmatprep.subr.bf16.mxu1 %v7398_v38  ;;  %6311 = vmatprep.subr.bf16.mxu0 %v7399_v39  ;;  %v7465_v38 = vld [vmem:[%s10138_s0 + $0x260] ss:$100 sps:$4 sm:$0xff]  }
  0x2e   :  { %v7466_v39 = vld [vmem:[%s10138_s0 + $0x1a0] ss:$100 sps:$4 sm:$0xff]  }
  0x30   :  { %6218 = vmatpush3.bf16.msra.mxu1 %v7400_v40  ;;  %6312 = vmatpush3.bf16.msra.mxu0 %v7401_v41  ;;  %v7492_v40 = vld [vmem:[%s10137_s1 + $0x218] sm:$0xff]   ;;  %v7497_v41 = vld [vmem:[%s10137_s1 + $0x1e0] sm:$0xff]  }
  0x31   :  { %6219 = vmatprep.subr.bf16.mxu1 %v7408_v44  ;;  %6313 = vmatprep.subr.bf16.mxu0 %v7410_v45  ;;  %v7500_v44 = vld [vmem:[%s10137_s1 + $0x1a0] sm:$0xff]  }
  0x32   :  { %3596 = vmatmul.mubr.bf16.gmra.mrb[8].mxu0 %v7395_v42  ;;  %3652 = vmatmul.mubr.bf16.gmra.mrb[8].mxu1 %v7396_v43  ;;  %v7469_v42 = vld [vmem:[%s10138_s0 + $0x32c] ss:$100 sps:$4 sm:$0xff]   ;;  %v7501_v45 = vld [vmem:[%s10137_s1 + $0x260] sm:$0xff]  }
  0x33   :  { %3603 = vmatprep.mubr.bf16.mxu0 %v7402_v46  ;;  %3659 = vmatprep.mubr.bf16.mxu1 %v7404_v47  ;;  %v7471_v43 = vld [vmem:[%s10138_s0 + $0x26c] ss:$100 sps:$4 sm:$0xff]   ;;  %v7502_v46 = vld [vmem:[%s10137_s1 + $0x220] sm:$0xff]  }
  0x34   :  { %6220 = vmatpush3.bf16.msra.mxu1 %v7409_v48  ;;  %6314 = vmatpush3.bf16.msra.mxu0 %v7411_v49  ;;  %v7509_v47 = vld [vmem:[%s10137_s1 + $0x1e8] sm:$0xff]  }
  0x35   :  { %6221 = vmatprep.subr.bf16.mxu1 %v7418_v50  ;;  %6315 = vmatprep.subr.bf16.mxu0 %v7420_v53  ;;  %v7510_v48 = vld [vmem:[%s10137_s1 + $0x1a8] sm:$0xff]  }
  0x36   :  { %v7473_v49 = vld [vmem:[%s10138_s0 + $0x328] ss:$100 sps:$4 sm:$0xff]  }
  0x37   :  { %v7474_v50 = vld [vmem:[%s10138_s0 + $0x268] ss:$100 sps:$4 sm:$0xff]  }
  0x38   :  { %6222 = vmatpush3.bf16.msra.mxu1 %v7419_v51  ;;  %6316 = vmatpush3.bf16.msra.mxu0 %v7421_v54  ;;  %v7477_v51 = vld [vmem:[%s10138_s0 + $0x3f4] ss:$100 sps:$4 sm:$0xff]   ;;  %v7517_v53 = vld [vmem:[%s10137_s1 + $0x268] sm:$0xff]  }
  0x39   :  { %6223 = vmatprep.subr.bf16.mxu1 %v7425_v58  ;;  %6317 = vmatprep.subr.bf16.mxu0 %v7429_v60  ;;  %v7518_v54 = vld [vmem:[%s10137_s1 + $0x228] sm:$0xff]   ;;  %v7487_v58 = vld [vmem:[%s10138_s0 + $0x3fc] ss:$100 sps:$4 sm:$0xff]   ;;  %v7526_v60 = vld [vmem:[%s10137_s1 + $0x1b0] sm:$0xff]  }
  0x3a   :  { %3604 = vmatmul.mubr.bf16.gmra.mrb[12].mxu0 %v7406_v52  ;;  %3660 = vmatmul.mubr.bf16.gmra.mrb[12].mxu1 %v7407_v55  ;;  %v7479_v52 = vld [vmem:[%s10138_s0 + $0x334] ss:$100 sps:$4 sm:$0xff]  }
  0x3b   :  { %3611 = vmatprep.mubr.bf16.mxu0 %v7412_v56  ;;  %3667 = vmatprep.mubr.bf16.mxu1 %v7414_v57  ;;  %v7481_v55 = vld [vmem:[%s10138_s0 + $0x3f0] ss:$100 sps:$4 sm:$0xff]   ;;  %v7485_v57 = vld [vmem:[%s10138_s0 + $0x4bc] ss:$100 sps:$4 sm:$0xff]  }
  0x3c   :  { %6224 = vmatpush3.bf16.msra.mxu1 %v7428_v59  ;;  %6318 = vmatpush3.bf16.msra.mxu0 %v7430_v62  ;;  %v7482_v56 = vld [vmem:[%s10138_s0 + $0x330] ss:$100 sps:$4 sm:$0xff]  }
  0x3d   :  { %6225 = vmatprep.subr.bf16.mxu1 %v7431_v63  ;;  %6319 = vmatprep.subr.bf16.mxu0 %v7439_v5  ;;  %v7525_v59 = vld [vmem:[%s10137_s1 + $0x1f0] sm:$0xff]   ;;  %v7535_v63 = vld [vmem:[%s10137_s1 + $0x1f8] sm:$0xff]  }
  0x3e   :  { %v7532_v62 = vld [vmem:[%s10137_s1 + $0x230] sm:$0xff]   ;;  %v7542_v5 = vld [vmem:[%s10137_s1 + $0x278] sm:$0xff]  }
  0x40   :  { %6226 = vmatpush3.bf16.msra.mxu1 %v7432_v0  ;;  %6320 = vmatpush3.bf16.msra.mxu0 %v7440_v6  ;;  %v7490_v0 = vld [vmem:[%s10138_s0 + $0x4b8] ss:$100 sps:$4 sm:$0xff]  }
  0x41   :  { %6399 = vmatprep.subr.bf16.mxu1 %v7441_v7  ;;  %6493 = vmatprep.subr.bf16.mxu0 %v7449_v12  ;;  %v7543_v6 = vld [vmem:[%s10137_s1 + $0x238] sm:$0xff]   ;;  %v7549_v7 = vld [vmem:[%s10137_s1 + $0x2c0] sm:$0xff]  }
  0x42   :  { %3612 = vmatmul.mubr.bf16.gmra.mrb[16].mxu0 %v7416_v1  ;;  %3668 = vmatmul.mubr.bf16.gmra.mrb[16].mxu1 %v7417_v2  ;;  %v7491_v1 = vld [vmem:[%s10138_s0 + $0x3f8] ss:$100 sps:$4 sm:$0xff]   ;;  %v7493_v2 = vld [vmem:[%s10138_s0 + $0x584] ss:$100 sps:$4 sm:$0xff]  }
  0x43   :  { %3619 = vmatprep.mubr.bf16.mxu0 %v7422_v3  ;;  %3675 = vmatprep.mubr.bf16.mxu1 %v5772_v4  ;;  %v7495_v3 = vld [vmem:[%s10138_s0 + $0x4c4] ss:$100 sps:$4 sm:$0xff]   ;;  %v7539_v4 = vld [vmem:[%s10137_s1 + $0x1b8] sm:$0xff]  }
  0x44   :  { %v7557_v12 = vld [vmem:[%s10137_s1 + $0x340] sm:$0xff]  }
  0x4a   :  { %3620 = vmatmul.mubr.bf16.gmra.mrb[20].mxu0 %v7426_v8  ;;  %3676 = vmatmul.mubr.bf16.gmra.mrb[20].mxu1 %v5771_v10  ;;  %v7498_v8 = vld [vmem:[%s10138_s0 + $0x580] ss:$100 sps:$4 sm:$0xff]   ;;  %v7503_v10 = vld [vmem:[%s10138_s0 + $0x64c] ss:$100 sps:$4 sm:$0xff]  }
  0x4b   :  { %3627 = vmatprep.mubr.bf16.mxu0 %v7433_v9  ;;  %3715 = vmatprep.mubr.bf16.mxu1 %v7437_v11  ;;  %v7499_v9 = vld [vmem:[%s10138_s0 + $0x4c0] ss:$100 sps:$4 sm:$0xff]   ;;  %v7505_v11 = vld [vmem:[%s10138_s0 + $0x58c] ss:$100 sps:$4 sm:$0xff]  }
  0x52   :  { %3628 = vmatmul.mubr.bf16.gmra.mrb[24].mxu0 %v7438_v14  ;;  %3716 = vmatmul.mubr.bf16.vlgmr.msra.gmra.mrb[24].mxu1 %v7435_v13  ;;  %v7507_v13 = vld [vmem:[%s10138_s0 + $0x648] ss:$100 sps:$4 sm:$0xff]  }
  0x53   :  { %6400 = vmatpush3.bf16.msra.mxu1 %v7442_v15  ;;  %3723 = vmatprep.mubr.bf16.mxu1 %v7443_v16  ;;  %v7508_v14 = vld [vmem:[%s10138_s0 + $0x588] ss:$100 sps:$4 sm:$0xff]   ;;  %v7511_v15 = vld [vmem:[%s10138_s0 + $0x714] ss:$100 sps:$4 sm:$0xff]  }
  0x54   :  { %3851 = vmatprep.mubr.bf16.mxu0 %v7447_v17  ;;  %6401 = vmatprep.subr.bf16.mxu1 %v7457_v18  ;;  %v7513_v16 = vld [vmem:[%s10138_s0 + $0x654] ss:$100 sps:$4 sm:$0xff]  }
  0x55   :  { %v7515_v17 = vld [vmem:[%s10138_s0 + $0x710] ss:$100 sps:$4 sm:$0xff]  }
  0x56   :  { %v7516_v18 = vld [vmem:[%s10138_s0 + $0x650] ss:$100 sps:$4 sm:$0xff]  }
  0x57   :  { %6402 = vmatpush3.bf16.msra.mxu1 %v7458_v19  ;;  %v7519_v19 = vld [vmem:[%s10138_s0 + $0x7dc] ss:$100 sps:$4 sm:$0xff]  }
  0x58   :  { %6403 = vmatprep.subr.bf16.mxu1 %v7467_v21  ;;  %v7523_v21 = vld [vmem:[%s10138_s0 + $0x7d8] ss:$100 sps:$4 sm:$0xff]  }
  0x5a   :  { %3724 = vmatmul.mubr.bf16.gmra.mrb[28].mxu1 %v7448_v22  ;;  %3852 = vmatmul.mubr.bf16.vlgmr.msra.gmra.mrb[28].mxu0 %v7445_v20  ;;  %v7521_v20 = vld [vmem:[%s10138_s0 + $0x71c] ss:$100 sps:$4 sm:$0xff]  }
  0x5b   :  { %6494 = vmatpush3.bf16.msra.mxu0 %v7450_v23  ;;  %3731 = vmatprep.mubr.bf16.mxu1 %v7451_v24  ;;  %v7524_v22 = vld [vmem:[%s10138_s0 + $0x718] ss:$100 sps:$4 sm:$0xff]   ;;  %v7528_v23 = vld [vmem:[%s10138_s0 + $0x8a4] ss:$100 sps:$4 sm:$0xff]  }
  0x5c   :  { %3859 = vmatprep.mubr.bf16.mxu0 %v7453_v25  ;;  %6495 = vmatprep.subr.bf16.mxu0 %v7459_v26  ;;  %v7530_v24 = vld [vmem:[%s10138_s0 + $0x7e4] ss:$100 sps:$4 sm:$0xff]  }
  0x5d   :  { %6404 = vmatpush3.bf16.msra.mxu1 %v7468_v27  ;;  %v328_v25 = vld [vmem:[%s10138_s0 + $0x968] sm:$0xff]  ;;  %v7533_v26 = vld [vmem:[%s10138_s0 + $0x8a0] ss:$100 sps:$4 sm:$0xff]  }
  0x5e   :  { %6405 = vmatprep.subr.bf16.mxu1 %v7483_v29  ;;  %v7534_v27 = vld [vmem:[%s10138_s0 + $0x7e0] ss:$100 sps:$4 sm:$0xff]   ;;  %v7537_v29 = vld [vmem:[%s10138_s0 + $0x8ac] ss:$100 sps:$4 sm:$0xff]  }
  0x5f   :  { %6496 = vmatpush3.bf16.msra.mxu0 %v7460_v28  ;;  %v5774_v28 = vcombine.high %v328_v25, %v328_v25 }
  0x60   :  { %6497 = vmatprep.subr.bf16.mxu0 %v7475_v32  ;;  %v7541_v32 = vld [vmem:[%s10138_s0 + $0x8a8] ss:$100 sps:$4 sm:$0xff]  }
  0x61   :  { %6406 = vmatpush3.bf16.msra.mxu1 %v7484_v33 }
  0x62   :  { %3732 = vmatmul.mubr.bf16.gmra.mrb[32].mxu1 %v7455_v30  ;;  %3860 = vmatmul.mubr.bf16.gmra.mrb[32].mxu0 %v7456_v31  ;;  %v329_v30 = vld [vmem:[%s10138_s0 + $0x970] sm:$0xff]  ;;  %v5773_v31 = vcombine.low %v328_v25, %v328_v25 }
  0x63   :  { %3739 = vmatprep.mubr.bf16.mxu1 %v7461_v34  ;;  %3867 = vmatprep.mubr.bf16.mxu0 %v7463_v35  ;;  %v5776_v33 = vcombine.high %v329_v30, %v329_v30  ;;  %v7547_v34 = vld [vmem:[%s10138_s0 + $0x1c] ss:$100 sps:$4 sm:$0xff]   ;;  %v7593_v25 = vld [vmem:[%s10138_s0 + $0x4cc] ss:$100 sps:$4 sm:$0xff]  }
  0x64   :  { %6498 = vmatpush3.bf16.msra.mxu0 %v7476_v36  ;;  %6407 = vmatprep.subr.bf16.mxu1 %v7497_v41  ;;  %v7545_v35 = vld [vmem:[%s10138_s0 + $0x18] ss:$100 sps:$4 sm:$0xff]   ;;  %v7550_v36 = vld [vmem:[%s10137_s1 + $0x280] sm:$0xff]   ;;  %v7566_v41 = vld [vmem:[%s10137_s1 + $0x288] sm:$0xff]  }
  0x65   :  { %6499 = vmatprep.subr.bf16.mxu0 %v7489_v37  ;;  %6408 = vmatpush3.bf16.msra.mxu1 %v7500_v44  ;;  %v5775_v37 = vcombine.low %v329_v30, %v329_v30  ;;  %v7556_v44 = vld [vmem:[%s10138_s0 + $0xe0] ss:$100 sps:$4 sm:$0xff]   ;;  %v7603_v30 = vld [vmem:[%s10138_s0 + $0x4d4] ss:$100 sps:$4 sm:$0xff]  }
  0x66   :  { %6409 = vmatprep.subr.bf16.mxu1 %v7509_v47  ;;  %v7561_v47 = vld [vmem:[%s10138_s0 + $0xec] ss:$100 sps:$4 sm:$0xff]  }
  0x68   :  { %6500 = vmatpush3.bf16.msra.mxu0 %v7492_v40  ;;  %v7565_v40 = vld [vmem:[%s10137_s1 + $0x2c8] sm:$0xff]  }
  0x69   :  { %6501 = vmatprep.subr.bf16.mxu0 %v7501_v45  ;;  %6410 = vmatpush3.bf16.msra.mxu1 %v7510_v48  ;;  %v7558_v45 = vld [vmem:[%s10137_s1 + $0x300] sm:$0xff]   ;;  %v7567_v48 = vld [vmem:[%s10137_s1 + $0x348] sm:$0xff]  }
  0x6a   :  { %3740 = vmatmul.mubr.bf16.gmra.mrb[36].mxu1 %v7465_v38  ;;  %3868 = vmatmul.mubr.bf16.gmra.mrb[36].mxu0 %v7466_v39  ;;  %v7551_v38 = vld [vmem:[%s10138_s0 + $0xe4] ss:$100 sps:$4 sm:$0xff]  }
  0x6b   :  { %3747 = vmatprep.mubr.bf16.mxu1 %v7469_v42  ;;  %3875 = vmatprep.mubr.bf16.mxu0 %v7471_v43  ;;  %v7555_v39 = vld [vmem:[%s10138_s0 + $0x24] ss:$100 sps:$4 sm:$0xff]   ;;  %v7575_v43 = vld [vmem:[%s10137_s1 + $0x2d0] sm:$0xff]  }
  0x6c   :  { %6502 = vmatpush3.bf16.msra.mxu0 %v7502_v46  ;;  %6411 = vmatprep.subr.bf16.mxu1 %v7525_v59  ;;  %v7553_v42 = vld [vmem:[%s10138_s0 + $0x20] ss:$100 sps:$4 sm:$0xff]   ;;  %v7559_v46 = vld [vmem:[%s10138_s0 + $0x1ac] ss:$100 sps:$4 sm:$0xff]   ;;  %v7597_v59 = vld [vmem:[%s10137_s1 + $0x358] sm:$0xff]  }
  0x6d   :  { %6503 = vmatprep.subr.bf16.mxu0 %v7517_v53  ;;  %6412 = vmatpush3.bf16.msra.mxu1 %v7526_v60  ;;  %v7564_v53 = vld [vmem:[%s10138_s0 + $0xe8] ss:$100 sps:$4 sm:$0xff]   ;;  %v7605_v60 = vld [vmem:[%s10137_s1 + $0x2e0] sm:$0xff]  }
  0x6e   :  { %6413 = vmatprep.subr.bf16.mxu1 %v7535_v63  ;;  %v7573_v63 = vld [vmem:[%s10138_s0 + $0x270] ss:$100 sps:$4 sm:$0xff]  }
  0x70   :  { %6504 = vmatpush3.bf16.msra.mxu0 %v7518_v54  ;;  %v7583_v54 = vld [vmem:[%s10137_s1 + $0x350] sm:$0xff]  }
  0x71   :  { %6505 = vmatprep.subr.bf16.mxu0 %v7527_v61  ;;  %6414 = vmatpush3.bf16.msra.mxu1 %v7539_v4  ;;  %v7608_v61 = vld [vmem:[%s10137_s1 + $0x2a0] sm:$0xff]  }
  0x72   :  { %3748 = vmatmul.mubr.bf16.gmra.mrb[40].mxu1 %v7473_v49  ;;  %3876 = vmatmul.mubr.bf16.gmra.mrb[40].mxu0 %v7474_v50  ;;  %v7576_v49 = vld [vmem:[%s10137_s1 + $0x290] sm:$0xff]   ;;  %v7591_v50 = vld [vmem:[%s10137_s1 + $0x2d8] sm:$0xff]  }
  0x73   :  { %3755 = vmatprep.mubr.bf16.mxu1 %v7477_v51  ;;  %3883 = vmatprep.mubr.bf16.mxu0 %v7479_v52  ;;  %v7568_v51 = vld [vmem:[%s10137_s1 + $0x308] sm:$0xff]   ;;  %v7579_v4 = vld [vmem:[%s10138_s0 + $0x27c] ss:$100 sps:$4 sm:$0xff]  }
  0x74   :  { %6506 = vmatpush3.bf16.msra.mxu0 %v7532_v62  ;;  %6587 = vmatprep.subr.bf16.mxu1 %v7549_v7  ;;  %v7563_v52 = vld [vmem:[%s10138_s0 + $0x1a8] ss:$100 sps:$4 sm:$0xff]  }
  0x75   :  { %6507 = vmatprep.subr.bf16.mxu0 %v7542_v5  ;;  %v7617_v62 = vld [vmem:[%s10137_s1 + $0x2e8] sm:$0xff]  }
  0x76   :  { %v7618_v5 = vld [vmem:[%s10137_s1 + $0x2a8] sm:$0xff]  }
  0x77   :  { %v7625_v7 = vld [vmem:[%s10137_s1 + $0x368] sm:$0xff]  }
  0x78   :  { %6508 = vmatpush3.bf16.msra.mxu0 %v7543_v6  ;;  %v7610_v6 = vld [vmem:[%s10137_s1 + $0x320] sm:$0xff]  }
  0x79   :  { %6681 = vmatprep.subr.bf16.mxu0 %v7557_v12  ;;  %v7581_v12 = vld [vmem:[%s10138_s0 + $0x338] ss:$100 sps:$4 sm:$0xff]  }
  0x7a   :  { %3756 = vmatmul.mubr.bf16.gmra.mrb[44].mxu1 %v7481_v55  ;;  %3884 = vmatmul.mubr.bf16.gmra.mrb[44].mxu0 %v7482_v56  ;;  %v7592_v55 = vld [vmem:[%s10137_s1 + $0x298] sm:$0xff]  }
  0x7b   :  { %3763 = vmatprep.mubr.bf16.mxu1 %v7485_v57  ;;  %3891 = vmatprep.mubr.bf16.mxu0 %v7487_v58  ;;  %v7569_v56 = vld [vmem:[%s10138_s0 + $0x274] ss:$100 sps:$4 sm:$0xff]  }
  0x7c   :  { %v7571_v57 = vld [vmem:[%s10138_s0 + $0x1b4] ss:$100 sps:$4 sm:$0xff]  }
  0x7d   :  { %v7584_v58 = vld [vmem:[%s10137_s1 + $0x310] sm:$0xff]  }
  0x82   :  { %3764 = vmatmul.mubr.bf16.gmra.mrb[48].mxu1 %v7490_v0  ;;  %3892 = vmatmul.mubr.bf16.gmra.mrb[48].mxu0 %v7491_v1  ;;  %v7574_v0 = vld [vmem:[%s10138_s0 + $0x1b0] ss:$100 sps:$4 sm:$0xff]   ;;  %v7600_v1 = vld [vmem:[%s10137_s1 + $0x318] sm:$0xff]  }
  0x83   :  { %3771 = vmatprep.mubr.bf16.mxu1 %v7493_v2  ;;  %3899 = vmatprep.mubr.bf16.mxu0 %v7495_v3  ;;  %v7609_v2 = vld [vmem:[%s10137_s1 + $0x360] sm:$0xff]  }
  0x84   :  { %v7577_v3 = vld [vmem:[%s10138_s0 + $0x33c] ss:$100 sps:$4 sm:$0xff]  }
  0x8a   :  { %3772 = vmatmul.mubr.bf16.gmra.mrb[52].mxu1 %v7498_v8  ;;  %3900 = vmatmul.mubr.bf16.gmra.mrb[52].mxu0 %v7499_v9  ;;  %v7633_v8 = vld [vmem:[%s10137_s1 + $0x2f0] sm:$0xff]  }
  0x8b   :  { %3779 = vmatprep.mubr.bf16.mxu1 %v7503_v10  ;;  %3907 = vmatprep.mubr.bf16.mxu0 %v7505_v11  ;;  %v7634_v9 = vld [vmem:[%s10137_s1 + $0x2b0] sm:$0xff]   ;;  %v7643_v10 = vld [vmem:[%s10137_s1 + $0x2f8] sm:$0xff]   ;;  %v7626_v11 = vld [vmem:[%s10137_s1 + $0x328] sm:$0xff]  }
  0x92   :  { %3780 = vmatmul.mubr.bf16.gmra.mrb[56].mxu1 %v7507_v13  ;;  %3908 = vmatmul.mubr.bf16.gmra.mrb[56].mxu0 %v7508_v14  ;;  %v7635_v13 = vld [vmem:[%s10137_s1 + $0x370] sm:$0xff]   ;;  %v7647_v14 = vld [vmem:[%s10137_s1 + $0x2b8] sm:$0xff]  }
  0x93   :  { %3787 = vmatprep.mubr.bf16.mxu1 %v7511_v15  ;;  %3915 = vmatprep.mubr.bf16.mxu0 %v7513_v16  ;;  %v7582_v15 = vld [vmem:[%s10138_s0 + $0x278] ss:$100 sps:$4 sm:$0xff]   ;;  %v7585_v16 = vld [vmem:[%s10138_s0 + $0x404] ss:$100 sps:$4 sm:$0xff]  }
  0x9a   :  { %3788 = vmatmul.mubr.bf16.gmra.mrb[60].mxu1 %v7515_v17  ;;  %3916 = vmatmul.mubr.bf16.gmra.mrb[60].mxu0 %v7516_v18  ;;  %v7587_v17 = vld [vmem:[%s10138_s0 + $0x344] ss:$100 sps:$4 sm:$0xff]   ;;  %v7640_v18 = vld [vmem:[%s10137_s1 + $0x330] sm:$0xff]  }
  0x9b   :  { %3795 = vmatprep.mubr.bf16.mxu1 %v7519_v19  ;;  %3923 = vmatprep.mubr.bf16.mxu0 %v7521_v20  ;;  %v7657_v19 = vld [vmem:[%s10137_s1 + $0x3c0] sm:$0xff]   ;;  %v7650_v20 = vld [vmem:[%s10137_s1 + $0x378] sm:$0xff]  }
  0xa2   :  { %3796 = vmatmul.mubr.bf16.gmra.mrb[64].mxu1 %v7523_v21  ;;  %3924 = vmatmul.mubr.bf16.gmra.mrb[64].mxu0 %v7524_v22  ;;  %v7589_v21 = vld [vmem:[%s10138_s0 + $0x400] ss:$100 sps:$4 sm:$0xff]  }
  0xa3   :  { %3803 = vmatprep.mubr.bf16.mxu1 %v7528_v23  ;;  %3931 = vmatprep.mubr.bf16.mxu0 %v7530_v24  ;;  %v7590_v22 = vld [vmem:[%s10138_s0 + $0x340] ss:$100 sps:$4 sm:$0xff]   ;;  %v7651_v23 = vld [vmem:[%s10137_s1 + $0x338] sm:$0xff]  }
  0xa4   :  { %v7665_v24 = vld [vmem:[%s10137_s1 + $0x440] sm:$0xff]  }
  0xaa   :  { %3804 = vmatmul.mubr.bf16.gmra.mrb[68].mxu1 %v7533_v26  ;;  %3932 = vmatmul.mubr.bf16.gmra.mrb[68].mxu0 %v7534_v27  ;;  %v7595_v26 = vld [vmem:[%s10138_s0 + $0x40c] ss:$100 sps:$4 sm:$0xff]  }
  0xab   :  { %3811 = vmatprep.mubr.bf16.mxu1 %v5774_v28  ;;  %3939 = vmatprep.mubr.bf16.mxu0 %v7537_v29  ;;  %v7598_v27 = vld [vmem:[%s10138_s0 + $0x4c8] ss:$100 sps:$4 sm:$0xff]   ;;  %v7601_v29 = vld [vmem:[%s10138_s0 + $0x594] ss:$100 sps:$4 sm:$0xff]  }
  0xac   :  { %v7599_v28 = vld [vmem:[%s10138_s0 + $0x408] ss:$100 sps:$4 sm:$0xff]  }
  0xb2   :  { %3812 = vmatmul.mubr.bf16.gmra.mrb[72].mxu1 %v5773_v31  ;;  %3940 = vmatmul.mubr.bf16.gmra.mrb[72].mxu0 %v7541_v32  ;;  %v7606_v31 = vld [vmem:[%s10138_s0 + $0x590] ss:$100 sps:$4 sm:$0xff]  }
  0xb3   :  { %3947 = vmatprep.mubr.bf16.mxu0 %v5776_v33  ;;  %3987 = vmatprep.mubr.bf16.mxu1 %v7547_v34  ;;  %v7607_v32 = vld [vmem:[%s10138_s0 + $0x4d0] ss:$100 sps:$4 sm:$0xff]   ;;  %v7611_v33 = vld [vmem:[%s10138_s0 + $0x65c] ss:$100 sps:$4 sm:$0xff]  }
  0xb4   :  { %v7613_v34 = vld [vmem:[%s10138_s0 + $0x59c] ss:$100 sps:$4 sm:$0xff]  }
  0xba   :  { %3948 = vmatmul.mubr.bf16.gmra.mrb[76].mxu0 %v5775_v37  ;;  %3988 = vmatmul.mubr.bf16.vlgmr.msra.gmra.mrb[76].mxu1 %v7545_v35  ;;  %v7615_v37 = vld [vmem:[%s10138_s0 + $0x658] ss:$100 sps:$4 sm:$0xff]  }
  0xbb   :  { %6588 = vmatpush3.bf16.msra.mxu1 %v7550_v36  ;;  %3995 = vmatprep.mubr.bf16.mxu1 %v7551_v38  ;;  %v7616_v38 = vld [vmem:[%s10138_s0 + $0x598] ss:$100 sps:$4 sm:$0xff]  }
  0xbc   :  { %4123 = vmatprep.mubr.bf16.mxu0 %v7555_v39  ;;  %6589 = vmatprep.subr.bf16.mxu1 %v7565_v40 }
  0xbf   :  { %6590 = vmatpush3.bf16.msra.mxu1 %v7566_v41  ;;  %v7619_v41 = vld [vmem:[%s10138_s0 + $0x724] ss:$100 sps:$4 sm:$0xff]  }
  0xc0   :  { %6591 = vmatprep.subr.bf16.mxu1 %v7575_v43 }
  0xc2   :  { %3996 = vmatmul.mubr.bf16.gmra.mrb[80].mxu1 %v7556_v44  ;;  %4124 = vmatmul.mubr.bf16.vlgmr.msra.gmra.mrb[80].mxu0 %v7553_v42 }
  0xc3   :  { %6682 = vmatpush3.bf16.msra.mxu0 %v7558_v45  ;;  %4003 = vmatprep.mubr.bf16.mxu1 %v7559_v46  ;;  %v7621_v46 = vld [vmem:[%s10138_s0 + $0x664] ss:$100 sps:$4 sm:$0xff]  }
  0xc4   :  { %4131 = vmatprep.mubr.bf16.mxu0 %v7561_v47  ;;  %6683 = vmatprep.subr.bf16.mxu0 %v7567_v48 }
  0xc5   :  { %6592 = vmatpush3.bf16.msra.mxu1 %v7576_v49 }
  0xc6   :  { %6593 = vmatprep.subr.bf16.mxu1 %v7591_v50 }
  0xc7   :  { %6684 = vmatpush3.bf16.msra.mxu0 %v7568_v51  ;;  %v7623_v51 = vld [vmem:[%s10138_s0 + $0x720] ss:$100 sps:$4 sm:$0xff]  }
  0xc8   :  { %6685 = vmatprep.subr.bf16.mxu0 %v7583_v54  ;;  %v7624_v54 = vld [vmem:[%s10138_s0 + $0x660] ss:$100 sps:$4 sm:$0xff]  }
  0xc9   :  { %6594 = vmatpush3.bf16.msra.mxu1 %v7592_v55  ;;  %v7627_v55 = vld [vmem:[%s10138_s0 + $0x7ec] ss:$100 sps:$4 sm:$0xff]  }
  0xca   :  { %4004 = vmatmul.mubr.bf16.gmra.mrb[84].mxu1 %v7563_v52  ;;  %4132 = vmatmul.mubr.bf16.gmra.mrb[84].mxu0 %v7564_v53 }
  0xcb   :  { %4011 = vmatprep.mubr.bf16.mxu1 %v7569_v56  ;;  %4139 = vmatprep.mubr.bf16.mxu0 %v7571_v57 }
  0xcc   :  { %6686 = vmatpush3.bf16.msra.mxu0 %v7584_v58  ;;  %6595 = vmatprep.subr.bf16.mxu1 %v7605_v60 }
  0xcd   :  { %6687 = vmatprep.subr.bf16.mxu0 %v7597_v59  ;;  %6596 = vmatpush3.bf16.msra.mxu1 %v7608_v61 }
  0xce   :  { %6597 = vmatprep.subr.bf16.mxu1 %v7617_v62  ;;  %v7629_v62 = vld [vmem:[%s10138_s0 + $0x72c] ss:$100 sps:$4 sm:$0xff]  }
  0xd0   :  { %6688 = vmatpush3.bf16.msra.mxu0 %v7600_v1 }
  0xd1   :  { %6689 = vmatprep.subr.bf16.mxu0 %v7609_v2  ;;  %6598 = vmatpush3.bf16.msra.mxu1 %v7618_v5 }
  0xd2   :  { %4012 = vmatmul.mubr.bf16.gmra.mrb[88].mxu1 %v7573_v63  ;;  %4140 = vmatmul.mubr.bf16.gmra.mrb[88].mxu0 %v7574_v0  ;;  %v8744_v63 = vld [vmem:[%s10139_s2] ss:$0 sm:$0xff] }
  0xd3   :  { %4019 = vmatprep.mubr.bf16.mxu1 %v7577_v3  ;;  %4147 = vmatprep.mubr.bf16.mxu0 %v7579_v4 }
  0xd4   :  { %6690 = vmatpush3.bf16.msra.mxu0 %v7610_v6  ;;  %6599 = vmatprep.subr.bf16.mxu1 %v7633_v8  ;;  %v7631_v6 = vld [vmem:[%s10138_s0 + $0x7e8] ss:$100 sps:$4 sm:$0xff]  }
  0xd5   :  { %6691 = vmatprep.subr.bf16.mxu0 %v7625_v7  ;;  %6600 = vmatpush3.bf16.msra.mxu1 %v7634_v9  ;;  %v7632_v7 = vld [vmem:[%s10138_s0 + $0x728] ss:$100 sps:$4 sm:$0xff]  }
  0xd6   :  { %6601 = vmatprep.subr.bf16.mxu1 %v7643_v10  ;;  %v7636_v10 = vld [vmem:[%s10138_s0 + $0x8b4] ss:$100 sps:$4 sm:$0xff]  }
  0xd8   :  { %6692 = vmatpush3.bf16.msra.mxu0 %v7626_v11 }
  0xd9   :  { %6693 = vmatprep.subr.bf16.mxu0 %v7635_v13  ;;  %6602 = vmatpush3.bf16.msra.mxu1 %v7647_v14 }
  0xda   :  { %4020 = vmatmul.mubr.bf16.gmra.mrb[92].mxu1 %v7581_v12  ;;  %4148 = vmatmul.mubr.bf16.gmra.mrb[92].mxu0 %v7582_v15 }
  0xdb   :  { %4027 = vmatprep.mubr.bf16.mxu1 %v7585_v16  ;;  %4155 = vmatprep.mubr.bf16.mxu0 %v7587_v17  ;;  %v7638_v17 = vld [vmem:[%s10138_s0 + $0x7f4] ss:$100 sps:$4 sm:$0xff]  }
  0xdc   :  { %6694 = vmatpush3.bf16.msra.mxu0 %v7640_v18  ;;  %6775 = vmatprep.subr.bf16.mxu1 %v7657_v19 }
  0xdd   :  { %6695 = vmatprep.subr.bf16.mxu0 %v7650_v20 }
  0xe0   :  { %6696 = vmatpush3.bf16.msra.mxu0 %v7651_v23  ;;  %v330_v23 = vld [vmem:[%s10138_s0 + $0x978] sm:$0xff] }
  0xe1   :  { %6869 = vmatprep.subr.bf16.mxu0 %v7665_v24 }
  0xe2   :  { %4028 = vmatmul.mubr.bf16.gmra.mrb[96].mxu1 %v7589_v21  ;;  %4156 = vmatmul.mubr.bf16.gmra.mrb[96].mxu0 %v7590_v22 }
  0xe3   :  { %4035 = vmatprep.mubr.bf16.mxu1 %v7593_v25  ;;  %4163 = vmatprep.mubr.bf16.mxu0 %v7595_v26  ;;  %v7641_v25 = vld [vmem:[%s10138_s0 + $0x8b0] ss:$100 sps:$4 sm:$0xff]  }
  0xe4   :  { %v7642_v26 = vld [vmem:[%s10138_s0 + $0x7f0] ss:$100 sps:$4 sm:$0xff]  }
  0xea   :  { %4036 = vmatmul.mubr.bf16.gmra.mrb[100].mxu1 %v7598_v27  ;;  %4164 = vmatmul.mubr.bf16.gmra.mrb[100].mxu0 %v7599_v28 }
  0xeb   :  { %4043 = vmatprep.mubr.bf16.mxu1 %v7601_v29  ;;  %4171 = vmatprep.mubr.bf16.mxu0 %v7603_v30 }
  0xf2   :  { %4044 = vmatmul.mubr.bf16.gmra.mrb[104].mxu1 %v7606_v31  ;;  %4172 = vmatmul.mubr.bf16.gmra.mrb[104].mxu0 %v7607_v32 }
  0xf3   :  { %4051 = vmatprep.mubr.bf16.mxu1 %v7611_v33  ;;  %4179 = vmatprep.mubr.bf16.mxu0 %v7613_v34 }
  0xf5   :  { %v6133_v35 = vpop.f32.mrb[0].mxu0  ;;  %v6175_v36 = vpop.f32.mrb[0].mxu1 }
  0xf6   :  { %v6134_v39 = vpop.f32.mrb[1].mxu0  ;;  %v6176_v40 = vpop.f32.mrb[1].mxu1 }
  0xf7   :  { %v8716_v42 = vadd.f32 %v6134_v39, %v6133_v35  ;;  %v6136_v43 = vpop.f32.mrb[2].mxu0  ;;  %v8718_v44 = vadd.f32 %v6176_v40, %v6175_v36  ;;  %v6178_v45 = vpop.f32.mrb[2].mxu1  ;;  %v5778_v35 = vcombine.high %v330_v23, %v330_v23  ;;  %v7645_v36 = vld [vmem:[%s10138_s0 + $0x8bc] ss:$100 sps:$4 sm:$0xff]  }
  0xf8   :  { %v6137_v47 = vpop.f32.mrb[3].mxu0  ;;  %v6179_v48 = vpop.f32.mrb[3].mxu1 }
  0xf9   :  { %v8723_v49 = vadd.f32 %v6137_v47, %v6136_v43  ;;  %v8725_v50 = vadd.f32 %v6179_v48, %v6178_v45  ;;  %v331_v45 = vld [vmem:[%s10138_s0 + $0x980] sm:$0xff] }
  0xfa   :  { %4052 = vmatmul.mubr.bf16.gmra.mrb[108].mxu1 %v7615_v37  ;;  %4180 = vmatmul.mubr.bf16.gmra.mrb[108].mxu0 %v7616_v38 }
  0xfb   :  { %4059 = vmatprep.mubr.bf16.mxu1 %v7619_v41  ;;  %4187 = vmatprep.mubr.bf16.mxu0 %v7621_v46  ;;  %v7649_v46 = vld [vmem:[%s10138_s0 + $0x8b8] ss:$100 sps:$4 sm:$0xff]  }
  0xfd   :  { %v6139_v52 = vpop.f32.mrb[4].mxu0  ;;  %v6181_v53 = vpop.f32.mrb[4].mxu1 }
  0xfe   :  { %v6140_v56 = vpop.f32.mrb[5].mxu0  ;;  %v6182_v57 = vpop.f32.mrb[5].mxu1 }
  0xff   :  { %v8736_v58 = vadd.f32 %v6140_v56, %v6139_v52  ;;  %v6142_v59 = vpop.f32.mrb[6].mxu0  ;;  %v6183_v60 = vadd.f32 %v6182_v57, %v6181_v53  ;;  %v6184_v61 = vpop.f32.mrb[6].mxu1 }
 0x100   :  { %v6143_v0 = vpop.f32.mrb[7].mxu0  ;;  %v6185_v1 = vpop.f32.mrb[7].mxu1 }
 0x101   :  { %v8747_v2 = vadd.f32 %v6183_v60, %v8744_v63  ;;  %v8749_v3 = vadd.f32 %v6143_v0, %v6142_v59  ;;  %v6186_v4 = vadd.f32 %v6185_v1, %v6184_v61  ;;  %v5780_v60 = vcombine.high %v331_v45, %v331_v45 }
 0x102   :  { %4060 = vmatmul.mubr.bf16.gmra.mrb[112].mxu1 %v7623_v51  ;;  %4188 = vmatmul.mubr.bf16.gmra.mrb[112].mxu0 %v7624_v54  ;;  %v7655_v51 = vld [vmem:[%s10138_s0 + $0x2c] ss:$100 sps:$4 sm:$0xff]   ;;  %v5777_v54 = vcombine.low %v330_v23, %v330_v23 }
 0x103   :  { %v8752_v5 = vadd.f32 %v6186_v4, %v8744_v63  ;;  %4067 = vmatprep.mubr.bf16.mxu1 %v7627_v55  ;;  %4195 = vmatprep.mubr.bf16.mxu0 %v7629_v62 }
 0x105   :  { %v6145_v8 = vpop.f32.mrb[8].mxu0  ;;  %v6187_v9 = vpop.f32.mrb[8].mxu1 }
 0x106   :  { %v6146_v11 = vpop.f32.mrb[9].mxu0  ;;  %v6188_v12 = vpop.f32.mrb[9].mxu1 }
 0x107   :  { %v8763_v13 = vadd.f32 %v6146_v11, %v6145_v8  ;;  %v6148_v14 = vpop.f32.mrb[10].mxu0  ;;  %v6189_v15 = vadd.f32 %v6188_v12, %v6187_v9  ;;  %v6190_v16 = vpop.f32.mrb[10].mxu1  ;;  %v7659_v11 = vld [vmem:[%s10138_s0 + $0xf4] ss:$100 sps:$4 sm:$0xff]  }
 0x108   :  { %v6149_v18 = vpop.f32.mrb[11].mxu0  ;;  %v6191_v19 = vpop.f32.mrb[11].mxu1 }
 0x109   :  { %v8769_v20 = vadd.f32 %v6189_v15, %v8744_v63  ;;  %v8771_v21 = vadd.f32 %v6149_v18, %v6148_v14  ;;  %v6192_v22 = vadd.f32 %v6191_v19, %v6190_v16  ;;  %v5779_v15 = vcombine.low %v331_v45, %v331_v45 }
 0x10a   :  { %4068 = vmatmul.mubr.bf16.gmra.mrb[116].mxu1 %v7631_v6  ;;  %4196 = vmatmul.mubr.bf16.gmra.mrb[116].mxu0 %v7632_v7  ;;  %v7653_v7 = vld [vmem:[%s10138_s0 + $0x28] ss:$100 sps:$4 sm:$0xff]   ;;  %v3582_v45 = vadd.f32 %v8716_v42, %v8744_v63  ;;  %v3585_v42 = vadd.f32 %v8723_v49, %v8744_v63 }
 0x10b   :  { %v8777_v24 = vadd.f32 %v6192_v22, %v8744_v63  ;;  %4075 = vmatprep.mubr.bf16.mxu1 %v7636_v10  ;;  %4203 = vmatprep.mubr.bf16.mxu0 %v7638_v17  ;;  %v7658_v10 = vld [vmem:[%s10137_s1 + $0x380] sm:$0xff]   ;;  %v7676_v49 = vld [vmem:[%s10137_s1 + $0x408] sm:$0xff]  }
 0x10d   :  { %v6151_v27 = vpop.f32.mrb[12].mxu0  ;;  %v6193_v28 = vpop.f32.mrb[12].mxu1 }
 0x10e   :  { %v6152_v29 = vpop.f32.mrb[13].mxu0  ;;  %v6194_v30 = vpop.f32.mrb[13].mxu1 }
 0x10f   :  { %v8785_v31 = vadd.f32 %v6152_v29, %v6151_v27  ;;  %v6154_v32 = vpop.f32.mrb[14].mxu0  ;;  %v6195_v33 = vadd.f32 %v6194_v30, %v6193_v28  ;;  %v6196_v34 = vpop.f32.mrb[14].mxu1  ;;  %v7674_v29 = vld [vmem:[%s10137_s1 + $0x388] sm:$0xff]   ;;  %v7683_v30 = vld [vmem:[%s10137_s1 + $0x3d0] sm:$0xff]  }
 0x110   :  { %v6155_v37 = vpop.f32.mrb[15].mxu0  ;;  %v6197_v38 = vpop.f32.mrb[15].mxu1 }
 0x111   :  { %v8791_v39 = vadd.f32 %v6195_v33, %v8744_v63  ;;  %v8793_v40 = vadd.f32 %v6155_v37, %v6154_v32  ;;  %v6198_v41 = vadd.f32 %v6197_v38, %v6196_v34  ;;  %v7661_v32 = vld [vmem:[%s10138_s0 + $0x30] ss:$100 sps:$4 sm:$0xff]   ;;  %v7667_v37 = vld [vmem:[%s10138_s0 + $0x1bc] ss:$100 sps:$4 sm:$0xff]  }
 0x112   :  { %4076 = vmatmul.mubr.bf16.gmra.mrb[120].mxu1 %v7641_v25  ;;  %4204 = vmatmul.mubr.bf16.gmra.mrb[120].mxu0 %v7642_v26  ;;  %v7663_v25 = vld [vmem:[%s10138_s0 + $0x34] ss:$100 sps:$4 sm:$0xff]   ;;  %v7673_v26 = vld [vmem:[%s10137_s1 + $0x3c8] sm:$0xff]  }
 0x113   :  { %v8796_v43 = vadd.f32 %v6198_v41, %v8744_v63  ;;  %4083 = vmatprep.mubr.bf16.mxu1 %v5778_v35  ;;  %4211 = vmatprep.mubr.bf16.mxu0 %v7645_v36  ;;  %v7664_v33 = vld [vmem:[%s10138_s0 + $0xf0] ss:$100 sps:$4 sm:$0xff]   ;;  %v7666_v36 = vld [vmem:[%s10137_s1 + $0x400] sm:$0xff]  }
 0x115   :  { %v6157_v47 = vpop.f32.mrb[16].mxu0  ;;  %v6199_v48 = vpop.f32.mrb[16].mxu1 }
 0x116   :  { %v6158_v52 = vpop.f32.mrb[17].mxu0  ;;  %v6200_v53 = vpop.f32.mrb[17].mxu1 }
 0x117   :  { %v8807_v55 = vadd.f32 %v6158_v52, %v6157_v47  ;;  %v6160_v56 = vpop.f32.mrb[18].mxu0  ;;  %v6201_v57 = vadd.f32 %v6200_v53, %v6199_v48  ;;  %v6202_v59 = vpop.f32.mrb[18].mxu1 }
 0x118   :  { %v6161_v61 = vpop.f32.mrb[19].mxu0  ;;  %v6203_v62 = vpop.f32.mrb[19].mxu1 }
 0x119   :  { %v8810_v0 = vadd.f32 %v6201_v57, %v8744_v63  ;;  %v8812_v1 = vadd.f32 %v6161_v61, %v6160_v56  ;;  %v6204_v4 = vadd.f32 %v6203_v62, %v6202_v59  ;;  %v7675_v56 = vld [vmem:[%s10137_s1 + $0x448] sm:$0xff]   ;;  %v7684_v61 = vld [vmem:[%s10137_s1 + $0x390] sm:$0xff]   ;;  %v7699_v62 = vld [vmem:[%s10137_s1 + $0x3d8] sm:$0xff]  }
 0x11a   :  { %4084 = vmatmul.mubr.bf16.gmra.mrb[124].mxu1 %v5777_v54  ;;  %4212 = vmatmul.mubr.bf16.gmra.mrb[124].mxu0 %v7649_v46  ;;  %v7669_v54 = vld [vmem:[%s10138_s0 + $0xfc] ss:$100 sps:$4 sm:$0xff]  }
 0x11b   :  { %v8815_v6 = vadd.f32 %v6204_v4, %v8744_v63  ;;  %4219 = vmatprep.mubr.bf16.mxu0 %v5780_v60  ;;  %4259 = vmatprep.mubr.bf16.mxu1 %v7655_v51 }
 0x11d   :  { %v6163_v8 = vpop.f32.mrb[20].mxu0  ;;  %v6205_v9 = vpop.f32.mrb[20].mxu1 }
 0x11e   :  { %v6164_v12 = vpop.f32.mrb[21].mxu0  ;;  %v6206_v14 = vpop.f32.mrb[21].mxu1 }
 0x11f   :  { %v8826_v16 = vadd.f32 %v6164_v12, %v6163_v8  ;;  %v6166_v17 = vpop.f32.mrb[22].mxu0  ;;  %v6207_v18 = vadd.f32 %v6206_v14, %v6205_v9  ;;  %v6208_v19 = vpop.f32.mrb[22].mxu1  ;;  %v7671_v8 = vld [vmem:[%s10138_s0 + $0x1b8] ss:$100 sps:$4 sm:$0xff]   ;;  %v7677_v12 = vld [vmem:[%s10138_s0 + $0x284] ss:$100 sps:$4 sm:$0xff]  }
 0x120   :  { %v6167_v22 = vpop.f32.mrb[23].mxu0  ;;  %v6209_v23 = vpop.f32.mrb[23].mxu1  ;;  %v7672_v9 = vld [vmem:[%s10138_s0 + $0xf8] ss:$100 sps:$4 sm:$0xff]   ;;  %v7679_v14 = vld [vmem:[%s10138_s0 + $0x1c4] ss:$100 sps:$4 sm:$0xff]   ;;  %v3590_v19 = vadd.f32 %v8736_v58, %v8744_v63 }
 0x121   :  { %v8835_v27 = vadd.f32 %v6207_v18, %v8744_v63  ;;  %v8837_v28 = vadd.f32 %v6167_v22, %v6166_v17  ;;  %v7713_v58 = vld [vmem:[%s10137_s1 + $0x3e0] sm:$0xff]  }
 0x122   :  { %4220 = vmatmul.mubr.bf16.gmra.mrb[128].mxu0 %v5779_v15  ;;  %4260 = vmatmul.mubr.bf16.vlgmr.msra.gmra.mrb[128].mxu1 %v7653_v7  ;;  %v7691_v7 = vld [vmem:[%s10137_s1 + $0x450] sm:$0xff]   ;;  %v7700_v15 = vld [vmem:[%s10137_s1 + $0x398] sm:$0xff]  }
 0x123   :  { %6776 = vmatpush3.bf16.msra.mxu1 %v7658_v10  ;;  %4267 = vmatprep.mubr.bf16.mxu1 %v7659_v11 }
 0x124   :  { %4395 = vmatprep.mubr.bf16.mxu0 %v7663_v25  ;;  %6777 = vmatprep.subr.bf16.mxu1 %v7673_v26 }
 0x125   :  { %v6169_v34 = vpop.f32.mrb[24].mxu0  ;;  %v6227_v35 = vpop.f32.mrb[24].mxu1 }
 0x126   :  { %v6170_v38 = vpop.f32.mrb[25].mxu0  ;;  %v6228_v41 = vpop.f32.mrb[25].mxu1 }
 0x127   :  { %v8859_v46 = vadd.f32 %v6170_v38, %v6169_v34  ;;  %v6229_v47 = vadd.f32 %v6228_v41, %v6227_v35  ;;  %v6172_v48 = vpop.f32.mrb[26].mxu0  ;;  %v6230_v51 = vpop.f32.mrb[26].mxu1  ;;  %6778 = vmatpush3.bf16.msra.mxu1 %v7674_v29  ;;  %v3593_v29 = vadd.f32 %v8749_v3, %v8744_v63  ;;  %v7705_v34 = vld [vmem:[%s10137_s1 + $0x458] sm:$0xff]   ;;  %v7716_v38 = vld [vmem:[%s10137_s1 + $0x3a0] sm:$0xff]   ;;  %v7725_v41 = vld [vmem:[%s10137_s1 + $0x3e8] sm:$0xff]  }
 0x128   :  { %v6173_v52 = vpop.f32.mrb[27].mxu0  ;;  %v6231_v53 = vpop.f32.mrb[27].mxu1  ;;  %6779 = vmatprep.subr.bf16.mxu1 %v7683_v30 }
 0x129   :  { %v3718_v57 = vadd.f32 %v6229_v47, %v3582_v45  ;;  %v8869_v59 = vadd.f32 %v6173_v52, %v6172_v48  ;;  %v6232_v60 = vadd.f32 %v6231_v53, %v6230_v51  ;;  %v7708_v45 = vld [vmem:[%s10137_s1 + $0x418] sm:$0xff]   ;;  %v7717_v51 = vld [vmem:[%s10137_s1 + $0x460] sm:$0xff]  }
 0x12a   :  { %4268 = vmatmul.mubr.bf16.gmra.mrb[132].mxu1 %v7664_v33  ;;  %4396 = vmatmul.mubr.bf16.vlgmr.msra.gmra.mrb[132].mxu0 %v7661_v32  ;;  %v7692_v33 = vld [vmem:[%s10137_s1 + $0x410] sm:$0xff]   ;;  %v7681_v52 = vld [vmem:[%s10138_s0 + $0x280] ss:$100 sps:$4 sm:$0xff]  }
 0x12b   :  { %v3721_v4 = vadd.f32 %v6232_v60, %v3585_v42  ;;  %6870 = vmatpush3.bf16.msra.mxu0 %v7666_v36  ;;  %4275 = vmatprep.mubr.bf16.mxu1 %v7667_v37  ;;  %v7682_v53 = vld [vmem:[%s10138_s0 + $0x1c0] ss:$100 sps:$4 sm:$0xff]   ;;  %v7685_v42 = vld [vmem:[%s10138_s0 + $0x34c] ss:$100 sps:$4 sm:$0xff]  }
 0x12c   :  { %4403 = vmatprep.mubr.bf16.mxu0 %v7669_v54  ;;  %6871 = vmatprep.subr.bf16.mxu0 %v7675_v56  ;;  %v7726_v60 = vld [vmem:[%s10137_s1 + $0x3a8] sm:$0xff]  }
 0x12d   :  { %v6233_v10 = vpop.f32.mrb[28].mxu1  ;;  %v6321_v11 = vpop.f32.mrb[28].mxu0  ;;  %6780 = vmatpush3.bf16.msra.mxu1 %v7684_v61 }
 0x12e   :  { %v6234_v17 = vpop.f32.mrb[29].mxu1  ;;  %v6322_v18 = vpop.f32.mrb[29].mxu0  ;;  %6781 = vmatprep.subr.bf16.mxu1 %v7699_v62 }
 0x12f   :  { %v6235_v22 = vadd.f32 %v6234_v17, %v6233_v10  ;;  %v6323_v23 = vadd.f32 %v6322_v18, %v6321_v11  ;;  %v6236_v25 = vpop.f32.mrb[30].mxu1  ;;  %v6324_v26 = vpop.f32.mrb[30].mxu0  ;;  %6872 = vmatpush3.bf16.msra.mxu0 %v7676_v49  ;;  %v3601_v10 = vadd.f32 %v8771_v21, %v8744_v63  ;;  %v7742_v21 = vld [vmem:[%s10137_s1 + $0x3b0] sm:$0xff]  }
 0x130   :  { %v6237_v30 = vpop.f32.mrb[31].mxu1  ;;  %v6325_v32 = vpop.f32.mrb[31].mxu0  ;;  %6873 = vmatprep.subr.bf16.mxu0 %v7691_v7 }
 0x131   :  { %v3726_v35 = vadd.f32 %v6235_v22, %v3590_v19  ;;  %v8911_v36 = vadd.f32 %v6323_v23, %v3718_v57  ;;  %v6238_v37 = vadd.f32 %v6237_v30, %v6236_v25  ;;  %v6326_v3 = vadd.f32 %v6325_v32, %v6324_v26  ;;  %6782 = vmatpush3.bf16.msra.mxu1 %v7700_v15  ;;  %v7687_v57 = vld [vmem:[%s10138_s0 + $0x28c] ss:$100 sps:$4 sm:$0xff]   ;;  %v7751_v22 = vld [vmem:[%s10137_s1 + $0x3f8] sm:$0xff]  }
 0x132   :  { %4276 = vmatmul.mubr.bf16.gmra.mrb[136].mxu1 %v7671_v8  ;;  %4404 = vmatmul.mubr.bf16.gmra.mrb[136].mxu0 %v7672_v9  ;;  %v7733_v15 = vld [vmem:[%s10137_s1 + $0x468] sm:$0xff]   ;;  %v7755_v30 = vld [vmem:[%s10137_s1 + $0x3b8] sm:$0xff]  }
 0x133   :  { %v3729_v47 = vadd.f32 %v6238_v37, %v3593_v29  ;;  %v8922_v48 = vadd.f32 %v6326_v3, %v3721_v4  ;;  %4283 = vmatprep.mubr.bf16.mxu1 %v7677_v12  ;;  %4411 = vmatprep.mubr.bf16.mxu0 %v7679_v14  ;;  %v3598_v4 = vadd.f32 %v8763_v13, %v8744_v63  ;;  %v7718_v14 = vld [vmem:[%s10137_s1 + $0x420] sm:$0xff]   ;;  %v7741_v13 = vld [vmem:[%s10137_s1 + $0x3f0] sm:$0xff]   ;;  %v7734_v23 = vld [vmem:[%s10137_s1 + $0x428] sm:$0xff]  }
 0x134   :  { %6874 = vmatpush3.bf16.msra.mxu0 %v7692_v33  ;;  %6783 = vmatprep.subr.bf16.mxu1 %v7713_v58  ;;  %v7743_v29 = vld [vmem:[%s10137_s1 + $0x470] sm:$0xff]   ;;  %v7689_v33 = vld [vmem:[%s10138_s0 + $0x348] ss:$100 sps:$4 sm:$0xff]  }
 0x135   :  { %v6239_v54 = vpop.f32.mrb[32].mxu1  ;;  %v6327_v56 = vpop.f32.mrb[32].mxu0  ;;  %6875 = vmatprep.subr.bf16.mxu0 %v7705_v34  ;;  %6784 = vmatpush3.bf16.msra.mxu1 %v7716_v38  ;;  %v7690_v34 = vld [vmem:[%s10138_s0 + $0x288] ss:$100 sps:$4 sm:$0xff]   ;;  %v7693_v37 = vld [vmem:[%s10138_s0 + $0x414] ss:$100 sps:$4 sm:$0xff]  }
 0x136   :  { %v6240_v61 = vpop.f32.mrb[33].mxu1  ;;  %v6328_v62 = vpop.f32.mrb[33].mxu0  ;;  %6785 = vmatprep.subr.bf16.mxu1 %v7725_v41  ;;  %v7695_v3 = vld [vmem:[%s10138_s0 + $0x354] ss:$100 sps:$4 sm:$0xff]  }
 0x137   :  { %v6241_v49 = vadd.f32 %v6240_v61, %v6239_v54  ;;  %v6329_v7 = vadd.f32 %v6328_v62, %v6327_v56  ;;  %v6242_v8 = vpop.f32.mrb[34].mxu1  ;;  %v6330_v9 = vpop.f32.mrb[34].mxu0  ;;  %v3609_v54 = vadd.f32 %v8793_v40, %v8744_v63  ;;  %v7758_v40 = vld [vmem:[%s10137_s1 + $0x478] sm:$0xff]  }
 0x138   :  { %v6243_v11 = vpop.f32.mrb[35].mxu1  ;;  %v6331_v12 = vpop.f32.mrb[35].mxu0  ;;  %6876 = vmatpush3.bf16.msra.mxu0 %v7708_v45  ;;  %v3606_v45 = vadd.f32 %v8785_v31, %v8744_v63 }
 0x139   :  { %v3734_v17 = vadd.f32 %v6241_v49, %v3598_v4  ;;  %v6244_v18 = vadd.f32 %v6243_v11, %v6242_v8  ;;  %v6332_v19 = vadd.f32 %v6331_v12, %v6330_v9  ;;  %6877 = vmatprep.subr.bf16.mxu0 %v7717_v51  ;;  %6786 = vmatpush3.bf16.msra.mxu1 %v7726_v60  ;;  %v7765_v60 = vld [vmem:[%s10137_s1 + $0x4c0] sm:$0xff]   ;;  %v7698_v11 = vld [vmem:[%s10138_s0 + $0x350] ss:$100 sps:$4 sm:$0xff]  }
 0x13a   :  { %4284 = vmatmul.mubr.bf16.gmra.mrb[140].mxu1 %v7681_v52  ;;  %4412 = vmatmul.mubr.bf16.gmra.mrb[140].mxu0 %v7682_v53  ;;  %v8964_v25 = vadd.f32 %v6329_v7, %v3726_v35  ;;  %v7759_v7 = vld [vmem:[%s10137_s1 + $0x438] sm:$0xff]   ;;  %v7773_v8 = vld [vmem:[%s10137_s1 + $0x540] sm:$0xff]  }
 0x13b   :  { %v3737_v26 = vadd.f32 %v6244_v18, %v3601_v10  ;;  %4291 = vmatprep.mubr.bf16.mxu1 %v7685_v42  ;;  %4419 = vmatprep.mubr.bf16.mxu0 %v7687_v57  ;;  %v8972_v32 = vadd.f32 %v6332_v19, %v3729_v47  ;;  %v7748_v57 = vld [vmem:[%s10137_s1 + $0x430] sm:$0xff]   ;;  %v3614_v19 = vadd.f32 %v8807_v55, %v8744_v63 }
 0x13c   :  { %6878 = vmatpush3.bf16.msra.mxu0 %v7718_v14  ;;  %6787 = vmatprep.subr.bf16.mxu1 %v7741_v13  ;;  %v7697_v10 = vld [vmem:[%s10138_s0 + $0x410] ss:$100 sps:$4 sm:$0xff]   ;;  %v7703_v13 = vld [vmem:[%s10138_s0 + $0x41c] ss:$100 sps:$4 sm:$0xff]  }
 0x13d   :  { %v6245_v58 = vpop.f32.mrb[36].mxu1  ;;  %v6333_v35 = vpop.f32.mrb[36].mxu0  ;;  %6879 = vmatprep.subr.bf16.mxu0 %v7733_v15  ;;  %6788 = vmatpush3.bf16.msra.mxu1 %v7742_v21  ;;  %v7701_v15 = vld [vmem:[%s10138_s0 + $0x4dc] ss:$100 sps:$4 sm:$0xff]  }
 0x13e   :  { %v6246_v38 = vpop.f32.mrb[37].mxu1  ;;  %v6334_v41 = vpop.f32.mrb[37].mxu0  ;;  %6789 = vmatprep.subr.bf16.mxu1 %v7751_v22 }
 0x13f   :  { %v6247_v47 = vadd.f32 %v6246_v38, %v6245_v58  ;;  %v6335_v51 = vadd.f32 %v6334_v41, %v6333_v35  ;;  %v6248_v52 = vpop.f32.mrb[38].mxu1  ;;  %v6336_v53 = vpop.f32.mrb[38].mxu0  ;;  %v7707_v38 = vld [vmem:[%s10138_s0 + $0x418] ss:$100 sps:$4 sm:$0xff]  }
 0x140   :  { %v6249_v56 = vpop.f32.mrb[39].mxu1  ;;  %v6337_v42 = vpop.f32.mrb[39].mxu0  ;;  %6880 = vmatpush3.bf16.msra.mxu0 %v7734_v23 }
 0x141   :  { %v3742_v61 = vadd.f32 %v6247_v47, %v3606_v45  ;;  %v6250_v31 = vadd.f32 %v6249_v56, %v6248_v52  ;;  %v6338_v62 = vadd.f32 %v6337_v42, %v6336_v53  ;;  %6881 = vmatprep.subr.bf16.mxu0 %v7743_v29  ;;  %6790 = vmatpush3.bf16.msra.mxu1 %v7755_v30  ;;  %v7709_v47 = vld [vmem:[%s10138_s0 + $0x5a4] ss:$100 sps:$4 sm:$0xff]  }
 0x142   :  { %4292 = vmatmul.mubr.bf16.gmra.mrb[144].mxu1 %v7689_v33  ;;  %4420 = vmatmul.mubr.bf16.gmra.mrb[144].mxu0 %v7690_v34  ;;  %v8999_v4 = vadd.f32 %v6335_v51, %v3734_v17  ;;  %v3617_v29 = vadd.f32 %v8812_v1, %v8744_v63  ;;  %v7706_v1 = vld [vmem:[%s10138_s0 + $0x4d8] ss:$100 sps:$4 sm:$0xff]   ;;  %v7711_v51 = vld [vmem:[%s10138_s0 + $0x4e4] ss:$100 sps:$4 sm:$0xff]  }
 0x143   :  { %v3745_v49 = vadd.f32 %v6250_v31, %v3609_v54  ;;  %4299 = vmatprep.mubr.bf16.mxu1 %v7693_v37  ;;  %4427 = vmatprep.mubr.bf16.mxu0 %v7695_v3  ;;  %v9007_v9 = vadd.f32 %v6338_v62, %v3737_v26  ;;  %v3622_v54 = vadd.f32 %v8826_v16, %v8744_v63 }
 0x144   :  { %6882 = vmatpush3.bf16.msra.mxu0 %v7748_v57  ;;  %6963 = vmatprep.subr.bf16.mxu1 %v7765_v60 }
 0x145   :  { %v6251_v12 = vpop.f32.mrb[40].mxu1  ;;  %v6339_v14 = vpop.f32.mrb[40].mxu0  ;;  %6883 = vmatprep.subr.bf16.mxu0 %v7758_v40 }
 0x146   :  { %v6252_v17 = vpop.f32.mrb[41].mxu1  ;;  %v6340_v18 = vpop.f32.mrb[41].mxu0 }
 0x147   :  { %v6253_v21 = vadd.f32 %v6252_v17, %v6251_v12  ;;  %v6341_v22 = vadd.f32 %v6340_v18, %v6339_v14  ;;  %v6254_v23 = vpop.f32.mrb[42].mxu1  ;;  %v6342_v26 = vpop.f32.mrb[42].mxu0 }
 0x148   :  { %v6255_v30 = vpop.f32.mrb[43].mxu1  ;;  %v6343_v33 = vpop.f32.mrb[43].mxu0  ;;  %6884 = vmatpush3.bf16.msra.mxu0 %v7759_v7 }
 0x149   :  { %v3750_v34 = vadd.f32 %v6253_v21, %v3614_v19  ;;  %v6256_v58 = vadd.f32 %v6255_v30, %v6254_v23  ;;  %v6344_v35 = vadd.f32 %v6343_v33, %v6342_v26  ;;  %7057 = vmatprep.subr.bf16.mxu0 %v7773_v8  ;;  %v9025_v37 = vadd.f32 %v6341_v22, %v3742_v61 }
 0x14a   :  { %4300 = vmatmul.mubr.bf16.gmra.mrb[148].mxu1 %v7697_v10  ;;  %4428 = vmatmul.mubr.bf16.gmra.mrb[148].mxu0 %v7698_v11  ;;  %v3625_v61 = vadd.f32 %v8837_v28, %v8744_v63  ;;  %v7714_v11 = vld [vmem:[%s10138_s0 + $0x5a0] ss:$100 sps:$4 sm:$0xff]   ;;  %v3630_v19 = vadd.f32 %v8859_v46, %v8744_v63 }
 0x14b   :  { %v3753_v3 = vadd.f32 %v6256_v58, %v3617_v29  ;;  %4307 = vmatprep.mubr.bf16.mxu1 %v7701_v15  ;;  %4435 = vmatprep.mubr.bf16.mxu0 %v7703_v13  ;;  %v9027_v55 = vadd.f32 %v6344_v35, %v3745_v49  ;;  %v7715_v28 = vld [vmem:[%s10138_s0 + $0x4e0] ss:$100 sps:$4 sm:$0xff]   ;;  %v7719_v15 = vld [vmem:[%s10138_s0 + $0x66c] ss:$100 sps:$4 sm:$0xff]   ;;  %v3633_v29 = vadd.f32 %v8869_v59, %v8744_v63 }
 0x14c   :  { %v7721_v13 = vld [vmem:[%s10138_s0 + $0x5ac] ss:$100 sps:$4 sm:$0xff]  }
 0x14d   :  { %v6257_v41 = vpop.f32.mrb[44].mxu1  ;;  %v6345_v45 = vpop.f32.mrb[44].mxu0  ;;  %v7724_v63 = vld [vmem:[%s10138_s0 + $0x5a8] ss:$100 sps:$4 sm:$0xff]  }
 0x14e   :  { %v6258_v52 = vpop.f32.mrb[45].mxu1  ;;  %v6346_v53 = vpop.f32.mrb[45].mxu0 }
 0x14f   :  { %v6259_v56 = vadd.f32 %v6258_v52, %v6257_v41  ;;  %v6347_v42 = vadd.f32 %v6346_v53, %v6345_v45  ;;  %v6260_v57 = vpop.f32.mrb[46].mxu1  ;;  %v6348_v60 = vpop.f32.mrb[46].mxu0  ;;  %v7727_v45 = vld [vmem:[%s10138_s0 + $0x734] ss:$100 sps:$4 sm:$0xff]   ;;  %v8021_v53 = vld [vmem:[%s10139_s2] ss:$0 sm:$0xff] }
 0x150   :  { %v6261_v31 = vpop.f32.mrb[47].mxu1  ;;  %v6349_v62 = vpop.f32.mrb[47].mxu0 }
 0x151   :  { %v3758_v40 = vadd.f32 %v6259_v56, %v3622_v54  ;;  %v6262_v49 = vadd.f32 %v6261_v31, %v6260_v57  ;;  %v6350_v7 = vadd.f32 %v6349_v62, %v6348_v60  ;;  %v9045_v8 = vadd.f32 %v6347_v42, %v3750_v34 }
 0x152   :  { %4308 = vmatmul.mubr.bf16.gmra.mrb[152].mxu1 %v7706_v1  ;;  %4436 = vmatmul.mubr.bf16.gmra.mrb[152].mxu0 %v7707_v38  ;;  %v7723_v38 = vld [vmem:[%s10138_s0 + $0x668] ss:$100 sps:$4 sm:$0xff]   ;;  %v3638_v54 = vadd.f32 %v8021_v53, %v8718_v44  ;;  %v7731_v44 = vld [vmem:[%s10138_s0 + $0x730] ss:$100 sps:$4 sm:$0xff]  }
 0x153   :  { %v3761_v10 = vadd.f32 %v6262_v49, %v3625_v61  ;;  %4315 = vmatprep.mubr.bf16.mxu1 %v7709_v47  ;;  %4443 = vmatprep.mubr.bf16.mxu0 %v7711_v51  ;;  %v9047_v16 = vadd.f32 %v6350_v7, %v3753_v3  ;;  %v7729_v47 = vld [vmem:[%s10138_s0 + $0x674] ss:$100 sps:$4 sm:$0xff]   ;;  %v3641_v61 = vadd.f32 %v8021_v53, %v8725_v50 }
 0x154   :  { %v7732_v50 = vld [vmem:[%s10138_s0 + $0x670] ss:$100 sps:$4 sm:$0xff]  }
 0x155   :  { %v6263_v12 = vpop.f32.mrb[48].mxu1  ;;  %v6351_v14 = vpop.f32.mrb[48].mxu0 }
 0x156   :  { %v6264_v17 = vpop.f32.mrb[49].mxu1  ;;  %v6352_v18 = vpop.f32.mrb[49].mxu0 }
 0x157   :  { %v6265_v21 = vadd.f32 %v6264_v17, %v6263_v12  ;;  %v6353_v22 = vadd.f32 %v6352_v18, %v6351_v14  ;;  %v6266_v23 = vpop.f32.mrb[50].mxu1  ;;  %v6354_v26 = vpop.f32.mrb[50].mxu0 }
 0x158   :  { %v6267_v30 = vpop.f32.mrb[51].mxu1  ;;  %v6355_v33 = vpop.f32.mrb[51].mxu0 }
 0x159   :  { %v3766_v34 = vadd.f32 %v6265_v21, %v3630_v19  ;;  %v6268_v58 = vadd.f32 %v6267_v30, %v6266_v23  ;;  %v6356_v35 = vadd.f32 %v6355_v33, %v6354_v26  ;;  %v9065_v3 = vadd.f32 %v6353_v22, %v3758_v40 }
 0x15a   :  { %4316 = vmatmul.mubr.bf16.gmra.mrb[156].mxu1 %v7714_v11  ;;  %4444 = vmatmul.mubr.bf16.gmra.mrb[156].mxu0 %v7715_v28 }
 0x15b   :  { %v3769_v1 = vadd.f32 %v6268_v58, %v3633_v29  ;;  %4323 = vmatprep.mubr.bf16.mxu1 %v7719_v15  ;;  %4451 = vmatprep.mubr.bf16.mxu0 %v7721_v13  ;;  %v9067_v46 = vadd.f32 %v6356_v35, %v3761_v10  ;;  %v7735_v15 = vld [vmem:[%s10138_s0 + $0x7fc] ss:$100 sps:$4 sm:$0xff]  }
 0x15c   :  { %v7737_v13 = vld [vmem:[%s10138_s0 + $0x73c] ss:$100 sps:$4 sm:$0xff]  }
 0x15d   :  { %v6269_v59 = vpop.f32.mrb[52].mxu1  ;;  %v6357_v41 = vpop.f32.mrb[52].mxu0 }
 0x15e   :  { %v6270_v51 = vpop.f32.mrb[53].mxu1  ;;  %v6358_v52 = vpop.f32.mrb[53].mxu0 }
 0x15f   :  { %v6271_v56 = vadd.f32 %v6270_v51, %v6269_v59  ;;  %v6359_v42 = vadd.f32 %v6358_v52, %v6357_v41  ;;  %v6272_v57 = vpop.f32.mrb[54].mxu1  ;;  %v6360_v60 = vpop.f32.mrb[54].mxu0  ;;  %v7744_v41 = vld [vmem:[%s10138_s0 + $0x8c4] ss:$100 sps:$4 sm:$0xff]  }
 0x160   :  { %v6273_v31 = vpop.f32.mrb[55].mxu1  ;;  %v6361_v62 = vpop.f32.mrb[55].mxu0 }
 0x161   :  { %v3774_v40 = vadd.f32 %v6271_v56, %v3638_v54  ;;  %v6274_v49 = vadd.f32 %v6273_v31, %v6272_v57  ;;  %v6362_v7 = vadd.f32 %v6361_v62, %v6360_v60  ;;  %v9086_v10 = vadd.f32 %v6359_v42, %v3766_v34  ;;  %v332_v62 = vld [vmem:[%s10138_s0 + $0x988] sm:$0xff] }
 0x162   :  { %4324 = vmatmul.mubr.bf16.gmra.mrb[160].mxu1 %v7723_v38  ;;  %4452 = vmatmul.mubr.bf16.gmra.mrb[160].mxu0 %v7724_v63  ;;  %v7739_v38 = vld [vmem:[%s10138_s0 + $0x7f8] ss:$100 sps:$4 sm:$0xff]  }
 0x163   :  { %v3777_v11 = vadd.f32 %v6274_v49, %v3641_v61  ;;  %4331 = vmatprep.mubr.bf16.mxu1 %v7727_v45  ;;  %4459 = vmatprep.mubr.bf16.mxu0 %v7729_v47  ;;  %v9088_v28 = vadd.f32 %v6362_v7, %v3769_v1  ;;  %v7750_v7 = vld [vmem:[%s10138_s0 + $0x800] ss:$100 sps:$4 sm:$0xff]  }
 0x165   :  { %v6275_v12 = vpop.f32.mrb[56].mxu1  ;;  %v6363_v14 = vpop.f32.mrb[56].mxu0 }
 0x166   :  { %v6276_v17 = vpop.f32.mrb[57].mxu1  ;;  %v6364_v18 = vpop.f32.mrb[57].mxu0 }
 0x167   :  { %v6277_v19 = vadd.f32 %v6276_v17, %v6275_v12  ;;  %v6365_v21 = vadd.f32 %v6364_v18, %v6363_v14  ;;  %v6278_v22 = vpop.f32.mrb[58].mxu1  ;;  %v6366_v23 = vpop.f32.mrb[58].mxu0  ;;  %v5782_v18 = vcombine.high %v332_v62, %v332_v62 }
 0x168   :  { %v6279_v26 = vpop.f32.mrb[59].mxu1  ;;  %v6367_v29 = vpop.f32.mrb[59].mxu0 }
 0x169   :  { %v3782_v30 = vadd.f32 %v6277_v19, %v8747_v2  ;;  %v6280_v33 = vadd.f32 %v6279_v26, %v6278_v22  ;;  %v6368_v34 = vadd.f32 %v6367_v29, %v6366_v23  ;;  %v9103_v58 = vadd.f32 %v6365_v21, %v3774_v40  ;;  %v7740_v2 = vld [vmem:[%s10138_s0 + $0x738] ss:$100 sps:$4 sm:$0xff]  }
 0x16a   :  { %4332 = vmatmul.mubr.bf16.gmra.mrb[164].mxu1 %v7731_v44  ;;  %4460 = vmatmul.mubr.bf16.gmra.mrb[164].mxu0 %v7732_v50  ;;  %v7753_v50 = vld [vmem:[%s10138_s0 + $0x8cc] ss:$100 sps:$4 sm:$0xff]  }
 0x16b   :  { %v3785_v35 = vadd.f32 %v6280_v33, %v8752_v5  ;;  %4339 = vmatprep.mubr.bf16.mxu1 %v7735_v15  ;;  %4467 = vmatprep.mubr.bf16.mxu0 %v7737_v13  ;;  %v9106_v1 = vadd.f32 %v6368_v34, %v3777_v11  ;;  %v7746_v5 = vld [vmem:[%s10138_s0 + $0x804] ss:$100 sps:$4 sm:$0xff]   ;;  %v333_v33 = vld [vmem:[%s10138_s0 + $0x990] sm:$0xff] }
 0x16d   :  { %v6281_v63 = vpop.f32.mrb[60].mxu1  ;;  %v6369_v59 = vpop.f32.mrb[60].mxu0 }
 0x16e   :  { %v6282_v45 = vpop.f32.mrb[61].mxu1  ;;  %v6370_v47 = vpop.f32.mrb[61].mxu0 }
 0x16f   :  { %v6283_v51 = vadd.f32 %v6282_v45, %v6281_v63  ;;  %v6371_v52 = vadd.f32 %v6370_v47, %v6369_v59  ;;  %v6284_v53 = vpop.f32.mrb[62].mxu1  ;;  %v6372_v54 = vpop.f32.mrb[62].mxu0  ;;  %v5781_v59 = vcombine.low %v332_v62, %v332_v62  ;;  %v7761_v62 = vld [vmem:[%s10138_s0 + $0x38] ss:$100 sps:$4 sm:$0xff]  }
 0x170   :  { %v6285_v56 = vpop.f32.mrb[63].mxu1  ;;  %v6373_v42 = vpop.f32.mrb[63].mxu0 }
 0x171   :  { %v3790_v57 = vadd.f32 %v6283_v51, %v8769_v20  ;;  %v6286_v60 = vadd.f32 %v6285_v56, %v6284_v53  ;;  %v6374_v61 = vadd.f32 %v6373_v42, %v6372_v54  ;;  %v9121_v31 = vadd.f32 %v6371_v52, %v3782_v30  ;;  %v7749_v20 = vld [vmem:[%s10138_s0 + $0x8c0] ss:$100 sps:$4 sm:$0xff]  }
 0x172   :  { %4340 = vmatmul.mubr.bf16.gmra.mrb[168].mxu1 %v7739_v38  ;;  %4468 = vmatmul.mubr.bf16.gmra.mrb[168].mxu0 %v7740_v2  ;;  %v7763_v2 = vld [vmem:[%s10138_s0 + $0x3c] ss:$100 sps:$4 sm:$0xff]   ;;  %v5784_v51 = vcombine.high %v333_v33, %v333_v33 }
 0x173   :  { %v3793_v40 = vadd.f32 %v6286_v60, %v8777_v24  ;;  %4347 = vmatprep.mubr.bf16.mxu1 %v7744_v41  ;;  %4475 = vmatprep.mubr.bf16.mxu0 %v7746_v5  ;;  %v9127_v49 = vadd.f32 %v6374_v61, %v3785_v35 }
 0x175   :  { %v6287_v11 = vpop.f32.mrb[64].mxu1  ;;  %v6375_v44 = vpop.f32.mrb[64].mxu0 }
 0x176   :  { %v6288_v12 = vpop.f32.mrb[65].mxu1  ;;  %v6376_v24 = vpop.f32.mrb[65].mxu0 }
 0x177   :  { %v6289_v14 = vadd.f32 %v6288_v12, %v6287_v11  ;;  %v6377_v15 = vadd.f32 %v6376_v24, %v6375_v44  ;;  %v6290_v13 = vpop.f32.mrb[66].mxu1  ;;  %v6378_v17 = vpop.f32.mrb[66].mxu0  ;;  %v5783_v11 = vcombine.low %v333_v33, %v333_v33 }
 0x178   :  { %v6291_v19 = vpop.f32.mrb[67].mxu1  ;;  %v6379_v21 = vpop.f32.mrb[67].mxu0 }
 0x179   :  { %v3798_v22 = vadd.f32 %v6289_v14, %v8791_v39  ;;  %v6292_v23 = vadd.f32 %v6291_v19, %v6290_v13  ;;  %v6380_v26 = vadd.f32 %v6379_v21, %v6378_v17  ;;  %v9139_v29 = vadd.f32 %v6377_v15, %v3790_v57  ;;  %v7757_v39 = vld [vmem:[%s10138_s0 + $0x8c8] ss:$100 sps:$4 sm:$0xff]  }
 0x17a   :  { %4348 = vmatmul.mubr.bf16.gmra.mrb[172].mxu1 %v7749_v20  ;;  %4476 = vmatmul.mubr.bf16.gmra.mrb[172].mxu0 %v7750_v7  ;;  %v7767_v14 = vld [vmem:[%s10138_s0 + $0x104] ss:$100 sps:$4 sm:$0xff]  }
 0x17b   :  { %v3801_v30 = vadd.f32 %v6292_v23, %v8796_v43  ;;  %4355 = vmatprep.mubr.bf16.mxu1 %v5782_v18  ;;  %4483 = vmatprep.mubr.bf16.mxu0 %v7753_v50  ;;  %v9145_v34 = vadd.f32 %v6380_v26, %v3793_v40  ;;  %v7771_v17 = vld [vmem:[%s10138_s0 + $0x44] ss:$100 sps:$4 sm:$0xff]  }
 0x17c   :  { %v7781_v18 = vld [vmem:[%s10137_s1 + $0x4c8] sm:$0xff]  }
 0x17d   :  { %v6293_v35 = vpop.f32.mrb[68].mxu1  ;;  %v6381_v38 = vpop.f32.mrb[68].mxu0  ;;  %v7782_v23 = vld [vmem:[%s10137_s1 + $0x488] sm:$0xff]  }
 0x17e   :  { %v6294_v63 = vpop.f32.mrb[69].mxu1  ;;  %v6382_v43 = vpop.f32.mrb[69].mxu0 }
 0x17f   :  { %v6295_v41 = vadd.f32 %v6294_v63, %v6293_v35  ;;  %v6383_v5 = vadd.f32 %v6382_v43, %v6381_v38  ;;  %v6296_v45 = vpop.f32.mrb[70].mxu1  ;;  %v6384_v47 = vpop.f32.mrb[70].mxu0  ;;  %v7769_v38 = vld [vmem:[%s10138_s0 + $0x40] ss:$100 sps:$4 sm:$0xff]  }
 0x180   :  { %v6297_v52 = vpop.f32.mrb[71].mxu1  ;;  %v6385_v53 = vpop.f32.mrb[71].mxu0 }
 0x181   :  { %v3806_v54 = vadd.f32 %v6295_v41, %v8810_v0  ;;  %v6298_v56 = vadd.f32 %v6297_v52, %v6296_v45  ;;  %v6386_v42 = vadd.f32 %v6385_v53, %v6384_v47  ;;  %v9154_v57 = vadd.f32 %v6383_v5, %v3798_v22  ;;  %v7774_v5 = vld [vmem:[%s10137_s1 + $0x500] sm:$0xff]   ;;  %v7775_v45 = vld [vmem:[%s10138_s0 + $0x1cc] ss:$100 sps:$4 sm:$0xff]  }
 0x182   :  { %4356 = vmatmul.mubr.bf16.gmra.mrb[176].mxu1 %v5781_v59  ;;  %4484 = vmatmul.mubr.bf16.gmra.mrb[176].mxu0 %v7757_v39  ;;  %v7777_v52 = vld [vmem:[%s10138_s0 + $0x10c] ss:$100 sps:$4 sm:$0xff]  }
 0x183   :  { %v3809_v60 = vadd.f32 %v6298_v56, %v8815_v6  ;;  %4491 = vmatprep.mubr.bf16.mxu0 %v5784_v51  ;;  %4531 = vmatprep.mubr.bf16.mxu1 %v7763_v2  ;;  %v9157_v61 = vadd.f32 %v6386_v42, %v3801_v30  ;;  %v7766_v6 = vld [vmem:[%s10137_s1 + $0x480] sm:$0xff]   ;;  %v7791_v30 = vld [vmem:[%s10137_s1 + $0x4d0] sm:$0xff]   ;;  %v7783_v53 = vld [vmem:[%s10137_s1 + $0x548] sm:$0xff]  }
 0x184   :  { %v7772_v2 = vld [vmem:[%s10138_s0 + $0x100] ss:$100 sps:$4 sm:$0xff]   ;;  %v7792_v42 = vld [vmem:[%s10137_s1 + $0x490] sm:$0xff]  }
 0x185   :  { %v6299_v40 = vpop.f32.mrb[72].mxu1  ;;  %v6387_v20 = vpop.f32.mrb[72].mxu0 }
 0x186   :  { %v6300_v7 = vpop.f32.mrb[73].mxu1  ;;  %v6388_v0 = vpop.f32.mrb[73].mxu0 }
 0x187   :  { %v6301_v44 = vadd.f32 %v6300_v7, %v6299_v40  ;;  %v6389_v50 = vadd.f32 %v6388_v0, %v6387_v20  ;;  %v6390_v12 = vpop.f32.mrb[74].mxu0  ;;  %v6302_v24 = vpop.f32.mrb[74].mxu1  ;;  %v7799_v20 = vld [vmem:[%s10137_s1 + $0x550] sm:$0xff]  }
 0x188   :  { %v6391_v15 = vpop.f32.mrb[75].mxu0  ;;  %v6303_v13 = vpop.f32.mrb[75].mxu1 }
 0x189   :  { %v3814_v19 = vadd.f32 %v6301_v44, %v8835_v27  ;;  %v6392_v21 = vadd.f32 %v6391_v15, %v6390_v12  ;;  %v9175_v22 = vadd.f32 %v6389_v50, %v3806_v54  ;;  %v7779_v50 = vld [vmem:[%s10138_s0 + $0x1c8] ss:$100 sps:$4 sm:$0xff]   ;;  %v7785_v13 = vld [vmem:[%s10138_s0 + $0x294] ss:$100 sps:$4 sm:$0xff]  }
 0x18a   :  { %4492 = vmatmul.mubr.bf16.gmra.mrb[180].mxu0 %v5783_v11  ;;  %4532 = vmatmul.mubr.bf16.vlgmr.msra.gmra.mrb[180].mxu1 %v7761_v62  ;;  %v7807_v62 = vld [vmem:[%s10137_s1 + $0x4d8] sm:$0xff]   ;;  %v7780_v12 = vld [vmem:[%s10138_s0 + $0x108] ss:$100 sps:$4 sm:$0xff]  }
 0x18b   :  { %6964 = vmatpush3.bf16.msra.mxu1 %v7766_v6  ;;  %4539 = vmatprep.mubr.bf16.mxu1 %v7767_v14  ;;  %v9180_v26 = vadd.f32 %v6392_v21, %v3809_v60  ;;  %v7808_v11 = vld [vmem:[%s10137_s1 + $0x498] sm:$0xff]   ;;  %v7800_v21 = vld [vmem:[%s10137_s1 + $0x510] sm:$0xff]  }
 0x18c   :  { %4667 = vmatprep.mubr.bf16.mxu0 %v7771_v17  ;;  %6965 = vmatprep.subr.bf16.mxu1 %v7781_v18  ;;  %v7787_v17 = vld [vmem:[%s10138_s0 + $0x1d4] ss:$100 sps:$4 sm:$0xff]  }
 0x18d   :  { %v6393_v27 = vpop.f32.mrb[76].mxu0  ;;  %v6415_v33 = vpop.f32.mrb[76].mxu1 }
 0x18e   :  { %v6394_v39 = vpop.f32.mrb[77].mxu0  ;;  %v6416_v35 = vpop.f32.mrb[77].mxu1 }
 0x18f   :  { %v6395_v63 = vadd.f32 %v6394_v39, %v6393_v27  ;;  %v6417_v43 = vadd.f32 %v6416_v35, %v6415_v33  ;;  %v6396_v59 = vpop.f32.mrb[78].mxu0  ;;  %v6418_v41 = vpop.f32.mrb[78].mxu1  ;;  %6966 = vmatpush3.bf16.msra.mxu1 %v7782_v23  ;;  %v7821_v23 = vld [vmem:[%s10137_s1 + $0x4e0] sm:$0xff]   ;;  %v7813_v39 = vld [vmem:[%s10137_s1 + $0x558] sm:$0xff]  }
 0x190   :  { %v6397_v47 = vpop.f32.mrb[79].mxu0  ;;  %v6419_v51 = vpop.f32.mrb[79].mxu1  ;;  %6967 = vmatprep.subr.bf16.mxu1 %v7791_v30  ;;  %v7824_v35 = vld [vmem:[%s10137_s1 + $0x4a0] sm:$0xff]  }
 0x191   :  { %v3990_v54 = vadd.f32 %v6417_v43, %v8911_v36  ;;  %v6420_v56 = vadd.f32 %v6419_v51, %v6418_v41  ;;  %v9207_v60 = vadd.f32 %v6395_v63, %v3814_v19  ;;  %v7784_v36 = vld [vmem:[%s10137_s1 + $0x508] sm:$0xff]   ;;  %v7816_v43 = vld [vmem:[%s10137_s1 + $0x518] sm:$0xff]   ;;  %v7789_v47 = vld [vmem:[%s10138_s0 + $0x290] ss:$100 sps:$4 sm:$0xff]  }
 0x192   :  { %4540 = vmatmul.mubr.bf16.gmra.mrb[184].mxu1 %v7772_v2  ;;  %4668 = vmatmul.mubr.bf16.vlgmr.msra.gmra.mrb[184].mxu0 %v7769_v38  ;;  %v7833_v2 = vld [vmem:[%s10137_s1 + $0x4e8] sm:$0xff]   ;;  %v7790_v51 = vld [vmem:[%s10138_s0 + $0x1d0] ss:$100 sps:$4 sm:$0xff]  }
 0x193   :  { %v3993_v40 = vadd.f32 %v6420_v56, %v8922_v48  ;;  %7058 = vmatpush3.bf16.msra.mxu0 %v7774_v5  ;;  %4547 = vmatprep.mubr.bf16.mxu1 %v7775_v45  ;;  %v7825_v5 = vld [vmem:[%s10137_s1 + $0x560] sm:$0xff]  }
 0x194   :  { %4675 = vmatprep.mubr.bf16.mxu0 %v7777_v52  ;;  %7059 = vmatprep.subr.bf16.mxu0 %v7783_v53 }
 0x195   :  { %v6421_v7 = vpop.f32.mrb[80].mxu1  ;;  %v6509_v0 = vpop.f32.mrb[80].mxu0  ;;  %6968 = vmatpush3.bf16.msra.mxu1 %v7792_v42  ;;  %v7793_v42 = vld [vmem:[%s10138_s0 + $0x35c] ss:$100 sps:$4 sm:$0xff]  }
 0x196   :  { %v6422_v48 = vpop.f32.mrb[81].mxu1  ;;  %v6510_v44 = vpop.f32.mrb[81].mxu0  ;;  %6969 = vmatprep.subr.bf16.mxu1 %v7807_v62  ;;  %v7795_v62 = vld [vmem:[%s10138_s0 + $0x29c] ss:$100 sps:$4 sm:$0xff]  }
 0x197   :  { %v6423_v24 = vadd.f32 %v6422_v48, %v6421_v7  ;;  %v6511_v6 = vadd.f32 %v6510_v44, %v6509_v0  ;;  %v6424_v14 = vpop.f32.mrb[82].mxu1  ;;  %v6512_v15 = vpop.f32.mrb[82].mxu0  ;;  %7060 = vmatpush3.bf16.msra.mxu0 %v7784_v36  ;;  %v7834_v7 = vld [vmem:[%s10137_s1 + $0x4a8] sm:$0xff]  }
 0x198   :  { %v6425_v18 = vpop.f32.mrb[83].mxu1  ;;  %v6513_v19 = vpop.f32.mrb[83].mxu0  ;;  %7061 = vmatprep.subr.bf16.mxu0 %v7799_v20  ;;  %v7826_v20 = vld [vmem:[%s10137_s1 + $0x520] sm:$0xff]  }
 0x199   :  { %v3998_v30 = vadd.f32 %v6423_v24, %v8964_v25  ;;  %v6426_v27 = vadd.f32 %v6425_v18, %v6424_v14  ;;  %v6514_v33 = vadd.f32 %v6513_v19, %v6512_v15  ;;  %6970 = vmatpush3.bf16.msra.mxu1 %v7808_v11  ;;  %v9247_v38 = vadd.f32 %v6511_v6, %v3990_v54  ;;  %v7850_v14 = vld [vmem:[%s10137_s1 + $0x4b0] sm:$0xff]   ;;  %v7797_v19 = vld [vmem:[%s10138_s0 + $0x358] ss:$100 sps:$4 sm:$0xff]  }
 0x19a   :  { %4548 = vmatmul.mubr.bf16.gmra.mrb[188].mxu1 %v7779_v50  ;;  %4676 = vmatmul.mubr.bf16.gmra.mrb[188].mxu0 %v7780_v12  ;;  %v7841_v50 = vld [vmem:[%s10137_s1 + $0x568] sm:$0xff]   ;;  %v7849_v12 = vld [vmem:[%s10137_s1 + $0x4f0] sm:$0xff]  }
 0x19b   :  { %v4001_v25 = vadd.f32 %v6426_v27, %v8972_v32  ;;  %4555 = vmatprep.mubr.bf16.mxu1 %v7785_v13  ;;  %4683 = vmatprep.mubr.bf16.mxu0 %v7787_v17  ;;  %v9253_v63 = vadd.f32 %v6514_v33, %v3993_v40 }
 0x19c   :  { %7062 = vmatpush3.bf16.msra.mxu0 %v7800_v21  ;;  %6971 = vmatprep.subr.bf16.mxu1 %v7821_v23  ;;  %v7798_v21 = vld [vmem:[%s10138_s0 + $0x298] ss:$100 sps:$4 sm:$0xff]  }
 0x19d   :  { %v6427_v59 = vpop.f32.mrb[84].mxu1  ;;  %v6515_v41 = vpop.f32.mrb[84].mxu0  ;;  %7063 = vmatprep.subr.bf16.mxu0 %v7813_v39  ;;  %6972 = vmatpush3.bf16.msra.mxu1 %v7824_v35  ;;  %v7801_v39 = vld [vmem:[%s10138_s0 + $0x424] ss:$100 sps:$4 sm:$0xff]  }
 0x19e   :  { %v6428_v45 = vpop.f32.mrb[85].mxu1  ;;  %v6516_v32 = vpop.f32.mrb[85].mxu0  ;;  %6973 = vmatprep.subr.bf16.mxu1 %v7833_v2  ;;  %v7803_v35 = vld [vmem:[%s10138_s0 + $0x364] ss:$100 sps:$4 sm:$0xff]  }
 0x19f   :  { %v6429_v52 = vadd.f32 %v6428_v45, %v6427_v59  ;;  %v6517_v53 = vadd.f32 %v6516_v32, %v6515_v41  ;;  %v6430_v54 = vpop.f32.mrb[86].mxu1  ;;  %v6518_v56 = vpop.f32.mrb[86].mxu0  ;;  %v7859_v59 = vld [vmem:[%s10137_s1 + $0x4f8] sm:$0xff]  }
 0x1a0   :  { %v6431_v40 = vpop.f32.mrb[87].mxu1  ;;  %v6519_v36 = vpop.f32.mrb[87].mxu0  ;;  %7064 = vmatpush3.bf16.msra.mxu0 %v7816_v43  ;;  %v7856_v43 = vld [vmem:[%s10137_s1 + $0x530] sm:$0xff]  }
 0x1a1   :  { %v4006_v0 = vadd.f32 %v6429_v52, %v8999_v4  ;;  %v9280_v11 = vadd.f32 %v6517_v53, %v3998_v30  ;;  %v6432_v48 = vadd.f32 %v6431_v40, %v6430_v54  ;;  %v6520_v44 = vadd.f32 %v6519_v36, %v6518_v56  ;;  %7065 = vmatprep.subr.bf16.mxu0 %v7825_v5  ;;  %v7842_v4 = vld [vmem:[%s10137_s1 + $0x528] sm:$0xff]   ;;  %v7873_v52 = vld [vmem:[%s10137_s1 + $0x5c0] sm:$0xff]   ;;  %v7867_v54 = vld [vmem:[%s10137_s1 + $0x538] sm:$0xff]  }
 0x1a2   :  { %4556 = vmatmul.mubr.bf16.gmra.mrb[192].mxu1 %v7789_v47  ;;  %4684 = vmatmul.mubr.bf16.gmra.mrb[192].mxu0 %v7790_v51  ;;  %v7863_v47 = vld [vmem:[%s10137_s1 + $0x4b8] sm:$0xff]   ;;  %v7806_v36 = vld [vmem:[%s10138_s0 + $0x360] ss:$100 sps:$4 sm:$0xff]  }
 0x1a3   :  { %v4009_v24 = vadd.f32 %v6432_v48, %v9007_v9  ;;  %v9289_v6 = vadd.f32 %v6520_v44, %v4001_v25  ;;  %4563 = vmatprep.mubr.bf16.mxu1 %v7793_v42  ;;  %4691 = vmatprep.mubr.bf16.mxu0 %v7795_v62  ;;  %v7851_v9 = vld [vmem:[%s10137_s1 + $0x570] sm:$0xff]   ;;  %v7866_v51 = vld [vmem:[%s10137_s1 + $0x578] sm:$0xff]   ;;  %v7805_v62 = vld [vmem:[%s10138_s0 + $0x420] ss:$100 sps:$4 sm:$0xff]  }
 0x1a4   :  { %7066 = vmatpush3.bf16.msra.mxu0 %v7826_v20  ;;  %6974 = vmatpush3.bf16.msra.mxu1 %v7834_v7  ;;  %v7809_v44 = vld [vmem:[%s10138_s0 + $0x4ec] ss:$100 sps:$4 sm:$0xff]  }
 0x1a5   :  { %v6433_v15 = vpop.f32.mrb[88].mxu1  ;;  %v6521_v13 = vpop.f32.mrb[88].mxu0  ;;  %7067 = vmatprep.subr.bf16.mxu0 %v7841_v50  ;;  %6975 = vmatprep.subr.bf16.mxu1 %v7849_v12  ;;  %v7811_v50 = vld [vmem:[%s10138_s0 + $0x42c] ss:$100 sps:$4 sm:$0xff]  }
 0x1a6   :  { %v6434_v17 = vpop.f32.mrb[89].mxu1  ;;  %v6522_v18 = vpop.f32.mrb[89].mxu0 }
 0x1a7   :  { %v6435_v23 = vadd.f32 %v6434_v17, %v6433_v15  ;;  %v6523_v30 = vadd.f32 %v6522_v18, %v6521_v13  ;;  %v6436_v27 = vpop.f32.mrb[90].mxu1  ;;  %v6524_v33 = vpop.f32.mrb[90].mxu0 }
 0x1a8   :  { %v6437_v2 = vpop.f32.mrb[91].mxu1  ;;  %v6525_v25 = vpop.f32.mrb[91].mxu0  ;;  %7068 = vmatpush3.bf16.msra.mxu0 %v7842_v4  ;;  %6976 = vmatpush3.bf16.msra.mxu1 %v7850_v14 }
 0x1a9   :  { %v4014_v41 = vadd.f32 %v6435_v23, %v9025_v37  ;;  %v9319_v5 = vadd.f32 %v6523_v30, %v4006_v0  ;;  %v6438_v45 = vadd.f32 %v6437_v2, %v6436_v27  ;;  %v6526_v32 = vadd.f32 %v6525_v25, %v6524_v33  ;;  %7069 = vmatprep.subr.bf16.mxu0 %v7851_v9  ;;  %v7815_v27 = vld [vmem:[%s10138_s0 + $0x428] ss:$100 sps:$4 sm:$0xff]   ;;  %v7817_v2 = vld [vmem:[%s10138_s0 + $0x5b4] ss:$100 sps:$4 sm:$0xff]  }
 0x1aa   :  { %4564 = vmatmul.mubr.bf16.gmra.mrb[196].mxu1 %v7797_v19  ;;  %4692 = vmatmul.mubr.bf16.gmra.mrb[196].mxu0 %v7798_v21  ;;  %v8022_v9 = vmov 0.0   ;;  %v7819_v25 = vld [vmem:[%s10138_s0 + $0x4f4] ss:$100 sps:$4 sm:$0xff]  }
 0x1ab   :  { %v4017_v37 = vadd.f32 %v6438_v45, %v9027_v55  ;;  %v9331_v53 = vadd.f32 %v6526_v32, %v4009_v24  ;;  %4571 = vmatprep.mubr.bf16.mxu1 %v7801_v39  ;;  %4699 = vmatprep.mubr.bf16.mxu0 %v7803_v35 }
 0x1ac   :  { %7070 = vmatpush3.bf16.msra.mxu0 %v7856_v43  ;;  %6977 = vmatprep.subr.bf16.mxu1 %v7859_v59 }
 0x1ad   :  { %v6439_v56 = vpop.f32.mrb[92].mxu1  ;;  %v6527_v42 = vpop.f32.mrb[92].mxu0  ;;  %6978 = vmatpush3.bf16.msra.mxu1 %v7863_v47  ;;  %7071 = vmatprep.subr.bf16.mxu0 %v7866_v51 }
 0x1ae   :  { %v6440_v40 = vpop.f32.mrb[93].mxu1  ;;  %v6528_v55 = vpop.f32.mrb[93].mxu0  ;;  %7151 = vmatprep.subr.bf16.mxu1 %v7873_v52 }
 0x1af   :  { %v6441_v20 = vadd.f32 %v6440_v40, %v6439_v56  ;;  %v6529_v7 = vadd.f32 %v6528_v55, %v6527_v42  ;;  %v6442_v0 = vpop.f32.mrb[94].mxu1  ;;  %v6530_v48 = vpop.f32.mrb[94].mxu0 }
 0x1b0   :  { %v6443_v12 = vpop.f32.mrb[95].mxu1  ;;  %v6531_v24 = vpop.f32.mrb[95].mxu0  ;;  %7072 = vmatpush3.bf16.msra.mxu0 %v7867_v54 }
 0x1b1   :  { %v4022_v4 = vadd.f32 %v6441_v20, %v9045_v8  ;;  %v9349_v14 = vadd.f32 %v6529_v7, %v4014_v41  ;;  %v6444_v15 = vadd.f32 %v6443_v12, %v6442_v0  ;;  %v6532_v13 = vadd.f32 %v6531_v24, %v6530_v48  ;;  %7266 = vmatprep.subr.bf16.mxu0 %v8022_v9  ;;  %v7814_v8 = vld [vmem:[%s10138_s0 + $0x4e8] ss:$100 sps:$4 sm:$0xff]   ;;  %v7827_v20 = vld [vmem:[%s10138_s0 + $0x67c] ss:$100 sps:$4 sm:$0xff]  }
 0x1b2   :  { %4572 = vmatmul.mubr.bf16.gmra.mrb[200].mxu1 %v7805_v62  ;;  %4700 = vmatmul.mubr.bf16.gmra.mrb[200].mxu0 %v7806_v36  ;;  %v7823_v62 = vld [vmem:[%s10138_s0 + $0x4f0] ss:$100 sps:$4 sm:$0xff]   ;;  %v7829_v7 = vld [vmem:[%s10138_s0 + $0x5bc] ss:$100 sps:$4 sm:$0xff]  }
 0x1b3   :  { %v4025_v17 = vadd.f32 %v6444_v15, %v9047_v16  ;;  %v9353_v18 = vadd.f32 %v6532_v13, %v4017_v37  ;;  %4579 = vmatprep.mubr.bf16.mxu1 %v7809_v44  ;;  %4707 = vmatprep.mubr.bf16.mxu0 %v7811_v50 }
 0x1b5   :  { %v6445_v19 = vpop.f32.mrb[96].mxu1  ;;  %v6533_v21 = vpop.f32.mrb[96].mxu0 }
 0x1b6   :  { %v6446_v23 = vpop.f32.mrb[97].mxu1  ;;  %v6534_v30 = vpop.f32.mrb[97].mxu0 }
 0x1b7   :  { %v6447_v33 = vadd.f32 %v6446_v23, %v6445_v19  ;;  %v6535_v39 = vadd.f32 %v6534_v30, %v6533_v21  ;;  %v6448_v35 = vpop.f32.mrb[98].mxu1  ;;  %v6536_v16 = vpop.f32.mrb[98].mxu0  ;;  %v7832_v23 = vld [vmem:[%s10138_s0 + $0x5b8] ss:$100 sps:$4 sm:$0xff]  }
 0x1b8   :  { %v6449_v43 = vpop.f32.mrb[99].mxu1  ;;  %v6537_v59 = vpop.f32.mrb[99].mxu0 }
 0x1b9   :  { %v4030_v41 = vadd.f32 %v6447_v33, %v9065_v3  ;;  %v9368_v45 = vadd.f32 %v6535_v39, %v4022_v4  ;;  %v6450_v32 = vadd.f32 %v6449_v43, %v6448_v35  ;;  %v6538_v47 = vadd.f32 %v6537_v59, %v6536_v16  ;;  %v7822_v3 = vld [vmem:[%s10138_s0 + $0x5b0] ss:$100 sps:$4 sm:$0xff]   ;;  %v7835_v33 = vld [vmem:[%s10138_s0 + $0x744] ss:$100 sps:$4 sm:$0xff]  }
 0x1ba   :  { %4580 = vmatmul.mubr.bf16.gmra.mrb[204].mxu1 %v7814_v8  ;;  %4708 = vmatmul.mubr.bf16.gmra.mrb[204].mxu0 %v7815_v27  ;;  %v7837_v39 = vld [vmem:[%s10138_s0 + $0x684] ss:$100 sps:$4 sm:$0xff]  }
 0x1bb   :  { %v4033_v51 = vadd.f32 %v6450_v32, %v9067_v46  ;;  %v9371_v52 = vadd.f32 %v6538_v47, %v4025_v17  ;;  %4587 = vmatprep.mubr.bf16.mxu1 %v7817_v2  ;;  %4715 = vmatprep.mubr.bf16.mxu0 %v7819_v25 }
 0x1bd   :  { %v6451_v37 = vpop.f32.mrb[100].mxu1  ;;  %v6539_v54 = vpop.f32.mrb[100].mxu0 }
 0x1be   :  { %v6452_v56 = vpop.f32.mrb[101].mxu1  ;;  %v6540_v42 = vpop.f32.mrb[101].mxu0 }
 0x1bf   :  { %v6453_v40 = vadd.f32 %v6452_v56, %v6451_v37  ;;  %v6541_v55 = vadd.f32 %v6540_v42, %v6539_v54  ;;  %v6454_v36 = vpop.f32.mrb[102].mxu1  ;;  %v6542_v46 = vpop.f32.mrb[102].mxu0  ;;  %v7840_v56 = vld [vmem:[%s10138_s0 + $0x680] ss:$100 sps:$4 sm:$0xff]  }
 0x1c0   :  { %v6455_v0 = vpop.f32.mrb[103].mxu1  ;;  %v6543_v48 = vpop.f32.mrb[103].mxu0 }
 0x1c1   :  { %v4038_v44 = vadd.f32 %v6453_v40, %v9086_v10  ;;  %v9386_v50 = vadd.f32 %v6541_v55, %v4030_v41  ;;  %v6456_v12 = vadd.f32 %v6455_v0, %v6454_v36  ;;  %v6544_v24 = vadd.f32 %v6543_v48, %v6542_v46  ;;  %v7831_v10 = vld [vmem:[%s10138_s0 + $0x678] ss:$100 sps:$4 sm:$0xff]   ;;  %v7843_v40 = vld [vmem:[%s10138_s0 + $0x80c] ss:$100 sps:$4 sm:$0xff]  }
 0x1c2   :  { %4588 = vmatmul.mubr.bf16.gmra.mrb[208].mxu1 %v7822_v3  ;;  %4716 = vmatmul.mubr.bf16.gmra.mrb[208].mxu0 %v7823_v62  ;;  %v7845_v55 = vld [vmem:[%s10138_s0 + $0x74c] ss:$100 sps:$4 sm:$0xff]  }
 0x1c3   :  { %v4041_v4 = vadd.f32 %v6456_v12, %v9088_v28  ;;  %v9389_v15 = vadd.f32 %v6544_v24, %v4033_v51  ;;  %4595 = vmatprep.mubr.bf16.mxu1 %v7827_v20  ;;  %4723 = vmatprep.mubr.bf16.mxu0 %v7829_v7 }
 0x1c5   :  { %v6457_v13 = vpop.f32.mrb[104].mxu1  ;;  %v6545_v17 = vpop.f32.mrb[104].mxu0 }
 0x1c6   :  { %v6458_v19 = vpop.f32.mrb[105].mxu1  ;;  %v6546_v21 = vpop.f32.mrb[105].mxu0 }
 0x1c7   :  { %v6459_v30 = vadd.f32 %v6458_v19, %v6457_v13  ;;  %v6547_v8 = vadd.f32 %v6546_v21, %v6545_v17  ;;  %v6460_v27 = vpop.f32.mrb[106].mxu1  ;;  %v6548_v28 = vpop.f32.mrb[106].mxu0  ;;  %v7848_v19 = vld [vmem:[%s10138_s0 + $0x748] ss:$100 sps:$4 sm:$0xff]  }
 0x1c8   :  { %v6461_v35 = vpop.f32.mrb[107].mxu1  ;;  %v6549_v16 = vpop.f32.mrb[107].mxu0 }
 0x1c9   :  { %v4046_v2 = vadd.f32 %v6459_v30, %v9103_v58  ;;  %v9404_v25 = vadd.f32 %v6547_v8, %v4038_v44  ;;  %v6462_v43 = vadd.f32 %v6461_v35, %v6460_v27  ;;  %v6550_v59 = vadd.f32 %v6549_v16, %v6548_v28  ;;  %v7839_v58 = vld [vmem:[%s10138_s0 + $0x740] ss:$100 sps:$4 sm:$0xff]   ;;  %v7852_v30 = vld [vmem:[%s10138_s0 + $0x8d4] ss:$100 sps:$4 sm:$0xff]  }
 0x1ca   :  { %4596 = vmatmul.mubr.bf16.gmra.mrb[212].mxu1 %v7831_v10  ;;  %4724 = vmatmul.mubr.bf16.gmra.mrb[212].mxu0 %v7832_v23  ;;  %v7854_v8 = vld [vmem:[%s10138_s0 + $0x814] ss:$100 sps:$4 sm:$0xff]  }
 0x1cb   :  { %v4049_v41 = vadd.f32 %v6462_v43, %v9106_v1  ;;  %v9407_v32 = vadd.f32 %v6550_v59, %v4041_v4  ;;  %4603 = vmatprep.mubr.bf16.mxu1 %v7835_v33  ;;  %4731 = vmatprep.mubr.bf16.mxu0 %v7837_v39  ;;  %v334_v59 = vld [vmem:[%s10138_s0 + $0x998] sm:$0xff] }
 0x1cd   :  { %v6463_v47 = vpop.f32.mrb[108].mxu1  ;;  %v6551_v51 = vpop.f32.mrb[108].mxu0 }
 0x1ce   :  { %v6464_v37 = vpop.f32.mrb[109].mxu1  ;;  %v6552_v54 = vpop.f32.mrb[109].mxu0 }
 0x1cf   :  { %v6465_v42 = vadd.f32 %v6464_v37, %v6463_v47  ;;  %v6553_v3 = vadd.f32 %v6552_v54, %v6551_v51  ;;  %v6466_v62 = vpop.f32.mrb[110].mxu1  ;;  %v6554_v1 = vpop.f32.mrb[110].mxu0  ;;  %v7857_v37 = vld [vmem:[%s10138_s0 + $0x8d0] ss:$100 sps:$4 sm:$0xff]  }
 0x1d0   :  { %v6467_v36 = vpop.f32.mrb[111].mxu1  ;;  %v6555_v46 = vpop.f32.mrb[111].mxu0 }
 0x1d1   :  { %v4054_v20 = vadd.f32 %v6465_v42, %v9121_v31  ;;  %v9422_v7 = vadd.f32 %v6553_v3, %v4046_v2  ;;  %v6468_v0 = vadd.f32 %v6467_v36, %v6466_v62  ;;  %v6556_v48 = vadd.f32 %v6555_v46, %v6554_v1  ;;  %v7847_v31 = vld [vmem:[%s10138_s0 + $0x808] ss:$100 sps:$4 sm:$0xff]   ;;  %v7861_v62 = vld [vmem:[%s10138_s0 + $0x8dc] ss:$100 sps:$4 sm:$0xff]  }
 0x1d2   :  { %4604 = vmatmul.mubr.bf16.gmra.mrb[216].mxu1 %v7839_v58  ;;  %4732 = vmatmul.mubr.bf16.gmra.mrb[216].mxu0 %v7840_v56  ;;  %v5786_v3 = vcombine.high %v334_v59, %v334_v59 }
 0x1d3   :  { %v4057_v44 = vadd.f32 %v6468_v0, %v9127_v49  ;;  %v9425_v12 = vadd.f32 %v6556_v48, %v4049_v41  ;;  %4611 = vmatprep.mubr.bf16.mxu1 %v7843_v40  ;;  %4739 = vmatprep.mubr.bf16.mxu0 %v7845_v55 }
 0x1d5   :  { %v6469_v24 = vpop.f32.mrb[112].mxu1  ;;  %v6557_v4 = vpop.f32.mrb[112].mxu0 }
 0x1d6   :  { %v6470_v13 = vpop.f32.mrb[113].mxu1  ;;  %v6558_v17 = vpop.f32.mrb[113].mxu0 }
 0x1d7   :  { %v6471_v21 = vadd.f32 %v6470_v13, %v6469_v24  ;;  %v6559_v10 = vadd.f32 %v6558_v17, %v6557_v4  ;;  %v6472_v23 = vpop.f32.mrb[114].mxu1  ;;  %v6560_v49 = vpop.f32.mrb[114].mxu0  ;;  %v5785_v17 = vcombine.low %v334_v59, %v334_v59 }
 0x1d8   :  { %v6473_v27 = vpop.f32.mrb[115].mxu1  ;;  %v6561_v28 = vpop.f32.mrb[115].mxu0 }
 0x1d9   :  { %v4062_v33 = vadd.f32 %v6471_v21, %v9139_v29  ;;  %v9440_v39 = vadd.f32 %v6559_v10, %v4054_v20  ;;  %v6474_v35 = vadd.f32 %v6473_v27, %v6472_v23  ;;  %v6562_v16 = vadd.f32 %v6561_v28, %v6560_v49  ;;  %v7871_v49 = vld [vmem:[%s10138_s0 + $0x4c] ss:$100 sps:$4 sm:$0xff]  }
 0x1da   :  { %4612 = vmatmul.mubr.bf16.gmra.mrb[220].mxu1 %v7847_v31  ;;  %4740 = vmatmul.mubr.bf16.gmra.mrb[220].mxu0 %v7848_v19  ;;  %v7865_v31 = vld [vmem:[%s10138_s0 + $0x8d8] ss:$100 sps:$4 sm:$0xff]  }
 0x1db   :  { %v4065_v2 = vadd.f32 %v6474_v35, %v9145_v34  ;;  %v9443_v43 = vadd.f32 %v6562_v16, %v4057_v44  ;;  %4619 = vmatprep.mubr.bf16.mxu1 %v7852_v30  ;;  %4747 = vmatprep.mubr.bf16.mxu0 %v7854_v8  ;;  %v7858_v34 = vld [vmem:[%s10138_s0 + $0x810] ss:$100 sps:$4 sm:$0xff]   ;;  %v335_v44 = vld [vmem:[%s10138_s0 + $0x9a0] sm:$0xff] }
 0x1dc   :  { %v5788_v23 = vcombine.high %v335_v44, %v335_v44 }
 0x1dd   :  { %v6475_v41 = vpop.f32.mrb[116].mxu1  ;;  %v6563_v47 = vpop.f32.mrb[116].mxu0 }
 0x1de   :  { %v6476_v51 = vpop.f32.mrb[117].mxu1  ;;  %v6564_v29 = vpop.f32.mrb[117].mxu0 }
 0x1df   :  { %v6477_v54 = vadd.f32 %v6476_v51, %v6475_v41  ;;  %v6565_v58 = vadd.f32 %v6564_v29, %v6563_v47  ;;  %v6478_v56 = vpop.f32.mrb[118].mxu1  ;;  %v6566_v42 = vpop.f32.mrb[118].mxu0  ;;  %v5787_v29 = vcombine.low %v335_v44, %v335_v44  ;;  %v7897_v44 = vld [vmem:[%s10137_s1 + $0x5d0] sm:$0xff]  }
 0x1e0   :  { %v6479_v1 = vpop.f32.mrb[119].mxu1  ;;  %v6567_v40 = vpop.f32.mrb[119].mxu0 }
 0x1e1   :  { %v4070_v55 = vadd.f32 %v6477_v54, %v9154_v57  ;;  %v9458_v36 = vadd.f32 %v6565_v58, %v4062_v33  ;;  %v6480_v46 = vadd.f32 %v6479_v1, %v6478_v56  ;;  %v6568_v20 = vadd.f32 %v6567_v40, %v6566_v42  ;;  %v7875_v56 = vld [vmem:[%s10138_s0 + $0x114] ss:$100 sps:$4 sm:$0xff]   ;;  %v7888_v1 = vld [vmem:[%s10137_s1 + $0x5c8] sm:$0xff]  }
 0x1e2   :  { %4620 = vmatmul.mubr.bf16.gmra.mrb[224].mxu1 %v7857_v37  ;;  %4748 = vmatmul.mubr.bf16.gmra.mrb[224].mxu0 %v7858_v34 }
 0x1e3   :  { %v4073_v0 = vadd.f32 %v6480_v46, %v9157_v61  ;;  %v9461_v48 = vadd.f32 %v6568_v20, %v4065_v2  ;;  %4627 = vmatprep.mubr.bf16.mxu1 %v5786_v3  ;;  %4755 = vmatprep.mubr.bf16.mxu0 %v7861_v62  ;;  %v7879_v62 = vld [vmem:[%s10138_s0 + $0x54] ss:$100 sps:$4 sm:$0xff]  }
 0x1e5   :  { %v6481_v24 = vpop.f32.mrb[120].mxu1  ;;  %v6569_v4 = vpop.f32.mrb[120].mxu0 }
 0x1e6   :  { %v6482_v13 = vpop.f32.mrb[121].mxu1  ;;  %v6570_v57 = vpop.f32.mrb[121].mxu0 }
 0x1e7   :  { %v6483_v19 = vadd.f32 %v6482_v13, %v6481_v24  ;;  %v6571_v21 = vadd.f32 %v6570_v57, %v6569_v4  ;;  %v6484_v61 = vpop.f32.mrb[122].mxu1  ;;  %v6572_v10 = vpop.f32.mrb[122].mxu0  ;;  %v7877_v57 = vld [vmem:[%s10138_s0 + $0x50] ss:$100 sps:$4 sm:$0xff]  }
 0x1e8   :  { %v6485_v30 = vpop.f32.mrb[123].mxu1  ;;  %v6573_v8 = vpop.f32.mrb[123].mxu0 }
 0x1e9   :  { %v4078_v27 = vadd.f32 %v6483_v19, %v9175_v22  ;;  %v9473_v28 = vadd.f32 %v6571_v21, %v4070_v55  ;;  %v6486_v33 = vadd.f32 %v6485_v30, %v6484_v61  ;;  %v6574_v35 = vadd.f32 %v6573_v8, %v6572_v10  ;;  %v7869_v22 = vld [vmem:[%s10138_s0 + $0x48] ss:$100 sps:$4 sm:$0xff]   ;;  %v7881_v10 = vld [vmem:[%s10137_s1 + $0x600] sm:$0xff]  }
 0x1ea   :  { %4628 = vmatmul.mubr.bf16.gmra.mrb[228].mxu1 %v5785_v17  ;;  %4756 = vmatmul.mubr.bf16.gmra.mrb[228].mxu0 %v7865_v31  ;;  %v7880_v17 = vld [vmem:[%s10138_s0 + $0x110] ss:$100 sps:$4 sm:$0xff]   ;;  %v7884_v8 = vld [vmem:[%s10138_s0 + $0x11c] ss:$100 sps:$4 sm:$0xff]  }
 0x1eb   :  { %v4081_v16 = vadd.f32 %v6486_v33, %v9180_v26  ;;  %v9476_v2 = vadd.f32 %v6574_v35, %v4073_v0  ;;  %4763 = vmatprep.mubr.bf16.mxu0 %v5788_v23  ;;  %4803 = vmatprep.mubr.bf16.mxu1 %v7871_v49  ;;  %v7874_v26 = vld [vmem:[%s10137_s1 + $0x580] sm:$0xff]   ;;  %v7889_v0 = vld [vmem:[%s10137_s1 + $0x588] sm:$0xff]  }
 0x1ec   :  { %v7882_v23 = vld [vmem:[%s10138_s0 + $0x1dc] ss:$100 sps:$4 sm:$0xff]  }
 0x1ed   :  { %v6487_v59 = vpop.f32.mrb[124].mxu1  ;;  %v6575_v41 = vpop.f32.mrb[124].mxu0 }
 0x1ee   :  { %v6488_v47 = vpop.f32.mrb[125].mxu1  ;;  %v6576_v51 = vpop.f32.mrb[125].mxu0 }
 0x1ef   :  { %v6489_v37 = vadd.f32 %v6488_v47, %v6487_v59  ;;  %v6577_v34 = vadd.f32 %v6576_v51, %v6575_v41  ;;  %v6578_v54 = vpop.f32.mrb[126].mxu0  ;;  %v6490_v58 = vpop.f32.mrb[126].mxu1  ;;  %v7912_v59 = vld [vmem:[%s10137_s1 + $0x5d8] sm:$0xff]   ;;  %v7890_v47 = vld [vmem:[%s10137_s1 + $0x608] sm:$0xff]  }
 0x1f0   :  { %v6579_v42 = vpop.f32.mrb[127].mxu0  ;;  %v6491_v3 = vpop.f32.mrb[127].mxu1 }
 0x1f1   :  { %v4086_v40 = vadd.f32 %v6489_v37, %v9207_v60  ;;  %v9494_v55 = vadd.f32 %v6577_v34, %v4078_v27  ;;  %v6580_v46 = vadd.f32 %v6579_v42, %v6578_v54  ;;  %v7887_v34 = vld [vmem:[%s10138_s0 + $0x118] ss:$100 sps:$4 sm:$0xff]   ;;  %v7891_v42 = vld [vmem:[%s10138_s0 + $0x2a4] ss:$100 sps:$4 sm:$0xff]  }
 0x1f2   :  { %4764 = vmatmul.mubr.bf16.gmra.mrb[232].mxu0 %v5787_v29  ;;  %4804 = vmatmul.mubr.bf16.vlgmr.msra.gmra.mrb[232].mxu1 %v7869_v22  ;;  %v7913_v22 = vld [vmem:[%s10137_s1 + $0x598] sm:$0xff]   ;;  %v7893_v3 = vld [vmem:[%s10138_s0 + $0x1e4] ss:$100 sps:$4 sm:$0xff]  }
 0x1f3   :  { %v9496_v20 = vadd.f32 %v6580_v46, %v4081_v16  ;;  %7152 = vmatpush3.bf16.msra.mxu1 %v7874_v26  ;;  %4811 = vmatprep.mubr.bf16.mxu1 %v7875_v56  ;;  %v7898_v16 = vld [vmem:[%s10137_s1 + $0x590] sm:$0xff]   ;;  %v7927_v46 = vld [vmem:[%s10137_s1 + $0x5e0] sm:$0xff]  }
 0x1f4   :  { %4939 = vmatprep.mubr.bf16.mxu0 %v7879_v62  ;;  %7153 = vmatprep.subr.bf16.mxu1 %v7888_v1 }
 0x1f5   :  { %v6581_v60 = vpop.f32.mrb[128].mxu0  ;;  %v6603_v24 = vpop.f32.mrb[128].mxu1 }
 0x1f6   :  { %v6582_v4 = vpop.f32.mrb[129].mxu0  ;;  %v6604_v13 = vpop.f32.mrb[129].mxu1 }
 0x1f7   :  { %v6583_v31 = vadd.f32 %v6582_v4, %v6581_v60  ;;  %v6605_v19 = vadd.f32 %v6604_v13, %v6603_v24  ;;  %v6584_v21 = vpop.f32.mrb[130].mxu0  ;;  %v6606_v61 = vpop.f32.mrb[130].mxu1  ;;  %7154 = vmatpush3.bf16.msra.mxu1 %v7889_v0  ;;  %v7928_v4 = vld [vmem:[%s10137_s1 + $0x5a0] sm:$0xff]   ;;  %v7936_v13 = vld [vmem:[%s10137_s1 + $0x5e8] sm:$0xff]  }
 0x1f8   :  { %v6585_v49 = vpop.f32.mrb[131].mxu0  ;;  %v6607_v30 = vpop.f32.mrb[131].mxu1  ;;  %7155 = vmatprep.subr.bf16.mxu1 %v7897_v44 }
 0x1f9   :  { %v9519_v27 = vadd.f32 %v6583_v31, %v4086_v40  ;;  %v4262_v33 = vadd.f32 %v6605_v19, %v9247_v38  ;;  %v6608_v35 = vadd.f32 %v6607_v30, %v6606_v61  ;;  %v7905_v40 = vld [vmem:[%s10137_s1 + $0x610] sm:$0xff]  }
 0x1fa   :  { %4812 = vmatmul.mubr.bf16.gmra.mrb[236].mxu1 %v7880_v17  ;;  %4940 = vmatmul.mubr.bf16.vlgmr.msra.gmra.mrb[236].mxu0 %v7877_v57 }
 0x1fb   :  { %v4265_v41 = vadd.f32 %v6608_v35, %v9253_v63  ;;  %7267 = vmatpush3.bf16.msra.mxu0 %v7881_v10  ;;  %4819 = vmatprep.mubr.bf16.mxu1 %v7882_v23  ;;  %v7886_v63 = vld [vmem:[%s10138_s0 + $0x1d8] ss:$100 sps:$4 sm:$0xff]   ;;  %v7896_v10 = vld [vmem:[%s10138_s0 + $0x1e0] ss:$100 sps:$4 sm:$0xff]   ;;  %v7901_v35 = vld [vmem:[%s10138_s0 + $0x2ac] ss:$100 sps:$4 sm:$0xff]  }
 0x1fc   :  { %4947 = vmatprep.mubr.bf16.mxu0 %v7884_v8  ;;  %7268 = vmatprep.subr.bf16.mxu0 %v8022_v9 }
 0x1fd   :  { %v6609_v38 = vpop.f32.mrb[132].mxu1  ;;  %v6697_v51 = vpop.f32.mrb[132].mxu0  ;;  %7156 = vmatpush3.bf16.msra.mxu1 %v7898_v16 }
 0x1fe   :  { %v6610_v29 = vpop.f32.mrb[133].mxu1  ;;  %v6698_v37 = vpop.f32.mrb[133].mxu0  ;;  %7157 = vmatprep.subr.bf16.mxu1 %v7912_v59 }
 0x1ff   :  { %v6611_v54 = vadd.f32 %v6610_v29, %v6609_v38  ;;  %v6699_v58 = vadd.f32 %v6698_v37, %v6697_v51  ;;  %v6612_v26 = vpop.f32.mrb[134].mxu1  ;;  %v6700_v56 = vpop.f32.mrb[134].mxu0  ;;  %7269 = vmatpush3.bf16.msra.mxu0 %v7890_v47  ;;  %v7937_v47 = vld [vmem:[%s10137_s1 + $0x5a8] sm:$0xff]   ;;  %v7951_v37 = vld [vmem:[%s10137_s1 + $0x5f0] sm:$0xff]  }
 0x200   :  { %v6613_v62 = vpop.f32.mrb[135].mxu1  ;;  %v6701_v1 = vpop.f32.mrb[135].mxu0  ;;  %7270 = vmatprep.subr.bf16.mxu0 %v8022_v9 }
 0x201   :  { %v4270_v0 = vadd.f32 %v6611_v54, %v9280_v11  ;;  %v9556_v44 = vadd.f32 %v6699_v58, %v4262_v33  ;;  %v6614_v60 = vadd.f32 %v6613_v62, %v6612_v26  ;;  %v6702_v24 = vadd.f32 %v6701_v1, %v6700_v56  ;;  %7158 = vmatpush3.bf16.msra.mxu1 %v7913_v22  ;;  %v7920_v11 = vld [vmem:[%s10137_s1 + $0x618] sm:$0xff]   ;;  %v7899_v33 = vld [vmem:[%s10138_s0 + $0x36c] ss:$100 sps:$4 sm:$0xff]  }
 0x202   :  { %4820 = vmatmul.mubr.bf16.gmra.mrb[240].mxu1 %v7886_v63  ;;  %4948 = vmatmul.mubr.bf16.gmra.mrb[240].mxu0 %v7887_v34  ;;  %v7952_v54 = vld [vmem:[%s10137_s1 + $0x5b0] sm:$0xff]  }
 0x203   :  { %v4273_v57 = vadd.f32 %v6614_v60, %v9289_v6  ;;  %v9565_v17 = vadd.f32 %v6702_v24, %v4265_v41  ;;  %4827 = vmatprep.mubr.bf16.mxu1 %v7891_v42  ;;  %4955 = vmatprep.mubr.bf16.mxu0 %v7893_v3  ;;  %v7895_v6 = vld [vmem:[%s10138_s0 + $0x2a0] ss:$100 sps:$4 sm:$0xff]   ;;  %v7903_v42 = vld [vmem:[%s10138_s0 + $0x368] ss:$100 sps:$4 sm:$0xff]   ;;  %v7908_v60 = vld [vmem:[%s10138_s0 + $0x374] ss:$100 sps:$4 sm:$0xff]  }
 0x204   :  { %7271 = vmatpush3.bf16.msra.mxu0 %v7905_v40  ;;  %7159 = vmatprep.subr.bf16.mxu1 %v7927_v46  ;;  %v7929_v41 = vld [vmem:[%s10137_s1 + $0x620] sm:$0xff]   ;;  %v7904_v3 = vld [vmem:[%s10138_s0 + $0x2a8] ss:$100 sps:$4 sm:$0xff]  }
 0x205   :  { %v6615_v31 = vpop.f32.mrb[136].mxu1  ;;  %v6703_v19 = vpop.f32.mrb[136].mxu0  ;;  %7272 = vmatprep.subr.bf16.mxu0 %v8022_v9  ;;  %7160 = vmatpush3.bf16.msra.mxu1 %v7928_v4 }
 0x206   :  { %v6616_v21 = vpop.f32.mrb[137].mxu1  ;;  %v6704_v61 = vpop.f32.mrb[137].mxu0  ;;  %7161 = vmatprep.subr.bf16.mxu1 %v7936_v13  ;;  %v7959_v13 = vld [vmem:[%s10137_s1 + $0x630] sm:$0xff]  }
 0x207   :  { %v6617_v23 = vadd.f32 %v6616_v21, %v6615_v31  ;;  %v6705_v49 = vadd.f32 %v6704_v61, %v6703_v19  ;;  %v6618_v30 = vpop.f32.mrb[138].mxu1  ;;  %v6706_v8 = vpop.f32.mrb[138].mxu0  ;;  %v7966_v61 = vld [vmem:[%s10137_s1 + $0x5b8] sm:$0xff]  }
 0x208   :  { %v6619_v16 = vpop.f32.mrb[139].mxu1  ;;  %v6707_v59 = vpop.f32.mrb[139].mxu0  ;;  %7273 = vmatpush3.bf16.msra.mxu0 %v7920_v11 }
 0x209   :  { %v4278_v38 = vadd.f32 %v6617_v23, %v9319_v5  ;;  %v9590_v51 = vadd.f32 %v6705_v49, %v4270_v0  ;;  %v6620_v22 = vadd.f32 %v6619_v16, %v6618_v30  ;;  %v6708_v29 = vadd.f32 %v6707_v59, %v6706_v8  ;;  %7274 = vmatprep.subr.bf16.mxu0 %v8022_v9  ;;  %v7944_v5 = vld [vmem:[%s10137_s1 + $0x628] sm:$0xff]   ;;  %v7906_v0 = vld [vmem:[%s10138_s0 + $0x434] ss:$100 sps:$4 sm:$0xff]  }
 0x20a   :  { %4828 = vmatmul.mubr.bf16.gmra.mrb[244].mxu1 %v7895_v6  ;;  %4956 = vmatmul.mubr.bf16.gmra.mrb[244].mxu0 %v7896_v10 }
 0x20b   :  { %v4281_v63 = vadd.f32 %v6620_v22, %v9331_v53  ;;  %v9597_v34 = vadd.f32 %v6708_v29, %v4273_v57  ;;  %4835 = vmatprep.mubr.bf16.mxu1 %v7899_v33  ;;  %4963 = vmatprep.mubr.bf16.mxu0 %v7901_v35  ;;  %v7960_v57 = vld [vmem:[%s10137_s1 + $0x5f8] sm:$0xff]   ;;  %v7911_v33 = vld [vmem:[%s10138_s0 + $0x370] ss:$100 sps:$4 sm:$0xff]  }
 0x20c   :  { %7275 = vmatpush3.bf16.msra.mxu0 %v7929_v41  ;;  %7162 = vmatpush3.bf16.msra.mxu1 %v7937_v47  ;;  %v7916_v47 = vld [vmem:[%s10138_s0 + $0x4fc] ss:$100 sps:$4 sm:$0xff]  }
 0x20d   :  { %v6621_v58 = vpop.f32.mrb[140].mxu1  ;;  %v6709_v26 = vpop.f32.mrb[140].mxu0  ;;  %7276 = vmatprep.subr.bf16.mxu0 %v8022_v9  ;;  %7163 = vmatprep.subr.bf16.mxu1 %v7951_v37 }
 0x20e   :  { %v6622_v53 = vpop.f32.mrb[141].mxu1  ;;  %v6710_v56 = vpop.f32.mrb[141].mxu0 }
 0x20f   :  { %v6623_v62 = vadd.f32 %v6622_v53, %v6621_v58  ;;  %v6711_v1 = vadd.f32 %v6710_v56, %v6709_v26  ;;  %v6624_v40 = vpop.f32.mrb[142].mxu1  ;;  %v6712_v46 = vpop.f32.mrb[142].mxu0 }
 0x210   :  { %v6625_v24 = vpop.f32.mrb[143].mxu1  ;;  %v6713_v4 = vpop.f32.mrb[143].mxu0  ;;  %7277 = vmatpush3.bf16.msra.mxu0 %v7944_v5  ;;  %7164 = vmatpush3.bf16.msra.mxu1 %v7952_v54 }
 0x211   :  { %v4286_v11 = vadd.f32 %v6623_v62, %v9349_v14  ;;  %v9625_v31 = vadd.f32 %v6711_v1, %v4278_v38  ;;  %v6626_v19 = vadd.f32 %v6625_v24, %v6624_v40  ;;  %v6714_v21 = vadd.f32 %v6713_v4, %v6712_v46  ;;  %7278 = vmatprep.subr.bf16.mxu0 %v8022_v9  ;;  %v7967_v14 = vld [vmem:[%s10137_s1 + $0x638] sm:$0xff]  }
 0x212   :  { %4836 = vmatmul.mubr.bf16.gmra.mrb[248].mxu1 %v7903_v42  ;;  %4964 = vmatmul.mubr.bf16.gmra.mrb[248].mxu0 %v7904_v3  ;;  %v7919_v38 = vld [vmem:[%s10138_s0 + $0x43c] ss:$100 sps:$4 sm:$0xff]  }
 0x213   :  { %v4289_v6 = vadd.f32 %v6626_v19, %v9353_v18  ;;  %v9632_v10 = vadd.f32 %v6714_v21, %v4281_v63  ;;  %4843 = vmatprep.mubr.bf16.mxu1 %v7906_v0  ;;  %4971 = vmatprep.mubr.bf16.mxu0 %v7908_v60  ;;  %v7910_v18 = vld [vmem:[%s10138_s0 + $0x430] ss:$100 sps:$4 sm:$0xff]   ;;  %v7917_v62 = vld [vmem:[%s10138_s0 + $0x438] ss:$100 sps:$4 sm:$0xff]   ;;  %v7923_v0 = vld [vmem:[%s10138_s0 + $0x5c4] ss:$100 sps:$4 sm:$0xff]  }
 0x214   :  { %7279 = vmatpush3.bf16.msra.mxu0 %v7959_v13  ;;  %7165 = vmatprep.subr.bf16.mxu1 %v7960_v57  ;;  %v7926_v60 = vld [vmem:[%s10138_s0 + $0x504] ss:$100 sps:$4 sm:$0xff]  }
 0x215   :  { %v6627_v23 = vpop.f32.mrb[144].mxu1  ;;  %v6715_v49 = vpop.f32.mrb[144].mxu0  ;;  %7166 = vmatpush3.bf16.msra.mxu1 %v7966_v61  ;;  %7280 = vmatprep.subr.bf16.mxu0 %v8022_v9 }
 0x216   :  { %v6628_v30 = vpop.f32.mrb[145].mxu1  ;;  %v6716_v8 = vpop.f32.mrb[145].mxu0 }
 0x217   :  { %v6629_v35 = vadd.f32 %v6628_v30, %v6627_v23  ;;  %v6717_v16 = vadd.f32 %v6716_v8, %v6715_v49  ;;  %v6630_v59 = vpop.f32.mrb[146].mxu1  ;;  %v6718_v41 = vpop.f32.mrb[146].mxu0  ;;  %v7924_v30 = vld [vmem:[%s10138_s0 + $0x500] ss:$100 sps:$4 sm:$0xff]  }
 0x218   :  { %v6631_v22 = vpop.f32.mrb[147].mxu1  ;;  %v6719_v29 = vpop.f32.mrb[147].mxu0  ;;  %7281 = vmatpush3.bf16.msra.mxu0 %v7967_v14 }
 0x219   :  { %v4294_v37 = vadd.f32 %v6629_v35, %v9368_v45  ;;  %v9651_v63 = vadd.f32 %v6717_v16, %v4286_v11  ;;  %v6632_v5 = vadd.f32 %v6631_v22, %v6630_v59  ;;  %v6720_v54 = vadd.f32 %v6719_v29, %v6718_v41  ;;  %v7914_v45 = vld [vmem:[%s10138_s0 + $0x4f8] ss:$100 sps:$4 sm:$0xff]   ;;  %v7932_v35 = vld [vmem:[%s10138_s0 + $0x68c] ss:$100 sps:$4 sm:$0xff]  }
 0x21a   :  { %4844 = vmatmul.mubr.bf16.gmra.mrb[252].mxu1 %v7910_v18  ;;  %4972 = vmatmul.mubr.bf16.gmra.mrb[252].mxu0 %v7911_v33  ;;  %v7935_v16 = vld [vmem:[%s10138_s0 + $0x5cc] ss:$100 sps:$4 sm:$0xff]  }
 0x21b   :  { %v4297_v58 = vadd.f32 %v6632_v5, %v9371_v52  ;;  %v9654_v26 = vadd.f32 %v6720_v54, %v4289_v6  ;;  %4851 = vmatprep.mubr.bf16.mxu1 %v7916_v47  ;;  %4979 = vmatprep.mubr.bf16.mxu0 %v7919_v38 }
 0x21d   :  { %v6633_v53 = vpop.f32.mrb[148].mxu1  ;;  %v6721_v56 = vpop.f32.mrb[148].mxu0 }
 0x21e   :  { %v6634_v42 = vpop.f32.mrb[149].mxu1  ;;  %v6722_v3 = vpop.f32.mrb[149].mxu0 }
 0x21f   :  { %v6635_v1 = vadd.f32 %v6634_v42, %v6633_v53  ;;  %v6723_v40 = vadd.f32 %v6722_v3, %v6721_v56  ;;  %v6636_v46 = vpop.f32.mrb[150].mxu1  ;;  %v6724_v52 = vpop.f32.mrb[150].mxu0  ;;  %v7933_v42 = vld [vmem:[%s10138_s0 + $0x5c8] ss:$100 sps:$4 sm:$0xff]  }
 0x220   :  { %v6637_v24 = vpop.f32.mrb[151].mxu1  ;;  %v6725_v4 = vpop.f32.mrb[151].mxu0 }
 0x221   :  { %v4302_v13 = vadd.f32 %v6635_v1, %v9386_v50  ;;  %v9669_v57 = vadd.f32 %v6723_v40, %v4294_v37  ;;  %v6638_v11 = vadd.f32 %v6637_v24, %v6636_v46  ;;  %v6726_v19 = vadd.f32 %v6725_v4, %v6724_v52  ;;  %v7921_v50 = vld [vmem:[%s10138_s0 + $0x5c0] ss:$100 sps:$4 sm:$0xff]   ;;  %v7940_v1 = vld [vmem:[%s10138_s0 + $0x754] ss:$100 sps:$4 sm:$0xff]  }
 0x222   :  { %4852 = vmatmul.mubr.bf16.gmra.mrb[0].mxu1 %v7914_v45  ;;  %4980 = vmatmul.mubr.bf16.gmra.mrb[0].mxu0 %v7917_v62  ;;  %v7943_v40 = vld [vmem:[%s10138_s0 + $0x694] ss:$100 sps:$4 sm:$0xff]  }
 0x223   :  { %v4305_v21 = vadd.f32 %v6638_v11, %v9389_v15  ;;  %v9672_v61 = vadd.f32 %v6726_v19, %v4297_v58  ;;  %4859 = vmatprep.mubr.bf16.mxu1 %v7923_v0  ;;  %4987 = vmatprep.mubr.bf16.mxu0 %v7926_v60 }
 0x225   :  { %v6639_v6 = vpop.f32.mrb[152].mxu1  ;;  %v6727_v14 = vpop.f32.mrb[152].mxu0 }
 0x226   :  { %v6640_v23 = vpop.f32.mrb[153].mxu1  ;;  %v6728_v49 = vpop.f32.mrb[153].mxu0 }
 0x227   :  { %v6641_v8 = vadd.f32 %v6640_v23, %v6639_v6  ;;  %v6729_v18 = vadd.f32 %v6728_v49, %v6727_v14  ;;  %v6642_v33 = vpop.f32.mrb[154].mxu1  ;;  %v6730_v15 = vpop.f32.mrb[154].mxu0  ;;  %v7941_v23 = vld [vmem:[%s10138_s0 + $0x690] ss:$100 sps:$4 sm:$0xff]  }
 0x228   :  { %v6643_v59 = vpop.f32.mrb[155].mxu1  ;;  %v6731_v41 = vpop.f32.mrb[155].mxu0 }
 0x229   :  { %v4310_v47 = vadd.f32 %v6641_v8, %v9404_v25  ;;  %v9687_v38 = vadd.f32 %v6729_v18, %v4302_v13  ;;  %v6644_v22 = vadd.f32 %v6643_v59, %v6642_v33  ;;  %v6732_v29 = vadd.f32 %v6731_v41, %v6730_v15  ;;  %v7930_v25 = vld [vmem:[%s10138_s0 + $0x688] ss:$100 sps:$4 sm:$0xff]   ;;  %v7947_v8 = vld [vmem:[%s10138_s0 + $0x81c] ss:$100 sps:$4 sm:$0xff]  }
 0x22a   :  { %4860 = vmatmul.mubr.bf16.gmra.mrb[4].mxu1 %v7921_v50  ;;  %4988 = vmatmul.mubr.bf16.gmra.mrb[4].mxu0 %v7924_v30  ;;  %v7950_v18 = vld [vmem:[%s10138_s0 + $0x75c] ss:$100 sps:$4 sm:$0xff]  }
 0x22b   :  { %v4313_v37 = vadd.f32 %v6644_v22, %v9407_v32  ;;  %v9690_v5 = vadd.f32 %v6732_v29, %v4305_v21  ;;  %4867 = vmatprep.mubr.bf16.mxu1 %v7932_v35  ;;  %4995 = vmatprep.mubr.bf16.mxu0 %v7935_v16 }
 0x22d   :  { %v6645_v54 = vpop.f32.mrb[156].mxu1  ;;  %v6733_v58 = vpop.f32.mrb[156].mxu0 }
 0x22e   :  { %v6646_v53 = vpop.f32.mrb[157].mxu1  ;;  %v6734_v56 = vpop.f32.mrb[157].mxu0 }
 0x22f   :  { %v6647_v3 = vadd.f32 %v6646_v53, %v6645_v54  ;;  %v6735_v45 = vadd.f32 %v6734_v56, %v6733_v58  ;;  %v6648_v62 = vpop.f32.mrb[158].mxu1  ;;  %v6736_v32 = vpop.f32.mrb[158].mxu0  ;;  %v7948_v53 = vld [vmem:[%s10138_s0 + $0x758] ss:$100 sps:$4 sm:$0xff]  }
 0x230   :  { %v6649_v46 = vpop.f32.mrb[159].mxu1  ;;  %v6737_v52 = vpop.f32.mrb[159].mxu0 }
 0x231   :  { %v4318_v0 = vadd.f32 %v6647_v3, %v9422_v7  ;;  %v9705_v60 = vadd.f32 %v6735_v45, %v4310_v47  ;;  %v6650_v24 = vadd.f32 %v6649_v46, %v6648_v62  ;;  %v6738_v4 = vadd.f32 %v6737_v52, %v6736_v32  ;;  %v7938_v7 = vld [vmem:[%s10138_s0 + $0x750] ss:$100 sps:$4 sm:$0xff]   ;;  %v7955_v3 = vld [vmem:[%s10138_s0 + $0x8e4] ss:$100 sps:$4 sm:$0xff]  }
 0x232   :  { %4868 = vmatmul.mubr.bf16.gmra.mrb[8].mxu1 %v7930_v25  ;;  %4996 = vmatmul.mubr.bf16.gmra.mrb[8].mxu0 %v7933_v42  ;;  %v7958_v45 = vld [vmem:[%s10138_s0 + $0x824] ss:$100 sps:$4 sm:$0xff]  }
 0x233   :  { %v4321_v13 = vadd.f32 %v6650_v24, %v9425_v12  ;;  %v9708_v11 = vadd.f32 %v6738_v4, %v4313_v37  ;;  %4875 = vmatprep.mubr.bf16.mxu1 %v7940_v1  ;;  %5003 = vmatprep.mubr.bf16.mxu0 %v7943_v40  ;;  %v336_v4 = vld [vmem:[%s10138_s0 + $0x9a8] sm:$0xff] }
 0x235   :  { %v6651_v19 = vpop.f32.mrb[160].mxu1  ;;  %v6739_v21 = vpop.f32.mrb[160].mxu0 }
 0x236   :  { %v6652_v6 = vpop.f32.mrb[161].mxu1  ;;  %v6740_v14 = vpop.f32.mrb[161].mxu0 }
 0x237   :  { %v6653_v49 = vadd.f32 %v6652_v6, %v6651_v19  ;;  %v6741_v50 = vadd.f32 %v6740_v14, %v6739_v21  ;;  %v6654_v30 = vpop.f32.mrb[162].mxu1  ;;  %v6742_v12 = vpop.f32.mrb[162].mxu0  ;;  %v7953_v6 = vld [vmem:[%s10138_s0 + $0x8e0] ss:$100 sps:$4 sm:$0xff]  }
 0x238   :  { %v6655_v33 = vpop.f32.mrb[163].mxu1  ;;  %v6743_v15 = vpop.f32.mrb[163].mxu0 }
 0x239   :  { %v4326_v35 = vadd.f32 %v6653_v49, %v9440_v39  ;;  %v9723_v16 = vadd.f32 %v6741_v50, %v4318_v0  ;;  %v6656_v59 = vadd.f32 %v6655_v33, %v6654_v30  ;;  %v6744_v41 = vadd.f32 %v6743_v15, %v6742_v12  ;;  %v7945_v39 = vld [vmem:[%s10138_s0 + $0x818] ss:$100 sps:$4 sm:$0xff]   ;;  %v7965_v30 = vld [vmem:[%s10138_s0 + $0x8ec] ss:$100 sps:$4 sm:$0xff]  }
 0x23a   :  { %4876 = vmatmul.mubr.bf16.gmra.mrb[12].mxu1 %v7938_v7  ;;  %5004 = vmatmul.mubr.bf16.gmra.mrb[12].mxu0 %v7941_v23  ;;  %v5790_v50 = vcombine.high %v336_v4, %v336_v4 }
 0x23b   :  { %v4329_v47 = vadd.f32 %v6656_v59, %v9443_v43  ;;  %v9726_v22 = vadd.f32 %v6744_v41, %v4321_v13  ;;  %4883 = vmatprep.mubr.bf16.mxu1 %v7947_v8  ;;  %5011 = vmatprep.mubr.bf16.mxu0 %v7950_v18 }
 0x23d   :  { %v6657_v29 = vpop.f32.mrb[164].mxu1  ;;  %v6745_v37 = vpop.f32.mrb[164].mxu0 }
 0x23e   :  { %v6658_v54 = vpop.f32.mrb[165].mxu1  ;;  %v6746_v58 = vpop.f32.mrb[165].mxu0 }
 0x23f   :  { %v6659_v56 = vadd.f32 %v6658_v54, %v6657_v29  ;;  %v6747_v25 = vadd.f32 %v6746_v58, %v6745_v37  ;;  %v6660_v42 = vpop.f32.mrb[166].mxu1  ;;  %v6748_v43 = vpop.f32.mrb[166].mxu0  ;;  %v5789_v58 = vcombine.low %v336_v4, %v336_v4 }
 0x240   :  { %v6661_v62 = vpop.f32.mrb[167].mxu1  ;;  %v6749_v32 = vpop.f32.mrb[167].mxu0 }
 0x241   :  { %v4334_v1 = vadd.f32 %v6659_v56, %v9458_v36  ;;  %v9741_v40 = vadd.f32 %v6747_v25, %v4326_v35  ;;  %v6662_v46 = vadd.f32 %v6661_v62, %v6660_v42  ;;  %v6750_v52 = vadd.f32 %v6749_v32, %v6748_v43  ;;  %v7972_v43 = vld [vmem:[%s10138_s0 + $0x5c] ss:$100 sps:$4 sm:$0xff]  }
 0x242   :  { %4884 = vmatmul.mubr.bf16.gmra.mrb[16].mxu1 %v7945_v39  ;;  %5012 = vmatmul.mubr.bf16.gmra.mrb[16].mxu0 %v7948_v53  ;;  %v7963_v39 = vld [vmem:[%s10138_s0 + $0x8e8] ss:$100 sps:$4 sm:$0xff]  }
 0x243   :  { %v4337_v0 = vadd.f32 %v6662_v46, %v9461_v48  ;;  %v9744_v24 = vadd.f32 %v6750_v52, %v4329_v47  ;;  %4891 = vmatprep.mubr.bf16.mxu1 %v7955_v3  ;;  %5019 = vmatprep.mubr.bf16.mxu0 %v7958_v45  ;;  %v7956_v48 = vld [vmem:[%s10138_s0 + $0x820] ss:$100 sps:$4 sm:$0xff]   ;;  %v337_v47 = vld [vmem:[%s10138_s0 + $0x9b0] sm:$0xff] }
 0x244   :  { %v5792_v42 = vcombine.high %v337_v47, %v337_v47 }
 0x245   :  { %v6663_v13 = vpop.f32.mrb[168].mxu1  ;;  %v6751_v19 = vpop.f32.mrb[168].mxu0 }
 0x246   :  { %v6664_v21 = vpop.f32.mrb[169].mxu1  ;;  %v6752_v36 = vpop.f32.mrb[169].mxu0 }
 0x247   :  { %v6665_v14 = vadd.f32 %v6664_v21, %v6663_v13  ;;  %v6753_v7 = vadd.f32 %v6752_v36, %v6751_v19  ;;  %v6666_v23 = vpop.f32.mrb[170].mxu1  ;;  %v6754_v49 = vpop.f32.mrb[170].mxu0  ;;  %v5791_v36 = vcombine.low %v337_v47, %v337_v47  ;;  %v7976_v47 = vld [vmem:[%s10138_s0 + $0x60] ss:$100 sps:$4 sm:$0xff]  }
 0x248   :  { %v6667_v12 = vpop.f32.mrb[171].mxu1  ;;  %v6755_v8 = vpop.f32.mrb[171].mxu0 }
 0x249   :  { %v4342_v18 = vadd.f32 %v6665_v14, %v9473_v28  ;;  %v9759_v33 = vadd.f32 %v6753_v7, %v4334_v1  ;;  %v6668_v15 = vadd.f32 %v6667_v12, %v6666_v23  ;;  %v6756_v35 = vadd.f32 %v6755_v8, %v6754_v49 }
 0x24a   :  { %4892 = vmatmul.mubr.bf16.gmra.mrb[20].mxu1 %v7953_v6  ;;  %5020 = vmatmul.mubr.bf16.gmra.mrb[20].mxu0 %v7956_v48 }
 0x24b   :  { %v4345_v59 = vadd.f32 %v6668_v15, %v9476_v2  ;;  %v9762_v41 = vadd.f32 %v6756_v35, %v4337_v0  ;;  %4899 = vmatprep.mubr.bf16.mxu1 %v5790_v50  ;;  %5027 = vmatprep.mubr.bf16.mxu0 %v7965_v30 }
 0x24d   :  { %v6669_v29 = vpop.f32.mrb[172].mxu1  ;;  %v6757_v37 = vpop.f32.mrb[172].mxu0 }
 0x24e   :  { %v6670_v54 = vpop.f32.mrb[173].mxu1  ;;  %v6758_v28 = vpop.f32.mrb[173].mxu0 }
 0x24f   :  { %v6671_v53 = vadd.f32 %v6670_v54, %v6669_v29  ;;  %v6759_v56 = vadd.f32 %v6758_v28, %v6757_v37  ;;  %v6672_v2 = vpop.f32.mrb[174].mxu1  ;;  %v6760_v25 = vpop.f32.mrb[174].mxu0 }
 0x250   :  { %v6673_v3 = vpop.f32.mrb[175].mxu1  ;;  %v6761_v45 = vpop.f32.mrb[175].mxu0 }
 0x251   :  { %v4350_v62 = vadd.f32 %v6671_v53, %v9494_v55  ;;  %v9774_v32 = vadd.f32 %v6759_v56, %v4342_v18  ;;  %v6674_v1 = vadd.f32 %v6673_v3, %v6672_v2  ;;  %v6762_v46 = vadd.f32 %v6761_v45, %v6760_v25  ;;  %v7970_v55 = vld [vmem:[%s10138_s0 + $0x58] ss:$100 sps:$4 sm:$0xff]  }
 0x252   :  { %4900 = vmatmul.mubr.bf16.gmra.mrb[24].mxu1 %v5789_v58  ;;  %5028 = vmatmul.mubr.bf16.gmra.mrb[24].mxu0 %v7963_v39  ;;  %v7979_v58 = vld [vmem:[%s10138_s0 + $0x1ec] ss:$100 sps:$4 sm:$0xff]  }
 0x253   :  { %v4353_v52 = vadd.f32 %v6674_v1, %v9496_v20  ;;  %v9777_v0 = vadd.f32 %v6762_v46, %v4345_v59  ;;  %5035 = vmatprep.mubr.bf16.mxu0 %v5792_v42  ;;  %5075 = vmatprep.mubr.bf16.mxu1 %v7972_v43  ;;  %v7975_v20 = vld [vmem:[%s10138_s0 + $0x124] ss:$100 sps:$4 sm:$0xff]  }
 0x254   :  { %v7977_v1 = vld [vmem:[%s10138_s0 + $0x1e8] ss:$100 sps:$4 sm:$0xff]  }
 0x255   :  { %v6675_v4 = vpop.f32.mrb[176].mxu1  ;;  %v6763_v13 = vpop.f32.mrb[176].mxu0 }
 0x256   :  { %v6676_v19 = vpop.f32.mrb[177].mxu1  ;;  %v6764_v21 = vpop.f32.mrb[177].mxu0 }
 0x257   :  { %v6677_v6 = vadd.f32 %v6676_v19, %v6675_v4  ;;  %v6765_v48 = vadd.f32 %v6764_v21, %v6763_v13  ;;  %v6766_v14 = vpop.f32.mrb[178].mxu0  ;;  %v6678_v7 = vpop.f32.mrb[178].mxu1  ;;  %v7983_v13 = vld [vmem:[%s10138_s0 + $0x2b4] ss:$100 sps:$4 sm:$0xff]  }
 0x258   :  { %v6767_v23 = vpop.f32.mrb[179].mxu0  ;;  %v6679_v49 = vpop.f32.mrb[179].mxu1 }
 0x259   :  { %v4358_v50 = vadd.f32 %v6677_v6, %v9519_v27  ;;  %v9786_v30 = vadd.f32 %v6765_v48, %v4350_v62  ;;  %v6768_v12 = vadd.f32 %v6767_v23, %v6766_v14  ;;  %v7973_v27 = vld [vmem:[%s10138_s0 + $0x120] ss:$100 sps:$4 sm:$0xff]  }
 0x25a   :  { %5036 = vmatmul.mubr.bf16.gmra.mrb[28].mxu0 %v5791_v36  ;;  %5076 = vmatmul.mubr.bf16.vlgmr.msra.gmra.mrb[28].mxu1 %v7970_v55 }
 0x25b   :  { %v9788_v8 = vadd.f32 %v6768_v12, %v4353_v52  ;;  %5083 = vmatprep.mubr.bf16.mxu1 %v7975_v20  ;;  %7282 = vmatprep.mubr.msk.bf16.mxu0 %vm8023_vm0, %v8022_v9  ;;  %v7984_v12 = vld [vmem:[%s10138_s0 + $0x1f0] ss:$100 sps:$4 sm:$0xff]  }
 0x25d   :  { %v6769_v18 = vpop.f32.mrb[180].mxu0  ;;  %v6791_v15 = vpop.f32.mrb[180].mxu1 }
 0x25e   :  { %v6770_v35 = vpop.f32.mrb[181].mxu0  ;;  %v6792_v59 = vpop.f32.mrb[181].mxu1 }
 0x25f   :  { %v6771_v29 = vadd.f32 %v6770_v35, %v6769_v18  ;;  %v6793_v37 = vadd.f32 %v6792_v59, %v6791_v15  ;;  %v6772_v54 = vpop.f32.mrb[182].mxu0  ;;  %v6794_v28 = vpop.f32.mrb[182].mxu1  ;;  %v7987_v59 = vld [vmem:[%s10138_s0 + $0x37c] ss:$100 sps:$4 sm:$0xff]  }
 0x260   :  { %v6773_v39 = vpop.f32.mrb[183].mxu0  ;;  %v6795_v53 = vpop.f32.mrb[183].mxu1 }
 0x261   :  { %v9801_v56 = vadd.f32 %v6771_v29, %v4358_v50  ;;  %v4534_v2 = vadd.f32 %v6793_v37, %v9556_v44  ;;  %v6796_v25 = vadd.f32 %v6795_v53, %v6794_v28  ;;  %v7980_v44 = vld [vmem:[%s10138_s0 + $0x128] ss:$100 sps:$4 sm:$0xff]  }
 0x262   :  { %5084 = vmatmul.mubr.bf16.gmra.mrb[32].mxu1 %v7973_v27  ;;  %7283 = vmatmul.mubr.bf16.vlgmr.msra.gmra.mrb[32].mxu0 %v7976_v47 }
 0x263   :  { %v4537_v42 = vadd.f32 %v6796_v25, %v9565_v17  ;;  %5091 = vmatprep.mubr.bf16.mxu1 %v7979_v58  ;;  %7286 = vmatprep.mubr.msk.bf16.mxu0 %vm8023_vm0, %v8022_v9 }
 0x265   :  { %v6797_v43 = vpop.f32.mrb[184].mxu1  ;;  %v6885_v3 = vpop.f32.mrb[184].mxu0 }
 0x266   :  { %v6798_v45 = vpop.f32.mrb[185].mxu1  ;;  %v6886_v62 = vpop.f32.mrb[185].mxu0 }
 0x267   :  { %v6799_v46 = vadd.f32 %v6798_v45, %v6797_v43  ;;  %v6887_v52 = vadd.f32 %v6886_v62, %v6885_v3  ;;  %v6800_v4 = vpop.f32.mrb[186].mxu1  ;;  %v6888_v17 = vpop.f32.mrb[186].mxu0  ;;  %v7988_v43 = vld [vmem:[%s10138_s0 + $0x2b8] ss:$100 sps:$4 sm:$0xff]  }
 0x268   :  { %v6801_v19 = vpop.f32.mrb[187].mxu1  ;;  %v6889_v21 = vpop.f32.mrb[187].mxu0 }
 0x269   :  { %v4542_v36 = vadd.f32 %v6799_v46, %v9590_v51  ;;  %v9817_v55 = vadd.f32 %v6887_v52, %v4534_v2  ;;  %v6802_v6 = vadd.f32 %v6801_v19, %v6800_v4  ;;  %v6890_v48 = vadd.f32 %v6889_v21, %v6888_v17  ;;  %v7981_v51 = vld [vmem:[%s10138_s0 + $0x2b0] ss:$100 sps:$4 sm:$0xff]  }
 0x26a   :  { %5092 = vmatmul.mubr.bf16.gmra.mrb[36].mxu1 %v7977_v1  ;;  %7287 = vmatmul.mubr.bf16.gmra.mrb[36].mxu0 %v7980_v44  ;;  %v7991_v1 = vld [vmem:[%s10138_s0 + $0x444] ss:$100 sps:$4 sm:$0xff]  }
 0x26b   :  { %v4545_v14 = vadd.f32 %v6802_v6, %v9597_v34  ;;  %v9820_v7 = vadd.f32 %v6890_v48, %v4537_v42  ;;  %5099 = vmatprep.mubr.bf16.mxu1 %v7983_v13  ;;  %7290 = vmatprep.mubr.msk.bf16.mxu0 %vm8023_vm0, %v8022_v9 }
 0x26d   :  { %v6803_v20 = vpop.f32.mrb[188].mxu1  ;;  %v6891_v23 = vpop.f32.mrb[188].mxu0 }
 0x26e   :  { %v6804_v49 = vpop.f32.mrb[189].mxu1  ;;  %v6892_v50 = vpop.f32.mrb[189].mxu0 }
 0x26f   :  { %v6805_v18 = vadd.f32 %v6804_v49, %v6803_v20  ;;  %v6893_v34 = vadd.f32 %v6892_v50, %v6891_v23  ;;  %v6806_v15 = vpop.f32.mrb[190].mxu1  ;;  %v6894_v35 = vpop.f32.mrb[190].mxu0  ;;  %v7992_v20 = vld [vmem:[%s10138_s0 + $0x380] ss:$100 sps:$4 sm:$0xff]  }
 0x270   :  { %v6807_v27 = vpop.f32.mrb[191].mxu1  ;;  %v6895_v47 = vpop.f32.mrb[191].mxu0 }
 0x271   :  { %v4550_v29 = vadd.f32 %v6805_v18, %v9625_v31  ;;  %v9834_v37 = vadd.f32 %v6893_v34, %v4542_v36  ;;  %v6808_v54 = vadd.f32 %v6807_v27, %v6806_v15  ;;  %v6896_v28 = vadd.f32 %v6895_v47, %v6894_v35  ;;  %v7985_v31 = vld [vmem:[%s10138_s0 + $0x378] ss:$100 sps:$4 sm:$0xff]  }
 0x272   :  { %5100 = vmatmul.mubr.bf16.gmra.mrb[40].mxu1 %v7981_v51  ;;  %7291 = vmatmul.mubr.bf16.gmra.mrb[40].mxu0 %v7984_v12  ;;  %v7995_v51 = vld [vmem:[%s10138_s0 + $0x50c] ss:$100 sps:$4 sm:$0xff]  }
 0x273   :  { %v4553_v58 = vadd.f32 %v6808_v54, %v9632_v10  ;;  %v9837_v39 = vadd.f32 %v6896_v28, %v4545_v14  ;;  %5107 = vmatprep.mubr.bf16.mxu1 %v7987_v59  ;;  %7294 = vmatprep.mubr.msk.bf16.mxu0 %vm8023_vm0, %v8022_v9 }
 0x275   :  { %v6809_v53 = vpop.f32.mrb[192].mxu1  ;;  %v6897_v2 = vpop.f32.mrb[192].mxu0 }
 0x276   :  { %v6810_v25 = vpop.f32.mrb[193].mxu1  ;;  %v6898_v42 = vpop.f32.mrb[193].mxu0 }
 0x277   :  { %v6811_v3 = vadd.f32 %v6810_v25, %v6809_v53  ;;  %v6899_v10 = vadd.f32 %v6898_v42, %v6897_v2  ;;  %v6812_v45 = vpop.f32.mrb[194].mxu1  ;;  %v6900_v62 = vpop.f32.mrb[194].mxu0  ;;  %v7996_v53 = vld [vmem:[%s10138_s0 + $0x448] ss:$100 sps:$4 sm:$0xff]  }
 0x278   :  { %v6813_v44 = vpop.f32.mrb[195].mxu1  ;;  %v6901_v46 = vpop.f32.mrb[195].mxu0 }
 0x279   :  { %v4558_v52 = vadd.f32 %v6811_v3, %v9651_v63  ;;  %v9851_v4 = vadd.f32 %v6899_v10, %v4550_v29  ;;  %v6814_v17 = vadd.f32 %v6813_v44, %v6812_v45  ;;  %v6902_v13 = vadd.f32 %v6901_v46, %v6900_v62  ;;  %v7989_v63 = vld [vmem:[%s10138_s0 + $0x440] ss:$100 sps:$4 sm:$0xff]  }
 0x27a   :  { %5108 = vmatmul.mubr.bf16.gmra.mrb[44].mxu1 %v7985_v31  ;;  %7295 = vmatmul.mubr.bf16.gmra.mrb[44].mxu0 %v7988_v43  ;;  %v7999_v31 = vld [vmem:[%s10138_s0 + $0x5d4] ss:$100 sps:$4 sm:$0xff]  }
 0x27b   :  { %v4561_v19 = vadd.f32 %v6814_v17, %v9654_v26  ;;  %v9854_v21 = vadd.f32 %v6902_v13, %v4553_v58  ;;  %5115 = vmatprep.mubr.bf16.mxu1 %v7991_v1  ;;  %7298 = vmatprep.mubr.msk.bf16.mxu0 %vm8023_vm0, %v8022_v9 }
 0x27d   :  { %v6815_v36 = vpop.f32.mrb[196].mxu1  ;;  %v6903_v6 = vpop.f32.mrb[196].mxu0 }
 0x27e   :  { %v6816_v48 = vpop.f32.mrb[197].mxu1  ;;  %v6904_v14 = vpop.f32.mrb[197].mxu0 }
 0x27f   :  { %v6817_v23 = vadd.f32 %v6816_v48, %v6815_v36  ;;  %v6905_v26 = vadd.f32 %v6904_v14, %v6903_v6  ;;  %v6818_v49 = vpop.f32.mrb[198].mxu1  ;;  %v6906_v50 = vpop.f32.mrb[198].mxu0  ;;  %v8000_v36 = vld [vmem:[%s10138_s0 + $0x510] ss:$100 sps:$4 sm:$0xff]  }
 0x280   :  { %v6819_v12 = vpop.f32.mrb[199].mxu1  ;;  %v6907_v18 = vpop.f32.mrb[199].mxu0 }
 0x281   :  { %v4566_v34 = vadd.f32 %v6817_v23, %v9669_v57  ;;  %v9868_v15 = vadd.f32 %v6905_v26, %v4558_v52  ;;  %v6820_v35 = vadd.f32 %v6819_v12, %v6818_v49  ;;  %v6908_v59 = vadd.f32 %v6907_v18, %v6906_v50  ;;  %v7993_v57 = vld [vmem:[%s10138_s0 + $0x508] ss:$100 sps:$4 sm:$0xff]  }
 0x282   :  { %5116 = vmatmul.mubr.bf16.gmra.mrb[48].mxu1 %v7989_v63  ;;  %7299 = vmatmul.mubr.bf16.gmra.mrb[48].mxu0 %v7992_v20  ;;  %v8003_v63 = vld [vmem:[%s10138_s0 + $0x69c] ss:$100 sps:$4 sm:$0xff]  }
 0x283   :  { %v4569_v27 = vadd.f32 %v6820_v35, %v9672_v61  ;;  %v9871_v47 = vadd.f32 %v6908_v59, %v4561_v19  ;;  %5123 = vmatprep.mubr.bf16.mxu1 %v7995_v51  ;;  %7302 = vmatprep.mubr.msk.bf16.mxu0 %vm8023_vm0, %v8022_v9 }
 0x285   :  { %v6821_v29 = vpop.f32.mrb[200].mxu1  ;;  %v6909_v54 = vpop.f32.mrb[200].mxu0 }
 0x286   :  { %v6822_v28 = vpop.f32.mrb[201].mxu1  ;;  %v6910_v58 = vpop.f32.mrb[201].mxu0 }
 0x287   :  { %v6823_v2 = vadd.f32 %v6822_v28, %v6821_v29  ;;  %v6911_v61 = vadd.f32 %v6910_v58, %v6909_v54  ;;  %v6824_v25 = vpop.f32.mrb[202].mxu1  ;;  %v6912_v42 = vpop.f32.mrb[202].mxu0  ;;  %v8004_v29 = vld [vmem:[%s10138_s0 + $0x5d8] ss:$100 sps:$4 sm:$0xff]  }
 0x288   :  { %v6825_v43 = vpop.f32.mrb[203].mxu1  ;;  %v6913_v3 = vpop.f32.mrb[203].mxu0 }
 0x289   :  { %v4574_v10 = vadd.f32 %v6823_v2, %v9687_v38  ;;  %v9885_v45 = vadd.f32 %v6911_v61, %v4566_v34  ;;  %v6826_v62 = vadd.f32 %v6825_v43, %v6824_v25  ;;  %v6914_v1 = vadd.f32 %v6913_v3, %v6912_v42  ;;  %v7997_v38 = vld [vmem:[%s10138_s0 + $0x5d0] ss:$100 sps:$4 sm:$0xff]  }
 0x28a   :  { %5124 = vmatmul.mubr.bf16.gmra.mrb[52].mxu1 %v7993_v57  ;;  %7303 = vmatmul.mubr.bf16.gmra.mrb[52].mxu0 %v7996_v53  ;;  %v8007_v57 = vld [vmem:[%s10138_s0 + $0x764] ss:$100 sps:$4 sm:$0xff]  }
 0x28b   :  { %v4577_v44 = vadd.f32 %v6826_v62, %v9690_v5  ;;  %v9888_v46 = vadd.f32 %v6914_v1, %v4569_v27  ;;  %5131 = vmatprep.mubr.bf16.mxu1 %v7999_v31  ;;  %7306 = vmatprep.mubr.msk.bf16.mxu0 %vm8023_vm0, %v8022_v9 }
 0x28d   :  { %v6827_v52 = vpop.f32.mrb[204].mxu1  ;;  %v6915_v17 = vpop.f32.mrb[204].mxu0 }
 0x28e   :  { %v6828_v13 = vpop.f32.mrb[205].mxu1  ;;  %v6916_v19 = vpop.f32.mrb[205].mxu0 }
 0x28f   :  { %v6829_v6 = vadd.f32 %v6828_v13, %v6827_v52  ;;  %v6917_v5 = vadd.f32 %v6916_v19, %v6915_v17  ;;  %v6830_v48 = vpop.f32.mrb[206].mxu1  ;;  %v6918_v14 = vpop.f32.mrb[206].mxu0  ;;  %v8008_v52 = vld [vmem:[%s10138_s0 + $0x6a0] ss:$100 sps:$4 sm:$0xff]  }
 0x290   :  { %v6831_v20 = vpop.f32.mrb[207].mxu1  ;;  %v6919_v23 = vpop.f32.mrb[207].mxu0 }
 0x291   :  { %v4582_v26 = vadd.f32 %v6829_v6, %v9705_v60  ;;  %v9902_v49 = vadd.f32 %v6917_v5, %v4574_v10  ;;  %v6832_v50 = vadd.f32 %v6831_v20, %v6830_v48  ;;  %v6920_v51 = vadd.f32 %v6919_v23, %v6918_v14  ;;  %v8001_v60 = vld [vmem:[%s10138_s0 + $0x698] ss:$100 sps:$4 sm:$0xff]  }
 0x292   :  { %5132 = vmatmul.mubr.bf16.gmra.mrb[56].mxu1 %v7997_v38  ;;  %7307 = vmatmul.mubr.bf16.gmra.mrb[56].mxu0 %v8000_v36  ;;  %v8011_v38 = vld [vmem:[%s10138_s0 + $0x82c] ss:$100 sps:$4 sm:$0xff]  }
 0x293   :  { %v4585_v12 = vadd.f32 %v6832_v50, %v9708_v11  ;;  %v9905_v18 = vadd.f32 %v6920_v51, %v4577_v44  ;;  %5139 = vmatprep.mubr.bf16.mxu1 %v8003_v63  ;;  %7310 = vmatprep.mubr.msk.bf16.mxu0 %vm8023_vm0, %v8022_v9 }
 0x295   :  { %v6833_v34 = vpop.f32.mrb[208].mxu1  ;;  %v6921_v35 = vpop.f32.mrb[208].mxu0 }
 0x296   :  { %v6834_v59 = vpop.f32.mrb[209].mxu1  ;;  %v6922_v27 = vpop.f32.mrb[209].mxu0 }
 0x297   :  { %v6835_v54 = vadd.f32 %v6834_v59, %v6833_v34  ;;  %v6923_v11 = vadd.f32 %v6922_v27, %v6921_v35  ;;  %v6836_v28 = vpop.f32.mrb[210].mxu1  ;;  %v6924_v58 = vpop.f32.mrb[210].mxu0  ;;  %v8012_v34 = vld [vmem:[%s10138_s0 + $0x768] ss:$100 sps:$4 sm:$0xff]  }
 0x298   :  { %v6837_v53 = vpop.f32.mrb[211].mxu1  ;;  %v6925_v2 = vpop.f32.mrb[211].mxu0 }
 0x299   :  { %v4590_v61 = vadd.f32 %v6835_v54, %v9723_v16  ;;  %v9919_v25 = vadd.f32 %v6923_v11, %v4582_v26  ;;  %v6838_v42 = vadd.f32 %v6837_v53, %v6836_v28  ;;  %v6926_v31 = vadd.f32 %v6925_v2, %v6924_v58  ;;  %v8005_v16 = vld [vmem:[%s10138_s0 + $0x760] ss:$100 sps:$4 sm:$0xff]  }
 0x29a   :  { %5140 = vmatmul.mubr.bf16.gmra.mrb[60].mxu1 %v8001_v60  ;;  %7311 = vmatmul.mubr.bf16.gmra.mrb[60].mxu0 %v8004_v29  ;;  %v8015_v60 = vld [vmem:[%s10138_s0 + $0x8f4] ss:$100 sps:$4 sm:$0xff]  }
 0x29b   :  { %v4593_v43 = vadd.f32 %v6838_v42, %v9726_v22  ;;  %v9922_v3 = vadd.f32 %v6926_v31, %v4585_v12  ;;  %5147 = vmatprep.mubr.bf16.mxu1 %v8007_v57  ;;  %7314 = vmatprep.mubr.msk.bf16.mxu0 %vm8023_vm0, %v8022_v9 }
 0x29d   :  { %v6839_v10 = vpop.f32.mrb[212].mxu1  ;;  %v6927_v62 = vpop.f32.mrb[212].mxu0 }
 0x29e   :  { %v6840_v1 = vpop.f32.mrb[213].mxu1  ;;  %v6928_v44 = vpop.f32.mrb[213].mxu0 }
 0x29f   :  { %v6841_v17 = vadd.f32 %v6840_v1, %v6839_v10  ;;  %v6929_v22 = vadd.f32 %v6928_v44, %v6927_v62  ;;  %v6842_v13 = vpop.f32.mrb[214].mxu1  ;;  %v6930_v19 = vpop.f32.mrb[214].mxu0  ;;  %v8013_v10 = vld [vmem:[%s10138_s0 + $0x8f0] ss:$100 sps:$4 sm:$0xff]  }
 0x2a0   :  { %v6843_v36 = vpop.f32.mrb[215].mxu1  ;;  %v6931_v6 = vpop.f32.mrb[215].mxu0 }
 0x2a1   :  { %v4598_v5 = vadd.f32 %v6841_v17, %v9741_v40  ;;  %v9936_v48 = vadd.f32 %v6929_v22, %v4590_v61  ;;  %v6844_v14 = vadd.f32 %v6843_v36, %v6842_v13  ;;  %v6932_v63 = vadd.f32 %v6931_v6, %v6930_v19  ;;  %v8009_v40 = vld [vmem:[%s10138_s0 + $0x828] ss:$100 sps:$4 sm:$0xff]   ;;  %v338_v61 = vld [vmem:[%s10138_s0 + $0x9b8] sm:$0xff] }
 0x2a2   :  { %5148 = vmatmul.mubr.bf16.gmra.mrb[64].mxu1 %v8005_v16  ;;  %7315 = vmatmul.mubr.bf16.gmra.mrb[64].mxu0 %v8008_v52  ;;  %v5794_v52 = vcombine.high %v338_v61, %v338_v61 }
 0x2a3   :  { %v4601_v20 = vadd.f32 %v6844_v14, %v9744_v24  ;;  %v9939_v23 = vadd.f32 %v6932_v63, %v4593_v43  ;;  %5155 = vmatprep.mubr.bf16.mxu1 %v8011_v38  ;;  %7318 = vmatprep.mubr.msk.bf16.mxu0 %vm8023_vm0, %v8022_v9 }
 0x2a5   :  { %v6845_v26 = vpop.f32.mrb[216].mxu1  ;;  %v6933_v50 = vpop.f32.mrb[216].mxu0 }
 0x2a6   :  { %v6846_v51 = vpop.f32.mrb[217].mxu1  ;;  %v6934_v12 = vpop.f32.mrb[217].mxu0 }
 0x2a7   :  { %v6847_v35 = vadd.f32 %v6846_v51, %v6845_v26  ;;  %v6935_v24 = vadd.f32 %v6934_v12, %v6933_v50  ;;  %v6848_v59 = vpop.f32.mrb[218].mxu1  ;;  %v6936_v27 = vpop.f32.mrb[218].mxu0  ;;  %v5793_v50 = vcombine.low %v338_v61, %v338_v61 }
 0x2a8   :  { %v6849_v29 = vpop.f32.mrb[219].mxu1  ;;  %v6937_v54 = vpop.f32.mrb[219].mxu0 }
 0x2a9   :  { %v4606_v11 = vadd.f32 %v6847_v35, %v9759_v33  ;;  %v9953_v28 = vadd.f32 %v6935_v24, %v4598_v5  ;;  %v6850_v58 = vadd.f32 %v6849_v29, %v6848_v59  ;;  %v6938_v57 = vadd.f32 %v6937_v54, %v6936_v27 }
 0x2aa   :  { %5156 = vmatmul.mubr.bf16.gmra.mrb[68].mxu1 %v8009_v40  ;;  %7319 = vmatmul.mubr.bf16.gmra.mrb[68].mxu0 %v8012_v34 }
 0x2ab   :  { %v4609_v53 = vadd.f32 %v6850_v58, %v9762_v41  ;;  %v9956_v2 = vadd.f32 %v6938_v57, %v4601_v20  ;;  %5163 = vmatprep.mubr.bf16.mxu1 %v8015_v60  ;;  %7322 = vmatprep.mubr.msk.bf16.mxu0 %vm8023_vm0, %v8022_v9  ;;  %v8016_v41 = vld [vmem:[%s10138_s0 + $0x830] ss:$100 sps:$4 sm:$0xff]  }
 0x2ad   :  { %v6851_v42 = vpop.f32.mrb[220].mxu1  ;;  %v6939_v33 = vpop.f32.mrb[220].mxu0 }
 0x2ae   :  { %v6852_v31 = vpop.f32.mrb[221].mxu1  ;;  %v6940_v43 = vpop.f32.mrb[221].mxu0 }
 0x2af   :  { %v6853_v62 = vadd.f32 %v6852_v31, %v6851_v42  ;;  %v6941_v1 = vadd.f32 %v6940_v43, %v6939_v33  ;;  %v6854_v44 = vpop.f32.mrb[222].mxu1  ;;  %v6942_v16 = vpop.f32.mrb[222].mxu0 }
 0x2b0   :  { %v6855_v17 = vpop.f32.mrb[223].mxu1  ;;  %v6943_v22 = vpop.f32.mrb[223].mxu0 }
 0x2b1   :  { %v4614_v13 = vadd.f32 %v6853_v62, %v9774_v32  ;;  %v9970_v19 = vadd.f32 %v6941_v1, %v4606_v11  ;;  %v6856_v38 = vadd.f32 %v6855_v17, %v6854_v44  ;;  %v6944_v36 = vadd.f32 %v6943_v22, %v6942_v16  ;;  %v8019_v32 = vld [vmem:[%s10138_s0 + $0x8f8] ss:$100 sps:$4 sm:$0xff]  }
 0x2b2   :  { %5164 = vmatmul.mubr.bf16.gmra.mrb[72].mxu1 %v8013_v10  ;;  %7323 = vmatmul.mubr.bf16.gmra.mrb[72].mxu0 %v8016_v41 }
 0x2b3   :  { %v4617_v6 = vadd.f32 %v6856_v38, %v9777_v0  ;;  %v9973_v5 = vadd.f32 %v6944_v36, %v4609_v53  ;;  %5171 = vmatprep.mubr.bf16.mxu1 %v5794_v52  ;;  %7326 = vmatprep.mubr.msk.bf16.mxu0 %vm8023_vm0, %v8022_v9 }
 0x2b5   :  { %v6857_v14 = vpop.f32.mrb[224].mxu1  ;;  %v6945_v63 = vpop.f32.mrb[224].mxu0 }
 0x2b6   :  { %v6858_v20 = vpop.f32.mrb[225].mxu1  ;;  %v6946_v26 = vpop.f32.mrb[225].mxu0 }
 0x2b7   :  { %v6859_v51 = vadd.f32 %v6858_v20, %v6857_v14  ;;  %v6947_v12 = vadd.f32 %v6946_v26, %v6945_v63  ;;  %v6860_v40 = vpop.f32.mrb[226].mxu1  ;;  %v6948_v34 = vpop.f32.mrb[226].mxu0 }
 0x2b8   :  { %v6861_v0 = vpop.f32.mrb[227].mxu1  ;;  %v6949_v35 = vpop.f32.mrb[227].mxu0 }
 0x2b9   :  { %v4622_v24 = vadd.f32 %v6859_v51, %v9786_v30  ;;  %v9981_v59 = vadd.f32 %v6947_v12, %v4614_v13  ;;  %v6862_v27 = vadd.f32 %v6861_v0, %v6860_v40  ;;  %v6950_v60 = vadd.f32 %v6949_v35, %v6948_v34  ;;  %v8020_v30 = vld [vmem:[%s10138_s0 + $0x9c0] ss:$0 sps:$4 sm:$0xff]  }
 0x2ba   :  { %5172 = vmatmul.mubr.bf16.gmra.mrb[76].mxu1 %v5793_v50  ;;  %7327 = vmatmul.mubr.bf16.gmra.mrb[76].mxu0 %v8019_v32 }
 0x2bb   :  { %v4625_v29 = vadd.f32 %v6862_v27, %v9788_v8  ;;  %v9984_v54 = vadd.f32 %v6950_v60, %v4617_v6  ;;  %7330 = vmatprep.mubr.msk.bf16.mxu0 %vm8023_vm0, %v8022_v9 }
 0x2bd   :  { %v6863_v11 = vpop.f32.mrb[228].mxu1  ;;  %v6951_v58 = vpop.f32.mrb[228].mxu0 }
 0x2be   :  { %v6864_v57 = vpop.f32.mrb[229].mxu1  ;;  %v6952_v53 = vpop.f32.mrb[229].mxu0 }
 0x2bf   :  { %v6865_v61 = vadd.f32 %v6864_v57, %v6863_v11  ;;  %v6953_v42 = vadd.f32 %v6952_v53, %v6951_v58  ;;  %v6954_v33 = vpop.f32.mrb[230].mxu0  ;;  %v6866_v31 = vpop.f32.mrb[230].mxu1 }
 0x2c0   :  { %v6955_v43 = vpop.f32.mrb[231].mxu0  ;;  %v6867_v10 = vpop.f32.mrb[231].mxu1 }
 0x2c1   :  { %v4630_v8 = vadd.f32 %v6865_v61, %v9801_v56  ;;  %v9992_v41 = vadd.f32 %v6953_v42, %v4622_v24  ;;  %v6956_v62 = vadd.f32 %v6955_v43, %v6954_v33 }
 0x2c2   :  { %7331 = vmatmul.mubr.bf16.gmra.mrb[80].mxu0 %v8020_v30 }
 0x2c3   :  { %v9994_v9 = vadd.f32 %v6956_v62, %v4625_v29 }
 0x2c5   :  { %v6957_v1 = vpop.f32.mrb[232].mxu0  ;;  %v6979_v44 = vpop.f32.mrb[232].mxu1 }
 0x2c6   :  { %v6958_v16 = vpop.f32.mrb[233].mxu0  ;;  %v6980_v52 = vpop.f32.mrb[233].mxu1 }
 0x2c7   :  { %v6959_v17 = vadd.f32 %v6958_v16, %v6957_v1  ;;  %v6981_v22 = vadd.f32 %v6980_v52, %v6979_v44  ;;  %v6960_v13 = vpop.f32.mrb[234].mxu0  ;;  %v6982_v38 = vpop.f32.mrb[234].mxu1 }
 0x2c8   :  { %v6961_v36 = vpop.f32.mrb[235].mxu0  ;;  %v6983_v6 = vpop.f32.mrb[235].mxu1 }
 0x2c9   :  { %v9996_v14 = vadd.f32 %v6959_v17, %v4630_v8  ;;  %v4806_v56 = vadd.f32 %v6981_v22, %v9817_v55  ;;  %v6984_v63 = vadd.f32 %v6983_v6, %v6982_v38 }
 0x2cb   :  { %v4809_v20 = vadd.f32 %v6984_v63, %v9820_v7 }
 0x2cd   :  { %v6985_v26 = vpop.f32.mrb[236].mxu1  ;;  %v7073_v50 = vpop.f32.mrb[236].mxu0 }
 0x2ce   :  { %v6986_v32 = vpop.f32.mrb[237].mxu1  ;;  %v7074_v51 = vpop.f32.mrb[237].mxu0 }
 0x2cf   :  { %v6987_v12 = vadd.f32 %v6986_v32, %v6985_v26  ;;  %v7075_v40 = vadd.f32 %v7074_v51, %v7073_v50  ;;  %v6988_v34 = vpop.f32.mrb[238].mxu1  ;;  %v7076_v0 = vpop.f32.mrb[238].mxu0 }
 0x2d0   :  { %v6989_v35 = vpop.f32.mrb[239].mxu1  ;;  %v7077_v24 = vpop.f32.mrb[239].mxu0 }
 0x2d1   :  { %v4814_v27 = vadd.f32 %v6987_v12, %v9834_v37  ;;  %v10001_v60 = vadd.f32 %v7075_v40, %v4806_v56  ;;  %v6990_v29 = vadd.f32 %v6989_v35, %v6988_v34  ;;  %v7078_v11 = vadd.f32 %v7077_v24, %v7076_v0 }
 0x2d3   :  { %v4817_v55 = vadd.f32 %v6990_v29, %v9837_v39  ;;  %v10004_v58 = vadd.f32 %v7078_v11, %v4809_v20 }
 0x2d5   :  { %v6991_v7 = vpop.f32.mrb[240].mxu1  ;;  %v7079_v57 = vpop.f32.mrb[240].mxu0 }
 0x2d6   :  { %v6992_v53 = vpop.f32.mrb[241].mxu1  ;;  %v7080_v30 = vpop.f32.mrb[241].mxu0 }
 0x2d7   :  { %v6993_v61 = vadd.f32 %v6992_v53, %v6991_v7  ;;  %v7081_v42 = vadd.f32 %v7080_v30, %v7079_v57  ;;  %v6994_v33 = vpop.f32.mrb[242].mxu1  ;;  %v7082_v31 = vpop.f32.mrb[242].mxu0 }
 0x2d8   :  { %v6995_v43 = vpop.f32.mrb[243].mxu1  ;;  %v7083_v10 = vpop.f32.mrb[243].mxu0 }
 0x2d9   :  { %v4822_v37 = vadd.f32 %v6993_v61, %v9851_v4  ;;  %v10007_v8 = vadd.f32 %v7081_v42, %v4814_v27  ;;  %v6996_v62 = vadd.f32 %v6995_v43, %v6994_v33  ;;  %v7084_v1 = vadd.f32 %v7083_v10, %v7082_v31 }
 0x2db   :  { %v4825_v39 = vadd.f32 %v6996_v62, %v9854_v21  ;;  %v10010_v44 = vadd.f32 %v7084_v1, %v4817_v55 }
 0x2dd   :  { %v6997_v16 = vpop.f32.mrb[244].mxu1  ;;  %v7085_v52 = vpop.f32.mrb[244].mxu0 }
 0x2de   :  { %v6998_v17 = vpop.f32.mrb[245].mxu1  ;;  %v7086_v22 = vpop.f32.mrb[245].mxu0 }
 0x2df   :  { %v6999_v13 = vadd.f32 %v6998_v17, %v6997_v16  ;;  %v7087_v38 = vadd.f32 %v7086_v22, %v7085_v52  ;;  %v7000_v36 = vpop.f32.mrb[246].mxu1  ;;  %v7088_v6 = vpop.f32.mrb[246].mxu0 }
 0x2e0   :  { %v7001_v56 = vpop.f32.mrb[247].mxu1  ;;  %v7089_v63 = vpop.f32.mrb[247].mxu0 }
 0x2e1   :  { %v4830_v4 = vadd.f32 %v6999_v13, %v9868_v15  ;;  %v10013_v20 = vadd.f32 %v7087_v38, %v4822_v37  ;;  %v7002_v26 = vadd.f32 %v7001_v56, %v7000_v36  ;;  %v7090_v50 = vadd.f32 %v7089_v63, %v7088_v6 }
 0x2e3   :  { %v4833_v21 = vadd.f32 %v7002_v26, %v9871_v47  ;;  %v10016_v32 = vadd.f32 %v7090_v50, %v4825_v39 }
 0x2e5   :  { %v7003_v51 = vpop.f32.mrb[248].mxu1  ;;  %v7091_v12 = vpop.f32.mrb[248].mxu0 }
 0x2e6   :  { %v7004_v40 = vpop.f32.mrb[249].mxu1  ;;  %v7092_v34 = vpop.f32.mrb[249].mxu0 }
 0x2e7   :  { %v7005_v0 = vadd.f32 %v7004_v40, %v7003_v51  ;;  %v7093_v35 = vadd.f32 %v7092_v34, %v7091_v12  ;;  %v7006_v24 = vpop.f32.mrb[250].mxu1  ;;  %v7094_v27 = vpop.f32.mrb[250].mxu0 }
 0x2e8   :  { %v7007_v29 = vpop.f32.mrb[251].mxu1  ;;  %v7095_v11 = vpop.f32.mrb[251].mxu0 }
 0x2e9   :  { %v4838_v15 = vadd.f32 %v7005_v0, %v9885_v45  ;;  %v10019_v55 = vadd.f32 %v7093_v35, %v4830_v4  ;;  %v7008_v7 = vadd.f32 %v7007_v29, %v7006_v24  ;;  %v7096_v57 = vadd.f32 %v7095_v11, %v7094_v27 }
 0x2eb   :  { %v4841_v47 = vadd.f32 %v7008_v7, %v9888_v46  ;;  %v10022_v53 = vadd.f32 %v7096_v57, %v4833_v21 }
 0x2ed   :  { %v7009_v30 = vpop.f32.mrb[252].mxu1  ;;  %v7097_v61 = vpop.f32.mrb[252].mxu0 }
 0x2ee   :  { %v7010_v42 = vpop.f32.mrb[253].mxu1  ;;  %v7098_v33 = vpop.f32.mrb[253].mxu0 }
 0x2ef   :  { %v7011_v31 = vadd.f32 %v7010_v42, %v7009_v30  ;;  %v7099_v43 = vadd.f32 %v7098_v33, %v7097_v61  ;;  %v7012_v10 = vpop.f32.mrb[254].mxu1  ;;  %v7100_v37 = vpop.f32.mrb[254].mxu0 }
 0x2f0   :  { %v7013_v62 = vpop.f32.mrb[255].mxu1  ;;  %v7101_v1 = vpop.f32.mrb[255].mxu0 }
 0x2f1   :  { %v4846_v45 = vadd.f32 %v7011_v31, %v9902_v49  ;;  %v10025_v39 = vadd.f32 %v7099_v43, %v4838_v15  ;;  %v7014_v16 = vadd.f32 %v7013_v62, %v7012_v10  ;;  %v7102_v52 = vadd.f32 %v7101_v1, %v7100_v37 }
 0x2f3   :  { %v4849_v46 = vadd.f32 %v7014_v16, %v9905_v18  ;;  %v10028_v17 = vadd.f32 %v7102_v52, %v4841_v47 }
 0x2f5   :  { %v7015_v22 = vpop.f32.mrb[0].mxu1  ;;  %v7103_v13 = vpop.f32.mrb[0].mxu0 }
 0x2f6   :  { %v7016_v38 = vpop.f32.mrb[1].mxu1  ;;  %v7104_v36 = vpop.f32.mrb[1].mxu0 }
 0x2f7   :  { %v7017_v6 = vadd.f32 %v7016_v38, %v7015_v22  ;;  %v7105_v56 = vadd.f32 %v7104_v36, %v7103_v13  ;;  %v7018_v63 = vpop.f32.mrb[2].mxu1  ;;  %v7106_v4 = vpop.f32.mrb[2].mxu0 }
 0x2f8   :  { %v7019_v26 = vpop.f32.mrb[3].mxu1  ;;  %v7107_v50 = vpop.f32.mrb[3].mxu0 }
 0x2f9   :  { %v4854_v49 = vadd.f32 %v7017_v6, %v9919_v25  ;;  %v10031_v21 = vadd.f32 %v7105_v56, %v4846_v45  ;;  %v7020_v51 = vadd.f32 %v7019_v26, %v7018_v63  ;;  %v7108_v12 = vadd.f32 %v7107_v50, %v7106_v4 }
 0x2fb   :  { %v4857_v18 = vadd.f32 %v7020_v51, %v9922_v3  ;;  %v10034_v40 = vadd.f32 %v7108_v12, %v4849_v46 }
 0x2fd   :  { %v7021_v34 = vpop.f32.mrb[4].mxu1  ;;  %v7109_v0 = vpop.f32.mrb[4].mxu0 }
 0x2fe   :  { %v7022_v35 = vpop.f32.mrb[5].mxu1  ;;  %v7110_v24 = vpop.f32.mrb[5].mxu0 }
 0x2ff   :  { %v7023_v27 = vadd.f32 %v7022_v35, %v7021_v34  ;;  %v7111_v29 = vadd.f32 %v7110_v24, %v7109_v0  ;;  %v7024_v11 = vpop.f32.mrb[6].mxu1  ;;  %v7112_v15 = vpop.f32.mrb[6].mxu0 }
 0x300   :  { %v7025_v7 = vpop.f32.mrb[7].mxu1  ;;  %v7113_v57 = vpop.f32.mrb[7].mxu0 }
 0x301   :  { %v4862_v25 = vadd.f32 %v7023_v27, %v9936_v48  ;;  %v10037_v47 = vadd.f32 %v7111_v29, %v4854_v49  ;;  %v7026_v30 = vadd.f32 %v7025_v7, %v7024_v11  ;;  %v7114_v61 = vadd.f32 %v7113_v57, %v7112_v15 }
 0x303   :  { %v4865_v3 = vadd.f32 %v7026_v30, %v9939_v23  ;;  %v10040_v42 = vadd.f32 %v7114_v61, %v4857_v18 }
 0x305   :  { %v7027_v33 = vpop.f32.mrb[8].mxu1  ;;  %v7115_v31 = vpop.f32.mrb[8].mxu0 }
 0x306   :  { %v7028_v43 = vpop.f32.mrb[9].mxu1  ;;  %v7116_v10 = vpop.f32.mrb[9].mxu0 }
 0x307   :  { %v7029_v37 = vadd.f32 %v7028_v43, %v7027_v33  ;;  %v7117_v62 = vadd.f32 %v7116_v10, %v7115_v31  ;;  %v7030_v1 = vpop.f32.mrb[10].mxu1  ;;  %v7118_v45 = vpop.f32.mrb[10].mxu0 }
 0x308   :  { %v7031_v16 = vpop.f32.mrb[11].mxu1  ;;  %v7119_v52 = vpop.f32.mrb[11].mxu0 }
 0x309   :  { %v4870_v48 = vadd.f32 %v7029_v37, %v9953_v28  ;;  %v10043_v46 = vadd.f32 %v7117_v62, %v4862_v25  ;;  %v7032_v22 = vadd.f32 %v7031_v16, %v7030_v1  ;;  %v7120_v13 = vadd.f32 %v7119_v52, %v7118_v45 }
 0x30b   :  { %v4873_v23 = vadd.f32 %v7032_v22, %v9956_v2  ;;  %v10046_v38 = vadd.f32 %v7120_v13, %v4865_v3 }
 0x30d   :  { %v7033_v36 = vpop.f32.mrb[12].mxu1  ;;  %v7121_v6 = vpop.f32.mrb[12].mxu0 }
 0x30e   :  { %v7034_v56 = vpop.f32.mrb[13].mxu1  ;;  %v7122_v63 = vpop.f32.mrb[13].mxu0 }
 0x30f   :  { %v7035_v4 = vadd.f32 %v7034_v56, %v7033_v36  ;;  %v7123_v26 = vadd.f32 %v7122_v63, %v7121_v6  ;;  %v7036_v50 = vpop.f32.mrb[14].mxu1  ;;  %v7124_v49 = vpop.f32.mrb[14].mxu0 }
 0x310   :  { %v7037_v51 = vpop.f32.mrb[15].mxu1  ;;  %v7125_v12 = vpop.f32.mrb[15].mxu0 }
 0x311   :  { %v4878_v28 = vadd.f32 %v7035_v4, %v9970_v19  ;;  %v10049_v18 = vadd.f32 %v7123_v26, %v4870_v48  ;;  %v7038_v34 = vadd.f32 %v7037_v51, %v7036_v50  ;;  %v7126_v0 = vadd.f32 %v7125_v12, %v7124_v49 }
 0x313   :  { %v4881_v2 = vadd.f32 %v7038_v34, %v9973_v5  ;;  %v10052_v35 = vadd.f32 %v7126_v0, %v4873_v23 }
 0x315   :  { %v7039_v24 = vpop.f32.mrb[16].mxu1  ;;  %v7127_v27 = vpop.f32.mrb[16].mxu0 }
 0x316   :  { %v7040_v29 = vpop.f32.mrb[17].mxu1  ;;  %v7128_v11 = vpop.f32.mrb[17].mxu0 }
 0x317   :  { %v7041_v15 = vadd.f32 %v7040_v29, %v7039_v24  ;;  %v7129_v7 = vadd.f32 %v7128_v11, %v7127_v27  ;;  %v7042_v57 = vpop.f32.mrb[18].mxu1  ;;  %v7130_v25 = vpop.f32.mrb[18].mxu0 }
 0x318   :  { %v7043_v30 = vpop.f32.mrb[19].mxu1  ;;  %v7131_v61 = vpop.f32.mrb[19].mxu0 }
 0x319   :  { %v4886_v19 = vadd.f32 %v7041_v15, %v9981_v59  ;;  %v10055_v3 = vadd.f32 %v7129_v7, %v4878_v28  ;;  %v7044_v33 = vadd.f32 %v7043_v30, %v7042_v57  ;;  %v7132_v31 = vadd.f32 %v7131_v61, %v7130_v25 }
 0x31b   :  { %v4889_v5 = vadd.f32 %v7044_v33, %v9984_v54  ;;  %v10058_v43 = vadd.f32 %v7132_v31, %v4881_v2 }
 0x31d   :  { %v7045_v10 = vpop.f32.mrb[20].mxu1  ;;  %v7133_v37 = vpop.f32.mrb[20].mxu0 }
 0x31e   :  { %v7046_v62 = vpop.f32.mrb[21].mxu1  ;;  %v7134_v1 = vpop.f32.mrb[21].mxu0 }
 0x31f   :  { %v7047_v45 = vadd.f32 %v7046_v62, %v7045_v10  ;;  %v7135_v16 = vadd.f32 %v7134_v1, %v7133_v37  ;;  %v7048_v52 = vpop.f32.mrb[22].mxu1  ;;  %v7136_v48 = vpop.f32.mrb[22].mxu0 }
 0x320   :  { %v7049_v22 = vpop.f32.mrb[23].mxu1  ;;  %v7137_v13 = vpop.f32.mrb[23].mxu0 }
 0x321   :  { %v4894_v59 = vadd.f32 %v7047_v45, %v9992_v41  ;;  %v10061_v23 = vadd.f32 %v7135_v16, %v4886_v19  ;;  %v7050_v36 = vadd.f32 %v7049_v22, %v7048_v52  ;;  %v7138_v6 = vadd.f32 %v7137_v13, %v7136_v48 }
 0x323   :  { %v4897_v54 = vadd.f32 %v7050_v36, %v9994_v9  ;;  %v10064_v56 = vadd.f32 %v7138_v6, %v4889_v5 }
 0x325   :  { %v7051_v63 = vpop.f32.mrb[24].mxu1  ;;  %v7139_v4 = vpop.f32.mrb[24].mxu0 }
 0x326   :  { %v7052_v26 = vpop.f32.mrb[25].mxu1  ;;  %v7140_v50 = vpop.f32.mrb[25].mxu0 }
 0x327   :  { %v7053_v49 = vadd.f32 %v7052_v26, %v7051_v63  ;;  %v7141_v51 = vadd.f32 %v7140_v50, %v7139_v4  ;;  %v7142_v12 = vpop.f32.mrb[26].mxu0  ;;  %v7054_v28 = vpop.f32.mrb[26].mxu1 }
 0x328   :  { %v7143_v34 = vpop.f32.mrb[27].mxu0  ;;  %v7055_v0 = vpop.f32.mrb[27].mxu1 }
 0x329   :  { %v4902_v41 = vadd.f32 %v7053_v49, %v9996_v14  ;;  %v10067_v2 = vadd.f32 %v7141_v51, %v4894_v59  ;;  %v7144_v24 = vadd.f32 %v7143_v34, %v7142_v12 }
 0x32b   :  { %v10069_v27 = vadd.f32 %v7144_v24, %v4897_v54 }
 0x32d   :  { %v7145_v9 = vpop.f32.mrb[28].mxu0  ;;  %v7167_v29 = vpop.f32.mrb[28].mxu1 }
 0x32e   :  { %v7146_v11 = vpop.f32.mrb[29].mxu0  ;;  %v7168_v15 = vpop.f32.mrb[29].mxu1 }
 0x32f   :  { %v7147_v7 = vadd.f32 %v7146_v11, %v7145_v9  ;;  %v7169_v57 = vadd.f32 %v7168_v15, %v7167_v29  ;;  %v7148_v25 = vpop.f32.mrb[30].mxu0  ;;  %v7170_v30 = vpop.f32.mrb[30].mxu1 }
 0x330   :  { %v7149_v61 = vpop.f32.mrb[31].mxu0  ;;  %v7171_v19 = vpop.f32.mrb[31].mxu1 }
 0x331   :  { %v10071_v33 = vadd.f32 %v7147_v7, %v4902_v41  ;;  %v7172_v31 = vadd.f32 %v7171_v19, %v7170_v30  ;;  %v5078_v14 = vadd.f32 %v7169_v57, %v10001_v60 }
 0x333   :  { %v5081_v5 = vadd.f32 %v7172_v31, %v10004_v58 }
 0x335   :  { %v7173_v10 = vpop.f32.mrb[32].mxu1  ;;  %v5213_v37 = vpop.f32.mrb[32].mxu0 }
 0x336   :  { %v5214_v62 = vadd.f32 %v5213_v37, %v5078_v14  ;;  %v7174_v1 = vpop.f32.mrb[33].mxu1  ;;  %v7284_v45 = vpop.f32.mrb[33].mxu0 }
 0x337   :  { %v7175_v16 = vadd.f32 %v7174_v1, %v7173_v10  ;;  %v7176_v52 = vpop.f32.mrb[34].mxu1  ;;  %v5216_v48 = vpop.f32.mrb[34].mxu0 }
 0x338   :  { %v5217_v22 = vadd.f32 %v5216_v48, %v5081_v5  ;;  %v7177_v13 = vpop.f32.mrb[35].mxu1  ;;  %v7285_v59 = vpop.f32.mrb[35].mxu0  ;;  %v5315_v54 = vmax.f32 %v5214_v62, 0.0 }
 0x339   :  { %v7178_v36 = vadd.f32 %v7177_v13, %v7176_v52  ;;  %v5086_v6 = vadd.f32 %v7175_v16, %v10007_v8 }
 0x33a   :  { %v5316_v63 = vmax.f32 %v5217_v22, 0.0 }
 0x33b   :  { %v5089_v60 = vadd.f32 %v7178_v36, %v10010_v44 }
 0x33c   :  { %v6049_v4 = vpack.c.bf16 %v5316_v63, %v5315_v54 }
 0x33d   :  { %v7179_v58 = vpop.f32.mrb[36].mxu1  ;;  %v5221_v26 = vpop.f32.mrb[36].mxu0 }
 0x33e   :  { %6050 = vst [vmem:[%s10140_s3] sm:$0xff] %v6049_v4   ;;  %v5222_v50 = vadd.f32 %v5221_v26, %v5086_v6  ;;  %v7180_v49 = vpop.f32.mrb[37].mxu1  ;;  %v7288_v51 = vpop.f32.mrb[37].mxu0 }
 0x33f   :  { %v7181_v12 = vadd.f32 %v7180_v49, %v7179_v58  ;;  %v7182_v28 = vpop.f32.mrb[38].mxu1  ;;  %v5224_v34 = vpop.f32.mrb[38].mxu0 }
 0x340   :  { %v5225_v0 = vadd.f32 %v5224_v34, %v5089_v60  ;;  %v7183_v41 = vpop.f32.mrb[39].mxu1  ;;  %v7289_v8 = vpop.f32.mrb[39].mxu0  ;;  %v5317_v44 = vmax.f32 %v5222_v50, 0.0 }
 0x341   :  { %v7184_v24 = vadd.f32 %v7183_v41, %v7182_v28  ;;  %v5094_v9 = vadd.f32 %v7181_v12, %v10013_v20 }
 0x342   :  { %v5318_v29 = vmax.f32 %v5225_v0, 0.0 }
 0x343   :  { %v5097_v11 = vadd.f32 %v7184_v24, %v10016_v32 }
 0x344   :  { %v6054_v15 = vpack.c.bf16 %v5318_v29, %v5317_v44 }
 0x345   :  { %v7185_v7 = vpop.f32.mrb[40].mxu1  ;;  %v5229_v57 = vpop.f32.mrb[40].mxu0 }
 0x346   :  { %6106 = vst [vmem:[%s10140_s3 + $0x8] sm:$0xff] %v6054_v15   ;;  %v5230_v25 = vadd.f32 %v5229_v57, %v5094_v9  ;;  %v7186_v30 = vpop.f32.mrb[41].mxu1  ;;  %v7292_v61 = vpop.f32.mrb[41].mxu0 }
 0x347   :  { %v7187_v19 = vadd.f32 %v7186_v30, %v7185_v7  ;;  %v7188_v31 = vpop.f32.mrb[42].mxu1  ;;  %v5232_v14 = vpop.f32.mrb[42].mxu0 }
 0x348   :  { %v5233_v5 = vadd.f32 %v5232_v14, %v5097_v11  ;;  %v7189_v10 = vpop.f32.mrb[43].mxu1  ;;  %v7293_v20 = vpop.f32.mrb[43].mxu0  ;;  %v5319_v32 = vmax.f32 %v5230_v25, 0.0 }
 0x349   :  { %v7190_v37 = vadd.f32 %v7189_v10, %v7188_v31  ;;  %v5102_v62 = vadd.f32 %v7187_v19, %v10019_v55 }
 0x34a   :  { %v5320_v1 = vmax.f32 %v5233_v5, 0.0 }
 0x34b   :  { %v5105_v45 = vadd.f32 %v7190_v37, %v10022_v53 }
 0x34c   :  { %v6059_v16 = vpack.c.bf16 %v5320_v1, %v5319_v32 }
 0x34d   :  { %v7191_v52 = vpop.f32.mrb[44].mxu1  ;;  %v5237_v48 = vpop.f32.mrb[44].mxu0 }
 0x34e   :  { %6107 = vst [vmem:[%s10140_s3 + $0x10] sm:$0xff] %v6059_v16   ;;  %v5238_v22 = vadd.f32 %v5237_v48, %v5102_v62  ;;  %v7192_v13 = vpop.f32.mrb[45].mxu1  ;;  %v7296_v59 = vpop.f32.mrb[45].mxu0 }
 0x34f   :  { %v7193_v36 = vadd.f32 %v7192_v13, %v7191_v52  ;;  %v7194_v6 = vpop.f32.mrb[46].mxu1  ;;  %v5240_v54 = vpop.f32.mrb[46].mxu0 }
 0x350   :  { %v5241_v63 = vadd.f32 %v5240_v54, %v5105_v45  ;;  %v7195_v60 = vpop.f32.mrb[47].mxu1  ;;  %v7297_v55 = vpop.f32.mrb[47].mxu0  ;;  %v5321_v53 = vmax.f32 %v5238_v22, 0.0 }
 0x351   :  { %v7196_v4 = vadd.f32 %v7195_v60, %v7194_v6  ;;  %v5110_v58 = vadd.f32 %v7193_v36, %v10025_v39 }
 0x352   :  { %v5322_v26 = vmax.f32 %v5241_v63, 0.0 }
 0x353   :  { %v5113_v50 = vadd.f32 %v7196_v4, %v10028_v17 }
 0x354   :  { %v6064_v49 = vpack.c.bf16 %v5322_v26, %v5321_v53 }
 0x355   :  { %v7197_v51 = vpop.f32.mrb[48].mxu1  ;;  %v5245_v12 = vpop.f32.mrb[48].mxu0 }
 0x356   :  { %6108 = vst [vmem:[%s10140_s3 + $0x18] sm:$0xff] %v6064_v49   ;;  %v5246_v28 = vadd.f32 %v5245_v12, %v5110_v58  ;;  %v7198_v34 = vpop.f32.mrb[49].mxu1  ;;  %v7300_v0 = vpop.f32.mrb[49].mxu0 }
 0x357   :  { %v7199_v41 = vadd.f32 %v7198_v34, %v7197_v51  ;;  %v7200_v8 = vpop.f32.mrb[50].mxu1  ;;  %v5248_v24 = vpop.f32.mrb[50].mxu0 }
 0x358   :  { %v5249_v9 = vadd.f32 %v5248_v24, %v5113_v50  ;;  %v7201_v44 = vpop.f32.mrb[51].mxu1  ;;  %v7301_v39 = vpop.f32.mrb[51].mxu0  ;;  %v5323_v17 = vmax.f32 %v5246_v28, 0.0 }
 0x359   :  { %v7202_v29 = vadd.f32 %v7201_v44, %v7200_v8  ;;  %v5118_v11 = vadd.f32 %v7199_v41, %v10031_v21 }
 0x35a   :  { %v5324_v15 = vmax.f32 %v5249_v9, 0.0 }
 0x35b   :  { %v5121_v7 = vadd.f32 %v7202_v29, %v10034_v40 }
 0x35c   :  { %v6069_v57 = vpack.c.bf16 %v5324_v15, %v5323_v17 }
 0x35d   :  { %v7203_v25 = vpop.f32.mrb[52].mxu1  ;;  %v5253_v30 = vpop.f32.mrb[52].mxu0 }
 0x35e   :  { %6109 = vst [vmem:[%s10140_s3 + $0x20] sm:$0xff] %v6069_v57   ;;  %v5254_v61 = vadd.f32 %v5253_v30, %v5118_v11  ;;  %v7204_v19 = vpop.f32.mrb[53].mxu1  ;;  %v7304_v31 = vpop.f32.mrb[53].mxu0 }
 0x35f   :  { %v7205_v14 = vadd.f32 %v7204_v19, %v7203_v25  ;;  %v7206_v5 = vpop.f32.mrb[54].mxu1  ;;  %v5256_v10 = vpop.f32.mrb[54].mxu0 }
 0x360   :  { %v5257_v20 = vadd.f32 %v5256_v10, %v5121_v7  ;;  %v7207_v37 = vpop.f32.mrb[55].mxu1  ;;  %v7305_v21 = vpop.f32.mrb[55].mxu0  ;;  %v5325_v40 = vmax.f32 %v5254_v61, 0.0 }
 0x361   :  { %v7208_v62 = vadd.f32 %v7207_v37, %v7206_v5  ;;  %v5126_v32 = vadd.f32 %v7205_v14, %v10037_v47 }
 0x362   :  { %v5326_v1 = vmax.f32 %v5257_v20, 0.0 }
 0x363   :  { %v5129_v45 = vadd.f32 %v7208_v62, %v10040_v42 }
 0x364   :  { %v6074_v16 = vpack.c.bf16 %v5326_v1, %v5325_v40 }
 0x365   :  { %v7209_v52 = vpop.f32.mrb[56].mxu1  ;;  %v5261_v48 = vpop.f32.mrb[56].mxu0 }
 0x366   :  { %6110 = vst [vmem:[%s10140_s3 + $0x28] sm:$0xff] %v6074_v16   ;;  %v5262_v22 = vadd.f32 %v5261_v48, %v5126_v32  ;;  %v7210_v13 = vpop.f32.mrb[57].mxu1  ;;  %v7308_v59 = vpop.f32.mrb[57].mxu0 }
 0x367   :  { %v7211_v36 = vadd.f32 %v7210_v13, %v7209_v52  ;;  %v7212_v6 = vpop.f32.mrb[58].mxu1  ;;  %v5264_v54 = vpop.f32.mrb[58].mxu0 }
 0x368   :  { %v5265_v63 = vadd.f32 %v5264_v54, %v5129_v45  ;;  %v7213_v60 = vpop.f32.mrb[59].mxu1  ;;  %v7309_v47 = vpop.f32.mrb[59].mxu0  ;;  %v5327_v42 = vmax.f32 %v5262_v22, 0.0 }
 0x369   :  { %v7214_v55 = vadd.f32 %v7213_v60, %v7212_v6  ;;  %v5134_v4 = vadd.f32 %v7211_v36, %v10043_v46 }
 0x36a   :  { %v5328_v58 = vmax.f32 %v5265_v63, 0.0 }
 0x36b   :  { %v5137_v53 = vadd.f32 %v7214_v55, %v10046_v38 }
 0x36c   :  { %v6079_v26 = vpack.c.bf16 %v5328_v58, %v5327_v42 }
 0x36d   :  { %v7215_v50 = vpop.f32.mrb[60].mxu1  ;;  %v5269_v49 = vpop.f32.mrb[60].mxu0 }
 0x36e   :  { %6111 = vst [vmem:[%s10140_s3 + $0x30] sm:$0xff] %v6079_v26   ;;  %v5270_v51 = vadd.f32 %v5269_v49, %v5134_v4  ;;  %v7216_v12 = vpop.f32.mrb[61].mxu1  ;;  %v7312_v28 = vpop.f32.mrb[61].mxu0 }
 0x36f   :  { %v7217_v34 = vadd.f32 %v7216_v12, %v7215_v50  ;;  %v7218_v0 = vpop.f32.mrb[62].mxu1  ;;  %v5272_v41 = vpop.f32.mrb[62].mxu0 }
 0x370   :  { %v5273_v8 = vadd.f32 %v5272_v41, %v5137_v53  ;;  %v7219_v24 = vpop.f32.mrb[63].mxu1  ;;  %v7313_v46 = vpop.f32.mrb[63].mxu0  ;;  %v5329_v38 = vmax.f32 %v5270_v51, 0.0 }
 0x371   :  { %v7220_v9 = vadd.f32 %v7219_v24, %v7218_v0  ;;  %v5142_v44 = vadd.f32 %v7217_v34, %v10049_v18 }
 0x372   :  { %v5330_v39 = vmax.f32 %v5273_v8, 0.0 }
 0x373   :  { %v5145_v29 = vadd.f32 %v7220_v9, %v10052_v35 }
 0x374   :  { %v6084_v11 = vpack.c.bf16 %v5330_v39, %v5329_v38 }
 0x375   :  { %v7221_v17 = vpop.f32.mrb[64].mxu1  ;;  %v5277_v15 = vpop.f32.mrb[64].mxu0 }
 0x376   :  { %6112 = vst [vmem:[%s10140_s3 + $0x38] sm:$0xff] %v6084_v11   ;;  %v5278_v7 = vadd.f32 %v5277_v15, %v5142_v44  ;;  %v7222_v57 = vpop.f32.mrb[65].mxu1  ;;  %v7316_v25 = vpop.f32.mrb[65].mxu0 }
 0x377   :  { %v7223_v30 = vadd.f32 %v7222_v57, %v7221_v17  ;;  %v7224_v61 = vpop.f32.mrb[66].mxu1  ;;  %v5280_v19 = vpop.f32.mrb[66].mxu0 }
 0x378   :  { %v5281_v31 = vadd.f32 %v5280_v19, %v5145_v29  ;;  %v7225_v14 = vpop.f32.mrb[67].mxu1  ;;  %v7317_v18 = vpop.f32.mrb[67].mxu0  ;;  %v5331_v35 = vmax.f32 %v5278_v7, 0.0 }
 0x379   :  { %v7226_v5 = vadd.f32 %v7225_v14, %v7224_v61  ;;  %v5150_v10 = vadd.f32 %v7223_v30, %v10055_v3 }
 0x37a   :  { %v5332_v20 = vmax.f32 %v5281_v31, 0.0 }
 0x37b   :  { %v5153_v37 = vadd.f32 %v7226_v5, %v10058_v43 }
 0x37c   :  { %v6089_v21 = vpack.c.bf16 %v5332_v20, %v5331_v35 }
 0x37d   :  { %v7227_v62 = vpop.f32.mrb[68].mxu1  ;;  %v5285_v32 = vpop.f32.mrb[68].mxu0 }
 0x37e   :  { %6113 = vst [vmem:[%s10140_s3 + $0x40] sm:$0xff] %v6089_v21   ;;  %v5286_v40 = vadd.f32 %v5285_v32, %v5150_v10  ;;  %v7228_v1 = vpop.f32.mrb[69].mxu1  ;;  %v7320_v45 = vpop.f32.mrb[69].mxu0 }
 0x37f   :  { %v7229_v16 = vadd.f32 %v7228_v1, %v7227_v62  ;;  %v7230_v52 = vpop.f32.mrb[70].mxu1  ;;  %v5288_v48 = vpop.f32.mrb[70].mxu0 }
 0x380   :  { %v5289_v22 = vadd.f32 %v5288_v48, %v5153_v37  ;;  %v7231_v13 = vpop.f32.mrb[71].mxu1  ;;  %v7321_v3 = vpop.f32.mrb[71].mxu0  ;;  %v5333_v43 = vmax.f32 %v5286_v40, 0.0 }
 0x381   :  { %v7232_v59 = vadd.f32 %v7231_v13, %v7230_v52  ;;  %v5158_v36 = vadd.f32 %v7229_v16, %v10061_v23 }
 0x382   :  { %v5334_v6 = vmax.f32 %v5289_v22, 0.0 }
 0x383   :  { %v5161_v54 = vadd.f32 %v7232_v59, %v10064_v56 }
 0x384   :  { %v6094_v63 = vpack.c.bf16 %v5334_v6, %v5333_v43 }
 0x385   :  { %v7233_v60 = vpop.f32.mrb[72].mxu1  ;;  %v5293_v47 = vpop.f32.mrb[72].mxu0 }
 0x386   :  { %6114 = vst [vmem:[%s10140_s3 + $0x48] sm:$0xff] %v6094_v63   ;;  %v5294_v55 = vadd.f32 %v5293_v47, %v5158_v36  ;;  %v7234_v4 = vpop.f32.mrb[73].mxu1  ;;  %v7324_v42 = vpop.f32.mrb[73].mxu0 }
 0x387   :  { %v7235_v58 = vadd.f32 %v7234_v4, %v7233_v60  ;;  %v7236_v53 = vpop.f32.mrb[74].mxu1  ;;  %v5296_v26 = vpop.f32.mrb[74].mxu0 }
 0x388   :  { %v5297_v50 = vadd.f32 %v5296_v26, %v5161_v54  ;;  %v7237_v49 = vpop.f32.mrb[75].mxu1  ;;  %v7325_v23 = vpop.f32.mrb[75].mxu0  ;;  %v5335_v56 = vmax.f32 %v5294_v55, 0.0 }
 0x389   :  { %v7238_v51 = vadd.f32 %v7237_v49, %v7236_v53  ;;  %v5166_v12 = vadd.f32 %v7235_v58, %v10067_v2 }
 0x38a   :  { %v5336_v28 = vmax.f32 %v5297_v50, 0.0 }
 0x38b   :  { %v5169_v34 = vadd.f32 %v7238_v51, %v10069_v27 }
 0x38c   :  { %v6099_v0 = vpack.c.bf16 %v5336_v28, %v5335_v56 }
 0x38d   :  { %v7239_v41 = vpop.f32.mrb[76].mxu1  ;;  %v5301_v8 = vpop.f32.mrb[76].mxu0 }
 0x38e   :  { %6115 = vst [vmem:[%s10140_s3 + $0x50] sm:$0xff] %v6099_v0   ;;  %v5302_v24 = vadd.f32 %v5301_v8, %v5166_v12  ;;  %v7240_v46 = vpop.f32.mrb[77].mxu1  ;;  %v7328_v9 = vpop.f32.mrb[77].mxu0 }
 0x38f   :  { %v7241_v44 = vadd.f32 %v7240_v46, %v7239_v41  ;;  %v5304_v38 = vpop.f32.mrb[78].mxu0  ;;  %v7242_v39 = vpop.f32.mrb[78].mxu1 }
 0x390   :  { %v5305_v29 = vadd.f32 %v5304_v38, %v5169_v34  ;;  %v7329_v11 = vpop.f32.mrb[79].mxu0  ;;  %v7243_v2 = vpop.f32.mrb[79].mxu1  ;;  %v5337_v15 = vmax.f32 %v5302_v24, 0.0 }
 0x391   :  { %v5174_v17 = vadd.f32 %v7241_v44, %v10071_v33 }
 0x392   :  { %v5338_v27 = vmax.f32 %v5305_v29, 0.0 }
 0x394   :  { %v6104_v7 = vpack.c.bf16 %v5338_v27, %v5337_v15 }
 0x395   :  { %v5309_v57 = vpop.f32.mrb[80].mxu0 }
 0x396   :  { %6116 = vst [vmem:[%s10140_s3 + $0x58] sm:$0xff] %v6104_v7   ;;  %v5310_v25 = vadd.f32 %v5309_v57, %v5174_v17  ;;  %v7332_v30 = vpop.f32.mrb[81].mxu0 }
 0x397   :  { %v5312_v61 = vpop.f32.mrb[82].mxu0 }
 0x398   :  { %v5339_v19 = vmax.f32 %v5310_v25, 0.0  ;;  %v7333_v31 = vpop.f32.mrb[83].mxu0 }
 0x39a   :  { %v6045_v14 = vpack.c.bf16 %v5339_v19, %v5339_v19 }
 0x39c   :  { %5465 = vst [vmem:[%s10140_s3 + $0x60] sm:$0xf] %v6045_v14 }

// kernel: lenet_forward.6
= control target key start
LH: loop header
LB: loop body
LE: loop exit
PB: predicated region body
PF: predicated region fallthrough
CT: control target
= control target key end

     0   :  { %s275_s6 = smov 0   ;;  %s318_s0 = inlined_call_operand.vmem [shape: bf16[10,2,5,256], index: 0, kind: input, shape index: {}]   ;;  %s319_s1 = inlined_call_operand.vmem [shape: bf16[10,5,128], index: 1, kind: output, shape index: {}]  }
   0x1 LB: > { %s233_s7 = sadd.s32 4294967295, %s263_s6   ;;  %p237_p0 = scmp.ge.s32.totalorder %s263_s6, 1  ;;  %s263_s6 = sphi %s275_s6, %s11_s6  }
   0x2   : > { %p89_p1 = scmp.lt.s32.totalorder %s263_s6, 3 }
   0x4   : > { %p90_p2 = pnand %p237_p0, %p89_p1 }
   0x5   : > { %s110_s8 = smul.u32 (!%p90_p2), 5, %s233_s7  ;;  %vm159_vm0 = vcmask (!%p90_p2), 1042432   ;;  %vm160_vm1 = vsmask.f32 (!%p90_p2), 2304 }
   0x6   : > { %93 = sbr.rel (%p90_p2) target bundleno = 28 (0x1c), region = 24  ;;  %vm291_vm2 = vmand (!%p90_p2), %vm159_vm0, %vm160_vm1 }
   0x7   : > { %p111_p3 = scmp.lt.s32.totalorder (!%p90_p2), %s110_s8, 9 }
   0xd   : > { %s323_s8 = smov (!%p111_p3, %s110_s8), 9 }
   0xe   : > { %s248_s9 = sshll.u32 %s323_s8, 4  ;;  %s240_s10 = sshll.u32 %s323_s8, 2 }
   0xf   : > { %s115_s13 = scalar_lea.vmem %s318_s0, %s248_s9  ;;  %s289_s16 = scalar_lea.vmem %s319_s1, %s240_s10 }
  0x10   : > { %v123_v0 = vld [vmem:[%s115_s13] sm:$0x77]  ;;  %v241_v1 = vld [vmem:[%s115_s13 + $0x8] sm:$0x77]  ;;  %v124_v3 = vld [vmem:[%s115_s13 + $0x10] sm:$0x77] }
  0x11   : > { %v134_v2 = vmax.bf16 %v241_v1, %v123_v0  ;;  %v242_v4 = vld [vmem:[%s115_s13 + $0x18] sm:$0x77]  ;;  %v125_v6 = vld [vmem:[%s115_s13 + $0x20] sm:$0x77]  ;;  %v243_v7 = vld [vmem:[%s115_s13 + $0x28] sm:$0x77] }
  0x12   : > { %v135_v5 = vmax.bf16 %v242_v4, %v124_v3  ;;  %v136_v9 = vmax.bf16 %v243_v7, %v125_v6  ;;  %v126_v10 = vld [vmem:[%s115_s13 + $0x30] sm:$0x77]  ;;  %v244_v11 = vld [vmem:[%s115_s13 + $0x38] sm:$0x77]  ;;  %v162_v13 = vld [vmem:[%s289_s16] sm:$0x7] }
  0x13   : > { %v144_v8 = vrot.slane %v134_v2, 4  ;;  %v137_v15 = vmax.bf16 %v244_v11, %v126_v10  ;;  %v127_v16 = vld [vmem:[%s115_s13 + $0x40] sm:$0x77]  ;;  %v245_v20 = vld [vmem:[%s115_s13 + $0x48] sm:$0x77] }
  0x14   : > { %v145_v14 = vrot.slane %v135_v5, 4  ;;  %v165_v18 = vld [vmem:[%s289_s16 + $0x4] sm:$0x7]  ;;  %v146_v19 = vrot.slane %v136_v9, 4  ;;  %v168_v22 = vld [vmem:[%s289_s16 + $0x8] sm:$0x7]  ;;  %v138_v24 = vmax.bf16 %v245_v20, %v127_v16 }
  0x15   : > { %v154_v17 = vmax.bf16 %v144_v8, %v134_v2  ;;  %v147_v23 = vrot.slane %v137_v15, 4  ;;  %v171_v27 = vld [vmem:[%s289_s16 + $0xc] sm:$0x7]  ;;  %v174_v32 = vld [vmem:[%s289_s16 + $0x10] sm:$0x7] }
  0x16   : > { %v155_v21 = vmax.bf16 %v145_v14, %v135_v5  ;;  %v156_v26 = vmax.bf16 %v146_v19, %v136_v9  ;;  %v148_v30 = vrot.slane %v138_v24, 4 }
  0x17   : > { %v163_v25 = vsel %vm291_vm2, %v154_v17, %v162_v13  ;;  %v157_v29 = vmax.bf16 %v147_v23, %v137_v15 }
  0x18   : > { %164 = vst [vmem:[%s289_s16] sm:$0x7] %v163_v25  ;;  %v166_v28 = vsel %vm291_vm2, %v155_v21, %v165_v18  ;;  %v169_v31 = vsel %vm291_vm2, %v156_v26, %v168_v22  ;;  %v158_v34 = vmax.bf16 %v148_v30, %v138_v24 }
  0x19   : > { %167 = vst [vmem:[%s289_s16 + $0x4] sm:$0x7] %v166_v28  ;;  %170 = vst [vmem:[%s289_s16 + $0x8] sm:$0x7] %v169_v31  ;;  %v172_v33 = vsel %vm291_vm2, %v157_v29, %v171_v27 }
  0x1a   : > { %173 = vst [vmem:[%s289_s16 + $0xc] sm:$0x7] %v172_v33  ;;  %v175_v35 = vsel %vm291_vm2, %v158_v34, %v174_v32 }
  0x1b   : > { %176 = vst [vmem:[%s289_s16 + $0x10] sm:$0x7] %v175_v35 }
  0x1c PF: > { %s11_s6 = sadd.s32 1, %s263_s6  }
  0x1d   : > { %p8_p4 = scmp.ge.s32.totalorder %s11_s6, 4  }
  0x1f   :  { %10 = sbr.rel (!%p8_p4) target bundleno = 1 (0x1), region = 55 }

// kernel: lenet_forward.7
= control target key start
LH: loop header
LB: loop body
LE: loop exit
PB: predicated region body
PF: predicated region fallthrough
CT: control target
= control target key end

     0   :  { %s10708_s1 = inlined_call_operand.vmem [shape: bf16[3200,512], index: 1, kind: input, shape index: {}]   ;;  %s10709_s0 = inlined_call_operand.vmem [shape: bf16[8,3200], index: 0, kind: input, shape index: {}]   ;;  %s10710_s2 = inlined_call_operand.vmem [shape: f32[1,512], index: 2, kind: input, shape index: {}]   ;;  %s10711_s3 = inlined_call_operand.vmem [shape: f32[8,512], index: 3, kind: output, shape index: {}]  }
   0x1   :  { %v6942_v0 = vld [vmem:[%s10708_s1 + $0x4] ss:$16 sps:$4 sm:$0xff]   ;;  %v6944_v1 = vld [vmem:[%s10708_s1 + $0xc] ss:$16 sps:$4 sm:$0xff]   ;;  %v6946_v2 = vld [vmem:[%s10708_s1] ss:$16 sps:$4 sm:$0xff]  }
   0x2   :  { %4938 = vmatprep.subr.bf16.mxu0 %v6942_v0  ;;  %v6947_v3 = vld [vmem:[%s10708_s1 + $0x8] ss:$16 sps:$4 sm:$0xff]   ;;  %5471 = vmatprep.subr.bf16.mxu1 %v6944_v1  ;;  %v6948_v4 = vld [vmem:[%s10708_s1 + $0x24] ss:$16 sps:$4 sm:$0xff]   ;;  %v6950_v5 = vld [vmem:[%s10708_s1 + $0x2c] ss:$16 sps:$4 sm:$0xff]  }
   0x3   :  { %4939 = vmatpush1.bf16.msra.mxu0 %v6946_v2  ;;  %5472 = vmatpush1.bf16.msra.mxu1 %v6947_v3  ;;  %v6952_v6 = vld [vmem:[%s10708_s1 + $0x20] ss:$16 sps:$4 sm:$0xff]   ;;  %v6953_v7 = vld [vmem:[%s10708_s1 + $0x28] ss:$16 sps:$4 sm:$0xff]   ;;  %v6954_v8 = vld [vmem:[%s10708_s1 + $0x44] ss:$16 sps:$4 sm:$0xff]  }
   0x4   :  { %4940 = vmatprep.subr.bf16.mxu0 %v6948_v4  ;;  %5473 = vmatprep.subr.bf16.mxu1 %v6950_v5  ;;  %v6956_v9 = vld [vmem:[%s10708_s1 + $0x4c] ss:$16 sps:$4 sm:$0xff]   ;;  %v6958_v10 = vld [vmem:[%s10708_s1 + $0x40] ss:$16 sps:$4 sm:$0xff]   ;;  %v6959_v11 = vld [vmem:[%s10708_s1 + $0x48] ss:$16 sps:$4 sm:$0xff]  }
   0x5   :  { %v6960_v12 = vld [vmem:[%s10708_s1 + $0x64] ss:$16 sps:$4 sm:$0xff]   ;;  %v6962_v13 = vld [vmem:[%s10708_s1 + $0x6c] ss:$16 sps:$4 sm:$0xff]   ;;  %v6964_v14 = vld [vmem:[%s10708_s1 + $0x60] ss:$16 sps:$4 sm:$0xff]  }
   0x6   :  { %v6965_v15 = vld [vmem:[%s10708_s1 + $0x68] ss:$16 sps:$4 sm:$0xff]   ;;  %v6966_v16 = vld [vmem:[%s10708_s1 + $0x84] ss:$16 sps:$4 sm:$0xff]   ;;  %v6968_v17 = vld [vmem:[%s10708_s1 + $0x8c] ss:$16 sps:$4 sm:$0xff]  }
   0x7   :  { %4941 = vmatpush1.bf16.msra.mxu0 %v6952_v6  ;;  %5474 = vmatpush1.bf16.msra.mxu1 %v6953_v7  ;;  %v6970_v18 = vld [vmem:[%s10708_s1 + $0x80] ss:$16 sps:$4 sm:$0xff]   ;;  %v6971_v19 = vld [vmem:[%s10708_s1 + $0x88] ss:$16 sps:$4 sm:$0xff]   ;;  %v6972_v20 = vld [vmem:[%s10708_s1 + $0xa4] ss:$16 sps:$4 sm:$0xff]  }
   0x8   :  { %4942 = vmatprep.subr.bf16.mxu0 %v6954_v8  ;;  %5475 = vmatprep.subr.bf16.mxu1 %v6956_v9  ;;  %v6974_v21 = vld [vmem:[%s10708_s1 + $0xac] ss:$16 sps:$4 sm:$0xff]   ;;  %v6976_v22 = vld [vmem:[%s10708_s1 + $0xa0] ss:$16 sps:$4 sm:$0xff]   ;;  %v6977_v23 = vld [vmem:[%s10708_s1 + $0xa8] ss:$16 sps:$4 sm:$0xff]  }
   0x9   :  { %v6978_v24 = vld [vmem:[%s10708_s1 + $0xc4] ss:$16 sps:$4 sm:$0xff]   ;;  %v6980_v25 = vld [vmem:[%s10708_s1 + $0xcc] ss:$16 sps:$4 sm:$0xff]   ;;  %v6982_v26 = vld [vmem:[%s10708_s1 + $0xc0] ss:$16 sps:$4 sm:$0xff]  }
   0xa   :  { %v6983_v27 = vld [vmem:[%s10708_s1 + $0xc8] ss:$16 sps:$4 sm:$0xff]   ;;  %v6984_v28 = vld [vmem:[%s10708_s1 + $0xe4] ss:$16 sps:$4 sm:$0xff]   ;;  %v6986_v29 = vld [vmem:[%s10708_s1 + $0xec] ss:$16 sps:$4 sm:$0xff]  }
   0xb   :  { %4943 = vmatpush1.bf16.msra.mxu0 %v6958_v10  ;;  %5476 = vmatpush1.bf16.msra.mxu1 %v6959_v11  ;;  %v6988_v30 = vld [vmem:[%s10708_s1 + $0xe0] ss:$16 sps:$4 sm:$0xff]   ;;  %v6989_v31 = vld [vmem:[%s10708_s1 + $0xe8] ss:$16 sps:$4 sm:$0xff]   ;;  %v6990_v32 = vld [vmem:[%s10708_s1 + $0x104] ss:$16 sps:$4 sm:$0xff]  }
   0xc   :  { %4944 = vmatprep.subr.bf16.mxu0 %v6960_v12  ;;  %5477 = vmatprep.subr.bf16.mxu1 %v6962_v13  ;;  %v6992_v33 = vld [vmem:[%s10708_s1 + $0x10c] ss:$16 sps:$4 sm:$0xff]   ;;  %v6994_v34 = vld [vmem:[%s10708_s1 + $0x100] ss:$16 sps:$4 sm:$0xff]   ;;  %v6995_v35 = vld [vmem:[%s10708_s1 + $0x108] ss:$16 sps:$4 sm:$0xff]  }
   0xd   :  { %v6996_v36 = vld [vmem:[%s10708_s1 + $0x124] ss:$16 sps:$4 sm:$0xff]   ;;  %v6998_v37 = vld [vmem:[%s10708_s1 + $0x12c] ss:$16 sps:$4 sm:$0xff]   ;;  %v7000_v38 = vld [vmem:[%s10708_s1 + $0x120] ss:$16 sps:$4 sm:$0xff]  }
   0xe   :  { %v7001_v39 = vld [vmem:[%s10708_s1 + $0x128] ss:$16 sps:$4 sm:$0xff]   ;;  %v7002_v40 = vld [vmem:[%s10708_s1 + $0x144] ss:$16 sps:$4 sm:$0xff]   ;;  %v7004_v41 = vld [vmem:[%s10708_s1 + $0x14c] ss:$16 sps:$4 sm:$0xff]  }
   0xf   :  { %4945 = vmatpush1.bf16.msra.mxu0 %v6964_v14  ;;  %5478 = vmatpush1.bf16.msra.mxu1 %v6965_v15  ;;  %v7006_v42 = vld [vmem:[%s10708_s1 + $0x140] ss:$16 sps:$4 sm:$0xff]   ;;  %v7007_v43 = vld [vmem:[%s10708_s1 + $0x148] ss:$16 sps:$4 sm:$0xff]   ;;  %v7008_v44 = vld [vmem:[%s10708_s1 + $0x164] ss:$16 sps:$4 sm:$0xff]  }
  0x10   :  { %4946 = vmatprep.subr.bf16.mxu0 %v6966_v16  ;;  %5479 = vmatprep.subr.bf16.mxu1 %v6968_v17  ;;  %v7010_v45 = vld [vmem:[%s10708_s1 + $0x16c] ss:$16 sps:$4 sm:$0xff]   ;;  %v15_v46 = vld [vmem:[%s10709_s0] sm:$0xff]  ;;  %v7013_v49 = vld [vmem:[%s10708_s1 + $0x168] ss:$16 sps:$4 sm:$0xff]  }
  0x11   :  { %v7012_v47 = vld [vmem:[%s10708_s1 + $0x160] ss:$16 sps:$4 sm:$0xff]   ;;  %v6017_v48 = vcombine.high %v15_v46, %v15_v46  ;;  %v7014_v50 = vld [vmem:[%s10708_s1 + $0x184] ss:$16 sps:$4 sm:$0xff]   ;;  %v7016_v51 = vld [vmem:[%s10708_s1 + $0x18c] ss:$16 sps:$4 sm:$0xff]   ;;  %v6016_v4 = vcombine.low %v15_v46, %v15_v46 }
  0x12   :  { %v7018_v52 = vld [vmem:[%s10708_s1 + $0x180] ss:$16 sps:$4 sm:$0xff]   ;;  %v7019_v53 = vld [vmem:[%s10708_s1 + $0x188] ss:$16 sps:$4 sm:$0xff]   ;;  %v7020_v54 = vld [vmem:[%s10708_s1 + $0x1a4] ss:$16 sps:$4 sm:$0xff]  }
  0x13   :  { %4947 = vmatpush1.bf16.msra.mxu0 %v6970_v18  ;;  %5480 = vmatpush1.bf16.msra.mxu1 %v6971_v19  ;;  %v7022_v55 = vld [vmem:[%s10708_s1 + $0x1ac] ss:$16 sps:$4 sm:$0xff]   ;;  %v7024_v56 = vld [vmem:[%s10708_s1 + $0x1a0] ss:$16 sps:$4 sm:$0xff]   ;;  %v7025_v57 = vld [vmem:[%s10708_s1 + $0x1a8] ss:$16 sps:$4 sm:$0xff]  }
  0x14   :  { %4948 = vmatprep.subr.bf16.mxu0 %v6972_v20  ;;  %5481 = vmatprep.subr.bf16.mxu1 %v6974_v21  ;;  %v7026_v58 = vld [vmem:[%s10708_s1 + $0x1c4] ss:$16 sps:$4 sm:$0xff]   ;;  %v7028_v59 = vld [vmem:[%s10708_s1 + $0x1cc] ss:$16 sps:$4 sm:$0xff]   ;;  %v7030_v60 = vld [vmem:[%s10708_s1 + $0x1c0] ss:$16 sps:$4 sm:$0xff]  }
  0x15   :  { %4970 = vmatprep.mubr.bf16.mxu0 %v6017_v48  ;;  %5503 = vmatprep.mubr.bf16.mxu1 %v6017_v48  ;;  %v7031_v61 = vld [vmem:[%s10708_s1 + $0x1c8] ss:$16 sps:$4 sm:$0xff]   ;;  %v7032_v62 = vld [vmem:[%s10708_s1 + $0x1e4] ss:$16 sps:$4 sm:$0xff]   ;;  %v7034_v63 = vld [vmem:[%s10708_s1 + $0x1ec] ss:$16 sps:$4 sm:$0xff]  }
  0x16   :  { %v7036_v0 = vld [vmem:[%s10708_s1 + $0x1e0] ss:$16 sps:$4 sm:$0xff]   ;;  %v7037_v1 = vld [vmem:[%s10708_s1 + $0x1e8] ss:$16 sps:$4 sm:$0xff]   ;;  %v7042_v2 = vld [vmem:[%s10708_s1 + $0x204] ss:$16 sps:$4 sm:$0xff]  }
  0x17   :  { %4949 = vmatpush1.bf16.msra.mxu0 %v6976_v22  ;;  %5482 = vmatpush1.bf16.msra.mxu1 %v6977_v23  ;;  %v7045_v3 = vld [vmem:[%s10708_s1 + $0x20c] ss:$16 sps:$4 sm:$0xff]   ;;  %v7040_v5 = vld [vmem:[%s10708_s1 + $0x200] ss:$16 sps:$4 sm:$0xff]   ;;  %v7043_v6 = vld [vmem:[%s10708_s1 + $0x208] ss:$16 sps:$4 sm:$0xff]  }
  0x18   :  { %4950 = vmatprep.subr.bf16.mxu0 %v6978_v24  ;;  %5483 = vmatprep.subr.bf16.mxu1 %v6980_v25  ;;  %v7048_v7 = vld [vmem:[%s10708_s1 + $0x224] ss:$16 sps:$4 sm:$0xff]   ;;  %v7051_v8 = vld [vmem:[%s10708_s1 + $0x22c] ss:$16 sps:$4 sm:$0xff]   ;;  %v7046_v9 = vld [vmem:[%s10708_s1 + $0x220] ss:$16 sps:$4 sm:$0xff]  }
  0x19   :  { %v7049_v10 = vld [vmem:[%s10708_s1 + $0x228] ss:$16 sps:$4 sm:$0xff]   ;;  %v7054_v11 = vld [vmem:[%s10708_s1 + $0x244] ss:$16 sps:$4 sm:$0xff]   ;;  %v7057_v12 = vld [vmem:[%s10708_s1 + $0x24c] ss:$16 sps:$4 sm:$0xff]  }
  0x1a   :  { %v7052_v13 = vld [vmem:[%s10708_s1 + $0x240] ss:$16 sps:$4 sm:$0xff]   ;;  %v7055_v14 = vld [vmem:[%s10708_s1 + $0x248] ss:$16 sps:$4 sm:$0xff]   ;;  %v7060_v15 = vld [vmem:[%s10708_s1 + $0x264] ss:$16 sps:$4 sm:$0xff]  }
  0x1b   :  { %4951 = vmatpush1.bf16.msra.mxu0 %v6982_v26  ;;  %5484 = vmatpush1.bf16.msra.mxu1 %v6983_v27  ;;  %v7063_v16 = vld [vmem:[%s10708_s1 + $0x26c] ss:$16 sps:$4 sm:$0xff]   ;;  %v7058_v17 = vld [vmem:[%s10708_s1 + $0x260] ss:$16 sps:$4 sm:$0xff]   ;;  %v7061_v18 = vld [vmem:[%s10708_s1 + $0x268] ss:$16 sps:$4 sm:$0xff]  }
  0x1c   :  { %4952 = vmatprep.subr.bf16.mxu0 %v6984_v28  ;;  %5485 = vmatprep.subr.bf16.mxu1 %v6986_v29  ;;  %v7066_v19 = vld [vmem:[%s10708_s1 + $0x284] ss:$16 sps:$4 sm:$0xff]   ;;  %v7069_v20 = vld [vmem:[%s10708_s1 + $0x28c] ss:$16 sps:$4 sm:$0xff]   ;;  %v7064_v21 = vld [vmem:[%s10708_s1 + $0x280] ss:$16 sps:$4 sm:$0xff]  }
  0x1d   :  { %v7067_v22 = vld [vmem:[%s10708_s1 + $0x288] ss:$16 sps:$4 sm:$0xff]   ;;  %v7072_v23 = vld [vmem:[%s10708_s1 + $0x2a4] ss:$16 sps:$4 sm:$0xff]   ;;  %v7075_v24 = vld [vmem:[%s10708_s1 + $0x2ac] ss:$16 sps:$4 sm:$0xff]  }
  0x1e   :  { %v7070_v25 = vld [vmem:[%s10708_s1 + $0x2a0] ss:$16 sps:$4 sm:$0xff]   ;;  %v7073_v26 = vld [vmem:[%s10708_s1 + $0x2a8] ss:$16 sps:$4 sm:$0xff]   ;;  %v7078_v27 = vld [vmem:[%s10708_s1 + $0x2c4] ss:$16 sps:$4 sm:$0xff]  }
  0x1f   :  { %4953 = vmatpush1.bf16.msra.mxu0 %v6988_v30  ;;  %5486 = vmatpush1.bf16.msra.mxu1 %v6989_v31  ;;  %v7081_v28 = vld [vmem:[%s10708_s1 + $0x2cc] ss:$16 sps:$4 sm:$0xff]   ;;  %v7076_v31 = vld [vmem:[%s10708_s1 + $0x2c0] ss:$16 sps:$4 sm:$0xff]   ;;  %v7103_v48 = vld [vmem:[%s10708_s1 + $0x348] ss:$16 sps:$4 sm:$0xff]  }
  0x20   :  { %4954 = vmatprep.subr.bf16.mxu0 %v6990_v32  ;;  %5487 = vmatprep.subr.bf16.mxu1 %v6992_v33  ;;  %v8464_v29 = vld [vmem:[%s10709_s0 + $0x8] sm:$0xff]  ;;  %v7084_v33 = vld [vmem:[%s10708_s1 + $0x2e4] ss:$16 sps:$4 sm:$0xff]  }
  0x21   :  { %v6019_v30 = vcombine.high %v8464_v29, %v8464_v29  ;;  %v7079_v32 = vld [vmem:[%s10708_s1 + $0x2c8] ss:$16 sps:$4 sm:$0xff]   ;;  %v7105_v46 = vld [vmem:[%s10708_s1 + $0x34c] ss:$16 sps:$4 sm:$0xff]  }
  0x23   :  { %4955 = vmatpush1.bf16.msra.mxu0 %v6994_v34  ;;  %5488 = vmatpush1.bf16.msra.mxu1 %v6995_v35  ;;  %v7087_v34 = vld [vmem:[%s10708_s1 + $0x2ec] ss:$16 sps:$4 sm:$0xff]   ;;  %v7082_v35 = vld [vmem:[%s10708_s1 + $0x2e0] ss:$16 sps:$4 sm:$0xff]  }
  0x24   :  { %4956 = vmatprep.subr.bf16.mxu0 %v6996_v36  ;;  %5489 = vmatprep.subr.bf16.mxu1 %v6998_v37  ;;  %v7085_v36 = vld [vmem:[%s10708_s1 + $0x2e8] ss:$16 sps:$4 sm:$0xff]   ;;  %v7090_v37 = vld [vmem:[%s10708_s1 + $0x304] ss:$16 sps:$4 sm:$0xff]  }
  0x27   :  { %4957 = vmatpush1.bf16.msra.mxu0 %v7000_v38  ;;  %5490 = vmatpush1.bf16.msra.mxu1 %v7001_v39  ;;  %v7093_v38 = vld [vmem:[%s10708_s1 + $0x30c] ss:$16 sps:$4 sm:$0xff]   ;;  %v7088_v39 = vld [vmem:[%s10708_s1 + $0x300] ss:$16 sps:$4 sm:$0xff]  }
  0x28   :  { %4958 = vmatprep.subr.bf16.mxu0 %v7002_v40  ;;  %5491 = vmatprep.subr.bf16.mxu1 %v7004_v41  ;;  %v7091_v40 = vld [vmem:[%s10708_s1 + $0x308] ss:$16 sps:$4 sm:$0xff]   ;;  %v7096_v41 = vld [vmem:[%s10708_s1 + $0x324] ss:$16 sps:$4 sm:$0xff]  }
  0x2b   :  { %4959 = vmatpush1.bf16.msra.mxu0 %v7006_v42  ;;  %5492 = vmatpush1.bf16.msra.mxu1 %v7007_v43  ;;  %v7099_v42 = vld [vmem:[%s10708_s1 + $0x32c] ss:$16 sps:$4 sm:$0xff]   ;;  %v7094_v43 = vld [vmem:[%s10708_s1 + $0x320] ss:$16 sps:$4 sm:$0xff]  }
  0x2c   :  { %4960 = vmatprep.subr.bf16.mxu0 %v7008_v44  ;;  %5493 = vmatprep.subr.bf16.mxu1 %v7010_v45  ;;  %v7097_v44 = vld [vmem:[%s10708_s1 + $0x328] ss:$16 sps:$4 sm:$0xff]   ;;  %v7102_v45 = vld [vmem:[%s10708_s1 + $0x344] ss:$16 sps:$4 sm:$0xff]  }
  0x2f   :  { %4961 = vmatpush1.bf16.msra.mxu0 %v7012_v47  ;;  %5494 = vmatpush1.bf16.msra.mxu1 %v7013_v49  ;;  %v7100_v47 = vld [vmem:[%s10708_s1 + $0x340] ss:$16 sps:$4 sm:$0xff]   ;;  %v7108_v49 = vld [vmem:[%s10708_s1 + $0x364] ss:$16 sps:$4 sm:$0xff]  }
  0x30   :  { %4962 = vmatprep.subr.bf16.mxu0 %v7014_v50  ;;  %5495 = vmatprep.subr.bf16.mxu1 %v7016_v51  ;;  %v7111_v50 = vld [vmem:[%s10708_s1 + $0x36c] ss:$16 sps:$4 sm:$0xff]   ;;  %v7106_v51 = vld [vmem:[%s10708_s1 + $0x360] ss:$16 sps:$4 sm:$0xff]  }
  0x33   :  { %4963 = vmatpush1.bf16.msra.mxu0 %v7018_v52  ;;  %5496 = vmatpush1.bf16.msra.mxu1 %v7019_v53  ;;  %v7109_v52 = vld [vmem:[%s10708_s1 + $0x368] ss:$16 sps:$4 sm:$0xff]   ;;  %v7114_v53 = vld [vmem:[%s10708_s1 + $0x384] ss:$16 sps:$4 sm:$0xff]  }
  0x34   :  { %4964 = vmatprep.subr.bf16.mxu0 %v7020_v54  ;;  %5497 = vmatprep.subr.bf16.mxu1 %v7022_v55  ;;  %v7117_v54 = vld [vmem:[%s10708_s1 + $0x38c] ss:$16 sps:$4 sm:$0xff]   ;;  %v7112_v55 = vld [vmem:[%s10708_s1 + $0x380] ss:$16 sps:$4 sm:$0xff]  }
  0x37   :  { %4965 = vmatpush1.bf16.msra.mxu0 %v7024_v56  ;;  %5498 = vmatpush1.bf16.msra.mxu1 %v7025_v57  ;;  %v7115_v56 = vld [vmem:[%s10708_s1 + $0x388] ss:$16 sps:$4 sm:$0xff]   ;;  %v7120_v57 = vld [vmem:[%s10708_s1 + $0x3a4] ss:$16 sps:$4 sm:$0xff]  }
  0x38   :  { %4966 = vmatprep.subr.bf16.mxu0 %v7026_v58  ;;  %5499 = vmatprep.subr.bf16.mxu1 %v7028_v59  ;;  %v7123_v58 = vld [vmem:[%s10708_s1 + $0x3ac] ss:$16 sps:$4 sm:$0xff]   ;;  %v7118_v59 = vld [vmem:[%s10708_s1 + $0x3a0] ss:$16 sps:$4 sm:$0xff]  }
  0x3b   :  { %4967 = vmatpush1.bf16.msra.mxu0 %v7030_v60  ;;  %5500 = vmatpush1.bf16.msra.mxu1 %v7031_v61  ;;  %v7121_v60 = vld [vmem:[%s10708_s1 + $0x3a8] ss:$16 sps:$4 sm:$0xff]   ;;  %v7126_v61 = vld [vmem:[%s10708_s1 + $0x3c4] ss:$16 sps:$4 sm:$0xff]  }
  0x3c   :  { %4968 = vmatprep.subr.bf16.mxu0 %v7032_v62  ;;  %5501 = vmatprep.subr.bf16.mxu1 %v7034_v63  ;;  %v7129_v62 = vld [vmem:[%s10708_s1 + $0x3cc] ss:$16 sps:$4 sm:$0xff]   ;;  %v7124_v63 = vld [vmem:[%s10708_s1 + $0x3c0] ss:$16 sps:$4 sm:$0xff]  }
  0x3f   :  { %4969 = vmatpush1.bf16.msra.mxu0 %v7036_v0  ;;  %5502 = vmatpush1.bf16.msra.mxu1 %v7037_v1  ;;  %v7127_v0 = vld [vmem:[%s10708_s1 + $0x3c8] ss:$16 sps:$4 sm:$0xff]   ;;  %v7132_v1 = vld [vmem:[%s10708_s1 + $0x3e4] ss:$16 sps:$4 sm:$0xff]  }
  0x40   :  { %4979 = vmatprep.subr.bf16.mxu0 %v7042_v2  ;;  %5512 = vmatprep.subr.bf16.mxu1 %v7045_v3  ;;  %v7135_v2 = vld [vmem:[%s10708_s1 + $0x3ec] ss:$16 sps:$4 sm:$0xff]   ;;  %v7130_v3 = vld [vmem:[%s10708_s1 + $0x3e0] ss:$16 sps:$4 sm:$0xff]  }
  0x42   :  { %4971 = vmatmul.mubr.bf16.vlgmr.msra.gmra.mrb[0].mxu0 %v6016_v4  ;;  %5504 = vmatmul.mubr.bf16.vlgmr.msra.gmra.mrb[0].mxu1 %v6016_v4  ;;  %v7133_v4 = vld [vmem:[%s10708_s1 + $0x3e8] ss:$16 sps:$4 sm:$0xff]  }
  0x43   :  { %4980 = vmatpush1.bf16.msra.mxu0 %v7040_v5  ;;  %5513 = vmatpush1.bf16.msra.mxu1 %v7043_v6  ;;  %v7140_v5 = vld [vmem:[%s10708_s1 + $0x404] ss:$16 sps:$4 sm:$0xff]   ;;  %v7143_v6 = vld [vmem:[%s10708_s1 + $0x40c] ss:$16 sps:$4 sm:$0xff]  }
  0x44   :  { %4981 = vmatprep.subr.bf16.mxu0 %v7048_v7  ;;  %5514 = vmatprep.subr.bf16.mxu1 %v7051_v8  ;;  %v6018_v7 = vcombine.low %v8464_v29, %v8464_v29  ;;  %v7138_v8 = vld [vmem:[%s10708_s1 + $0x400] ss:$16 sps:$4 sm:$0xff]   ;;  %v7173_v29 = vld [vmem:[%s10708_s1 + $0x4ac] ss:$16 sps:$4 sm:$0xff]  }
  0x45   :  { %5011 = vmatprep.mubr.bf16.mxu0 %v6019_v30  ;;  %5544 = vmatprep.mubr.bf16.mxu1 %v6019_v30  ;;  %v7168_v30 = vld [vmem:[%s10708_s1 + $0x4a0] ss:$16 sps:$4 sm:$0xff]  }
  0x47   :  { %4982 = vmatpush1.bf16.msra.mxu0 %v7046_v9  ;;  %5515 = vmatpush1.bf16.msra.mxu1 %v7049_v10  ;;  %v7141_v9 = vld [vmem:[%s10708_s1 + $0x408] ss:$16 sps:$4 sm:$0xff]   ;;  %v7146_v10 = vld [vmem:[%s10708_s1 + $0x424] ss:$16 sps:$4 sm:$0xff]  }
  0x48   :  { %4983 = vmatprep.subr.bf16.mxu0 %v7054_v11  ;;  %5516 = vmatprep.subr.bf16.mxu1 %v7057_v12  ;;  %v8602_v11 = vld [vmem:[%s10709_s0 + $0x10] sm:$0xff]  ;;  %v7149_v12 = vld [vmem:[%s10708_s1 + $0x42c] ss:$16 sps:$4 sm:$0xff]  }
  0x4b   :  { %4984 = vmatpush1.bf16.msra.mxu0 %v7052_v13  ;;  %5517 = vmatpush1.bf16.msra.mxu1 %v7055_v14  ;;  %v6021_v13 = vcombine.high %v8602_v11, %v8602_v11  ;;  %v7144_v14 = vld [vmem:[%s10708_s1 + $0x420] ss:$16 sps:$4 sm:$0xff]  }
  0x4c   :  { %4985 = vmatprep.subr.bf16.mxu0 %v7060_v15  ;;  %5518 = vmatprep.subr.bf16.mxu1 %v7063_v16  ;;  %v7147_v15 = vld [vmem:[%s10708_s1 + $0x428] ss:$16 sps:$4 sm:$0xff]   ;;  %v7152_v16 = vld [vmem:[%s10708_s1 + $0x444] ss:$16 sps:$4 sm:$0xff]  }
  0x4f   :  { %4986 = vmatpush1.bf16.msra.mxu0 %v7058_v17  ;;  %5519 = vmatpush1.bf16.msra.mxu1 %v7061_v18  ;;  %v7155_v17 = vld [vmem:[%s10708_s1 + $0x44c] ss:$16 sps:$4 sm:$0xff]   ;;  %v7150_v18 = vld [vmem:[%s10708_s1 + $0x440] ss:$16 sps:$4 sm:$0xff]  }
  0x50   :  { %4987 = vmatprep.subr.bf16.mxu0 %v7066_v19  ;;  %5520 = vmatprep.subr.bf16.mxu1 %v7069_v20  ;;  %v7153_v19 = vld [vmem:[%s10708_s1 + $0x448] ss:$16 sps:$4 sm:$0xff]   ;;  %v7158_v20 = vld [vmem:[%s10708_s1 + $0x464] ss:$16 sps:$4 sm:$0xff]  }
  0x53   :  { %4988 = vmatpush1.bf16.msra.mxu0 %v7064_v21  ;;  %5521 = vmatpush1.bf16.msra.mxu1 %v7067_v22  ;;  %v7161_v21 = vld [vmem:[%s10708_s1 + $0x46c] ss:$16 sps:$4 sm:$0xff]   ;;  %v7156_v22 = vld [vmem:[%s10708_s1 + $0x460] ss:$16 sps:$4 sm:$0xff]  }
  0x54   :  { %4989 = vmatprep.subr.bf16.mxu0 %v7072_v23  ;;  %5522 = vmatprep.subr.bf16.mxu1 %v7075_v24  ;;  %v7159_v23 = vld [vmem:[%s10708_s1 + $0x468] ss:$16 sps:$4 sm:$0xff]   ;;  %v7164_v24 = vld [vmem:[%s10708_s1 + $0x484] ss:$16 sps:$4 sm:$0xff]  }
  0x57   :  { %4990 = vmatpush1.bf16.msra.mxu0 %v7070_v25  ;;  %5523 = vmatpush1.bf16.msra.mxu1 %v7073_v26  ;;  %v7167_v25 = vld [vmem:[%s10708_s1 + $0x48c] ss:$16 sps:$4 sm:$0xff]   ;;  %v7162_v26 = vld [vmem:[%s10708_s1 + $0x480] ss:$16 sps:$4 sm:$0xff]  }
  0x58   :  { %4991 = vmatprep.subr.bf16.mxu0 %v7078_v27  ;;  %5524 = vmatprep.subr.bf16.mxu1 %v7081_v28  ;;  %v7165_v27 = vld [vmem:[%s10708_s1 + $0x488] ss:$16 sps:$4 sm:$0xff]   ;;  %v7170_v28 = vld [vmem:[%s10708_s1 + $0x4a4] ss:$16 sps:$4 sm:$0xff]  }
  0x5b   :  { %4992 = vmatpush1.bf16.msra.mxu0 %v7076_v31  ;;  %5525 = vmatpush1.bf16.msra.mxu1 %v7079_v32  ;;  %v7171_v31 = vld [vmem:[%s10708_s1 + $0x4a8] ss:$16 sps:$4 sm:$0xff]   ;;  %v7176_v32 = vld [vmem:[%s10708_s1 + $0x4c4] ss:$16 sps:$4 sm:$0xff]  }
  0x5c   :  { %4993 = vmatprep.subr.bf16.mxu0 %v7084_v33  ;;  %5526 = vmatprep.subr.bf16.mxu1 %v7087_v34  ;;  %v7179_v33 = vld [vmem:[%s10708_s1 + $0x4cc] ss:$16 sps:$4 sm:$0xff]   ;;  %v7174_v34 = vld [vmem:[%s10708_s1 + $0x4c0] ss:$16 sps:$4 sm:$0xff]  }
  0x5f   :  { %4994 = vmatpush1.bf16.msra.mxu0 %v7082_v35  ;;  %5527 = vmatpush1.bf16.msra.mxu1 %v7085_v36  ;;  %v7177_v35 = vld [vmem:[%s10708_s1 + $0x4c8] ss:$16 sps:$4 sm:$0xff]   ;;  %v7182_v36 = vld [vmem:[%s10708_s1 + $0x4e4] ss:$16 sps:$4 sm:$0xff]  }
  0x60   :  { %4995 = vmatprep.subr.bf16.mxu0 %v7090_v37  ;;  %5528 = vmatprep.subr.bf16.mxu1 %v7093_v38  ;;  %v7185_v37 = vld [vmem:[%s10708_s1 + $0x4ec] ss:$16 sps:$4 sm:$0xff]   ;;  %v7180_v38 = vld [vmem:[%s10708_s1 + $0x4e0] ss:$16 sps:$4 sm:$0xff]  }
  0x63   :  { %4996 = vmatpush1.bf16.msra.mxu0 %v7088_v39  ;;  %5529 = vmatpush1.bf16.msra.mxu1 %v7091_v40  ;;  %v7183_v39 = vld [vmem:[%s10708_s1 + $0x4e8] ss:$16 sps:$4 sm:$0xff]   ;;  %v7188_v40 = vld [vmem:[%s10708_s1 + $0x504] ss:$16 sps:$4 sm:$0xff]  }
  0x64   :  { %4997 = vmatprep.subr.bf16.mxu0 %v7096_v41  ;;  %5530 = vmatprep.subr.bf16.mxu1 %v7099_v42  ;;  %v7191_v41 = vld [vmem:[%s10708_s1 + $0x50c] ss:$16 sps:$4 sm:$0xff]   ;;  %v7186_v42 = vld [vmem:[%s10708_s1 + $0x500] ss:$16 sps:$4 sm:$0xff]  }
  0x67   :  { %4998 = vmatpush1.bf16.msra.mxu0 %v7094_v43  ;;  %5531 = vmatpush1.bf16.msra.mxu1 %v7097_v44  ;;  %v7189_v43 = vld [vmem:[%s10708_s1 + $0x508] ss:$16 sps:$4 sm:$0xff]   ;;  %v7194_v44 = vld [vmem:[%s10708_s1 + $0x524] ss:$16 sps:$4 sm:$0xff]  }
  0x68   :  { %4999 = vmatprep.subr.bf16.mxu0 %v7102_v45  ;;  %5532 = vmatprep.subr.bf16.mxu1 %v7105_v46  ;;  %v7197_v45 = vld [vmem:[%s10708_s1 + $0x52c] ss:$16 sps:$4 sm:$0xff]   ;;  %v7192_v46 = vld [vmem:[%s10708_s1 + $0x520] ss:$16 sps:$4 sm:$0xff]  }
  0x6b   :  { %5000 = vmatpush1.bf16.msra.mxu0 %v7100_v47  ;;  %5533 = vmatpush1.bf16.msra.mxu1 %v7103_v48  ;;  %v7195_v47 = vld [vmem:[%s10708_s1 + $0x528] ss:$16 sps:$4 sm:$0xff]   ;;  %v7200_v48 = vld [vmem:[%s10708_s1 + $0x544] ss:$16 sps:$4 sm:$0xff]  }
  0x6c   :  { %5001 = vmatprep.subr.bf16.mxu0 %v7108_v49  ;;  %5534 = vmatprep.subr.bf16.mxu1 %v7111_v50  ;;  %v7203_v49 = vld [vmem:[%s10708_s1 + $0x54c] ss:$16 sps:$4 sm:$0xff]   ;;  %v7198_v50 = vld [vmem:[%s10708_s1 + $0x540] ss:$16 sps:$4 sm:$0xff]  }
  0x6f   :  { %5002 = vmatpush1.bf16.msra.mxu0 %v7106_v51  ;;  %5535 = vmatpush1.bf16.msra.mxu1 %v7109_v52  ;;  %v7201_v51 = vld [vmem:[%s10708_s1 + $0x548] ss:$16 sps:$4 sm:$0xff]   ;;  %v7206_v52 = vld [vmem:[%s10708_s1 + $0x564] ss:$16 sps:$4 sm:$0xff]  }
  0x70   :  { %5003 = vmatprep.subr.bf16.mxu0 %v7114_v53  ;;  %5536 = vmatprep.subr.bf16.mxu1 %v7117_v54  ;;  %v7209_v53 = vld [vmem:[%s10708_s1 + $0x56c] ss:$16 sps:$4 sm:$0xff]   ;;  %v7204_v54 = vld [vmem:[%s10708_s1 + $0x560] ss:$16 sps:$4 sm:$0xff]  }
  0x73   :  { %5004 = vmatpush1.bf16.msra.mxu0 %v7112_v55  ;;  %5537 = vmatpush1.bf16.msra.mxu1 %v7115_v56  ;;  %v7207_v55 = vld [vmem:[%s10708_s1 + $0x568] ss:$16 sps:$4 sm:$0xff]   ;;  %v7212_v56 = vld [vmem:[%s10708_s1 + $0x584] ss:$16 sps:$4 sm:$0xff]  }
  0x74   :  { %5005 = vmatprep.subr.bf16.mxu0 %v7120_v57  ;;  %5538 = vmatprep.subr.bf16.mxu1 %v7123_v58  ;;  %v7215_v57 = vld [vmem:[%s10708_s1 + $0x58c] ss:$16 sps:$4 sm:$0xff]   ;;  %v7210_v58 = vld [vmem:[%s10708_s1 + $0x580] ss:$16 sps:$4 sm:$0xff]  }
  0x77   :  { %5006 = vmatpush1.bf16.msra.mxu0 %v7118_v59  ;;  %5539 = vmatpush1.bf16.msra.mxu1 %v7121_v60  ;;  %v7213_v59 = vld [vmem:[%s10708_s1 + $0x588] ss:$16 sps:$4 sm:$0xff]   ;;  %v7218_v60 = vld [vmem:[%s10708_s1 + $0x5a4] ss:$16 sps:$4 sm:$0xff]  }
  0x78   :  { %5007 = vmatprep.subr.bf16.mxu0 %v7126_v61  ;;  %5540 = vmatprep.subr.bf16.mxu1 %v7129_v62  ;;  %v7221_v61 = vld [vmem:[%s10708_s1 + $0x5ac] ss:$16 sps:$4 sm:$0xff]   ;;  %v7216_v62 = vld [vmem:[%s10708_s1 + $0x5a0] ss:$16 sps:$4 sm:$0xff]  }
  0x7b   :  { %5008 = vmatpush1.bf16.msra.mxu0 %v7124_v63  ;;  %5541 = vmatpush1.bf16.msra.mxu1 %v7127_v0  ;;  %v7219_v63 = vld [vmem:[%s10708_s1 + $0x5a8] ss:$16 sps:$4 sm:$0xff]   ;;  %v7224_v0 = vld [vmem:[%s10708_s1 + $0x5c4] ss:$16 sps:$4 sm:$0xff]  }
  0x7c   :  { %5009 = vmatprep.subr.bf16.mxu0 %v7132_v1  ;;  %5542 = vmatprep.subr.bf16.mxu1 %v7135_v2  ;;  %v7227_v1 = vld [vmem:[%s10708_s1 + $0x5cc] ss:$16 sps:$4 sm:$0xff]   ;;  %v7222_v2 = vld [vmem:[%s10708_s1 + $0x5c0] ss:$16 sps:$4 sm:$0xff]  }
  0x7f   :  { %5010 = vmatpush1.bf16.msra.mxu0 %v7130_v3  ;;  %5543 = vmatpush1.bf16.msra.mxu1 %v7133_v4  ;;  %v7225_v3 = vld [vmem:[%s10708_s1 + $0x5c8] ss:$16 sps:$4 sm:$0xff]   ;;  %v7230_v4 = vld [vmem:[%s10708_s1 + $0x5e4] ss:$16 sps:$4 sm:$0xff]  }
  0x80   :  { %5020 = vmatprep.subr.bf16.mxu0 %v7140_v5  ;;  %5553 = vmatprep.subr.bf16.mxu1 %v7143_v6  ;;  %v7233_v5 = vld [vmem:[%s10708_s1 + $0x5ec] ss:$16 sps:$4 sm:$0xff]   ;;  %v7228_v6 = vld [vmem:[%s10708_s1 + $0x5e0] ss:$16 sps:$4 sm:$0xff]  }
  0x82   :  { %5012 = vmatmul.mubr.bf16.vlgmr.msra.gmra.mrb[0].mxu0 %v6018_v7  ;;  %5545 = vmatmul.mubr.bf16.vlgmr.msra.gmra.mrb[0].mxu1 %v6018_v7  ;;  %v7231_v7 = vld [vmem:[%s10708_s1 + $0x5e8] ss:$16 sps:$4 sm:$0xff]  }
  0x83   :  { %5021 = vmatpush1.bf16.msra.mxu0 %v7138_v8  ;;  %5554 = vmatpush1.bf16.msra.mxu1 %v7141_v9  ;;  %v7238_v8 = vld [vmem:[%s10708_s1 + $0x604] ss:$16 sps:$4 sm:$0xff]   ;;  %v7241_v9 = vld [vmem:[%s10708_s1 + $0x60c] ss:$16 sps:$4 sm:$0xff]  }
  0x84   :  { %5022 = vmatprep.subr.bf16.mxu0 %v7146_v10  ;;  %5555 = vmatprep.subr.bf16.mxu1 %v7149_v12  ;;  %v7236_v10 = vld [vmem:[%s10708_s1 + $0x600] ss:$16 sps:$4 sm:$0xff]   ;;  %v6020_v12 = vcombine.low %v8602_v11, %v8602_v11  ;;  %v7247_v11 = vld [vmem:[%s10708_s1 + $0x62c] ss:$16 sps:$4 sm:$0xff]  }
  0x85   :  { %5052 = vmatprep.mubr.bf16.mxu0 %v6021_v13  ;;  %5585 = vmatprep.mubr.bf16.mxu1 %v6021_v13  ;;  %v7239_v13 = vld [vmem:[%s10708_s1 + $0x608] ss:$16 sps:$4 sm:$0xff]  }
  0x87   :  { %5023 = vmatpush1.bf16.msra.mxu0 %v7144_v14  ;;  %5556 = vmatpush1.bf16.msra.mxu1 %v7147_v15  ;;  %v8800_v14 = vld [vmem:[%s10709_s0 + $0x18] sm:$0xff]  ;;  %v7244_v15 = vld [vmem:[%s10708_s1 + $0x624] ss:$16 sps:$4 sm:$0xff]  }
  0x88   :  { %5024 = vmatprep.subr.bf16.mxu0 %v7152_v16  ;;  %5557 = vmatprep.subr.bf16.mxu1 %v7155_v17  ;;  %v6023_v16 = vcombine.high %v8800_v14, %v8800_v14  ;;  %v7242_v17 = vld [vmem:[%s10708_s1 + $0x620] ss:$16 sps:$4 sm:$0xff]  }
  0x8b   :  { %5025 = vmatpush1.bf16.msra.mxu0 %v7150_v18  ;;  %5558 = vmatpush1.bf16.msra.mxu1 %v7153_v19  ;;  %v7245_v18 = vld [vmem:[%s10708_s1 + $0x628] ss:$16 sps:$4 sm:$0xff]   ;;  %v7250_v19 = vld [vmem:[%s10708_s1 + $0x644] ss:$16 sps:$4 sm:$0xff]  }
  0x8c   :  { %5026 = vmatprep.subr.bf16.mxu0 %v7158_v20  ;;  %5559 = vmatprep.subr.bf16.mxu1 %v7161_v21  ;;  %v7253_v20 = vld [vmem:[%s10708_s1 + $0x64c] ss:$16 sps:$4 sm:$0xff]   ;;  %v7248_v21 = vld [vmem:[%s10708_s1 + $0x640] ss:$16 sps:$4 sm:$0xff]  }
  0x8f   :  { %5027 = vmatpush1.bf16.msra.mxu0 %v7156_v22  ;;  %5560 = vmatpush1.bf16.msra.mxu1 %v7159_v23  ;;  %v7251_v22 = vld [vmem:[%s10708_s1 + $0x648] ss:$16 sps:$4 sm:$0xff]   ;;  %v7256_v23 = vld [vmem:[%s10708_s1 + $0x664] ss:$16 sps:$4 sm:$0xff]  }
  0x90   :  { %5028 = vmatprep.subr.bf16.mxu0 %v7164_v24  ;;  %5561 = vmatprep.subr.bf16.mxu1 %v7167_v25  ;;  %v7259_v24 = vld [vmem:[%s10708_s1 + $0x66c] ss:$16 sps:$4 sm:$0xff]   ;;  %v7254_v25 = vld [vmem:[%s10708_s1 + $0x660] ss:$16 sps:$4 sm:$0xff]  }
  0x93   :  { %5029 = vmatpush1.bf16.msra.mxu0 %v7162_v26  ;;  %5562 = vmatpush1.bf16.msra.mxu1 %v7165_v27  ;;  %v7257_v26 = vld [vmem:[%s10708_s1 + $0x668] ss:$16 sps:$4 sm:$0xff]   ;;  %v7262_v27 = vld [vmem:[%s10708_s1 + $0x684] ss:$16 sps:$4 sm:$0xff]  }
  0x94   :  { %5030 = vmatprep.subr.bf16.mxu0 %v7170_v28  ;;  %5563 = vmatprep.subr.bf16.mxu1 %v7173_v29  ;;  %v7265_v28 = vld [vmem:[%s10708_s1 + $0x68c] ss:$16 sps:$4 sm:$0xff]   ;;  %v7260_v29 = vld [vmem:[%s10708_s1 + $0x680] ss:$16 sps:$4 sm:$0xff]  }
  0x97   :  { %5031 = vmatpush1.bf16.msra.mxu0 %v7168_v30  ;;  %5564 = vmatpush1.bf16.msra.mxu1 %v7171_v31  ;;  %v7263_v30 = vld [vmem:[%s10708_s1 + $0x688] ss:$16 sps:$4 sm:$0xff]   ;;  %v7268_v31 = vld [vmem:[%s10708_s1 + $0x6a4] ss:$16 sps:$4 sm:$0xff]  }
  0x98   :  { %5032 = vmatprep.subr.bf16.mxu0 %v7176_v32  ;;  %5565 = vmatprep.subr.bf16.mxu1 %v7179_v33  ;;  %v7271_v32 = vld [vmem:[%s10708_s1 + $0x6ac] ss:$16 sps:$4 sm:$0xff]   ;;  %v7266_v33 = vld [vmem:[%s10708_s1 + $0x6a0] ss:$16 sps:$4 sm:$0xff]  }
  0x9b   :  { %5033 = vmatpush1.bf16.msra.mxu0 %v7174_v34  ;;  %5566 = vmatpush1.bf16.msra.mxu1 %v7177_v35  ;;  %v7269_v34 = vld [vmem:[%s10708_s1 + $0x6a8] ss:$16 sps:$4 sm:$0xff]   ;;  %v7274_v35 = vld [vmem:[%s10708_s1 + $0x6c4] ss:$16 sps:$4 sm:$0xff]  }
  0x9c   :  { %5034 = vmatprep.subr.bf16.mxu0 %v7182_v36  ;;  %5567 = vmatprep.subr.bf16.mxu1 %v7185_v37  ;;  %v7277_v36 = vld [vmem:[%s10708_s1 + $0x6cc] ss:$16 sps:$4 sm:$0xff]   ;;  %v7272_v37 = vld [vmem:[%s10708_s1 + $0x6c0] ss:$16 sps:$4 sm:$0xff]  }
  0x9f   :  { %5035 = vmatpush1.bf16.msra.mxu0 %v7180_v38  ;;  %5568 = vmatpush1.bf16.msra.mxu1 %v7183_v39  ;;  %v7275_v38 = vld [vmem:[%s10708_s1 + $0x6c8] ss:$16 sps:$4 sm:$0xff]   ;;  %v7280_v39 = vld [vmem:[%s10708_s1 + $0x6e4] ss:$16 sps:$4 sm:$0xff]  }
  0xa0   :  { %5036 = vmatprep.subr.bf16.mxu0 %v7188_v40  ;;  %5569 = vmatprep.subr.bf16.mxu1 %v7191_v41  ;;  %v7283_v40 = vld [vmem:[%s10708_s1 + $0x6ec] ss:$16 sps:$4 sm:$0xff]   ;;  %v7278_v41 = vld [vmem:[%s10708_s1 + $0x6e0] ss:$16 sps:$4 sm:$0xff]  }
  0xa3   :  { %5037 = vmatpush1.bf16.msra.mxu0 %v7186_v42  ;;  %5570 = vmatpush1.bf16.msra.mxu1 %v7189_v43  ;;  %v7281_v42 = vld [vmem:[%s10708_s1 + $0x6e8] ss:$16 sps:$4 sm:$0xff]   ;;  %v7286_v43 = vld [vmem:[%s10708_s1 + $0x704] ss:$16 sps:$4 sm:$0xff]  }
  0xa4   :  { %5038 = vmatprep.subr.bf16.mxu0 %v7194_v44  ;;  %5571 = vmatprep.subr.bf16.mxu1 %v7197_v45  ;;  %v7289_v44 = vld [vmem:[%s10708_s1 + $0x70c] ss:$16 sps:$4 sm:$0xff]   ;;  %v7284_v45 = vld [vmem:[%s10708_s1 + $0x700] ss:$16 sps:$4 sm:$0xff]  }
  0xa7   :  { %5039 = vmatpush1.bf16.msra.mxu0 %v7192_v46  ;;  %5572 = vmatpush1.bf16.msra.mxu1 %v7195_v47  ;;  %v7287_v46 = vld [vmem:[%s10708_s1 + $0x708] ss:$16 sps:$4 sm:$0xff]   ;;  %v7292_v47 = vld [vmem:[%s10708_s1 + $0x724] ss:$16 sps:$4 sm:$0xff]  }
  0xa8   :  { %5040 = vmatprep.subr.bf16.mxu0 %v7200_v48  ;;  %5573 = vmatprep.subr.bf16.mxu1 %v7203_v49  ;;  %v7295_v48 = vld [vmem:[%s10708_s1 + $0x72c] ss:$16 sps:$4 sm:$0xff]   ;;  %v7290_v49 = vld [vmem:[%s10708_s1 + $0x720] ss:$16 sps:$4 sm:$0xff]  }
  0xab   :  { %5041 = vmatpush1.bf16.msra.mxu0 %v7198_v50  ;;  %5574 = vmatpush1.bf16.msra.mxu1 %v7201_v51  ;;  %v7293_v50 = vld [vmem:[%s10708_s1 + $0x728] ss:$16 sps:$4 sm:$0xff]   ;;  %v7298_v51 = vld [vmem:[%s10708_s1 + $0x744] ss:$16 sps:$4 sm:$0xff]  }
  0xac   :  { %5042 = vmatprep.subr.bf16.mxu0 %v7206_v52  ;;  %5575 = vmatprep.subr.bf16.mxu1 %v7209_v53  ;;  %v7301_v52 = vld [vmem:[%s10708_s1 + $0x74c] ss:$16 sps:$4 sm:$0xff]   ;;  %v7296_v53 = vld [vmem:[%s10708_s1 + $0x740] ss:$16 sps:$4 sm:$0xff]  }
  0xaf   :  { %5043 = vmatpush1.bf16.msra.mxu0 %v7204_v54  ;;  %5576 = vmatpush1.bf16.msra.mxu1 %v7207_v55  ;;  %v7299_v54 = vld [vmem:[%s10708_s1 + $0x748] ss:$16 sps:$4 sm:$0xff]   ;;  %v7304_v55 = vld [vmem:[%s10708_s1 + $0x764] ss:$16 sps:$4 sm:$0xff]  }
  0xb0   :  { %5044 = vmatprep.subr.bf16.mxu0 %v7212_v56  ;;  %5577 = vmatprep.subr.bf16.mxu1 %v7215_v57  ;;  %v7307_v56 = vld [vmem:[%s10708_s1 + $0x76c] ss:$16 sps:$4 sm:$0xff]   ;;  %v7302_v57 = vld [vmem:[%s10708_s1 + $0x760] ss:$16 sps:$4 sm:$0xff]  }
  0xb3   :  { %5045 = vmatpush1.bf16.msra.mxu0 %v7210_v58  ;;  %5578 = vmatpush1.bf16.msra.mxu1 %v7213_v59  ;;  %v7305_v58 = vld [vmem:[%s10708_s1 + $0x768] ss:$16 sps:$4 sm:$0xff]   ;;  %v7310_v59 = vld [vmem:[%s10708_s1 + $0x784] ss:$16 sps:$4 sm:$0xff]  }
  0xb4   :  { %5046 = vmatprep.subr.bf16.mxu0 %v7218_v60  ;;  %5579 = vmatprep.subr.bf16.mxu1 %v7221_v61  ;;  %v7313_v60 = vld [vmem:[%s10708_s1 + $0x78c] ss:$16 sps:$4 sm:$0xff]   ;;  %v7308_v61 = vld [vmem:[%s10708_s1 + $0x780] ss:$16 sps:$4 sm:$0xff]  }
  0xb7   :  { %5047 = vmatpush1.bf16.msra.mxu0 %v7216_v62  ;;  %5580 = vmatpush1.bf16.msra.mxu1 %v7219_v63  ;;  %v7311_v62 = vld [vmem:[%s10708_s1 + $0x788] ss:$16 sps:$4 sm:$0xff]   ;;  %v7316_v63 = vld [vmem:[%s10708_s1 + $0x7a4] ss:$16 sps:$4 sm:$0xff]  }
  0xb8   :  { %5048 = vmatprep.subr.bf16.mxu0 %v7224_v0  ;;  %5581 = vmatprep.subr.bf16.mxu1 %v7227_v1  ;;  %v7319_v0 = vld [vmem:[%s10708_s1 + $0x7ac] ss:$16 sps:$4 sm:$0xff]   ;;  %v7314_v1 = vld [vmem:[%s10708_s1 + $0x7a0] ss:$16 sps:$4 sm:$0xff]  }
  0xbb   :  { %5049 = vmatpush1.bf16.msra.mxu0 %v7222_v2  ;;  %5582 = vmatpush1.bf16.msra.mxu1 %v7225_v3  ;;  %v7317_v2 = vld [vmem:[%s10708_s1 + $0x7a8] ss:$16 sps:$4 sm:$0xff]   ;;  %v7322_v3 = vld [vmem:[%s10708_s1 + $0x7c4] ss:$16 sps:$4 sm:$0xff]  }
  0xbc   :  { %5050 = vmatprep.subr.bf16.mxu0 %v7230_v4  ;;  %5583 = vmatprep.subr.bf16.mxu1 %v7233_v5  ;;  %v7325_v4 = vld [vmem:[%s10708_s1 + $0x7cc] ss:$16 sps:$4 sm:$0xff]   ;;  %v7320_v5 = vld [vmem:[%s10708_s1 + $0x7c0] ss:$16 sps:$4 sm:$0xff]  }
  0xbf   :  { %5051 = vmatpush1.bf16.msra.mxu0 %v7228_v6  ;;  %5584 = vmatpush1.bf16.msra.mxu1 %v7231_v7  ;;  %v7323_v6 = vld [vmem:[%s10708_s1 + $0x7c8] ss:$16 sps:$4 sm:$0xff]   ;;  %v7328_v7 = vld [vmem:[%s10708_s1 + $0x7e4] ss:$16 sps:$4 sm:$0xff]  }
  0xc0   :  { %5061 = vmatprep.subr.bf16.mxu0 %v7238_v8  ;;  %5594 = vmatprep.subr.bf16.mxu1 %v7241_v9  ;;  %v7331_v8 = vld [vmem:[%s10708_s1 + $0x7ec] ss:$16 sps:$4 sm:$0xff]   ;;  %v7326_v9 = vld [vmem:[%s10708_s1 + $0x7e0] ss:$16 sps:$4 sm:$0xff]  }
  0xc2   :  { %5053 = vmatmul.mubr.bf16.vlgmr.msra.gmra.mrb[0].mxu0 %v6020_v12  ;;  %5586 = vmatmul.mubr.bf16.vlgmr.msra.gmra.mrb[0].mxu1 %v6020_v12  ;;  %v7336_v12 = vld [vmem:[%s10708_s1 + $0x804] ss:$16 sps:$4 sm:$0xff]  }
  0xc3   :  { %5062 = vmatpush1.bf16.msra.mxu0 %v7236_v10  ;;  %5595 = vmatpush1.bf16.msra.mxu1 %v7239_v13  ;;  %v7329_v10 = vld [vmem:[%s10708_s1 + $0x7e8] ss:$16 sps:$4 sm:$0xff]   ;;  %v7339_v13 = vld [vmem:[%s10708_s1 + $0x80c] ss:$16 sps:$4 sm:$0xff]  }
  0xc4   :  { %5063 = vmatprep.subr.bf16.mxu0 %v7244_v15  ;;  %5596 = vmatprep.subr.bf16.mxu1 %v7247_v11  ;;  %v7334_v15 = vld [vmem:[%s10708_s1 + $0x800] ss:$16 sps:$4 sm:$0xff]   ;;  %v6022_v11 = vcombine.low %v8800_v14, %v8800_v14  ;;  %v7345_v14 = vld [vmem:[%s10708_s1 + $0x82c] ss:$16 sps:$4 sm:$0xff]  }
  0xc5   :  { %5093 = vmatprep.mubr.bf16.mxu0 %v6023_v16  ;;  %5626 = vmatprep.mubr.bf16.mxu1 %v6023_v16  ;;  %v8998_v16 = vld [vmem:[%s10709_s0 + $0x20] sm:$0xff] }
  0xc7   :  { %5064 = vmatpush1.bf16.msra.mxu0 %v7242_v17  ;;  %5597 = vmatpush1.bf16.msra.mxu1 %v7245_v18  ;;  %v7337_v17 = vld [vmem:[%s10708_s1 + $0x808] ss:$16 sps:$4 sm:$0xff]   ;;  %v7342_v18 = vld [vmem:[%s10708_s1 + $0x824] ss:$16 sps:$4 sm:$0xff]  }
  0xc8   :  { %5065 = vmatprep.subr.bf16.mxu0 %v7250_v19  ;;  %5598 = vmatprep.subr.bf16.mxu1 %v7253_v20  ;;  %v6025_v19 = vcombine.high %v8998_v16, %v8998_v16  ;;  %v7340_v20 = vld [vmem:[%s10708_s1 + $0x820] ss:$16 sps:$4 sm:$0xff]  }
  0xcb   :  { %5066 = vmatpush1.bf16.msra.mxu0 %v7248_v21  ;;  %5599 = vmatpush1.bf16.msra.mxu1 %v7251_v22  ;;  %v7343_v21 = vld [vmem:[%s10708_s1 + $0x828] ss:$16 sps:$4 sm:$0xff]   ;;  %v7348_v22 = vld [vmem:[%s10708_s1 + $0x844] ss:$16 sps:$4 sm:$0xff]  }
  0xcc   :  { %5067 = vmatprep.subr.bf16.mxu0 %v7256_v23  ;;  %5600 = vmatprep.subr.bf16.mxu1 %v7259_v24  ;;  %v7351_v23 = vld [vmem:[%s10708_s1 + $0x84c] ss:$16 sps:$4 sm:$0xff]   ;;  %v7346_v24 = vld [vmem:[%s10708_s1 + $0x840] ss:$16 sps:$4 sm:$0xff]  }
  0xcf   :  { %5068 = vmatpush1.bf16.msra.mxu0 %v7254_v25  ;;  %5601 = vmatpush1.bf16.msra.mxu1 %v7257_v26  ;;  %v7349_v25 = vld [vmem:[%s10708_s1 + $0x848] ss:$16 sps:$4 sm:$0xff]   ;;  %v7354_v26 = vld [vmem:[%s10708_s1 + $0x864] ss:$16 sps:$4 sm:$0xff]  }
  0xd0   :  { %5069 = vmatprep.subr.bf16.mxu0 %v7262_v27  ;;  %5602 = vmatprep.subr.bf16.mxu1 %v7265_v28  ;;  %v7357_v27 = vld [vmem:[%s10708_s1 + $0x86c] ss:$16 sps:$4 sm:$0xff]   ;;  %v7352_v28 = vld [vmem:[%s10708_s1 + $0x860] ss:$16 sps:$4 sm:$0xff]  }
  0xd3   :  { %5070 = vmatpush1.bf16.msra.mxu0 %v7260_v29  ;;  %5603 = vmatpush1.bf16.msra.mxu1 %v7263_v30  ;;  %v7355_v29 = vld [vmem:[%s10708_s1 + $0x868] ss:$16 sps:$4 sm:$0xff]   ;;  %v7360_v30 = vld [vmem:[%s10708_s1 + $0x884] ss:$16 sps:$4 sm:$0xff]  }
  0xd4   :  { %5071 = vmatprep.subr.bf16.mxu0 %v7268_v31  ;;  %5604 = vmatprep.subr.bf16.mxu1 %v7271_v32  ;;  %v7363_v31 = vld [vmem:[%s10708_s1 + $0x88c] ss:$16 sps:$4 sm:$0xff]   ;;  %v7358_v32 = vld [vmem:[%s10708_s1 + $0x880] ss:$16 sps:$4 sm:$0xff]  }
  0xd7   :  { %5072 = vmatpush1.bf16.msra.mxu0 %v7266_v33  ;;  %5605 = vmatpush1.bf16.msra.mxu1 %v7269_v34  ;;  %v7361_v33 = vld [vmem:[%s10708_s1 + $0x888] ss:$16 sps:$4 sm:$0xff]   ;;  %v7366_v34 = vld [vmem:[%s10708_s1 + $0x8a4] ss:$16 sps:$4 sm:$0xff]  }
  0xd8   :  { %5073 = vmatprep.subr.bf16.mxu0 %v7274_v35  ;;  %5606 = vmatprep.subr.bf16.mxu1 %v7277_v36  ;;  %v7369_v35 = vld [vmem:[%s10708_s1 + $0x8ac] ss:$16 sps:$4 sm:$0xff]   ;;  %v7364_v36 = vld [vmem:[%s10708_s1 + $0x8a0] ss:$16 sps:$4 sm:$0xff]  }
  0xdb   :  { %5074 = vmatpush1.bf16.msra.mxu0 %v7272_v37  ;;  %5607 = vmatpush1.bf16.msra.mxu1 %v7275_v38  ;;  %v7367_v37 = vld [vmem:[%s10708_s1 + $0x8a8] ss:$16 sps:$4 sm:$0xff]   ;;  %v7372_v38 = vld [vmem:[%s10708_s1 + $0x8c4] ss:$16 sps:$4 sm:$0xff]  }
  0xdc   :  { %5075 = vmatprep.subr.bf16.mxu0 %v7280_v39  ;;  %5608 = vmatprep.subr.bf16.mxu1 %v7283_v40  ;;  %v7375_v39 = vld [vmem:[%s10708_s1 + $0x8cc] ss:$16 sps:$4 sm:$0xff]   ;;  %v7370_v40 = vld [vmem:[%s10708_s1 + $0x8c0] ss:$16 sps:$4 sm:$0xff]  }
  0xdf   :  { %5076 = vmatpush1.bf16.msra.mxu0 %v7278_v41  ;;  %5609 = vmatpush1.bf16.msra.mxu1 %v7281_v42  ;;  %v7373_v41 = vld [vmem:[%s10708_s1 + $0x8c8] ss:$16 sps:$4 sm:$0xff]   ;;  %v7378_v42 = vld [vmem:[%s10708_s1 + $0x8e4] ss:$16 sps:$4 sm:$0xff]  }
  0xe0   :  { %5077 = vmatprep.subr.bf16.mxu0 %v7286_v43  ;;  %5610 = vmatprep.subr.bf16.mxu1 %v7289_v44  ;;  %v7381_v43 = vld [vmem:[%s10708_s1 + $0x8ec] ss:$16 sps:$4 sm:$0xff]   ;;  %v7376_v44 = vld [vmem:[%s10708_s1 + $0x8e0] ss:$16 sps:$4 sm:$0xff]  }
  0xe3   :  { %5078 = vmatpush1.bf16.msra.mxu0 %v7284_v45  ;;  %5611 = vmatpush1.bf16.msra.mxu1 %v7287_v46  ;;  %v7379_v45 = vld [vmem:[%s10708_s1 + $0x8e8] ss:$16 sps:$4 sm:$0xff]   ;;  %v7384_v46 = vld [vmem:[%s10708_s1 + $0x904] ss:$16 sps:$4 sm:$0xff]  }
  0xe4   :  { %5079 = vmatprep.subr.bf16.mxu0 %v7292_v47  ;;  %5612 = vmatprep.subr.bf16.mxu1 %v7295_v48  ;;  %v7387_v47 = vld [vmem:[%s10708_s1 + $0x90c] ss:$16 sps:$4 sm:$0xff]   ;;  %v7382_v48 = vld [vmem:[%s10708_s1 + $0x900] ss:$16 sps:$4 sm:$0xff]  }
  0xe7   :  { %5080 = vmatpush1.bf16.msra.mxu0 %v7290_v49  ;;  %5613 = vmatpush1.bf16.msra.mxu1 %v7293_v50  ;;  %v7385_v49 = vld [vmem:[%s10708_s1 + $0x908] ss:$16 sps:$4 sm:$0xff]   ;;  %v7390_v50 = vld [vmem:[%s10708_s1 + $0x924] ss:$16 sps:$4 sm:$0xff]  }
  0xe8   :  { %5081 = vmatprep.subr.bf16.mxu0 %v7298_v51  ;;  %5614 = vmatprep.subr.bf16.mxu1 %v7301_v52  ;;  %v7393_v51 = vld [vmem:[%s10708_s1 + $0x92c] ss:$16 sps:$4 sm:$0xff]   ;;  %v7388_v52 = vld [vmem:[%s10708_s1 + $0x920] ss:$16 sps:$4 sm:$0xff]  }
  0xeb   :  { %5082 = vmatpush1.bf16.msra.mxu0 %v7296_v53  ;;  %5615 = vmatpush1.bf16.msra.mxu1 %v7299_v54  ;;  %v7391_v53 = vld [vmem:[%s10708_s1 + $0x928] ss:$16 sps:$4 sm:$0xff]   ;;  %v7396_v54 = vld [vmem:[%s10708_s1 + $0x944] ss:$16 sps:$4 sm:$0xff]  }
  0xec   :  { %5083 = vmatprep.subr.bf16.mxu0 %v7304_v55  ;;  %5616 = vmatprep.subr.bf16.mxu1 %v7307_v56  ;;  %v7399_v55 = vld [vmem:[%s10708_s1 + $0x94c] ss:$16 sps:$4 sm:$0xff]   ;;  %v7394_v56 = vld [vmem:[%s10708_s1 + $0x940] ss:$16 sps:$4 sm:$0xff]  }
  0xef   :  { %5084 = vmatpush1.bf16.msra.mxu0 %v7302_v57  ;;  %5617 = vmatpush1.bf16.msra.mxu1 %v7305_v58  ;;  %v7397_v57 = vld [vmem:[%s10708_s1 + $0x948] ss:$16 sps:$4 sm:$0xff]   ;;  %v7402_v58 = vld [vmem:[%s10708_s1 + $0x964] ss:$16 sps:$4 sm:$0xff]  }
  0xf0   :  { %5085 = vmatprep.subr.bf16.mxu0 %v7310_v59  ;;  %5618 = vmatprep.subr.bf16.mxu1 %v7313_v60  ;;  %v7405_v59 = vld [vmem:[%s10708_s1 + $0x96c] ss:$16 sps:$4 sm:$0xff]   ;;  %v7400_v60 = vld [vmem:[%s10708_s1 + $0x960] ss:$16 sps:$4 sm:$0xff]  }
  0xf3   :  { %5086 = vmatpush1.bf16.msra.mxu0 %v7308_v61  ;;  %5619 = vmatpush1.bf16.msra.mxu1 %v7311_v62  ;;  %v7403_v61 = vld [vmem:[%s10708_s1 + $0x968] ss:$16 sps:$4 sm:$0xff]   ;;  %v7408_v62 = vld [vmem:[%s10708_s1 + $0x984] ss:$16 sps:$4 sm:$0xff]  }
  0xf4   :  { %5087 = vmatprep.subr.bf16.mxu0 %v7316_v63  ;;  %5620 = vmatprep.subr.bf16.mxu1 %v7319_v0  ;;  %v7411_v63 = vld [vmem:[%s10708_s1 + $0x98c] ss:$16 sps:$4 sm:$0xff]   ;;  %v7406_v0 = vld [vmem:[%s10708_s1 + $0x980] ss:$16 sps:$4 sm:$0xff]  }
  0xf7   :  { %5088 = vmatpush1.bf16.msra.mxu0 %v7314_v1  ;;  %5621 = vmatpush1.bf16.msra.mxu1 %v7317_v2  ;;  %v7409_v1 = vld [vmem:[%s10708_s1 + $0x988] ss:$16 sps:$4 sm:$0xff]   ;;  %v7414_v2 = vld [vmem:[%s10708_s1 + $0x9a4] ss:$16 sps:$4 sm:$0xff]  }
  0xf8   :  { %5089 = vmatprep.subr.bf16.mxu0 %v7322_v3  ;;  %5622 = vmatprep.subr.bf16.mxu1 %v7325_v4  ;;  %v7417_v3 = vld [vmem:[%s10708_s1 + $0x9ac] ss:$16 sps:$4 sm:$0xff]   ;;  %v7412_v4 = vld [vmem:[%s10708_s1 + $0x9a0] ss:$16 sps:$4 sm:$0xff]  }
  0xfb   :  { %5090 = vmatpush1.bf16.msra.mxu0 %v7320_v5  ;;  %5623 = vmatpush1.bf16.msra.mxu1 %v7323_v6  ;;  %v7415_v5 = vld [vmem:[%s10708_s1 + $0x9a8] ss:$16 sps:$4 sm:$0xff]   ;;  %v7420_v6 = vld [vmem:[%s10708_s1 + $0x9c4] ss:$16 sps:$4 sm:$0xff]  }
  0xfc   :  { %5091 = vmatprep.subr.bf16.mxu0 %v7328_v7  ;;  %5624 = vmatprep.subr.bf16.mxu1 %v7331_v8  ;;  %v7423_v7 = vld [vmem:[%s10708_s1 + $0x9cc] ss:$16 sps:$4 sm:$0xff]   ;;  %v7418_v8 = vld [vmem:[%s10708_s1 + $0x9c0] ss:$16 sps:$4 sm:$0xff]  }
  0xff   :  { %5092 = vmatpush1.bf16.msra.mxu0 %v7326_v9  ;;  %5625 = vmatpush1.bf16.msra.mxu1 %v7329_v10  ;;  %v7421_v9 = vld [vmem:[%s10708_s1 + $0x9c8] ss:$16 sps:$4 sm:$0xff]   ;;  %v7426_v10 = vld [vmem:[%s10708_s1 + $0x9e4] ss:$16 sps:$4 sm:$0xff]  }
 0x100   :  { %5102 = vmatprep.subr.bf16.mxu0 %v7336_v12  ;;  %5635 = vmatprep.subr.bf16.mxu1 %v7339_v13  ;;  %v7429_v12 = vld [vmem:[%s10708_s1 + $0x9ec] ss:$16 sps:$4 sm:$0xff]   ;;  %v7424_v13 = vld [vmem:[%s10708_s1 + $0x9e0] ss:$16 sps:$4 sm:$0xff]  }
 0x102   :  { %5094 = vmatmul.mubr.bf16.vlgmr.msra.gmra.mrb[0].mxu0 %v6022_v11  ;;  %5627 = vmatmul.mubr.bf16.vlgmr.msra.gmra.mrb[0].mxu1 %v6022_v11  ;;  %v7434_v11 = vld [vmem:[%s10708_s1 + $0xa04] ss:$16 sps:$4 sm:$0xff]  }
 0x103   :  { %5103 = vmatpush1.bf16.msra.mxu0 %v7334_v15  ;;  %5636 = vmatpush1.bf16.msra.mxu1 %v7337_v17  ;;  %v7427_v15 = vld [vmem:[%s10708_s1 + $0x9e8] ss:$16 sps:$4 sm:$0xff]   ;;  %v7437_v17 = vld [vmem:[%s10708_s1 + $0xa0c] ss:$16 sps:$4 sm:$0xff]  }
 0x104   :  { %5104 = vmatprep.subr.bf16.mxu0 %v7342_v18  ;;  %5637 = vmatprep.subr.bf16.mxu1 %v7345_v14  ;;  %v9194_v18 = vld [vmem:[%s10709_s0 + $0x28] sm:$0xff]  ;;  %v6024_v14 = vcombine.low %v8998_v16, %v8998_v16 }
 0x105   :  { %5134 = vmatprep.mubr.bf16.mxu0 %v6025_v19  ;;  %5667 = vmatprep.mubr.bf16.mxu1 %v6025_v19  ;;  %v7432_v19 = vld [vmem:[%s10708_s1 + $0xa00] ss:$16 sps:$4 sm:$0xff]   ;;  %v7443_v16 = vld [vmem:[%s10708_s1 + $0xa2c] ss:$16 sps:$4 sm:$0xff]  }
 0x107   :  { %5105 = vmatpush1.bf16.msra.mxu0 %v7340_v20  ;;  %5638 = vmatpush1.bf16.msra.mxu1 %v7343_v21  ;;  %v7435_v20 = vld [vmem:[%s10708_s1 + $0xa08] ss:$16 sps:$4 sm:$0xff]   ;;  %v7440_v21 = vld [vmem:[%s10708_s1 + $0xa24] ss:$16 sps:$4 sm:$0xff]  }
 0x108   :  { %5106 = vmatprep.subr.bf16.mxu0 %v7348_v22  ;;  %5639 = vmatprep.subr.bf16.mxu1 %v7351_v23  ;;  %v6027_v22 = vcombine.high %v9194_v18, %v9194_v18  ;;  %v7438_v23 = vld [vmem:[%s10708_s1 + $0xa20] ss:$16 sps:$4 sm:$0xff]  }
 0x10b   :  { %5107 = vmatpush1.bf16.msra.mxu0 %v7346_v24  ;;  %5640 = vmatpush1.bf16.msra.mxu1 %v7349_v25  ;;  %v7441_v24 = vld [vmem:[%s10708_s1 + $0xa28] ss:$16 sps:$4 sm:$0xff]   ;;  %v7446_v25 = vld [vmem:[%s10708_s1 + $0xa44] ss:$16 sps:$4 sm:$0xff]  }
 0x10c   :  { %5108 = vmatprep.subr.bf16.mxu0 %v7354_v26  ;;  %5641 = vmatprep.subr.bf16.mxu1 %v7357_v27  ;;  %v7449_v26 = vld [vmem:[%s10708_s1 + $0xa4c] ss:$16 sps:$4 sm:$0xff]   ;;  %v7444_v27 = vld [vmem:[%s10708_s1 + $0xa40] ss:$16 sps:$4 sm:$0xff]  }
 0x10f   :  { %5109 = vmatpush1.bf16.msra.mxu0 %v7352_v28  ;;  %5642 = vmatpush1.bf16.msra.mxu1 %v7355_v29  ;;  %v7447_v28 = vld [vmem:[%s10708_s1 + $0xa48] ss:$16 sps:$4 sm:$0xff]   ;;  %v7452_v29 = vld [vmem:[%s10708_s1 + $0xa64] ss:$16 sps:$4 sm:$0xff]  }
 0x110   :  { %5110 = vmatprep.subr.bf16.mxu0 %v7360_v30  ;;  %5643 = vmatprep.subr.bf16.mxu1 %v7363_v31  ;;  %v7455_v30 = vld [vmem:[%s10708_s1 + $0xa6c] ss:$16 sps:$4 sm:$0xff]   ;;  %v7450_v31 = vld [vmem:[%s10708_s1 + $0xa60] ss:$16 sps:$4 sm:$0xff]  }
 0x113   :  { %5111 = vmatpush1.bf16.msra.mxu0 %v7358_v32  ;;  %5644 = vmatpush1.bf16.msra.mxu1 %v7361_v33  ;;  %v7453_v32 = vld [vmem:[%s10708_s1 + $0xa68] ss:$16 sps:$4 sm:$0xff]   ;;  %v7458_v33 = vld [vmem:[%s10708_s1 + $0xa84] ss:$16 sps:$4 sm:$0xff]  }
 0x114   :  { %5112 = vmatprep.subr.bf16.mxu0 %v7366_v34  ;;  %5645 = vmatprep.subr.bf16.mxu1 %v7369_v35  ;;  %v7461_v34 = vld [vmem:[%s10708_s1 + $0xa8c] ss:$16 sps:$4 sm:$0xff]   ;;  %v7456_v35 = vld [vmem:[%s10708_s1 + $0xa80] ss:$16 sps:$4 sm:$0xff]  }
 0x117   :  { %5113 = vmatpush1.bf16.msra.mxu0 %v7364_v36  ;;  %5646 = vmatpush1.bf16.msra.mxu1 %v7367_v37  ;;  %v7459_v36 = vld [vmem:[%s10708_s1 + $0xa88] ss:$16 sps:$4 sm:$0xff]   ;;  %v7464_v37 = vld [vmem:[%s10708_s1 + $0xaa4] ss:$16 sps:$4 sm:$0xff]  }
 0x118   :  { %5114 = vmatprep.subr.bf16.mxu0 %v7372_v38  ;;  %5647 = vmatprep.subr.bf16.mxu1 %v7375_v39  ;;  %v7467_v38 = vld [vmem:[%s10708_s1 + $0xaac] ss:$16 sps:$4 sm:$0xff]   ;;  %v7462_v39 = vld [vmem:[%s10708_s1 + $0xaa0] ss:$16 sps:$4 sm:$0xff]  }
 0x11b   :  { %5115 = vmatpush1.bf16.msra.mxu0 %v7370_v40  ;;  %5648 = vmatpush1.bf16.msra.mxu1 %v7373_v41  ;;  %v7465_v40 = vld [vmem:[%s10708_s1 + $0xaa8] ss:$16 sps:$4 sm:$0xff]   ;;  %v7470_v41 = vld [vmem:[%s10708_s1 + $0xac4] ss:$16 sps:$4 sm:$0xff]  }
 0x11c   :  { %5116 = vmatprep.subr.bf16.mxu0 %v7378_v42  ;;  %5649 = vmatprep.subr.bf16.mxu1 %v7381_v43  ;;  %v7473_v42 = vld [vmem:[%s10708_s1 + $0xacc] ss:$16 sps:$4 sm:$0xff]   ;;  %v7468_v43 = vld [vmem:[%s10708_s1 + $0xac0] ss:$16 sps:$4 sm:$0xff]  }
 0x11f   :  { %5117 = vmatpush1.bf16.msra.mxu0 %v7376_v44  ;;  %5650 = vmatpush1.bf16.msra.mxu1 %v7379_v45  ;;  %v7471_v44 = vld [vmem:[%s10708_s1 + $0xac8] ss:$16 sps:$4 sm:$0xff]   ;;  %v7476_v45 = vld [vmem:[%s10708_s1 + $0xae4] ss:$16 sps:$4 sm:$0xff]  }
 0x120   :  { %5118 = vmatprep.subr.bf16.mxu0 %v7384_v46  ;;  %5651 = vmatprep.subr.bf16.mxu1 %v7387_v47  ;;  %v7479_v46 = vld [vmem:[%s10708_s1 + $0xaec] ss:$16 sps:$4 sm:$0xff]   ;;  %v7474_v47 = vld [vmem:[%s10708_s1 + $0xae0] ss:$16 sps:$4 sm:$0xff]  }
 0x123   :  { %5119 = vmatpush1.bf16.msra.mxu0 %v7382_v48  ;;  %5652 = vmatpush1.bf16.msra.mxu1 %v7385_v49  ;;  %v7477_v48 = vld [vmem:[%s10708_s1 + $0xae8] ss:$16 sps:$4 sm:$0xff]   ;;  %v7482_v49 = vld [vmem:[%s10708_s1 + $0xb04] ss:$16 sps:$4 sm:$0xff]  }
 0x124   :  { %5120 = vmatprep.subr.bf16.mxu0 %v7390_v50  ;;  %5653 = vmatprep.subr.bf16.mxu1 %v7393_v51  ;;  %v7485_v50 = vld [vmem:[%s10708_s1 + $0xb0c] ss:$16 sps:$4 sm:$0xff]   ;;  %v7480_v51 = vld [vmem:[%s10708_s1 + $0xb00] ss:$16 sps:$4 sm:$0xff]  }
 0x127   :  { %5121 = vmatpush1.bf16.msra.mxu0 %v7388_v52  ;;  %5654 = vmatpush1.bf16.msra.mxu1 %v7391_v53  ;;  %v7483_v52 = vld [vmem:[%s10708_s1 + $0xb08] ss:$16 sps:$4 sm:$0xff]   ;;  %v7488_v53 = vld [vmem:[%s10708_s1 + $0xb24] ss:$16 sps:$4 sm:$0xff]  }
 0x128   :  { %5122 = vmatprep.subr.bf16.mxu0 %v7396_v54  ;;  %5655 = vmatprep.subr.bf16.mxu1 %v7399_v55  ;;  %v7491_v54 = vld [vmem:[%s10708_s1 + $0xb2c] ss:$16 sps:$4 sm:$0xff]   ;;  %v7486_v55 = vld [vmem:[%s10708_s1 + $0xb20] ss:$16 sps:$4 sm:$0xff]  }
 0x12b   :  { %5123 = vmatpush1.bf16.msra.mxu0 %v7394_v56  ;;  %5656 = vmatpush1.bf16.msra.mxu1 %v7397_v57  ;;  %v7489_v56 = vld [vmem:[%s10708_s1 + $0xb28] ss:$16 sps:$4 sm:$0xff]   ;;  %v7494_v57 = vld [vmem:[%s10708_s1 + $0xb44] ss:$16 sps:$4 sm:$0xff]  }
 0x12c   :  { %5124 = vmatprep.subr.bf16.mxu0 %v7402_v58  ;;  %5657 = vmatprep.subr.bf16.mxu1 %v7405_v59  ;;  %v7497_v58 = vld [vmem:[%s10708_s1 + $0xb4c] ss:$16 sps:$4 sm:$0xff]   ;;  %v7492_v59 = vld [vmem:[%s10708_s1 + $0xb40] ss:$16 sps:$4 sm:$0xff]  }
 0x12f   :  { %5125 = vmatpush1.bf16.msra.mxu0 %v7400_v60  ;;  %5658 = vmatpush1.bf16.msra.mxu1 %v7403_v61  ;;  %v7495_v60 = vld [vmem:[%s10708_s1 + $0xb48] ss:$16 sps:$4 sm:$0xff]   ;;  %v7500_v61 = vld [vmem:[%s10708_s1 + $0xb64] ss:$16 sps:$4 sm:$0xff]  }
 0x130   :  { %5126 = vmatprep.subr.bf16.mxu0 %v7408_v62  ;;  %5659 = vmatprep.subr.bf16.mxu1 %v7411_v63  ;;  %v7503_v62 = vld [vmem:[%s10708_s1 + $0xb6c] ss:$16 sps:$4 sm:$0xff]   ;;  %v7498_v63 = vld [vmem:[%s10708_s1 + $0xb60] ss:$16 sps:$4 sm:$0xff]  }
 0x133   :  { %5127 = vmatpush1.bf16.msra.mxu0 %v7406_v0  ;;  %5660 = vmatpush1.bf16.msra.mxu1 %v7409_v1  ;;  %v7501_v0 = vld [vmem:[%s10708_s1 + $0xb68] ss:$16 sps:$4 sm:$0xff]   ;;  %v7506_v1 = vld [vmem:[%s10708_s1 + $0xb84] ss:$16 sps:$4 sm:$0xff]  }
 0x134   :  { %5128 = vmatprep.subr.bf16.mxu0 %v7414_v2  ;;  %5661 = vmatprep.subr.bf16.mxu1 %v7417_v3  ;;  %v7509_v2 = vld [vmem:[%s10708_s1 + $0xb8c] ss:$16 sps:$4 sm:$0xff]   ;;  %v7504_v3 = vld [vmem:[%s10708_s1 + $0xb80] ss:$16 sps:$4 sm:$0xff]  }
 0x137   :  { %5129 = vmatpush1.bf16.msra.mxu0 %v7412_v4  ;;  %5662 = vmatpush1.bf16.msra.mxu1 %v7415_v5  ;;  %v7507_v4 = vld [vmem:[%s10708_s1 + $0xb88] ss:$16 sps:$4 sm:$0xff]   ;;  %v7512_v5 = vld [vmem:[%s10708_s1 + $0xba4] ss:$16 sps:$4 sm:$0xff]  }
 0x138   :  { %5130 = vmatprep.subr.bf16.mxu0 %v7420_v6  ;;  %5663 = vmatprep.subr.bf16.mxu1 %v7423_v7  ;;  %v7515_v6 = vld [vmem:[%s10708_s1 + $0xbac] ss:$16 sps:$4 sm:$0xff]   ;;  %v7510_v7 = vld [vmem:[%s10708_s1 + $0xba0] ss:$16 sps:$4 sm:$0xff]  }
 0x13b   :  { %5131 = vmatpush1.bf16.msra.mxu0 %v7418_v8  ;;  %5664 = vmatpush1.bf16.msra.mxu1 %v7421_v9  ;;  %v7513_v8 = vld [vmem:[%s10708_s1 + $0xba8] ss:$16 sps:$4 sm:$0xff]   ;;  %v7518_v9 = vld [vmem:[%s10708_s1 + $0xbc4] ss:$16 sps:$4 sm:$0xff]  }
 0x13c   :  { %5132 = vmatprep.subr.bf16.mxu0 %v7426_v10  ;;  %5665 = vmatprep.subr.bf16.mxu1 %v7429_v12  ;;  %v7521_v10 = vld [vmem:[%s10708_s1 + $0xbcc] ss:$16 sps:$4 sm:$0xff]   ;;  %v7516_v12 = vld [vmem:[%s10708_s1 + $0xbc0] ss:$16 sps:$4 sm:$0xff]  }
 0x13f   :  { %5133 = vmatpush1.bf16.msra.mxu0 %v7424_v13  ;;  %5666 = vmatpush1.bf16.msra.mxu1 %v7427_v15  ;;  %v7519_v13 = vld [vmem:[%s10708_s1 + $0xbc8] ss:$16 sps:$4 sm:$0xff]   ;;  %v7524_v15 = vld [vmem:[%s10708_s1 + $0xbe4] ss:$16 sps:$4 sm:$0xff]  }
 0x140   :  { %5143 = vmatprep.subr.bf16.mxu0 %v7434_v11  ;;  %5676 = vmatprep.subr.bf16.mxu1 %v7437_v17  ;;  %v7527_v11 = vld [vmem:[%s10708_s1 + $0xbec] ss:$16 sps:$4 sm:$0xff]   ;;  %v7522_v17 = vld [vmem:[%s10708_s1 + $0xbe0] ss:$16 sps:$4 sm:$0xff]  }
 0x142   :  { %5135 = vmatmul.mubr.bf16.vlgmr.msra.gmra.mrb[0].mxu0 %v6024_v14  ;;  %5668 = vmatmul.mubr.bf16.vlgmr.msra.gmra.mrb[0].mxu1 %v6024_v14  ;;  %v7525_v14 = vld [vmem:[%s10708_s1 + $0xbe8] ss:$16 sps:$4 sm:$0xff]  }
 0x143   :  { %5144 = vmatpush1.bf16.msra.mxu0 %v7432_v19  ;;  %5677 = vmatpush1.bf16.msra.mxu1 %v7435_v20  ;;  %v7532_v19 = vld [vmem:[%s10708_s1 + $0xc04] ss:$16 sps:$4 sm:$0xff]   ;;  %v7535_v20 = vld [vmem:[%s10708_s1 + $0xc0c] ss:$16 sps:$4 sm:$0xff]  }
 0x144   :  { %5145 = vmatprep.subr.bf16.mxu0 %v7440_v21  ;;  %5678 = vmatprep.subr.bf16.mxu1 %v7443_v16  ;;  %v9395_v21 = vld [vmem:[%s10709_s0 + $0x30] sm:$0xff]  ;;  %v6026_v16 = vcombine.low %v9194_v18, %v9194_v18  ;;  %v7541_v18 = vld [vmem:[%s10708_s1 + $0xc2c] ss:$16 sps:$4 sm:$0xff]  }
 0x145   :  { %5175 = vmatprep.mubr.bf16.mxu0 %v6027_v22  ;;  %5708 = vmatprep.mubr.bf16.mxu1 %v6027_v22  ;;  %v7530_v22 = vld [vmem:[%s10708_s1 + $0xc00] ss:$16 sps:$4 sm:$0xff]  }
 0x147   :  { %5146 = vmatpush1.bf16.msra.mxu0 %v7438_v23  ;;  %5679 = vmatpush1.bf16.msra.mxu1 %v7441_v24  ;;  %v7533_v23 = vld [vmem:[%s10708_s1 + $0xc08] ss:$16 sps:$4 sm:$0xff]   ;;  %v7538_v24 = vld [vmem:[%s10708_s1 + $0xc24] ss:$16 sps:$4 sm:$0xff]  }
 0x148   :  { %5147 = vmatprep.subr.bf16.mxu0 %v7446_v25  ;;  %5680 = vmatprep.subr.bf16.mxu1 %v7449_v26  ;;  %v6029_v25 = vcombine.high %v9395_v21, %v9395_v21  ;;  %v7536_v26 = vld [vmem:[%s10708_s1 + $0xc20] ss:$16 sps:$4 sm:$0xff]  }
 0x14b   :  { %5148 = vmatpush1.bf16.msra.mxu0 %v7444_v27  ;;  %5681 = vmatpush1.bf16.msra.mxu1 %v7447_v28  ;;  %v7539_v27 = vld [vmem:[%s10708_s1 + $0xc28] ss:$16 sps:$4 sm:$0xff]   ;;  %v7544_v28 = vld [vmem:[%s10708_s1 + $0xc44] ss:$16 sps:$4 sm:$0xff]  }
 0x14c   :  { %5149 = vmatprep.subr.bf16.mxu0 %v7452_v29  ;;  %5682 = vmatprep.subr.bf16.mxu1 %v7455_v30  ;;  %v7547_v29 = vld [vmem:[%s10708_s1 + $0xc4c] ss:$16 sps:$4 sm:$0xff]   ;;  %v7542_v30 = vld [vmem:[%s10708_s1 + $0xc40] ss:$16 sps:$4 sm:$0xff]  }
 0x14f   :  { %5150 = vmatpush1.bf16.msra.mxu0 %v7450_v31  ;;  %5683 = vmatpush1.bf16.msra.mxu1 %v7453_v32  ;;  %v7545_v31 = vld [vmem:[%s10708_s1 + $0xc48] ss:$16 sps:$4 sm:$0xff]   ;;  %v7550_v32 = vld [vmem:[%s10708_s1 + $0xc64] ss:$16 sps:$4 sm:$0xff]  }
 0x150   :  { %5151 = vmatprep.subr.bf16.mxu0 %v7458_v33  ;;  %5684 = vmatprep.subr.bf16.mxu1 %v7461_v34  ;;  %v7553_v33 = vld [vmem:[%s10708_s1 + $0xc6c] ss:$16 sps:$4 sm:$0xff]   ;;  %v7548_v34 = vld [vmem:[%s10708_s1 + $0xc60] ss:$16 sps:$4 sm:$0xff]  }
 0x153   :  { %5152 = vmatpush1.bf16.msra.mxu0 %v7456_v35  ;;  %5685 = vmatpush1.bf16.msra.mxu1 %v7459_v36  ;;  %v7551_v35 = vld [vmem:[%s10708_s1 + $0xc68] ss:$16 sps:$4 sm:$0xff]   ;;  %v7556_v36 = vld [vmem:[%s10708_s1 + $0xc84] ss:$16 sps:$4 sm:$0xff]  }
 0x154   :  { %5153 = vmatprep.subr.bf16.mxu0 %v7464_v37  ;;  %5686 = vmatprep.subr.bf16.mxu1 %v7467_v38  ;;  %v7559_v37 = vld [vmem:[%s10708_s1 + $0xc8c] ss:$16 sps:$4 sm:$0xff]   ;;  %v7554_v38 = vld [vmem:[%s10708_s1 + $0xc80] ss:$16 sps:$4 sm:$0xff]  }
 0x157   :  { %5154 = vmatpush1.bf16.msra.mxu0 %v7462_v39  ;;  %5687 = vmatpush1.bf16.msra.mxu1 %v7465_v40  ;;  %v7557_v39 = vld [vmem:[%s10708_s1 + $0xc88] ss:$16 sps:$4 sm:$0xff]   ;;  %v7562_v40 = vld [vmem:[%s10708_s1 + $0xca4] ss:$16 sps:$4 sm:$0xff]  }
 0x158   :  { %5155 = vmatprep.subr.bf16.mxu0 %v7470_v41  ;;  %5688 = vmatprep.subr.bf16.mxu1 %v7473_v42  ;;  %v7565_v41 = vld [vmem:[%s10708_s1 + $0xcac] ss:$16 sps:$4 sm:$0xff]   ;;  %v7560_v42 = vld [vmem:[%s10708_s1 + $0xca0] ss:$16 sps:$4 sm:$0xff]  }
 0x15b   :  { %5156 = vmatpush1.bf16.msra.mxu0 %v7468_v43  ;;  %5689 = vmatpush1.bf16.msra.mxu1 %v7471_v44  ;;  %v7563_v43 = vld [vmem:[%s10708_s1 + $0xca8] ss:$16 sps:$4 sm:$0xff]   ;;  %v7568_v44 = vld [vmem:[%s10708_s1 + $0xcc4] ss:$16 sps:$4 sm:$0xff]  }
 0x15c   :  { %5157 = vmatprep.subr.bf16.mxu0 %v7476_v45  ;;  %5690 = vmatprep.subr.bf16.mxu1 %v7479_v46  ;;  %v7571_v45 = vld [vmem:[%s10708_s1 + $0xccc] ss:$16 sps:$4 sm:$0xff]   ;;  %v7566_v46 = vld [vmem:[%s10708_s1 + $0xcc0] ss:$16 sps:$4 sm:$0xff]  }
 0x15f   :  { %5158 = vmatpush1.bf16.msra.mxu0 %v7474_v47  ;;  %5691 = vmatpush1.bf16.msra.mxu1 %v7477_v48  ;;  %v7569_v47 = vld [vmem:[%s10708_s1 + $0xcc8] ss:$16 sps:$4 sm:$0xff]   ;;  %v7574_v48 = vld [vmem:[%s10708_s1 + $0xce4] ss:$16 sps:$4 sm:$0xff]  }
 0x160   :  { %5159 = vmatprep.subr.bf16.mxu0 %v7482_v49  ;;  %5692 = vmatprep.subr.bf16.mxu1 %v7485_v50  ;;  %v7577_v49 = vld [vmem:[%s10708_s1 + $0xcec] ss:$16 sps:$4 sm:$0xff]   ;;  %v7572_v50 = vld [vmem:[%s10708_s1 + $0xce0] ss:$16 sps:$4 sm:$0xff]  }
 0x163   :  { %5160 = vmatpush1.bf16.msra.mxu0 %v7480_v51  ;;  %5693 = vmatpush1.bf16.msra.mxu1 %v7483_v52  ;;  %v7575_v51 = vld [vmem:[%s10708_s1 + $0xce8] ss:$16 sps:$4 sm:$0xff]   ;;  %v7580_v52 = vld [vmem:[%s10708_s1 + $0xd04] ss:$16 sps:$4 sm:$0xff]  }
 0x164   :  { %5161 = vmatprep.subr.bf16.mxu0 %v7488_v53  ;;  %5694 = vmatprep.subr.bf16.mxu1 %v7491_v54  ;;  %v7583_v53 = vld [vmem:[%s10708_s1 + $0xd0c] ss:$16 sps:$4 sm:$0xff]   ;;  %v7578_v54 = vld [vmem:[%s10708_s1 + $0xd00] ss:$16 sps:$4 sm:$0xff]  }
 0x167   :  { %5162 = vmatpush1.bf16.msra.mxu0 %v7486_v55  ;;  %5695 = vmatpush1.bf16.msra.mxu1 %v7489_v56  ;;  %v7581_v55 = vld [vmem:[%s10708_s1 + $0xd08] ss:$16 sps:$4 sm:$0xff]   ;;  %v7586_v56 = vld [vmem:[%s10708_s1 + $0xd24] ss:$16 sps:$4 sm:$0xff]  }
 0x168   :  { %5163 = vmatprep.subr.bf16.mxu0 %v7494_v57  ;;  %5696 = vmatprep.subr.bf16.mxu1 %v7497_v58  ;;  %v7589_v57 = vld [vmem:[%s10708_s1 + $0xd2c] ss:$16 sps:$4 sm:$0xff]   ;;  %v7584_v58 = vld [vmem:[%s10708_s1 + $0xd20] ss:$16 sps:$4 sm:$0xff]  }
 0x16b   :  { %5164 = vmatpush1.bf16.msra.mxu0 %v7492_v59  ;;  %5697 = vmatpush1.bf16.msra.mxu1 %v7495_v60  ;;  %v7587_v59 = vld [vmem:[%s10708_s1 + $0xd28] ss:$16 sps:$4 sm:$0xff]   ;;  %v7592_v60 = vld [vmem:[%s10708_s1 + $0xd44] ss:$16 sps:$4 sm:$0xff]  }
 0x16c   :  { %5165 = vmatprep.subr.bf16.mxu0 %v7500_v61  ;;  %5698 = vmatprep.subr.bf16.mxu1 %v7503_v62  ;;  %v7595_v61 = vld [vmem:[%s10708_s1 + $0xd4c] ss:$16 sps:$4 sm:$0xff]   ;;  %v7590_v62 = vld [vmem:[%s10708_s1 + $0xd40] ss:$16 sps:$4 sm:$0xff]  }
 0x16f   :  { %5166 = vmatpush1.bf16.msra.mxu0 %v7498_v63  ;;  %5699 = vmatpush1.bf16.msra.mxu1 %v7501_v0  ;;  %v7593_v63 = vld [vmem:[%s10708_s1 + $0xd48] ss:$16 sps:$4 sm:$0xff]   ;;  %v7598_v0 = vld [vmem:[%s10708_s1 + $0xd64] ss:$16 sps:$4 sm:$0xff]  }
 0x170   :  { %5167 = vmatprep.subr.bf16.mxu0 %v7506_v1  ;;  %5700 = vmatprep.subr.bf16.mxu1 %v7509_v2  ;;  %v7601_v1 = vld [vmem:[%s10708_s1 + $0xd6c] ss:$16 sps:$4 sm:$0xff]   ;;  %v7596_v2 = vld [vmem:[%s10708_s1 + $0xd60] ss:$16 sps:$4 sm:$0xff]  }
 0x173   :  { %5168 = vmatpush1.bf16.msra.mxu0 %v7504_v3  ;;  %5701 = vmatpush1.bf16.msra.mxu1 %v7507_v4  ;;  %v7599_v3 = vld [vmem:[%s10708_s1 + $0xd68] ss:$16 sps:$4 sm:$0xff]   ;;  %v7604_v4 = vld [vmem:[%s10708_s1 + $0xd84] ss:$16 sps:$4 sm:$0xff]  }
 0x174   :  { %5169 = vmatprep.subr.bf16.mxu0 %v7512_v5  ;;  %5702 = vmatprep.subr.bf16.mxu1 %v7515_v6  ;;  %v7607_v5 = vld [vmem:[%s10708_s1 + $0xd8c] ss:$16 sps:$4 sm:$0xff]   ;;  %v7602_v6 = vld [vmem:[%s10708_s1 + $0xd80] ss:$16 sps:$4 sm:$0xff]  }
 0x177   :  { %5170 = vmatpush1.bf16.msra.mxu0 %v7510_v7  ;;  %5703 = vmatpush1.bf16.msra.mxu1 %v7513_v8  ;;  %v7605_v7 = vld [vmem:[%s10708_s1 + $0xd88] ss:$16 sps:$4 sm:$0xff]   ;;  %v7610_v8 = vld [vmem:[%s10708_s1 + $0xda4] ss:$16 sps:$4 sm:$0xff]  }
 0x178   :  { %5171 = vmatprep.subr.bf16.mxu0 %v7518_v9  ;;  %5704 = vmatprep.subr.bf16.mxu1 %v7521_v10  ;;  %v7613_v9 = vld [vmem:[%s10708_s1 + $0xdac] ss:$16 sps:$4 sm:$0xff]   ;;  %v7608_v10 = vld [vmem:[%s10708_s1 + $0xda0] ss:$16 sps:$4 sm:$0xff]  }
 0x17b   :  { %5172 = vmatpush1.bf16.msra.mxu0 %v7516_v12  ;;  %5705 = vmatpush1.bf16.msra.mxu1 %v7519_v13  ;;  %v7611_v12 = vld [vmem:[%s10708_s1 + $0xda8] ss:$16 sps:$4 sm:$0xff]   ;;  %v7616_v13 = vld [vmem:[%s10708_s1 + $0xdc4] ss:$16 sps:$4 sm:$0xff]  }
 0x17c   :  { %5173 = vmatprep.subr.bf16.mxu0 %v7524_v15  ;;  %5706 = vmatprep.subr.bf16.mxu1 %v7527_v11  ;;  %v7619_v15 = vld [vmem:[%s10708_s1 + $0xdcc] ss:$16 sps:$4 sm:$0xff]   ;;  %v7614_v11 = vld [vmem:[%s10708_s1 + $0xdc0] ss:$16 sps:$4 sm:$0xff]  }
 0x17f   :  { %5174 = vmatpush1.bf16.msra.mxu0 %v7522_v17  ;;  %5707 = vmatpush1.bf16.msra.mxu1 %v7525_v14  ;;  %v7617_v17 = vld [vmem:[%s10708_s1 + $0xdc8] ss:$16 sps:$4 sm:$0xff]   ;;  %v7622_v14 = vld [vmem:[%s10708_s1 + $0xde4] ss:$16 sps:$4 sm:$0xff]  }
 0x180   :  { %5184 = vmatprep.subr.bf16.mxu0 %v7532_v19  ;;  %5717 = vmatprep.subr.bf16.mxu1 %v7535_v20  ;;  %v7625_v19 = vld [vmem:[%s10708_s1 + $0xdec] ss:$16 sps:$4 sm:$0xff]   ;;  %v7620_v20 = vld [vmem:[%s10708_s1 + $0xde0] ss:$16 sps:$4 sm:$0xff]  }
 0x182   :  { %5176 = vmatmul.mubr.bf16.vlgmr.msra.gmra.mrb[0].mxu0 %v6026_v16  ;;  %5709 = vmatmul.mubr.bf16.vlgmr.msra.gmra.mrb[0].mxu1 %v6026_v16  ;;  %v7623_v16 = vld [vmem:[%s10708_s1 + $0xde8] ss:$16 sps:$4 sm:$0xff]  }
 0x183   :  { %5185 = vmatpush1.bf16.msra.mxu0 %v7530_v22  ;;  %5718 = vmatpush1.bf16.msra.mxu1 %v7533_v23  ;;  %v7630_v22 = vld [vmem:[%s10708_s1 + $0xe04] ss:$16 sps:$4 sm:$0xff]   ;;  %v7633_v23 = vld [vmem:[%s10708_s1 + $0xe0c] ss:$16 sps:$4 sm:$0xff]  }
 0x184   :  { %5186 = vmatprep.subr.bf16.mxu0 %v7538_v24  ;;  %5719 = vmatprep.subr.bf16.mxu1 %v7541_v18  ;;  %v9596_v24 = vld [vmem:[%s10709_s0 + $0x38] sm:$0xff]  ;;  %v6028_v18 = vcombine.low %v9395_v21, %v9395_v21 }
 0x185   :  { %5216 = vmatprep.mubr.bf16.mxu0 %v6029_v25  ;;  %5749 = vmatprep.mubr.bf16.mxu1 %v6029_v25  ;;  %v7628_v25 = vld [vmem:[%s10708_s1 + $0xe00] ss:$16 sps:$4 sm:$0xff]   ;;  %v7639_v21 = vld [vmem:[%s10708_s1 + $0xe2c] ss:$16 sps:$4 sm:$0xff]  }
 0x187   :  { %5187 = vmatpush1.bf16.msra.mxu0 %v7536_v26  ;;  %5720 = vmatpush1.bf16.msra.mxu1 %v7539_v27  ;;  %v7631_v26 = vld [vmem:[%s10708_s1 + $0xe08] ss:$16 sps:$4 sm:$0xff]   ;;  %v7636_v27 = vld [vmem:[%s10708_s1 + $0xe24] ss:$16 sps:$4 sm:$0xff]  }
 0x188   :  { %5188 = vmatprep.subr.bf16.mxu0 %v7544_v28  ;;  %5721 = vmatprep.subr.bf16.mxu1 %v7547_v29  ;;  %v6031_v28 = vcombine.high %v9596_v24, %v9596_v24  ;;  %v7634_v29 = vld [vmem:[%s10708_s1 + $0xe20] ss:$16 sps:$4 sm:$0xff]  }
 0x18b   :  { %5189 = vmatpush1.bf16.msra.mxu0 %v7542_v30  ;;  %5722 = vmatpush1.bf16.msra.mxu1 %v7545_v31  ;;  %v7637_v30 = vld [vmem:[%s10708_s1 + $0xe28] ss:$16 sps:$4 sm:$0xff]   ;;  %v7642_v31 = vld [vmem:[%s10708_s1 + $0xe44] ss:$16 sps:$4 sm:$0xff]  }
 0x18c   :  { %5190 = vmatprep.subr.bf16.mxu0 %v7550_v32  ;;  %5723 = vmatprep.subr.bf16.mxu1 %v7553_v33  ;;  %v7645_v32 = vld [vmem:[%s10708_s1 + $0xe4c] ss:$16 sps:$4 sm:$0xff]   ;;  %v7640_v33 = vld [vmem:[%s10708_s1 + $0xe40] ss:$16 sps:$4 sm:$0xff]  }
 0x18f   :  { %5191 = vmatpush1.bf16.msra.mxu0 %v7548_v34  ;;  %5724 = vmatpush1.bf16.msra.mxu1 %v7551_v35  ;;  %v7643_v34 = vld [vmem:[%s10708_s1 + $0xe48] ss:$16 sps:$4 sm:$0xff]   ;;  %v7648_v35 = vld [vmem:[%s10708_s1 + $0xe64] ss:$16 sps:$4 sm:$0xff]  }
 0x190   :  { %5192 = vmatprep.subr.bf16.mxu0 %v7556_v36  ;;  %5725 = vmatprep.subr.bf16.mxu1 %v7559_v37  ;;  %v7651_v36 = vld [vmem:[%s10708_s1 + $0xe6c] ss:$16 sps:$4 sm:$0xff]   ;;  %v7646_v37 = vld [vmem:[%s10708_s1 + $0xe60] ss:$16 sps:$4 sm:$0xff]  }
 0x193   :  { %5193 = vmatpush1.bf16.msra.mxu0 %v7554_v38  ;;  %5726 = vmatpush1.bf16.msra.mxu1 %v7557_v39  ;;  %v7649_v38 = vld [vmem:[%s10708_s1 + $0xe68] ss:$16 sps:$4 sm:$0xff]   ;;  %v7654_v39 = vld [vmem:[%s10708_s1 + $0xe84] ss:$16 sps:$4 sm:$0xff]  }
 0x194   :  { %5194 = vmatprep.subr.bf16.mxu0 %v7562_v40  ;;  %5727 = vmatprep.subr.bf16.mxu1 %v7565_v41  ;;  %v7657_v40 = vld [vmem:[%s10708_s1 + $0xe8c] ss:$16 sps:$4 sm:$0xff]   ;;  %v7652_v41 = vld [vmem:[%s10708_s1 + $0xe80] ss:$16 sps:$4 sm:$0xff]  }
 0x197   :  { %5195 = vmatpush1.bf16.msra.mxu0 %v7560_v42  ;;  %5728 = vmatpush1.bf16.msra.mxu1 %v7563_v43  ;;  %v7655_v42 = vld [vmem:[%s10708_s1 + $0xe88] ss:$16 sps:$4 sm:$0xff]   ;;  %v7660_v43 = vld [vmem:[%s10708_s1 + $0xea4] ss:$16 sps:$4 sm:$0xff]  }
 0x198   :  { %5196 = vmatprep.subr.bf16.mxu0 %v7568_v44  ;;  %5729 = vmatprep.subr.bf16.mxu1 %v7571_v45  ;;  %v7663_v44 = vld [vmem:[%s10708_s1 + $0xeac] ss:$16 sps:$4 sm:$0xff]   ;;  %v7658_v45 = vld [vmem:[%s10708_s1 + $0xea0] ss:$16 sps:$4 sm:$0xff]  }
 0x19b   :  { %5197 = vmatpush1.bf16.msra.mxu0 %v7566_v46  ;;  %5730 = vmatpush1.bf16.msra.mxu1 %v7569_v47  ;;  %v7661_v46 = vld [vmem:[%s10708_s1 + $0xea8] ss:$16 sps:$4 sm:$0xff]   ;;  %v7666_v47 = vld [vmem:[%s10708_s1 + $0xec4] ss:$16 sps:$4 sm:$0xff]  }
 0x19c   :  { %5198 = vmatprep.subr.bf16.mxu0 %v7574_v48  ;;  %5731 = vmatprep.subr.bf16.mxu1 %v7577_v49  ;;  %v7669_v48 = vld [vmem:[%s10708_s1 + $0xecc] ss:$16 sps:$4 sm:$0xff]   ;;  %v7664_v49 = vld [vmem:[%s10708_s1 + $0xec0] ss:$16 sps:$4 sm:$0xff]  }
 0x19f   :  { %5199 = vmatpush1.bf16.msra.mxu0 %v7572_v50  ;;  %5732 = vmatpush1.bf16.msra.mxu1 %v7575_v51  ;;  %v7667_v50 = vld [vmem:[%s10708_s1 + $0xec8] ss:$16 sps:$4 sm:$0xff]   ;;  %v7672_v51 = vld [vmem:[%s10708_s1 + $0xee4] ss:$16 sps:$4 sm:$0xff]  }
 0x1a0   :  { %5200 = vmatprep.subr.bf16.mxu0 %v7580_v52  ;;  %5733 = vmatprep.subr.bf16.mxu1 %v7583_v53  ;;  %v7675_v52 = vld [vmem:[%s10708_s1 + $0xeec] ss:$16 sps:$4 sm:$0xff]   ;;  %v7670_v53 = vld [vmem:[%s10708_s1 + $0xee0] ss:$16 sps:$4 sm:$0xff]  }
 0x1a3   :  { %5201 = vmatpush1.bf16.msra.mxu0 %v7578_v54  ;;  %5734 = vmatpush1.bf16.msra.mxu1 %v7581_v55  ;;  %v7673_v54 = vld [vmem:[%s10708_s1 + $0xee8] ss:$16 sps:$4 sm:$0xff]   ;;  %v7678_v55 = vld [vmem:[%s10708_s1 + $0xf04] ss:$16 sps:$4 sm:$0xff]  }
 0x1a4   :  { %5202 = vmatprep.subr.bf16.mxu0 %v7586_v56  ;;  %5735 = vmatprep.subr.bf16.mxu1 %v7589_v57  ;;  %v7681_v56 = vld [vmem:[%s10708_s1 + $0xf0c] ss:$16 sps:$4 sm:$0xff]   ;;  %v7676_v57 = vld [vmem:[%s10708_s1 + $0xf00] ss:$16 sps:$4 sm:$0xff]  }
 0x1a7   :  { %5203 = vmatpush1.bf16.msra.mxu0 %v7584_v58  ;;  %5736 = vmatpush1.bf16.msra.mxu1 %v7587_v59  ;;  %v7679_v58 = vld [vmem:[%s10708_s1 + $0xf08] ss:$16 sps:$4 sm:$0xff]   ;;  %v7684_v59 = vld [vmem:[%s10708_s1 + $0xf24] ss:$16 sps:$4 sm:$0xff]  }
 0x1a8   :  { %5204 = vmatprep.subr.bf16.mxu0 %v7592_v60  ;;  %5737 = vmatprep.subr.bf16.mxu1 %v7595_v61  ;;  %v7687_v60 = vld [vmem:[%s10708_s1 + $0xf2c] ss:$16 sps:$4 sm:$0xff]   ;;  %v7682_v61 = vld [vmem:[%s10708_s1 + $0xf20] ss:$16 sps:$4 sm:$0xff]  }
 0x1ab   :  { %5205 = vmatpush1.bf16.msra.mxu0 %v7590_v62  ;;  %5738 = vmatpush1.bf16.msra.mxu1 %v7593_v63  ;;  %v7685_v62 = vld [vmem:[%s10708_s1 + $0xf28] ss:$16 sps:$4 sm:$0xff]   ;;  %v7690_v63 = vld [vmem:[%s10708_s1 + $0xf44] ss:$16 sps:$4 sm:$0xff]  }
 0x1ac   :  { %5206 = vmatprep.subr.bf16.mxu0 %v7598_v0  ;;  %5739 = vmatprep.subr.bf16.mxu1 %v7601_v1  ;;  %v7693_v0 = vld [vmem:[%s10708_s1 + $0xf4c] ss:$16 sps:$4 sm:$0xff]   ;;  %v7688_v1 = vld [vmem:[%s10708_s1 + $0xf40] ss:$16 sps:$4 sm:$0xff]  }
 0x1af   :  { %5207 = vmatpush1.bf16.msra.mxu0 %v7596_v2  ;;  %5740 = vmatpush1.bf16.msra.mxu1 %v7599_v3  ;;  %v7691_v2 = vld [vmem:[%s10708_s1 + $0xf48] ss:$16 sps:$4 sm:$0xff]   ;;  %v7696_v3 = vld [vmem:[%s10708_s1 + $0xf64] ss:$16 sps:$4 sm:$0xff]  }
 0x1b0   :  { %5208 = vmatprep.subr.bf16.mxu0 %v7604_v4  ;;  %5741 = vmatprep.subr.bf16.mxu1 %v7607_v5  ;;  %v7699_v4 = vld [vmem:[%s10708_s1 + $0xf6c] ss:$16 sps:$4 sm:$0xff]   ;;  %v7694_v5 = vld [vmem:[%s10708_s1 + $0xf60] ss:$16 sps:$4 sm:$0xff]  }
 0x1b3   :  { %5209 = vmatpush1.bf16.msra.mxu0 %v7602_v6  ;;  %5742 = vmatpush1.bf16.msra.mxu1 %v7605_v7  ;;  %v7697_v6 = vld [vmem:[%s10708_s1 + $0xf68] ss:$16 sps:$4 sm:$0xff]   ;;  %v7702_v7 = vld [vmem:[%s10708_s1 + $0xf84] ss:$16 sps:$4 sm:$0xff]  }
 0x1b4   :  { %5210 = vmatprep.subr.bf16.mxu0 %v7610_v8  ;;  %5743 = vmatprep.subr.bf16.mxu1 %v7613_v9  ;;  %v7705_v8 = vld [vmem:[%s10708_s1 + $0xf8c] ss:$16 sps:$4 sm:$0xff]   ;;  %v7700_v9 = vld [vmem:[%s10708_s1 + $0xf80] ss:$16 sps:$4 sm:$0xff]  }
 0x1b7   :  { %5211 = vmatpush1.bf16.msra.mxu0 %v7608_v10  ;;  %5744 = vmatpush1.bf16.msra.mxu1 %v7611_v12  ;;  %v7703_v10 = vld [vmem:[%s10708_s1 + $0xf88] ss:$16 sps:$4 sm:$0xff]   ;;  %v7708_v12 = vld [vmem:[%s10708_s1 + $0xfa4] ss:$16 sps:$4 sm:$0xff]  }
 0x1b8   :  { %5212 = vmatprep.subr.bf16.mxu0 %v7616_v13  ;;  %5745 = vmatprep.subr.bf16.mxu1 %v7619_v15  ;;  %v7711_v13 = vld [vmem:[%s10708_s1 + $0xfac] ss:$16 sps:$4 sm:$0xff]   ;;  %v7706_v15 = vld [vmem:[%s10708_s1 + $0xfa0] ss:$16 sps:$4 sm:$0xff]  }
 0x1bb   :  { %5213 = vmatpush1.bf16.msra.mxu0 %v7614_v11  ;;  %5746 = vmatpush1.bf16.msra.mxu1 %v7617_v17  ;;  %v7709_v11 = vld [vmem:[%s10708_s1 + $0xfa8] ss:$16 sps:$4 sm:$0xff]   ;;  %v7714_v17 = vld [vmem:[%s10708_s1 + $0xfc4] ss:$16 sps:$4 sm:$0xff]  }
 0x1bc   :  { %5214 = vmatprep.subr.bf16.mxu0 %v7622_v14  ;;  %5747 = vmatprep.subr.bf16.mxu1 %v7625_v19  ;;  %v7717_v14 = vld [vmem:[%s10708_s1 + $0xfcc] ss:$16 sps:$4 sm:$0xff]   ;;  %v7712_v19 = vld [vmem:[%s10708_s1 + $0xfc0] ss:$16 sps:$4 sm:$0xff]  }
 0x1bf   :  { %5215 = vmatpush1.bf16.msra.mxu0 %v7620_v20  ;;  %5748 = vmatpush1.bf16.msra.mxu1 %v7623_v16  ;;  %v7715_v20 = vld [vmem:[%s10708_s1 + $0xfc8] ss:$16 sps:$4 sm:$0xff]   ;;  %v7720_v16 = vld [vmem:[%s10708_s1 + $0xfe4] ss:$16 sps:$4 sm:$0xff]  }
 0x1c0   :  { %5225 = vmatprep.subr.bf16.mxu0 %v7630_v22  ;;  %5758 = vmatprep.subr.bf16.mxu1 %v7633_v23  ;;  %v7723_v22 = vld [vmem:[%s10708_s1 + $0xfec] ss:$16 sps:$4 sm:$0xff]   ;;  %v7718_v23 = vld [vmem:[%s10708_s1 + $0xfe0] ss:$16 sps:$4 sm:$0xff]  }
 0x1c2   :  { %5217 = vmatmul.mubr.bf16.vlgmr.msra.gmra.mrb[0].mxu0 %v6028_v18  ;;  %5750 = vmatmul.mubr.bf16.vlgmr.msra.gmra.mrb[0].mxu1 %v6028_v18  ;;  %v7721_v18 = vld [vmem:[%s10708_s1 + $0xfe8] ss:$16 sps:$4 sm:$0xff]  }
 0x1c3   :  { %5226 = vmatpush1.bf16.msra.mxu0 %v7628_v25  ;;  %5759 = vmatpush1.bf16.msra.mxu1 %v7631_v26  ;;  %v7728_v25 = vld [vmem:[%s10708_s1 + $0x1004] ss:$16 sps:$4 sm:$0xff]   ;;  %v7731_v26 = vld [vmem:[%s10708_s1 + $0x100c] ss:$16 sps:$4 sm:$0xff]  }
 0x1c4   :  { %5227 = vmatprep.subr.bf16.mxu0 %v7636_v27  ;;  %5760 = vmatprep.subr.bf16.mxu1 %v7639_v21  ;;  %v6030_v27 = vcombine.low %v9596_v24, %v9596_v24  ;;  %v9799_v21 = vld [vmem:[%s10709_s0 + $0x40] sm:$0xff] }
 0x1c5   :  { %5257 = vmatprep.mubr.bf16.mxu0 %v6031_v28  ;;  %5790 = vmatprep.mubr.bf16.mxu1 %v6031_v28  ;;  %v7726_v28 = vld [vmem:[%s10708_s1 + $0x1000] ss:$16 sps:$4 sm:$0xff]   ;;  %v7734_v24 = vld [vmem:[%s10708_s1 + $0x1024] ss:$16 sps:$4 sm:$0xff]  }
 0x1c7   :  { %5228 = vmatpush1.bf16.msra.mxu0 %v7634_v29  ;;  %5761 = vmatpush1.bf16.msra.mxu1 %v7637_v30  ;;  %v7729_v29 = vld [vmem:[%s10708_s1 + $0x1008] ss:$16 sps:$4 sm:$0xff]   ;;  %v7737_v30 = vld [vmem:[%s10708_s1 + $0x102c] ss:$16 sps:$4 sm:$0xff]  }
 0x1c8   :  { %5229 = vmatprep.subr.bf16.mxu0 %v7642_v31  ;;  %5762 = vmatprep.subr.bf16.mxu1 %v7645_v32  ;;  %v6033_v31 = vcombine.high %v9799_v21, %v9799_v21  ;;  %v7732_v32 = vld [vmem:[%s10708_s1 + $0x1020] ss:$16 sps:$4 sm:$0xff]  }
 0x1cb   :  { %5230 = vmatpush1.bf16.msra.mxu0 %v7640_v33  ;;  %5763 = vmatpush1.bf16.msra.mxu1 %v7643_v34  ;;  %v7735_v33 = vld [vmem:[%s10708_s1 + $0x1028] ss:$16 sps:$4 sm:$0xff]   ;;  %v7740_v34 = vld [vmem:[%s10708_s1 + $0x1044] ss:$16 sps:$4 sm:$0xff]  }
 0x1cc   :  { %5231 = vmatprep.subr.bf16.mxu0 %v7648_v35  ;;  %5764 = vmatprep.subr.bf16.mxu1 %v7651_v36  ;;  %v7743_v35 = vld [vmem:[%s10708_s1 + $0x104c] ss:$16 sps:$4 sm:$0xff]   ;;  %v7738_v36 = vld [vmem:[%s10708_s1 + $0x1040] ss:$16 sps:$4 sm:$0xff]  }
 0x1cf   :  { %5232 = vmatpush1.bf16.msra.mxu0 %v7646_v37  ;;  %5765 = vmatpush1.bf16.msra.mxu1 %v7649_v38  ;;  %v7741_v37 = vld [vmem:[%s10708_s1 + $0x1048] ss:$16 sps:$4 sm:$0xff]   ;;  %v7746_v38 = vld [vmem:[%s10708_s1 + $0x1064] ss:$16 sps:$4 sm:$0xff]  }
 0x1d0   :  { %5233 = vmatprep.subr.bf16.mxu0 %v7654_v39  ;;  %5766 = vmatprep.subr.bf16.mxu1 %v7657_v40  ;;  %v7749_v39 = vld [vmem:[%s10708_s1 + $0x106c] ss:$16 sps:$4 sm:$0xff]   ;;  %v7744_v40 = vld [vmem:[%s10708_s1 + $0x1060] ss:$16 sps:$4 sm:$0xff]  }
 0x1d3   :  { %5234 = vmatpush1.bf16.msra.mxu0 %v7652_v41  ;;  %5767 = vmatpush1.bf16.msra.mxu1 %v7655_v42  ;;  %v7747_v41 = vld [vmem:[%s10708_s1 + $0x1068] ss:$16 sps:$4 sm:$0xff]   ;;  %v7752_v42 = vld [vmem:[%s10708_s1 + $0x1084] ss:$16 sps:$4 sm:$0xff]  }
 0x1d4   :  { %5235 = vmatprep.subr.bf16.mxu0 %v7660_v43  ;;  %5768 = vmatprep.subr.bf16.mxu1 %v7663_v44  ;;  %v7755_v43 = vld [vmem:[%s10708_s1 + $0x108c] ss:$16 sps:$4 sm:$0xff]   ;;  %v7750_v44 = vld [vmem:[%s10708_s1 + $0x1080] ss:$16 sps:$4 sm:$0xff]  }
 0x1d7   :  { %5236 = vmatpush1.bf16.msra.mxu0 %v7658_v45  ;;  %5769 = vmatpush1.bf16.msra.mxu1 %v7661_v46  ;;  %v7753_v45 = vld [vmem:[%s10708_s1 + $0x1088] ss:$16 sps:$4 sm:$0xff]   ;;  %v7758_v46 = vld [vmem:[%s10708_s1 + $0x10a4] ss:$16 sps:$4 sm:$0xff]  }
 0x1d8   :  { %5237 = vmatprep.subr.bf16.mxu0 %v7666_v47  ;;  %5770 = vmatprep.subr.bf16.mxu1 %v7669_v48  ;;  %v7761_v47 = vld [vmem:[%s10708_s1 + $0x10ac] ss:$16 sps:$4 sm:$0xff]   ;;  %v7756_v48 = vld [vmem:[%s10708_s1 + $0x10a0] ss:$16 sps:$4 sm:$0xff]  }
 0x1db   :  { %5238 = vmatpush1.bf16.msra.mxu0 %v7664_v49  ;;  %5771 = vmatpush1.bf16.msra.mxu1 %v7667_v50  ;;  %v7759_v49 = vld [vmem:[%s10708_s1 + $0x10a8] ss:$16 sps:$4 sm:$0xff]   ;;  %v7764_v50 = vld [vmem:[%s10708_s1 + $0x10c4] ss:$16 sps:$4 sm:$0xff]  }
 0x1dc   :  { %5239 = vmatprep.subr.bf16.mxu0 %v7672_v51  ;;  %5772 = vmatprep.subr.bf16.mxu1 %v7675_v52  ;;  %v7767_v51 = vld [vmem:[%s10708_s1 + $0x10cc] ss:$16 sps:$4 sm:$0xff]   ;;  %v7762_v52 = vld [vmem:[%s10708_s1 + $0x10c0] ss:$16 sps:$4 sm:$0xff]  }
 0x1df   :  { %5240 = vmatpush1.bf16.msra.mxu0 %v7670_v53  ;;  %5773 = vmatpush1.bf16.msra.mxu1 %v7673_v54  ;;  %v7765_v53 = vld [vmem:[%s10708_s1 + $0x10c8] ss:$16 sps:$4 sm:$0xff]   ;;  %v7770_v54 = vld [vmem:[%s10708_s1 + $0x10e4] ss:$16 sps:$4 sm:$0xff]  }
 0x1e0   :  { %5241 = vmatprep.subr.bf16.mxu0 %v7678_v55  ;;  %5774 = vmatprep.subr.bf16.mxu1 %v7681_v56  ;;  %v7773_v55 = vld [vmem:[%s10708_s1 + $0x10ec] ss:$16 sps:$4 sm:$0xff]   ;;  %v7768_v56 = vld [vmem:[%s10708_s1 + $0x10e0] ss:$16 sps:$4 sm:$0xff]  }
 0x1e3   :  { %5242 = vmatpush1.bf16.msra.mxu0 %v7676_v57  ;;  %5775 = vmatpush1.bf16.msra.mxu1 %v7679_v58  ;;  %v7771_v57 = vld [vmem:[%s10708_s1 + $0x10e8] ss:$16 sps:$4 sm:$0xff]   ;;  %v7776_v58 = vld [vmem:[%s10708_s1 + $0x1104] ss:$16 sps:$4 sm:$0xff]  }
 0x1e4   :  { %5243 = vmatprep.subr.bf16.mxu0 %v7684_v59  ;;  %5776 = vmatprep.subr.bf16.mxu1 %v7687_v60  ;;  %v7779_v59 = vld [vmem:[%s10708_s1 + $0x110c] ss:$16 sps:$4 sm:$0xff]   ;;  %v7774_v60 = vld [vmem:[%s10708_s1 + $0x1100] ss:$16 sps:$4 sm:$0xff]  }
 0x1e7   :  { %5244 = vmatpush1.bf16.msra.mxu0 %v7682_v61  ;;  %5777 = vmatpush1.bf16.msra.mxu1 %v7685_v62  ;;  %v7777_v61 = vld [vmem:[%s10708_s1 + $0x1108] ss:$16 sps:$4 sm:$0xff]   ;;  %v7782_v62 = vld [vmem:[%s10708_s1 + $0x1124] ss:$16 sps:$4 sm:$0xff]  }
 0x1e8   :  { %5245 = vmatprep.subr.bf16.mxu0 %v7690_v63  ;;  %5778 = vmatprep.subr.bf16.mxu1 %v7693_v0  ;;  %v7785_v63 = vld [vmem:[%s10708_s1 + $0x112c] ss:$16 sps:$4 sm:$0xff]   ;;  %v7780_v0 = vld [vmem:[%s10708_s1 + $0x1120] ss:$16 sps:$4 sm:$0xff]  }
 0x1eb   :  { %5246 = vmatpush1.bf16.msra.mxu0 %v7688_v1  ;;  %5779 = vmatpush1.bf16.msra.mxu1 %v7691_v2  ;;  %v7783_v1 = vld [vmem:[%s10708_s1 + $0x1128] ss:$16 sps:$4 sm:$0xff]   ;;  %v7788_v2 = vld [vmem:[%s10708_s1 + $0x1144] ss:$16 sps:$4 sm:$0xff]  }
 0x1ec   :  { %5247 = vmatprep.subr.bf16.mxu0 %v7696_v3  ;;  %5780 = vmatprep.subr.bf16.mxu1 %v7699_v4  ;;  %v7791_v3 = vld [vmem:[%s10708_s1 + $0x114c] ss:$16 sps:$4 sm:$0xff]   ;;  %v7786_v4 = vld [vmem:[%s10708_s1 + $0x1140] ss:$16 sps:$4 sm:$0xff]  }
 0x1ef   :  { %5248 = vmatpush1.bf16.msra.mxu0 %v7694_v5  ;;  %5781 = vmatpush1.bf16.msra.mxu1 %v7697_v6  ;;  %v7789_v5 = vld [vmem:[%s10708_s1 + $0x1148] ss:$16 sps:$4 sm:$0xff]   ;;  %v7794_v6 = vld [vmem:[%s10708_s1 + $0x1164] ss:$16 sps:$4 sm:$0xff]  }
 0x1f0   :  { %5249 = vmatprep.subr.bf16.mxu0 %v7702_v7  ;;  %5782 = vmatprep.subr.bf16.mxu1 %v7705_v8  ;;  %v7797_v7 = vld [vmem:[%s10708_s1 + $0x116c] ss:$16 sps:$4 sm:$0xff]   ;;  %v7792_v8 = vld [vmem:[%s10708_s1 + $0x1160] ss:$16 sps:$4 sm:$0xff]  }
 0x1f3   :  { %5250 = vmatpush1.bf16.msra.mxu0 %v7700_v9  ;;  %5783 = vmatpush1.bf16.msra.mxu1 %v7703_v10  ;;  %v7795_v9 = vld [vmem:[%s10708_s1 + $0x1168] ss:$16 sps:$4 sm:$0xff]   ;;  %v7800_v10 = vld [vmem:[%s10708_s1 + $0x1184] ss:$16 sps:$4 sm:$0xff]  }
 0x1f4   :  { %5251 = vmatprep.subr.bf16.mxu0 %v7708_v12  ;;  %5784 = vmatprep.subr.bf16.mxu1 %v7711_v13  ;;  %v7803_v12 = vld [vmem:[%s10708_s1 + $0x118c] ss:$16 sps:$4 sm:$0xff]   ;;  %v7798_v13 = vld [vmem:[%s10708_s1 + $0x1180] ss:$16 sps:$4 sm:$0xff]  }
 0x1f7   :  { %5252 = vmatpush1.bf16.msra.mxu0 %v7706_v15  ;;  %5785 = vmatpush1.bf16.msra.mxu1 %v7709_v11  ;;  %v7801_v15 = vld [vmem:[%s10708_s1 + $0x1188] ss:$16 sps:$4 sm:$0xff]   ;;  %v7806_v11 = vld [vmem:[%s10708_s1 + $0x11a4] ss:$16 sps:$4 sm:$0xff]  }
 0x1f8   :  { %5253 = vmatprep.subr.bf16.mxu0 %v7714_v17  ;;  %5786 = vmatprep.subr.bf16.mxu1 %v7717_v14  ;;  %v7809_v17 = vld [vmem:[%s10708_s1 + $0x11ac] ss:$16 sps:$4 sm:$0xff]   ;;  %v7804_v14 = vld [vmem:[%s10708_s1 + $0x11a0] ss:$16 sps:$4 sm:$0xff]  }
 0x1fb   :  { %5254 = vmatpush1.bf16.msra.mxu0 %v7712_v19  ;;  %5787 = vmatpush1.bf16.msra.mxu1 %v7715_v20  ;;  %v7807_v19 = vld [vmem:[%s10708_s1 + $0x11a8] ss:$16 sps:$4 sm:$0xff]   ;;  %v7812_v20 = vld [vmem:[%s10708_s1 + $0x11c4] ss:$16 sps:$4 sm:$0xff]  }
 0x1fc   :  { %5255 = vmatprep.subr.bf16.mxu0 %v7720_v16  ;;  %5788 = vmatprep.subr.bf16.mxu1 %v7723_v22  ;;  %v7815_v16 = vld [vmem:[%s10708_s1 + $0x11cc] ss:$16 sps:$4 sm:$0xff]   ;;  %v7810_v22 = vld [vmem:[%s10708_s1 + $0x11c0] ss:$16 sps:$4 sm:$0xff]  }
 0x1ff   :  { %5256 = vmatpush1.bf16.msra.mxu0 %v7718_v23  ;;  %5789 = vmatpush1.bf16.msra.mxu1 %v7721_v18  ;;  %v7813_v23 = vld [vmem:[%s10708_s1 + $0x11c8] ss:$16 sps:$4 sm:$0xff]   ;;  %v7818_v18 = vld [vmem:[%s10708_s1 + $0x11e4] ss:$16 sps:$4 sm:$0xff]  }
 0x200   :  { %5266 = vmatprep.subr.bf16.mxu0 %v7728_v25  ;;  %5799 = vmatprep.subr.bf16.mxu1 %v7731_v26  ;;  %v7821_v25 = vld [vmem:[%s10708_s1 + $0x11ec] ss:$16 sps:$4 sm:$0xff]   ;;  %v7816_v26 = vld [vmem:[%s10708_s1 + $0x11e0] ss:$16 sps:$4 sm:$0xff]  }
 0x202   :  { %5258 = vmatmul.mubr.bf16.vlgmr.msra.gmra.mrb[0].mxu0 %v6030_v27  ;;  %5791 = vmatmul.mubr.bf16.vlgmr.msra.gmra.mrb[0].mxu1 %v6030_v27  ;;  %v7819_v27 = vld [vmem:[%s10708_s1 + $0x11e8] ss:$16 sps:$4 sm:$0xff]  }
 0x203   :  { %5267 = vmatpush1.bf16.msra.mxu0 %v7726_v28  ;;  %5800 = vmatpush1.bf16.msra.mxu1 %v7729_v29  ;;  %v7826_v28 = vld [vmem:[%s10708_s1 + $0x1204] ss:$16 sps:$4 sm:$0xff]   ;;  %v7829_v29 = vld [vmem:[%s10708_s1 + $0x120c] ss:$16 sps:$4 sm:$0xff]  }
 0x204   :  { %5268 = vmatprep.subr.bf16.mxu0 %v7734_v24  ;;  %5801 = vmatprep.subr.bf16.mxu1 %v7737_v30  ;;  %v6032_v24 = vcombine.low %v9799_v21, %v9799_v21  ;;  %v10000_v30 = vld [vmem:[%s10709_s0 + $0x48] sm:$0xff]  ;;  %v7832_v21 = vld [vmem:[%s10708_s1 + $0x1224] ss:$16 sps:$4 sm:$0xff]  }
 0x205   :  { %5298 = vmatprep.mubr.bf16.mxu0 %v6033_v31  ;;  %5831 = vmatprep.mubr.bf16.mxu1 %v6033_v31  ;;  %v7824_v31 = vld [vmem:[%s10708_s1 + $0x1200] ss:$16 sps:$4 sm:$0xff]  }
 0x207   :  { %5269 = vmatpush1.bf16.msra.mxu0 %v7732_v32  ;;  %5802 = vmatpush1.bf16.msra.mxu1 %v7735_v33  ;;  %v7827_v32 = vld [vmem:[%s10708_s1 + $0x1208] ss:$16 sps:$4 sm:$0xff]   ;;  %v7835_v33 = vld [vmem:[%s10708_s1 + $0x122c] ss:$16 sps:$4 sm:$0xff]  }
 0x208   :  { %5270 = vmatprep.subr.bf16.mxu0 %v7740_v34  ;;  %5803 = vmatprep.subr.bf16.mxu1 %v7743_v35  ;;  %v6035_v34 = vcombine.high %v10000_v30, %v10000_v30  ;;  %v7830_v35 = vld [vmem:[%s10708_s1 + $0x1220] ss:$16 sps:$4 sm:$0xff]  }
 0x20b   :  { %5271 = vmatpush1.bf16.msra.mxu0 %v7738_v36  ;;  %5804 = vmatpush1.bf16.msra.mxu1 %v7741_v37  ;;  %v7833_v36 = vld [vmem:[%s10708_s1 + $0x1228] ss:$16 sps:$4 sm:$0xff]   ;;  %v7838_v37 = vld [vmem:[%s10708_s1 + $0x1244] ss:$16 sps:$4 sm:$0xff]  }
 0x20c   :  { %5272 = vmatprep.subr.bf16.mxu0 %v7746_v38  ;;  %5805 = vmatprep.subr.bf16.mxu1 %v7749_v39  ;;  %v7841_v38 = vld [vmem:[%s10708_s1 + $0x124c] ss:$16 sps:$4 sm:$0xff]   ;;  %v7836_v39 = vld [vmem:[%s10708_s1 + $0x1240] ss:$16 sps:$4 sm:$0xff]  }
 0x20f   :  { %5273 = vmatpush1.bf16.msra.mxu0 %v7744_v40  ;;  %5806 = vmatpush1.bf16.msra.mxu1 %v7747_v41  ;;  %v7839_v40 = vld [vmem:[%s10708_s1 + $0x1248] ss:$16 sps:$4 sm:$0xff]   ;;  %v7844_v41 = vld [vmem:[%s10708_s1 + $0x1264] ss:$16 sps:$4 sm:$0xff]  }
 0x210   :  { %5274 = vmatprep.subr.bf16.mxu0 %v7752_v42  ;;  %5807 = vmatprep.subr.bf16.mxu1 %v7755_v43  ;;  %v7847_v42 = vld [vmem:[%s10708_s1 + $0x126c] ss:$16 sps:$4 sm:$0xff]   ;;  %v7842_v43 = vld [vmem:[%s10708_s1 + $0x1260] ss:$16 sps:$4 sm:$0xff]  }
 0x213   :  { %5275 = vmatpush1.bf16.msra.mxu0 %v7750_v44  ;;  %5808 = vmatpush1.bf16.msra.mxu1 %v7753_v45  ;;  %v7845_v44 = vld [vmem:[%s10708_s1 + $0x1268] ss:$16 sps:$4 sm:$0xff]   ;;  %v7850_v45 = vld [vmem:[%s10708_s1 + $0x1284] ss:$16 sps:$4 sm:$0xff]  }
 0x214   :  { %5276 = vmatprep.subr.bf16.mxu0 %v7758_v46  ;;  %5809 = vmatprep.subr.bf16.mxu1 %v7761_v47  ;;  %v7853_v46 = vld [vmem:[%s10708_s1 + $0x128c] ss:$16 sps:$4 sm:$0xff]   ;;  %v7848_v47 = vld [vmem:[%s10708_s1 + $0x1280] ss:$16 sps:$4 sm:$0xff]  }
 0x217   :  { %5277 = vmatpush1.bf16.msra.mxu0 %v7756_v48  ;;  %5810 = vmatpush1.bf16.msra.mxu1 %v7759_v49  ;;  %v7851_v48 = vld [vmem:[%s10708_s1 + $0x1288] ss:$16 sps:$4 sm:$0xff]   ;;  %v7856_v49 = vld [vmem:[%s10708_s1 + $0x12a4] ss:$16 sps:$4 sm:$0xff]  }
 0x218   :  { %5278 = vmatprep.subr.bf16.mxu0 %v7764_v50  ;;  %5811 = vmatprep.subr.bf16.mxu1 %v7767_v51  ;;  %v7859_v50 = vld [vmem:[%s10708_s1 + $0x12ac] ss:$16 sps:$4 sm:$0xff]   ;;  %v7854_v51 = vld [vmem:[%s10708_s1 + $0x12a0] ss:$16 sps:$4 sm:$0xff]  }
 0x21b   :  { %5279 = vmatpush1.bf16.msra.mxu0 %v7762_v52  ;;  %5812 = vmatpush1.bf16.msra.mxu1 %v7765_v53  ;;  %v7857_v52 = vld [vmem:[%s10708_s1 + $0x12a8] ss:$16 sps:$4 sm:$0xff]   ;;  %v7862_v53 = vld [vmem:[%s10708_s1 + $0x12c4] ss:$16 sps:$4 sm:$0xff]  }
 0x21c   :  { %5280 = vmatprep.subr.bf16.mxu0 %v7770_v54  ;;  %5813 = vmatprep.subr.bf16.mxu1 %v7773_v55  ;;  %v7865_v54 = vld [vmem:[%s10708_s1 + $0x12cc] ss:$16 sps:$4 sm:$0xff]   ;;  %v7860_v55 = vld [vmem:[%s10708_s1 + $0x12c0] ss:$16 sps:$4 sm:$0xff]  }
 0x21f   :  { %5281 = vmatpush1.bf16.msra.mxu0 %v7768_v56  ;;  %5814 = vmatpush1.bf16.msra.mxu1 %v7771_v57  ;;  %v7863_v56 = vld [vmem:[%s10708_s1 + $0x12c8] ss:$16 sps:$4 sm:$0xff]   ;;  %v7868_v57 = vld [vmem:[%s10708_s1 + $0x12e4] ss:$16 sps:$4 sm:$0xff]  }
 0x220   :  { %5282 = vmatprep.subr.bf16.mxu0 %v7776_v58  ;;  %5815 = vmatprep.subr.bf16.mxu1 %v7779_v59  ;;  %v7871_v58 = vld [vmem:[%s10708_s1 + $0x12ec] ss:$16 sps:$4 sm:$0xff]   ;;  %v7866_v59 = vld [vmem:[%s10708_s1 + $0x12e0] ss:$16 sps:$4 sm:$0xff]  }
 0x223   :  { %5283 = vmatpush1.bf16.msra.mxu0 %v7774_v60  ;;  %5816 = vmatpush1.bf16.msra.mxu1 %v7777_v61  ;;  %v7869_v60 = vld [vmem:[%s10708_s1 + $0x12e8] ss:$16 sps:$4 sm:$0xff]   ;;  %v7874_v61 = vld [vmem:[%s10708_s1 + $0x1304] ss:$16 sps:$4 sm:$0xff]  }
 0x224   :  { %5284 = vmatprep.subr.bf16.mxu0 %v7782_v62  ;;  %5817 = vmatprep.subr.bf16.mxu1 %v7785_v63  ;;  %v7877_v62 = vld [vmem:[%s10708_s1 + $0x130c] ss:$16 sps:$4 sm:$0xff]   ;;  %v7872_v63 = vld [vmem:[%s10708_s1 + $0x1300] ss:$16 sps:$4 sm:$0xff]  }
 0x227   :  { %5285 = vmatpush1.bf16.msra.mxu0 %v7780_v0  ;;  %5818 = vmatpush1.bf16.msra.mxu1 %v7783_v1  ;;  %v7875_v0 = vld [vmem:[%s10708_s1 + $0x1308] ss:$16 sps:$4 sm:$0xff]   ;;  %v7880_v1 = vld [vmem:[%s10708_s1 + $0x1324] ss:$16 sps:$4 sm:$0xff]  }
 0x228   :  { %5286 = vmatprep.subr.bf16.mxu0 %v7788_v2  ;;  %5819 = vmatprep.subr.bf16.mxu1 %v7791_v3  ;;  %v7883_v2 = vld [vmem:[%s10708_s1 + $0x132c] ss:$16 sps:$4 sm:$0xff]   ;;  %v7878_v3 = vld [vmem:[%s10708_s1 + $0x1320] ss:$16 sps:$4 sm:$0xff]  }
 0x22b   :  { %5287 = vmatpush1.bf16.msra.mxu0 %v7786_v4  ;;  %5820 = vmatpush1.bf16.msra.mxu1 %v7789_v5  ;;  %v7881_v4 = vld [vmem:[%s10708_s1 + $0x1328] ss:$16 sps:$4 sm:$0xff]   ;;  %v7886_v5 = vld [vmem:[%s10708_s1 + $0x1344] ss:$16 sps:$4 sm:$0xff]  }
 0x22c   :  { %5288 = vmatprep.subr.bf16.mxu0 %v7794_v6  ;;  %5821 = vmatprep.subr.bf16.mxu1 %v7797_v7  ;;  %v7889_v6 = vld [vmem:[%s10708_s1 + $0x134c] ss:$16 sps:$4 sm:$0xff]   ;;  %v7884_v7 = vld [vmem:[%s10708_s1 + $0x1340] ss:$16 sps:$4 sm:$0xff]  }
 0x22f   :  { %5289 = vmatpush1.bf16.msra.mxu0 %v7792_v8  ;;  %5822 = vmatpush1.bf16.msra.mxu1 %v7795_v9  ;;  %v7887_v8 = vld [vmem:[%s10708_s1 + $0x1348] ss:$16 sps:$4 sm:$0xff]   ;;  %v7892_v9 = vld [vmem:[%s10708_s1 + $0x1364] ss:$16 sps:$4 sm:$0xff]  }
 0x230   :  { %5290 = vmatprep.subr.bf16.mxu0 %v7800_v10  ;;  %5823 = vmatprep.subr.bf16.mxu1 %v7803_v12  ;;  %v7895_v10 = vld [vmem:[%s10708_s1 + $0x136c] ss:$16 sps:$4 sm:$0xff]   ;;  %v7890_v12 = vld [vmem:[%s10708_s1 + $0x1360] ss:$16 sps:$4 sm:$0xff]  }
 0x233   :  { %5291 = vmatpush1.bf16.msra.mxu0 %v7798_v13  ;;  %5824 = vmatpush1.bf16.msra.mxu1 %v7801_v15  ;;  %v7893_v13 = vld [vmem:[%s10708_s1 + $0x1368] ss:$16 sps:$4 sm:$0xff]   ;;  %v7898_v15 = vld [vmem:[%s10708_s1 + $0x1384] ss:$16 sps:$4 sm:$0xff]  }
 0x234   :  { %5292 = vmatprep.subr.bf16.mxu0 %v7806_v11  ;;  %5825 = vmatprep.subr.bf16.mxu1 %v7809_v17  ;;  %v7901_v11 = vld [vmem:[%s10708_s1 + $0x138c] ss:$16 sps:$4 sm:$0xff]   ;;  %v7896_v17 = vld [vmem:[%s10708_s1 + $0x1380] ss:$16 sps:$4 sm:$0xff]  }
 0x237   :  { %5293 = vmatpush1.bf16.msra.mxu0 %v7804_v14  ;;  %5826 = vmatpush1.bf16.msra.mxu1 %v7807_v19  ;;  %v7899_v14 = vld [vmem:[%s10708_s1 + $0x1388] ss:$16 sps:$4 sm:$0xff]   ;;  %v7904_v19 = vld [vmem:[%s10708_s1 + $0x13a4] ss:$16 sps:$4 sm:$0xff]  }
 0x238   :  { %5294 = vmatprep.subr.bf16.mxu0 %v7812_v20  ;;  %5827 = vmatprep.subr.bf16.mxu1 %v7815_v16  ;;  %v7907_v20 = vld [vmem:[%s10708_s1 + $0x13ac] ss:$16 sps:$4 sm:$0xff]   ;;  %v7902_v16 = vld [vmem:[%s10708_s1 + $0x13a0] ss:$16 sps:$4 sm:$0xff]  }
 0x23b   :  { %5295 = vmatpush1.bf16.msra.mxu0 %v7810_v22  ;;  %5828 = vmatpush1.bf16.msra.mxu1 %v7813_v23  ;;  %v7905_v22 = vld [vmem:[%s10708_s1 + $0x13a8] ss:$16 sps:$4 sm:$0xff]   ;;  %v7910_v23 = vld [vmem:[%s10708_s1 + $0x13c4] ss:$16 sps:$4 sm:$0xff]  }
 0x23c   :  { %5296 = vmatprep.subr.bf16.mxu0 %v7818_v18  ;;  %5829 = vmatprep.subr.bf16.mxu1 %v7821_v25  ;;  %v7913_v18 = vld [vmem:[%s10708_s1 + $0x13cc] ss:$16 sps:$4 sm:$0xff]   ;;  %v7908_v25 = vld [vmem:[%s10708_s1 + $0x13c0] ss:$16 sps:$4 sm:$0xff]  }
 0x23f   :  { %5297 = vmatpush1.bf16.msra.mxu0 %v7816_v26  ;;  %5830 = vmatpush1.bf16.msra.mxu1 %v7819_v27  ;;  %v7911_v26 = vld [vmem:[%s10708_s1 + $0x13c8] ss:$16 sps:$4 sm:$0xff]   ;;  %v7916_v27 = vld [vmem:[%s10708_s1 + $0x13e4] ss:$16 sps:$4 sm:$0xff]  }
 0x240   :  { %5307 = vmatprep.subr.bf16.mxu0 %v7826_v28  ;;  %5840 = vmatprep.subr.bf16.mxu1 %v7829_v29  ;;  %v7919_v28 = vld [vmem:[%s10708_s1 + $0x13ec] ss:$16 sps:$4 sm:$0xff]   ;;  %v7914_v29 = vld [vmem:[%s10708_s1 + $0x13e0] ss:$16 sps:$4 sm:$0xff]  }
 0x242   :  { %5299 = vmatmul.mubr.bf16.vlgmr.msra.gmra.mrb[0].mxu0 %v6032_v24  ;;  %5832 = vmatmul.mubr.bf16.vlgmr.msra.gmra.mrb[0].mxu1 %v6032_v24  ;;  %v7917_v24 = vld [vmem:[%s10708_s1 + $0x13e8] ss:$16 sps:$4 sm:$0xff]  }
 0x243   :  { %5308 = vmatpush1.bf16.msra.mxu0 %v7824_v31  ;;  %5841 = vmatpush1.bf16.msra.mxu1 %v7827_v32  ;;  %v7924_v31 = vld [vmem:[%s10708_s1 + $0x1404] ss:$16 sps:$4 sm:$0xff]   ;;  %v7927_v32 = vld [vmem:[%s10708_s1 + $0x140c] ss:$16 sps:$4 sm:$0xff]  }
 0x244   :  { %5309 = vmatprep.subr.bf16.mxu0 %v7832_v21  ;;  %5842 = vmatprep.subr.bf16.mxu1 %v7835_v33  ;;  %v6034_v21 = vcombine.low %v10000_v30, %v10000_v30  ;;  %v10201_v33 = vld [vmem:[%s10709_s0 + $0x50] sm:$0xff] }
 0x245   :  { %5339 = vmatprep.mubr.bf16.mxu0 %v6035_v34  ;;  %5872 = vmatprep.mubr.bf16.mxu1 %v6035_v34  ;;  %v7922_v34 = vld [vmem:[%s10708_s1 + $0x1400] ss:$16 sps:$4 sm:$0xff]   ;;  %v7930_v30 = vld [vmem:[%s10708_s1 + $0x1424] ss:$16 sps:$4 sm:$0xff]  }
 0x247   :  { %5310 = vmatpush1.bf16.msra.mxu0 %v7830_v35  ;;  %5843 = vmatpush1.bf16.msra.mxu1 %v7833_v36  ;;  %v7925_v35 = vld [vmem:[%s10708_s1 + $0x1408] ss:$16 sps:$4 sm:$0xff]   ;;  %v7933_v36 = vld [vmem:[%s10708_s1 + $0x142c] ss:$16 sps:$4 sm:$0xff]  }
 0x248   :  { %5311 = vmatprep.subr.bf16.mxu0 %v7838_v37  ;;  %5844 = vmatprep.subr.bf16.mxu1 %v7841_v38  ;;  %v6037_v37 = vcombine.high %v10201_v33, %v10201_v33  ;;  %v7928_v38 = vld [vmem:[%s10708_s1 + $0x1420] ss:$16 sps:$4 sm:$0xff]  }
 0x24b   :  { %5312 = vmatpush1.bf16.msra.mxu0 %v7836_v39  ;;  %5845 = vmatpush1.bf16.msra.mxu1 %v7839_v40  ;;  %v7931_v39 = vld [vmem:[%s10708_s1 + $0x1428] ss:$16 sps:$4 sm:$0xff]   ;;  %v7936_v40 = vld [vmem:[%s10708_s1 + $0x1444] ss:$16 sps:$4 sm:$0xff]  }
 0x24c   :  { %5313 = vmatprep.subr.bf16.mxu0 %v7844_v41  ;;  %5846 = vmatprep.subr.bf16.mxu1 %v7847_v42  ;;  %v7939_v41 = vld [vmem:[%s10708_s1 + $0x144c] ss:$16 sps:$4 sm:$0xff]   ;;  %v7934_v42 = vld [vmem:[%s10708_s1 + $0x1440] ss:$16 sps:$4 sm:$0xff]  }
 0x24f   :  { %5314 = vmatpush1.bf16.msra.mxu0 %v7842_v43  ;;  %5847 = vmatpush1.bf16.msra.mxu1 %v7845_v44  ;;  %v7937_v43 = vld [vmem:[%s10708_s1 + $0x1448] ss:$16 sps:$4 sm:$0xff]   ;;  %v7942_v44 = vld [vmem:[%s10708_s1 + $0x1464] ss:$16 sps:$4 sm:$0xff]  }
 0x250   :  { %5315 = vmatprep.subr.bf16.mxu0 %v7850_v45  ;;  %5848 = vmatprep.subr.bf16.mxu1 %v7853_v46  ;;  %v7945_v45 = vld [vmem:[%s10708_s1 + $0x146c] ss:$16 sps:$4 sm:$0xff]   ;;  %v7940_v46 = vld [vmem:[%s10708_s1 + $0x1460] ss:$16 sps:$4 sm:$0xff]  }
 0x253   :  { %5316 = vmatpush1.bf16.msra.mxu0 %v7848_v47  ;;  %5849 = vmatpush1.bf16.msra.mxu1 %v7851_v48  ;;  %v7943_v47 = vld [vmem:[%s10708_s1 + $0x1468] ss:$16 sps:$4 sm:$0xff]   ;;  %v7948_v48 = vld [vmem:[%s10708_s1 + $0x1484] ss:$16 sps:$4 sm:$0xff]  }
 0x254   :  { %5317 = vmatprep.subr.bf16.mxu0 %v7856_v49  ;;  %5850 = vmatprep.subr.bf16.mxu1 %v7859_v50  ;;  %v7951_v49 = vld [vmem:[%s10708_s1 + $0x148c] ss:$16 sps:$4 sm:$0xff]   ;;  %v7946_v50 = vld [vmem:[%s10708_s1 + $0x1480] ss:$16 sps:$4 sm:$0xff]  }
 0x257   :  { %5318 = vmatpush1.bf16.msra.mxu0 %v7854_v51  ;;  %5851 = vmatpush1.bf16.msra.mxu1 %v7857_v52  ;;  %v7949_v51 = vld [vmem:[%s10708_s1 + $0x1488] ss:$16 sps:$4 sm:$0xff]   ;;  %v7954_v52 = vld [vmem:[%s10708_s1 + $0x14a4] ss:$16 sps:$4 sm:$0xff]  }
 0x258   :  { %5319 = vmatprep.subr.bf16.mxu0 %v7862_v53  ;;  %5852 = vmatprep.subr.bf16.mxu1 %v7865_v54  ;;  %v7957_v53 = vld [vmem:[%s10708_s1 + $0x14ac] ss:$16 sps:$4 sm:$0xff]   ;;  %v7952_v54 = vld [vmem:[%s10708_s1 + $0x14a0] ss:$16 sps:$4 sm:$0xff]  }
 0x25b   :  { %5320 = vmatpush1.bf16.msra.mxu0 %v7860_v55  ;;  %5853 = vmatpush1.bf16.msra.mxu1 %v7863_v56  ;;  %v7955_v55 = vld [vmem:[%s10708_s1 + $0x14a8] ss:$16 sps:$4 sm:$0xff]   ;;  %v7960_v56 = vld [vmem:[%s10708_s1 + $0x14c4] ss:$16 sps:$4 sm:$0xff]  }
 0x25c   :  { %5321 = vmatprep.subr.bf16.mxu0 %v7868_v57  ;;  %5854 = vmatprep.subr.bf16.mxu1 %v7871_v58  ;;  %v7963_v57 = vld [vmem:[%s10708_s1 + $0x14cc] ss:$16 sps:$4 sm:$0xff]   ;;  %v7958_v58 = vld [vmem:[%s10708_s1 + $0x14c0] ss:$16 sps:$4 sm:$0xff]  }
 0x25f   :  { %5322 = vmatpush1.bf16.msra.mxu0 %v7866_v59  ;;  %5855 = vmatpush1.bf16.msra.mxu1 %v7869_v60  ;;  %v7961_v59 = vld [vmem:[%s10708_s1 + $0x14c8] ss:$16 sps:$4 sm:$0xff]   ;;  %v7966_v60 = vld [vmem:[%s10708_s1 + $0x14e4] ss:$16 sps:$4 sm:$0xff]  }
 0x260   :  { %5323 = vmatprep.subr.bf16.mxu0 %v7874_v61  ;;  %5856 = vmatprep.subr.bf16.mxu1 %v7877_v62  ;;  %v7969_v61 = vld [vmem:[%s10708_s1 + $0x14ec] ss:$16 sps:$4 sm:$0xff]   ;;  %v7964_v62 = vld [vmem:[%s10708_s1 + $0x14e0] ss:$16 sps:$4 sm:$0xff]  }
 0x263   :  { %5324 = vmatpush1.bf16.msra.mxu0 %v7872_v63  ;;  %5857 = vmatpush1.bf16.msra.mxu1 %v7875_v0  ;;  %v7967_v63 = vld [vmem:[%s10708_s1 + $0x14e8] ss:$16 sps:$4 sm:$0xff]   ;;  %v7972_v0 = vld [vmem:[%s10708_s1 + $0x1504] ss:$16 sps:$4 sm:$0xff]  }
 0x264   :  { %5325 = vmatprep.subr.bf16.mxu0 %v7880_v1  ;;  %5858 = vmatprep.subr.bf16.mxu1 %v7883_v2  ;;  %v7975_v1 = vld [vmem:[%s10708_s1 + $0x150c] ss:$16 sps:$4 sm:$0xff]   ;;  %v7970_v2 = vld [vmem:[%s10708_s1 + $0x1500] ss:$16 sps:$4 sm:$0xff]  }
 0x267   :  { %5326 = vmatpush1.bf16.msra.mxu0 %v7878_v3  ;;  %5859 = vmatpush1.bf16.msra.mxu1 %v7881_v4  ;;  %v7973_v3 = vld [vmem:[%s10708_s1 + $0x1508] ss:$16 sps:$4 sm:$0xff]   ;;  %v7978_v4 = vld [vmem:[%s10708_s1 + $0x1524] ss:$16 sps:$4 sm:$0xff]  }
 0x268   :  { %5327 = vmatprep.subr.bf16.mxu0 %v7886_v5  ;;  %5860 = vmatprep.subr.bf16.mxu1 %v7889_v6  ;;  %v7981_v5 = vld [vmem:[%s10708_s1 + $0x152c] ss:$16 sps:$4 sm:$0xff]   ;;  %v7976_v6 = vld [vmem:[%s10708_s1 + $0x1520] ss:$16 sps:$4 sm:$0xff]  }
 0x26b   :  { %5328 = vmatpush1.bf16.msra.mxu0 %v7884_v7  ;;  %5861 = vmatpush1.bf16.msra.mxu1 %v7887_v8  ;;  %v7979_v7 = vld [vmem:[%s10708_s1 + $0x1528] ss:$16 sps:$4 sm:$0xff]   ;;  %v7984_v8 = vld [vmem:[%s10708_s1 + $0x1544] ss:$16 sps:$4 sm:$0xff]  }
 0x26c   :  { %5329 = vmatprep.subr.bf16.mxu0 %v7892_v9  ;;  %5862 = vmatprep.subr.bf16.mxu1 %v7895_v10  ;;  %v7987_v9 = vld [vmem:[%s10708_s1 + $0x154c] ss:$16 sps:$4 sm:$0xff]   ;;  %v7982_v10 = vld [vmem:[%s10708_s1 + $0x1540] ss:$16 sps:$4 sm:$0xff]  }
 0x26f   :  { %5330 = vmatpush1.bf16.msra.mxu0 %v7890_v12  ;;  %5863 = vmatpush1.bf16.msra.mxu1 %v7893_v13  ;;  %v7985_v12 = vld [vmem:[%s10708_s1 + $0x1548] ss:$16 sps:$4 sm:$0xff]   ;;  %v7990_v13 = vld [vmem:[%s10708_s1 + $0x1564] ss:$16 sps:$4 sm:$0xff]  }
 0x270   :  { %5331 = vmatprep.subr.bf16.mxu0 %v7898_v15  ;;  %5864 = vmatprep.subr.bf16.mxu1 %v7901_v11  ;;  %v7993_v15 = vld [vmem:[%s10708_s1 + $0x156c] ss:$16 sps:$4 sm:$0xff]   ;;  %v7988_v11 = vld [vmem:[%s10708_s1 + $0x1560] ss:$16 sps:$4 sm:$0xff]  }
 0x273   :  { %5332 = vmatpush1.bf16.msra.mxu0 %v7896_v17  ;;  %5865 = vmatpush1.bf16.msra.mxu1 %v7899_v14  ;;  %v7991_v17 = vld [vmem:[%s10708_s1 + $0x1568] ss:$16 sps:$4 sm:$0xff]   ;;  %v7996_v14 = vld [vmem:[%s10708_s1 + $0x1584] ss:$16 sps:$4 sm:$0xff]  }
 0x274   :  { %5333 = vmatprep.subr.bf16.mxu0 %v7904_v19  ;;  %5866 = vmatprep.subr.bf16.mxu1 %v7907_v20  ;;  %v7999_v19 = vld [vmem:[%s10708_s1 + $0x158c] ss:$16 sps:$4 sm:$0xff]   ;;  %v7994_v20 = vld [vmem:[%s10708_s1 + $0x1580] ss:$16 sps:$4 sm:$0xff]  }
 0x277   :  { %5334 = vmatpush1.bf16.msra.mxu0 %v7902_v16  ;;  %5867 = vmatpush1.bf16.msra.mxu1 %v7905_v22  ;;  %v7997_v16 = vld [vmem:[%s10708_s1 + $0x1588] ss:$16 sps:$4 sm:$0xff]   ;;  %v8002_v22 = vld [vmem:[%s10708_s1 + $0x15a4] ss:$16 sps:$4 sm:$0xff]  }
 0x278   :  { %5335 = vmatprep.subr.bf16.mxu0 %v7910_v23  ;;  %5868 = vmatprep.subr.bf16.mxu1 %v7913_v18  ;;  %v8005_v23 = vld [vmem:[%s10708_s1 + $0x15ac] ss:$16 sps:$4 sm:$0xff]   ;;  %v8000_v18 = vld [vmem:[%s10708_s1 + $0x15a0] ss:$16 sps:$4 sm:$0xff]  }
 0x27b   :  { %5336 = vmatpush1.bf16.msra.mxu0 %v7908_v25  ;;  %5869 = vmatpush1.bf16.msra.mxu1 %v7911_v26  ;;  %v8003_v25 = vld [vmem:[%s10708_s1 + $0x15a8] ss:$16 sps:$4 sm:$0xff]   ;;  %v8008_v26 = vld [vmem:[%s10708_s1 + $0x15c4] ss:$16 sps:$4 sm:$0xff]  }
 0x27c   :  { %5337 = vmatprep.subr.bf16.mxu0 %v7916_v27  ;;  %5870 = vmatprep.subr.bf16.mxu1 %v7919_v28  ;;  %v8011_v27 = vld [vmem:[%s10708_s1 + $0x15cc] ss:$16 sps:$4 sm:$0xff]   ;;  %v8006_v28 = vld [vmem:[%s10708_s1 + $0x15c0] ss:$16 sps:$4 sm:$0xff]  }
 0x27f   :  { %5338 = vmatpush1.bf16.msra.mxu0 %v7914_v29  ;;  %5871 = vmatpush1.bf16.msra.mxu1 %v7917_v24  ;;  %v8009_v29 = vld [vmem:[%s10708_s1 + $0x15c8] ss:$16 sps:$4 sm:$0xff]   ;;  %v8014_v24 = vld [vmem:[%s10708_s1 + $0x15e4] ss:$16 sps:$4 sm:$0xff]  }
 0x280   :  { %5348 = vmatprep.subr.bf16.mxu0 %v7924_v31  ;;  %5881 = vmatprep.subr.bf16.mxu1 %v7927_v32  ;;  %v8017_v31 = vld [vmem:[%s10708_s1 + $0x15ec] ss:$16 sps:$4 sm:$0xff]   ;;  %v8012_v32 = vld [vmem:[%s10708_s1 + $0x15e0] ss:$16 sps:$4 sm:$0xff]  }
 0x282   :  { %5340 = vmatmul.mubr.bf16.vlgmr.msra.gmra.mrb[0].mxu0 %v6034_v21  ;;  %5873 = vmatmul.mubr.bf16.vlgmr.msra.gmra.mrb[0].mxu1 %v6034_v21  ;;  %v8015_v21 = vld [vmem:[%s10708_s1 + $0x15e8] ss:$16 sps:$4 sm:$0xff]  }
 0x283   :  { %5349 = vmatpush1.bf16.msra.mxu0 %v7922_v34  ;;  %5882 = vmatpush1.bf16.msra.mxu1 %v7925_v35  ;;  %v8022_v34 = vld [vmem:[%s10708_s1 + $0x1604] ss:$16 sps:$4 sm:$0xff]   ;;  %v8025_v35 = vld [vmem:[%s10708_s1 + $0x160c] ss:$16 sps:$4 sm:$0xff]  }
 0x284   :  { %5350 = vmatprep.subr.bf16.mxu0 %v7930_v30  ;;  %5883 = vmatprep.subr.bf16.mxu1 %v7933_v36  ;;  %v6036_v30 = vcombine.low %v10201_v33, %v10201_v33  ;;  %v10402_v36 = vld [vmem:[%s10709_s0 + $0x58] sm:$0xff]  ;;  %v8028_v33 = vld [vmem:[%s10708_s1 + $0x1624] ss:$16 sps:$4 sm:$0xff]  }
 0x285   :  { %5380 = vmatprep.mubr.bf16.mxu0 %v6037_v37  ;;  %5913 = vmatprep.mubr.bf16.mxu1 %v6037_v37  ;;  %v8020_v37 = vld [vmem:[%s10708_s1 + $0x1600] ss:$16 sps:$4 sm:$0xff]  }
 0x287   :  { %5351 = vmatpush1.bf16.msra.mxu0 %v7928_v38  ;;  %5884 = vmatpush1.bf16.msra.mxu1 %v7931_v39  ;;  %v8023_v38 = vld [vmem:[%s10708_s1 + $0x1608] ss:$16 sps:$4 sm:$0xff]   ;;  %v8031_v39 = vld [vmem:[%s10708_s1 + $0x162c] ss:$16 sps:$4 sm:$0xff]  }
 0x288   :  { %5352 = vmatprep.subr.bf16.mxu0 %v7936_v40  ;;  %5885 = vmatprep.subr.bf16.mxu1 %v7939_v41  ;;  %v6039_v40 = vcombine.high %v10402_v36, %v10402_v36  ;;  %v8026_v41 = vld [vmem:[%s10708_s1 + $0x1620] ss:$16 sps:$4 sm:$0xff]  }
 0x28b   :  { %5353 = vmatpush1.bf16.msra.mxu0 %v7934_v42  ;;  %5886 = vmatpush1.bf16.msra.mxu1 %v7937_v43  ;;  %v8029_v42 = vld [vmem:[%s10708_s1 + $0x1628] ss:$16 sps:$4 sm:$0xff]   ;;  %v8034_v43 = vld [vmem:[%s10708_s1 + $0x1644] ss:$16 sps:$4 sm:$0xff]  }
 0x28c   :  { %5354 = vmatprep.subr.bf16.mxu0 %v7942_v44  ;;  %5887 = vmatprep.subr.bf16.mxu1 %v7945_v45  ;;  %v8037_v44 = vld [vmem:[%s10708_s1 + $0x164c] ss:$16 sps:$4 sm:$0xff]   ;;  %v8032_v45 = vld [vmem:[%s10708_s1 + $0x1640] ss:$16 sps:$4 sm:$0xff]  }
 0x28f   :  { %5355 = vmatpush1.bf16.msra.mxu0 %v7940_v46  ;;  %5888 = vmatpush1.bf16.msra.mxu1 %v7943_v47  ;;  %v8035_v46 = vld [vmem:[%s10708_s1 + $0x1648] ss:$16 sps:$4 sm:$0xff]   ;;  %v8040_v47 = vld [vmem:[%s10708_s1 + $0x1664] ss:$16 sps:$4 sm:$0xff]  }
 0x290   :  { %5356 = vmatprep.subr.bf16.mxu0 %v7948_v48  ;;  %5889 = vmatprep.subr.bf16.mxu1 %v7951_v49  ;;  %v8043_v48 = vld [vmem:[%s10708_s1 + $0x166c] ss:$16 sps:$4 sm:$0xff]   ;;  %v8038_v49 = vld [vmem:[%s10708_s1 + $0x1660] ss:$16 sps:$4 sm:$0xff]  }
 0x293   :  { %5357 = vmatpush1.bf16.msra.mxu0 %v7946_v50  ;;  %5890 = vmatpush1.bf16.msra.mxu1 %v7949_v51  ;;  %v8041_v50 = vld [vmem:[%s10708_s1 + $0x1668] ss:$16 sps:$4 sm:$0xff]   ;;  %v8046_v51 = vld [vmem:[%s10708_s1 + $0x1684] ss:$16 sps:$4 sm:$0xff]  }
 0x294   :  { %5358 = vmatprep.subr.bf16.mxu0 %v7954_v52  ;;  %5891 = vmatprep.subr.bf16.mxu1 %v7957_v53  ;;  %v8049_v52 = vld [vmem:[%s10708_s1 + $0x168c] ss:$16 sps:$4 sm:$0xff]   ;;  %v8044_v53 = vld [vmem:[%s10708_s1 + $0x1680] ss:$16 sps:$4 sm:$0xff]  }
 0x297   :  { %5359 = vmatpush1.bf16.msra.mxu0 %v7952_v54  ;;  %5892 = vmatpush1.bf16.msra.mxu1 %v7955_v55  ;;  %v8047_v54 = vld [vmem:[%s10708_s1 + $0x1688] ss:$16 sps:$4 sm:$0xff]   ;;  %v8052_v55 = vld [vmem:[%s10708_s1 + $0x16a4] ss:$16 sps:$4 sm:$0xff]  }
 0x298   :  { %5360 = vmatprep.subr.bf16.mxu0 %v7960_v56  ;;  %5893 = vmatprep.subr.bf16.mxu1 %v7963_v57  ;;  %v8055_v56 = vld [vmem:[%s10708_s1 + $0x16ac] ss:$16 sps:$4 sm:$0xff]   ;;  %v8050_v57 = vld [vmem:[%s10708_s1 + $0x16a0] ss:$16 sps:$4 sm:$0xff]  }
 0x29b   :  { %5361 = vmatpush1.bf16.msra.mxu0 %v7958_v58  ;;  %5894 = vmatpush1.bf16.msra.mxu1 %v7961_v59  ;;  %v8053_v58 = vld [vmem:[%s10708_s1 + $0x16a8] ss:$16 sps:$4 sm:$0xff]   ;;  %v8058_v59 = vld [vmem:[%s10708_s1 + $0x16c4] ss:$16 sps:$4 sm:$0xff]  }
 0x29c   :  { %5362 = vmatprep.subr.bf16.mxu0 %v7966_v60  ;;  %5895 = vmatprep.subr.bf16.mxu1 %v7969_v61  ;;  %v8061_v60 = vld [vmem:[%s10708_s1 + $0x16cc] ss:$16 sps:$4 sm:$0xff]   ;;  %v8056_v61 = vld [vmem:[%s10708_s1 + $0x16c0] ss:$16 sps:$4 sm:$0xff]  }
 0x29f   :  { %5363 = vmatpush1.bf16.msra.mxu0 %v7964_v62  ;;  %5896 = vmatpush1.bf16.msra.mxu1 %v7967_v63  ;;  %v8059_v62 = vld [vmem:[%s10708_s1 + $0x16c8] ss:$16 sps:$4 sm:$0xff]   ;;  %v8064_v63 = vld [vmem:[%s10708_s1 + $0x16e4] ss:$16 sps:$4 sm:$0xff]  }
 0x2a0   :  { %5364 = vmatprep.subr.bf16.mxu0 %v7972_v0  ;;  %5897 = vmatprep.subr.bf16.mxu1 %v7975_v1  ;;  %v8067_v0 = vld [vmem:[%s10708_s1 + $0x16ec] ss:$16 sps:$4 sm:$0xff]   ;;  %v8062_v1 = vld [vmem:[%s10708_s1 + $0x16e0] ss:$16 sps:$4 sm:$0xff]  }
 0x2a3   :  { %5365 = vmatpush1.bf16.msra.mxu0 %v7970_v2  ;;  %5898 = vmatpush1.bf16.msra.mxu1 %v7973_v3  ;;  %v8065_v2 = vld [vmem:[%s10708_s1 + $0x16e8] ss:$16 sps:$4 sm:$0xff]   ;;  %v8070_v3 = vld [vmem:[%s10708_s1 + $0x1704] ss:$16 sps:$4 sm:$0xff]  }
 0x2a4   :  { %5366 = vmatprep.subr.bf16.mxu0 %v7978_v4  ;;  %5899 = vmatprep.subr.bf16.mxu1 %v7981_v5  ;;  %v8073_v4 = vld [vmem:[%s10708_s1 + $0x170c] ss:$16 sps:$4 sm:$0xff]   ;;  %v8068_v5 = vld [vmem:[%s10708_s1 + $0x1700] ss:$16 sps:$4 sm:$0xff]  }
 0x2a7   :  { %5367 = vmatpush1.bf16.msra.mxu0 %v7976_v6  ;;  %5900 = vmatpush1.bf16.msra.mxu1 %v7979_v7  ;;  %v8071_v6 = vld [vmem:[%s10708_s1 + $0x1708] ss:$16 sps:$4 sm:$0xff]   ;;  %v8076_v7 = vld [vmem:[%s10708_s1 + $0x1724] ss:$16 sps:$4 sm:$0xff]  }
 0x2a8   :  { %5368 = vmatprep.subr.bf16.mxu0 %v7984_v8  ;;  %5901 = vmatprep.subr.bf16.mxu1 %v7987_v9  ;;  %v8079_v8 = vld [vmem:[%s10708_s1 + $0x172c] ss:$16 sps:$4 sm:$0xff]   ;;  %v8074_v9 = vld [vmem:[%s10708_s1 + $0x1720] ss:$16 sps:$4 sm:$0xff]  }
 0x2ab   :  { %5369 = vmatpush1.bf16.msra.mxu0 %v7982_v10  ;;  %5902 = vmatpush1.bf16.msra.mxu1 %v7985_v12  ;;  %v8077_v10 = vld [vmem:[%s10708_s1 + $0x1728] ss:$16 sps:$4 sm:$0xff]   ;;  %v8082_v12 = vld [vmem:[%s10708_s1 + $0x1744] ss:$16 sps:$4 sm:$0xff]  }
 0x2ac   :  { %5370 = vmatprep.subr.bf16.mxu0 %v7990_v13  ;;  %5903 = vmatprep.subr.bf16.mxu1 %v7993_v15  ;;  %v8085_v13 = vld [vmem:[%s10708_s1 + $0x174c] ss:$16 sps:$4 sm:$0xff]   ;;  %v8080_v15 = vld [vmem:[%s10708_s1 + $0x1740] ss:$16 sps:$4 sm:$0xff]  }
 0x2af   :  { %5371 = vmatpush1.bf16.msra.mxu0 %v7988_v11  ;;  %5904 = vmatpush1.bf16.msra.mxu1 %v7991_v17  ;;  %v8083_v11 = vld [vmem:[%s10708_s1 + $0x1748] ss:$16 sps:$4 sm:$0xff]   ;;  %v8088_v17 = vld [vmem:[%s10708_s1 + $0x1764] ss:$16 sps:$4 sm:$0xff]  }
 0x2b0   :  { %5372 = vmatprep.subr.bf16.mxu0 %v7996_v14  ;;  %5905 = vmatprep.subr.bf16.mxu1 %v7999_v19  ;;  %v8091_v14 = vld [vmem:[%s10708_s1 + $0x176c] ss:$16 sps:$4 sm:$0xff]   ;;  %v8086_v19 = vld [vmem:[%s10708_s1 + $0x1760] ss:$16 sps:$4 sm:$0xff]  }
 0x2b3   :  { %5373 = vmatpush1.bf16.msra.mxu0 %v7994_v20  ;;  %5906 = vmatpush1.bf16.msra.mxu1 %v7997_v16  ;;  %v8089_v20 = vld [vmem:[%s10708_s1 + $0x1768] ss:$16 sps:$4 sm:$0xff]   ;;  %v8094_v16 = vld [vmem:[%s10708_s1 + $0x1784] ss:$16 sps:$4 sm:$0xff]  }
 0x2b4   :  { %5374 = vmatprep.subr.bf16.mxu0 %v8002_v22  ;;  %5907 = vmatprep.subr.bf16.mxu1 %v8005_v23  ;;  %v8097_v22 = vld [vmem:[%s10708_s1 + $0x178c] ss:$16 sps:$4 sm:$0xff]   ;;  %v8092_v23 = vld [vmem:[%s10708_s1 + $0x1780] ss:$16 sps:$4 sm:$0xff]  }
 0x2b7   :  { %5375 = vmatpush1.bf16.msra.mxu0 %v8000_v18  ;;  %5908 = vmatpush1.bf16.msra.mxu1 %v8003_v25  ;;  %v8095_v18 = vld [vmem:[%s10708_s1 + $0x1788] ss:$16 sps:$4 sm:$0xff]   ;;  %v8100_v25 = vld [vmem:[%s10708_s1 + $0x17a4] ss:$16 sps:$4 sm:$0xff]  }
 0x2b8   :  { %5376 = vmatprep.subr.bf16.mxu0 %v8008_v26  ;;  %5909 = vmatprep.subr.bf16.mxu1 %v8011_v27  ;;  %v8103_v26 = vld [vmem:[%s10708_s1 + $0x17ac] ss:$16 sps:$4 sm:$0xff]   ;;  %v8098_v27 = vld [vmem:[%s10708_s1 + $0x17a0] ss:$16 sps:$4 sm:$0xff]  }
 0x2bb   :  { %5377 = vmatpush1.bf16.msra.mxu0 %v8006_v28  ;;  %5910 = vmatpush1.bf16.msra.mxu1 %v8009_v29  ;;  %v8101_v28 = vld [vmem:[%s10708_s1 + $0x17a8] ss:$16 sps:$4 sm:$0xff]   ;;  %v8106_v29 = vld [vmem:[%s10708_s1 + $0x17c4] ss:$16 sps:$4 sm:$0xff]  }
 0x2bc   :  { %5378 = vmatprep.subr.bf16.mxu0 %v8014_v24  ;;  %5911 = vmatprep.subr.bf16.mxu1 %v8017_v31  ;;  %v8109_v24 = vld [vmem:[%s10708_s1 + $0x17cc] ss:$16 sps:$4 sm:$0xff]   ;;  %v8104_v31 = vld [vmem:[%s10708_s1 + $0x17c0] ss:$16 sps:$4 sm:$0xff]  }
 0x2bf   :  { %5379 = vmatpush1.bf16.msra.mxu0 %v8012_v32  ;;  %5912 = vmatpush1.bf16.msra.mxu1 %v8015_v21  ;;  %v8107_v32 = vld [vmem:[%s10708_s1 + $0x17c8] ss:$16 sps:$4 sm:$0xff]   ;;  %v8112_v21 = vld [vmem:[%s10708_s1 + $0x17e4] ss:$16 sps:$4 sm:$0xff]  }
 0x2c0   :  { %5389 = vmatprep.subr.bf16.mxu0 %v8022_v34  ;;  %5922 = vmatprep.subr.bf16.mxu1 %v8025_v35  ;;  %v8115_v34 = vld [vmem:[%s10708_s1 + $0x17ec] ss:$16 sps:$4 sm:$0xff]   ;;  %v8110_v35 = vld [vmem:[%s10708_s1 + $0x17e0] ss:$16 sps:$4 sm:$0xff]  }
 0x2c2   :  { %5381 = vmatmul.mubr.bf16.vlgmr.msra.gmra.mrb[0].mxu0 %v6036_v30  ;;  %5914 = vmatmul.mubr.bf16.vlgmr.msra.gmra.mrb[0].mxu1 %v6036_v30  ;;  %v8113_v30 = vld [vmem:[%s10708_s1 + $0x17e8] ss:$16 sps:$4 sm:$0xff]  }
 0x2c3   :  { %5390 = vmatpush1.bf16.msra.mxu0 %v8020_v37  ;;  %5923 = vmatpush1.bf16.msra.mxu1 %v8023_v38  ;;  %v8120_v37 = vld [vmem:[%s10708_s1 + $0x1804] ss:$16 sps:$4 sm:$0xff]   ;;  %v8123_v38 = vld [vmem:[%s10708_s1 + $0x180c] ss:$16 sps:$4 sm:$0xff]  }
 0x2c4   :  { %5391 = vmatprep.subr.bf16.mxu0 %v8028_v33  ;;  %5924 = vmatprep.subr.bf16.mxu1 %v8031_v39  ;;  %v6038_v33 = vcombine.low %v10402_v36, %v10402_v36  ;;  %v8118_v39 = vld [vmem:[%s10708_s1 + $0x1800] ss:$16 sps:$4 sm:$0xff]   ;;  %v8129_v36 = vld [vmem:[%s10708_s1 + $0x182c] ss:$16 sps:$4 sm:$0xff]  }
 0x2c5   :  { %5421 = vmatprep.mubr.bf16.mxu0 %v6039_v40  ;;  %5954 = vmatprep.mubr.bf16.mxu1 %v6039_v40  ;;  %v8121_v40 = vld [vmem:[%s10708_s1 + $0x1808] ss:$16 sps:$4 sm:$0xff]  }
 0x2c7   :  { %5392 = vmatpush1.bf16.msra.mxu0 %v8026_v41  ;;  %5925 = vmatpush1.bf16.msra.mxu1 %v8029_v42  ;;  %v8126_v41 = vld [vmem:[%s10708_s1 + $0x1824] ss:$16 sps:$4 sm:$0xff]   ;;  %v8124_v42 = vld [vmem:[%s10708_s1 + $0x1820] ss:$16 sps:$4 sm:$0xff]  }
 0x2c8   :  { %5393 = vmatprep.subr.bf16.mxu0 %v8034_v43  ;;  %5926 = vmatprep.subr.bf16.mxu1 %v8037_v44  ;;  %v8127_v43 = vld [vmem:[%s10708_s1 + $0x1828] ss:$16 sps:$4 sm:$0xff]   ;;  %v8132_v44 = vld [vmem:[%s10708_s1 + $0x1844] ss:$16 sps:$4 sm:$0xff]  }
 0x2cb   :  { %5394 = vmatpush1.bf16.msra.mxu0 %v8032_v45  ;;  %5927 = vmatpush1.bf16.msra.mxu1 %v8035_v46  ;;  %v8135_v45 = vld [vmem:[%s10708_s1 + $0x184c] ss:$16 sps:$4 sm:$0xff]   ;;  %v8167_v46 = vmov 0  }
 0x2cc   :  { %5395 = vmatprep.subr.bf16.mxu0 %v8040_v47  ;;  %5928 = vmatprep.subr.bf16.mxu1 %v8043_v48  ;;  %v8130_v47 = vld [vmem:[%s10708_s1 + $0x1840] ss:$16 sps:$4 sm:$0xff]   ;;  %v8133_v48 = vld [vmem:[%s10708_s1 + $0x1848] ss:$16 sps:$4 sm:$0xff]  }
 0x2cf   :  { %5396 = vmatpush1.bf16.msra.mxu0 %v8038_v49  ;;  %5929 = vmatpush1.bf16.msra.mxu1 %v8041_v50  ;;  %v8138_v49 = vld [vmem:[%s10708_s1 + $0x1864] ss:$16 sps:$4 sm:$0xff]   ;;  %v8141_v50 = vld [vmem:[%s10708_s1 + $0x186c] ss:$16 sps:$4 sm:$0xff]  }
 0x2d0   :  { %5397 = vmatprep.subr.bf16.mxu0 %v8046_v51  ;;  %5930 = vmatprep.subr.bf16.mxu1 %v8049_v52  ;;  %v8136_v51 = vld [vmem:[%s10708_s1 + $0x1860] ss:$16 sps:$4 sm:$0xff]   ;;  %v8139_v52 = vld [vmem:[%s10708_s1 + $0x1868] ss:$16 sps:$4 sm:$0xff]  }
 0x2d3   :  { %5398 = vmatpush1.bf16.msra.mxu0 %v8044_v53  ;;  %5931 = vmatpush1.bf16.msra.mxu1 %v8047_v54  ;;  %v8144_v53 = vld [vmem:[%s10708_s1 + $0x1884] ss:$16 sps:$4 sm:$0xff]   ;;  %v8147_v54 = vld [vmem:[%s10708_s1 + $0x188c] ss:$16 sps:$4 sm:$0xff]  }
 0x2d4   :  { %5399 = vmatprep.subr.bf16.mxu0 %v8052_v55  ;;  %5932 = vmatprep.subr.bf16.mxu1 %v8055_v56  ;;  %v8142_v55 = vld [vmem:[%s10708_s1 + $0x1880] ss:$16 sps:$4 sm:$0xff]   ;;  %v8145_v56 = vld [vmem:[%s10708_s1 + $0x1888] ss:$16 sps:$4 sm:$0xff]  }
 0x2d7   :  { %5400 = vmatpush1.bf16.msra.mxu0 %v8050_v57  ;;  %5933 = vmatpush1.bf16.msra.mxu1 %v8053_v58  ;;  %v8150_v57 = vld [vmem:[%s10708_s1 + $0x18a4] ss:$16 sps:$4 sm:$0xff]   ;;  %v8153_v58 = vld [vmem:[%s10708_s1 + $0x18ac] ss:$16 sps:$4 sm:$0xff]  }
 0x2d8   :  { %5401 = vmatprep.subr.bf16.mxu0 %v8058_v59  ;;  %5934 = vmatprep.subr.bf16.mxu1 %v8061_v60  ;;  %v8148_v59 = vld [vmem:[%s10708_s1 + $0x18a0] ss:$16 sps:$4 sm:$0xff]   ;;  %v8151_v60 = vld [vmem:[%s10708_s1 + $0x18a8] ss:$16 sps:$4 sm:$0xff]  }
 0x2db   :  { %5402 = vmatpush1.bf16.msra.mxu0 %v8056_v61  ;;  %5935 = vmatpush1.bf16.msra.mxu1 %v8059_v62  ;;  %v8156_v61 = vld [vmem:[%s10708_s1 + $0x18c4] ss:$16 sps:$4 sm:$0xff]   ;;  %v8159_v62 = vld [vmem:[%s10708_s1 + $0x18cc] ss:$16 sps:$4 sm:$0xff]  }
 0x2dc   :  { %5403 = vmatprep.subr.bf16.mxu0 %v8064_v63  ;;  %5936 = vmatprep.subr.bf16.mxu1 %v8067_v0  ;;  %v8154_v63 = vld [vmem:[%s10708_s1 + $0x18c0] ss:$16 sps:$4 sm:$0xff]   ;;  %v8157_v0 = vld [vmem:[%s10708_s1 + $0x18c8] ss:$16 sps:$4 sm:$0xff]  }
 0x2df   :  { %5404 = vmatpush1.bf16.msra.mxu0 %v8062_v1  ;;  %5937 = vmatpush1.bf16.msra.mxu1 %v8065_v2  ;;  %v8162_v1 = vld [vmem:[%s10708_s1 + $0x18e4] ss:$16 sps:$4 sm:$0xff]   ;;  %v8165_v2 = vld [vmem:[%s10708_s1 + $0x18ec] ss:$16 sps:$4 sm:$0xff]  }
 0x2e0   :  { %5405 = vmatprep.subr.bf16.mxu0 %v8070_v3  ;;  %5938 = vmatprep.subr.bf16.mxu1 %v8073_v4  ;;  %v8160_v3 = vld [vmem:[%s10708_s1 + $0x18e0] ss:$16 sps:$4 sm:$0xff]   ;;  %v8163_v4 = vld [vmem:[%s10708_s1 + $0x18e8] ss:$16 sps:$4 sm:$0xff]  }
 0x2e3   :  { %5406 = vmatpush1.bf16.msra.mxu0 %v8068_v5  ;;  %5939 = vmatpush1.bf16.msra.mxu1 %v8071_v6  ;;  %v8166_v5 = vld [vmem:[%s10709_s0 + $0x60] ss:$0 sps:$4 sm:$0xff]   ;;  %v830_v6 = vlaneseq }
 0x2e4   :  { %5407 = vmatprep.subr.bf16.mxu0 %v8076_v7  ;;  %5940 = vmatprep.subr.bf16.mxu1 %v8079_v8 }
 0x2e5   :  { %v831_v7 = vshrl.u32 %v830_v6, 7 }
 0x2e7   :  { %5408 = vmatpush1.bf16.msra.mxu0 %v8074_v9  ;;  %5941 = vmatpush1.bf16.msra.mxu1 %v8077_v10  ;;  %v832_v8 = vsub.s32 0, %v831_v7  ;;  %v840_v9 = vsub.s32 2, %v831_v7  ;;  %v828_v10 = vld [vmem:[%s10710_s2] sm:$0xf] }
 0x2e8   :  { %5409 = vmatprep.subr.bf16.mxu0 %v8082_v12  ;;  %5942 = vmatprep.subr.bf16.mxu1 %v8085_v13  ;;  %v836_v12 = vsub.s32 1, %v831_v7  ;;  %v844_v13 = vsub.s32 3, %v831_v7 }
 0x2eb   :  { %5410 = vmatpush1.bf16.msra.mxu0 %v8080_v15  ;;  %5943 = vmatpush1.bf16.msra.mxu1 %v8083_v11  ;;  %v833_v15 = vrot.slane %v828_v10, %v832_v8  ;;  %v841_v11 = vrot.slane %v828_v10, %v840_v9 }
 0x2ec   :  { %5411 = vmatprep.subr.bf16.mxu0 %v8088_v17  ;;  %5944 = vmatprep.subr.bf16.mxu1 %v8091_v14  ;;  %v837_v17 = vrot.slane %v828_v10, %v836_v12  ;;  %v845_v14 = vrot.slane %v828_v10, %v844_v13 }
 0x2ef   :  { %5412 = vmatpush1.bf16.msra.mxu0 %v8086_v19  ;;  %5945 = vmatpush1.bf16.msra.mxu1 %v8089_v20 }
 0x2f0   :  { %5413 = vmatprep.subr.bf16.mxu0 %v8094_v16  ;;  %5946 = vmatprep.subr.bf16.mxu1 %v8097_v22 }
 0x2f3   :  { %5414 = vmatpush1.bf16.msra.mxu0 %v8092_v23  ;;  %5947 = vmatpush1.bf16.msra.mxu1 %v8095_v18 }
 0x2f4   :  { %5415 = vmatprep.subr.bf16.mxu0 %v8100_v25  ;;  %5948 = vmatprep.subr.bf16.mxu1 %v8103_v26 }
 0x2f7   :  { %5416 = vmatpush1.bf16.msra.mxu0 %v8098_v27  ;;  %5949 = vmatpush1.bf16.msra.mxu1 %v8101_v28 }
 0x2f8   :  { %5417 = vmatprep.subr.bf16.mxu0 %v8106_v29  ;;  %5950 = vmatprep.subr.bf16.mxu1 %v8109_v24 }
 0x2fb   :  { %5418 = vmatpush1.bf16.msra.mxu0 %v8104_v31  ;;  %5951 = vmatpush1.bf16.msra.mxu1 %v8107_v32 }
 0x2fc   :  { %5419 = vmatprep.subr.bf16.mxu0 %v8112_v21  ;;  %5952 = vmatprep.subr.bf16.mxu1 %v8115_v34 }
 0x2ff   :  { %5420 = vmatpush1.bf16.msra.mxu0 %v8110_v35  ;;  %5953 = vmatpush1.bf16.msra.mxu1 %v8113_v30 }
 0x300   :  { %5430 = vmatprep.subr.bf16.mxu0 %v8120_v37  ;;  %5963 = vmatprep.subr.bf16.mxu1 %v8123_v38 }
 0x302   :  { %5422 = vmatmul.mubr.bf16.vlgmr.msra.gmra.mrb[0].mxu0 %v6038_v33  ;;  %5955 = vmatmul.mubr.bf16.vlgmr.msra.gmra.mrb[0].mxu1 %v6038_v33 }
 0x303   :  { %5431 = vmatpush1.bf16.msra.mxu0 %v8118_v39  ;;  %5964 = vmatpush1.bf16.msra.mxu1 %v8121_v40 }
 0x304   :  { %5432 = vmatprep.subr.bf16.mxu0 %v8126_v41  ;;  %5965 = vmatprep.subr.bf16.mxu1 %v8129_v36 }
 0x305   :  { %5462 = vmatprep.mubr.bf16.mxu0 %v8167_v46  ;;  %5995 = vmatprep.mubr.bf16.mxu1 %v8167_v46 }
 0x307   :  { %5433 = vmatpush1.bf16.msra.mxu0 %v8124_v42  ;;  %5966 = vmatpush1.bf16.msra.mxu1 %v8127_v43 }
 0x308   :  { %5434 = vmatprep.subr.bf16.mxu0 %v8132_v44  ;;  %5967 = vmatprep.subr.bf16.mxu1 %v8135_v45 }
 0x30b   :  { %5435 = vmatpush1.bf16.msra.mxu0 %v8130_v47  ;;  %5968 = vmatpush1.bf16.msra.mxu1 %v8133_v48 }
 0x30c   :  { %5436 = vmatprep.subr.bf16.mxu0 %v8138_v49  ;;  %5969 = vmatprep.subr.bf16.mxu1 %v8141_v50 }
 0x30f   :  { %5437 = vmatpush1.bf16.msra.mxu0 %v8136_v51  ;;  %5970 = vmatpush1.bf16.msra.mxu1 %v8139_v52 }
 0x310   :  { %5438 = vmatprep.subr.bf16.mxu0 %v8144_v53  ;;  %5971 = vmatprep.subr.bf16.mxu1 %v8147_v54 }
 0x313   :  { %5439 = vmatpush1.bf16.msra.mxu0 %v8142_v55  ;;  %5972 = vmatpush1.bf16.msra.mxu1 %v8145_v56 }
 0x314   :  { %5440 = vmatprep.subr.bf16.mxu0 %v8150_v57  ;;  %5973 = vmatprep.subr.bf16.mxu1 %v8153_v58 }
 0x317   :  { %5441 = vmatpush1.bf16.msra.mxu0 %v8148_v59  ;;  %5974 = vmatpush1.bf16.msra.mxu1 %v8151_v60 }
 0x318   :  { %5442 = vmatprep.subr.bf16.mxu0 %v8156_v61  ;;  %5975 = vmatprep.subr.bf16.mxu1 %v8159_v62 }
 0x31b   :  { %5443 = vmatpush1.bf16.msra.mxu0 %v8154_v63  ;;  %5976 = vmatpush1.bf16.msra.mxu1 %v8157_v0 }
 0x31c   :  { %5444 = vmatprep.subr.bf16.mxu0 %v8162_v1  ;;  %5977 = vmatprep.subr.bf16.mxu1 %v8165_v2 }
 0x31f   :  { %5445 = vmatpush1.bf16.msra.mxu0 %v8160_v3  ;;  %5978 = vmatpush1.bf16.msra.mxu1 %v8163_v4 }
 0x322   :  { %5463 = vmatmul.mubr.bf16.vlgmr.msra.gmra.mrb[0].mxu0 %v8166_v5  ;;  %5996 = vmatmul.mubr.bf16.vlgmr.msra.gmra.mrb[0].mxu1 %v8166_v5 }
 0x3f5   :  { %v5464_v19 = vpop.f32.mrb[0].mxu0  ;;  %v5997_v20 = vpop.f32.mrb[0].mxu1 }
 0x3f6   :  { %v6841_v16 = vadd.f32 %v5464_v19, %v833_v15  ;;  %v6843_v22 = vadd.f32 %v5997_v20, %v841_v11  ;;  %v5466_v23 = vpop.f32.mrb[1].mxu0  ;;  %v5999_v18 = vpop.f32.mrb[1].mxu1 }
 0x3f7   :  { %v6842_v25 = vadd.f32 %v5466_v23, %v837_v17  ;;  %v6844_v26 = vadd.f32 %v5999_v18, %v845_v14  ;;  %v5468_v27 = vpop.f32.mrb[2].mxu0  ;;  %v6001_v28 = vpop.f32.mrb[2].mxu1 }
 0x3f8   :  { %v6004_v29 = vmax.f32 %v6841_v16, 0.0  ;;  %v6006_v24 = vmax.f32 %v6843_v22, 0.0  ;;  %v5469_v31 = vpop.f32.mrb[3].mxu0  ;;  %v6002_v32 = vpop.f32.mrb[3].mxu1 }
 0x3f9   :  { %v6005_v21 = vmax.f32 %v6842_v25, 0.0  ;;  %v6007_v34 = vmax.f32 %v6844_v26, 0.0 }
 0x3fa   :  { %6008 = vst [vmem:[%s10711_s3] sm:$0xff] %v6004_v29  ;;  %6010 = vst [vmem:[%s10711_s3 + $0x10] sm:$0xff] %v6006_v24 }
 0x3fb   :  { %6009 = vst [vmem:[%s10711_s3 + $0x8] sm:$0xff] %v6005_v21  ;;  %6011 = vst [vmem:[%s10711_s3 + $0x18] sm:$0xff] %v6007_v34 }

</bundles_post_ra>
